<compile_context>
chip_gen: v7x
topology: tpu7x:2x2x1
jax: 0.10.0
libtpu: 0.0.40
codegen_flags: <defaults>
</compile_context>

<pallas_src>
import math

import jax
import jax.numpy as jnp
import numpy as np
from jax.experimental import pallas as pl
from jax.experimental.pallas import tpu as pltpu

NEG_SLOPE = 0.1  # nn.LeakyReLU(0.1)


# ------------------------------ layout helpers --------------------------------
# Activations travel between kernels as (C, B, H, W) f32.  For the conv kernels
# they are flattened to a "padded-flat" matrix (C, B*Hp*Wp + 2*slack), pixels in
# the lane dim.  A spatial tap shift (kh, kw) then becomes the static lane offset
# kh*Wp + kw, so the whole k*k im2col panel is just k*k static lane slices of one
# VMEM-resident activation.

def _to_flat(x, p, slack):
    """(C, B, H, W) f32 -> (C, B*Hp*Wp + 2*slack) bf16, spatially zero-padded by p."""
    C, B, H, W = x.shape
    xp = jnp.pad(x, ((0, 0), (0, 0), (p, p), (p, p)))
    flat = xp.reshape(C, B * (H + 2 * p) * (W + 2 * p))
    if slack:
        flat = jnp.pad(flat, ((0, 0), (slack, slack)))
    return flat.astype(jnp.bfloat16)


def _from_flat(y, B, H, W, p):
    """(C, B*Hp*Wp) -> (C, B, H, W) (drop the spatial padding)."""
    C = y.shape[0]
    Hp, Wp = H + 2 * p, W + 2 * p
    return y.reshape(C, B, Hp, Wp)[:, :, p:p + H, p:p + W]


def _valid_mask(B, H, W, p, slack):
    """(1, B*Hp*Wp + 2*slack) f32 mask: 1 at real pixels, 0 at padding / slack."""
    Hp, Wp = H + 2 * p, W + 2 * p
    m = np.zeros((B, Hp, Wp), np.float32)
    m[:, p:p + H, p:p + W] = 1.0
    m = np.pad(m.reshape(-1), (slack, slack))
    return jnp.asarray(m).reshape(1, -1)


def _fold_w(w):
    """(T, Cout, Cin) f32 -> (Cout, T*Cin) bf16, contraction index ordered (tap, cin)."""
    T, Co, Ci = w.shape
    return jnp.transpose(w, (1, 0, 2)).reshape(Co, T * Ci).astype(jnp.bfloat16)


def _full_block(shape):
    nd = len(shape)
    return pl.BlockSpec(shape, lambda *_: (0,) * nd)


# ------------------------- fused conv-chain Pallas kernel ----------------------

def conv_chain(x, stages, *, k):
    """Run a chain of stride-1 'same' k x k convolutions at one resolution as ONE
    Pallas kernel.  x: (Cin, B, H, W) f32.  Each stage dict:
        w       (k*k, Cout, Cin) f32 weights, taps ordered (kh, kw)
        b       (Cout,) f32 or None
        leaky   apply LeakyReLU(0.1) (default True)
        extra   optional (Ce, B, H, W) f32 tensor channel-concatenated (after the
                main path) into this stage's input
        w_extra (k*k, Cout, Ce) f32 weights for those extra channels
    Returns (Cout_last, B, H, W) f32."""
    p = k // 2
    _, B, H, W = x.shape
    Hp, Wp = H + 2 * p, W + 2 * p
    Nflat = B * Hp * Wp
    S = p * Wp + p                       # max |flat shift| of a filter tap
    n = len(stages)
    T = k * k
    offs = tuple(kh * Wp + kw for kh in range(k) for kw in range(k))
    # stage j output length (earlier stages carry extra slack for later taps)
    L_out = [Nflat + 2 * (n - 1 - j) * S for j in range(n)]

    operands = [_to_flat(x, p, n * S)]
    scratch = []
    meta = []
    for j, st in enumerate(stages):
        w = st['w']
        Co, Ci = int(w.shape[1]), int(w.shape[2])
        has_extra = st.get('extra') is not None
        has_bias = st.get('b') is not None
        ce = int(st['w_extra'].shape[2]) if has_extra else 0
        meta.append(dict(cout=Co, cin=Ci, cin_extra=ce, has_bias=has_bias,
                         has_extra=has_extra, leaky=st.get('leaky', True),
                         n_out=L_out[j]))
        operands.append(_fold_w(w))
        scratch.append(pltpu.VMEM((T * Ci, L_out[j]), jnp.bfloat16))
        if has_extra:
            operands.append(_to_flat(st['extra'], p, (n - j) * S))
            operands.append(_fold_w(st['w_extra']))
            scratch.append(pltpu.VMEM((T * ce, L_out[j]), jnp.bfloat16))
        if has_bias:
            operands.append(st['b'].astype(jnp.float32).reshape(Co, 1))
        if j < n - 1:
            operands.append(_valid_mask(B, H, W, p, (n - 1 - j) * S))

    n_ops = len(operands)
    co_last = meta[-1]['cout']

    def kernel(*refs):
        out_ref = refs[n_ops]
        scr = refs[n_ops + 1:]
        ridx = 1                     # refs[0] is the flattened chain input
        sidx = 0
        cur = refs[0]                # Ref for stage 0, bf16 value afterwards
        for j, m in enumerate(meta):
            N, Ci = m['n_out'], m['cin']
            w_ref = refs[ridx]; ridx += 1
            panel = scr[sidx]; sidx += 1
            # Build the im2col panel (T*Cin, N) in VMEM: one static lane slice per tap.
            for t, off in enumerate(offs):
                panel[t * Ci:(t + 1) * Ci, :] = cur[:, off:off + N]
            acc = jnp.dot(w_ref[...], panel[...],
                          preferred_element_type=jnp.float32)          # (Cout, N) f32
            if m['has_extra']:       # channel-concat folded in as a second matmul
                Ce = m['cin_extra']
                e_ref = refs[ridx]; ridx += 1
                we_ref = refs[ridx]; ridx += 1
                panel_e = scr[sidx]; sidx += 1
                for t, off in enumerate(offs):
                    panel_e[t * Ce:(t + 1) * Ce, :] = e_ref[:, off:off + N]
                acc = acc + jnp.dot(we_ref[...], panel_e[...],
                                    preferred_element_type=jnp.float32)
            if m['has_bias']:
                b_ref = refs[ridx]; ridx += 1
                acc = acc + b_ref[...]
            if m['leaky']:
                acc = jnp.where(acc >= 0, acc, NEG_SLOPE * acc)
            if j < n - 1:
                mask_ref = refs[ridx]; ridx += 1
                # zero padding/garbage lanes so they act as the next conv's zero pad
                cur = (acc * mask_ref[...]).astype(jnp.bfloat16)
            else:
                out_ref[...] = acc

    out = pl.pallas_call(
        kernel,
        out_shape=jax.ShapeDtypeStruct((co_last, Nflat), jnp.float32),
        grid=(1,),
        in_specs=[_full_block(op.shape) for op in operands],
        out_specs=_full_block((co_last, Nflat)),
        scratch_shapes=scratch,
        compiler_params=pltpu.CompilerParams(dimension_semantics=("arbitrary",)),
    )(*operands)
    return _from_flat(out, B, H, W, p)


# ------------------------------- XLA glue ops ----------------------------------

def maxpool2(x):                      # nn.MaxPool2d(2, 2) on (C, B, H, W)
    C, B, H, W = x.shape
    return x.reshape(C, B, H // 2, 2, W // 2, 2).max(axis=(3, 5))


def _lin_idx_w(n_in):
    # PyTorch upsample_bilinear2d, align_corners=False, scale_factor=2
    i = jnp.arange(2 * n_in, dtype=jnp.float32)
    src = jnp.maximum((i + 0.5) * 0.5 - 0.5, 0.0)
    i0 = jnp.floor(src).astype(jnp.int32)
    i1 = jnp.minimum(i0 + 1, n_in - 1)
    w1 = src - i0.astype(jnp.float32)
    return i0, i1, 1.0 - w1, w1


def upsample_bilinear_2x(x):          # nn.Upsample(scale_factor=2, 'bilinear') on (C, B, H, W)
    C, B, H, W = x.shape
    i0, i1, w0, w1 = _lin_idx_w(H)
    x = x[:, :, i0, :] * w0[None, None, :, None] + x[:, :, i1, :] * w1[None, None, :, None]
    j0, j1, v0, v1 = _lin_idx_w(W)
    x = x[:, :, :, j0] * v0[None, None, None, :] + x[:, :, :, j1] * v1[None, None, None, :]
    return x


# -------------------------------- parameters -----------------------------------

_LIVE_LAYERS = {
    # name: (cin, cout, kernel, has_bias)   -- chanells = 16 in the torch module
    'conv1_en0': (2, 16, 5, True),
    'conv1_en1': (16, 16, 5, True),
    'conv1_en2': (16, 16, 5, True),
    'conv2_en0': (16, 32, 5, True),
    'conv2_en1': (32, 32, 5, True),
    'conv2_en2': (32, 32, 5, True),
    'conv2_en3': (32, 32, 5, True),
    'conv2_de': (32, 16, 3, False),
    'conv2_sc': (32, 16, 3, False),
    'conv3_de': (16, 2, 3, False),
}
# conv3_en0..3, conv1_de, conv1_sc, conv3_sc and the *_conf layers never influence
# the module's returned tensor (dead code in the torch forward) -> not instantiated.


def init_params(key):
    """PyTorch-like uniform(-1/sqrt(fan_in), 1/sqrt(fan_in)) init.
    Weight layout: (k*k, Cout, Cin), taps ordered (kh, kw)."""
    params = {}
    for name, (cin, cout, k, has_bias) in _LIVE_LAYERS.items():
        key, kw, kb = jax.random.split(key, 3)
        bound = 1.0 / math.sqrt(cin * k * k)
        params[name + '_w'] = jax.random.uniform(
            kw, (k * k, cout, cin), jnp.float32, -bound, bound)
        if has_bias:
            params[name + '_b'] = jax.random.uniform(
                kb, (cout,), jnp.float32, -bound, bound)
    return params


# ---------------------------------- forward ------------------------------------

@jax.jit
def net_forward(params, x_nchw):
    x = jnp.transpose(x_nchw, (1, 0, 2, 3)).astype(jnp.float32)        # (C, B, H, W)

    # --- encoder, 16x16 --- (pad 2 input channels to 16 so bf16 panel rows stay
    # tile aligned; the extra channels / weights are zero)
    x_in = jnp.pad(x, ((0, 14), (0, 0), (0, 0), (0, 0)))
    w0 = jnp.pad(params['conv1_en0_w'], ((0, 0), (0, 0), (0, 14)))
    y = conv_chain(x_in, [dict(w=w0, b=params['conv1_en0_b'])], k=5)
    y = maxpool2(y)                                                     # (16, B, 8, 8)

    # --- encoder, 8x8: conv1_en1 -> conv1_en2 fused in one kernel ---
    x1 = conv_chain(y, [dict(w=params['conv1_en1_w'], b=params['conv1_en1_b']),
                        dict(w=params['conv1_en2_w'], b=params['conv1_en2_b'])], k=5)

    y = conv_chain(x1, [dict(w=params['conv2_en0_w'], b=params['conv2_en0_b'])], k=5)
    y = maxpool2(y)                                                     # (32, B, 4, 4)

    # --- encoder, 4x4: conv2_en1 -> conv2_en2 -> conv2_en3 fused ---
    x2 = conv_chain(y, [dict(w=params['conv2_en1_w'], b=params['conv2_en1_b']),
                        dict(w=params['conv2_en2_w'], b=params['conv2_en2_b']),
                        dict(w=params['conv2_en3_w'], b=params['conv2_en3_b'])], k=5)

    # conv3_en0..3 / upsample(x3) / conv1_de / cat / conv1_sc are dead in the torch
    # forward (result overwritten before use) -> physically removed.

    # --- decoder, 8x8: conv2_de -> cat([., x1]) -> conv2_sc fused in one kernel ---
    w_sc = params['conv2_sc_w']          # in-channels: [0:16]=conv2_de out, [16:32]=x1
    u = upsample_bilinear_2x(x2)                                        # (32, B, 8, 8)
    y = conv_chain(u, [dict(w=params['conv2_de_w'], b=None),
                       dict(w=w_sc[:, :, :16], b=None,
                            extra=x1, w_extra=w_sc[:, :, 16:])], k=3)

    # --- output head, 16x16: conv3_de, no bias, no activation ---
    y = upsample_bilinear_2x(y)                                         # (16, B, 16, 16)
    # torch builds x_inp_cat = cat([x, input], 1) but never uses it.
    out = conv_chain(y, [dict(w=params['conv3_de_w'], b=None, leaky=False)], k=3)
    return jnp.transpose(out, (1, 0, 2, 3))                             # NCHW (B, 2, H, W)


if __name__ == "__main__":
    key = jax.random.PRNGKey(0)
    pkey, xkey = jax.random.split(key)
    params = init_params(pkey)
    # NCHW, 2 input channels as required by conv1_en0.
    x = jax.random.normal(xkey, (2, 2, 16, 16), jnp.float32)
    y = net_forward(params, x)
    jax.block_until_ready(y)
    assert y.shape == (2, 2, 16, 16) and y.dtype == jnp.float32
    assert bool(jnp.all(jnp.isfinite(y)))
    print("KERNEL_OK")
</pallas_src>

<mosaic_0001>
module attributes {stable_mosaic.version = 11 : i64} {
  func.func @kernel(%arg0: i32, %arg1: memref<16x884xbf16, #tpu.memory_space<vmem>>, %arg2: memref<16x400xbf16, #tpu.memory_space<vmem>>, %arg3: memref<16x1xf32, #tpu.memory_space<vmem>>, %arg4: memref<16x800xf32, #tpu.memory_space<vmem>>, %arg5: memref<400x800xbf16, #tpu.memory_space<vmem>>) attributes {dimension_semantics = [#tpu.dimension_semantics<arbitrary>], iteration_bounds = array<i64: 1>, scalar_prefetch = 0 : i64, scratch_operands = 1 : i64, tpu.core_type = #tpu.core_type<tc>, window_params = [{pipeline_mode = #tpu.pipeline_mode<synchronous>, transform_indices = @transform_0, window_bounds = array<i64: 16, 884>}, {pipeline_mode = #tpu.pipeline_mode<synchronous>, transform_indices = @transform_1, window_bounds = array<i64: 16, 400>}, {pipeline_mode = #tpu.pipeline_mode<synchronous>, transform_indices = @transform_2, window_bounds = array<i64: 16, 1>}, {pipeline_mode = #tpu.pipeline_mode<synchronous>, transform_indices = @transform_3, window_bounds = array<i64: 16, 800>}]} {
    %c0 = arith.constant 0 : index
    %c0_0 = arith.constant 0 : index
    %0 = vector.load %arg1[%c0, %c0_0] : memref<16x884xbf16, #tpu.memory_space<vmem>>, vector<16x800xbf16>
    %c0_1 = arith.constant 0 : index
    %c0_2 = arith.constant 0 : index
    %1 = vector.load %arg5[%c0_1, %c0_2] : memref<400x800xbf16, #tpu.memory_space<vmem>>, vector<16x800xbf16>
    tpu.vector_store %arg5[%c0_1, %c0_2], %0 {strides = array<i32>} : memref<400x800xbf16, #tpu.memory_space<vmem>>, vector<16x800xbf16>,
    %c0_3 = arith.constant 0 : index
    %c1 = arith.constant 1 : index
    %2 = vector.load %arg1[%c0_3, %c1] : memref<16x884xbf16, #tpu.memory_space<vmem>>, vector<16x800xbf16>
    %c16 = arith.constant 16 : index
    %c0_4 = arith.constant 0 : index
    %3 = vector.load %arg5[%c16, %c0_4] : memref<400x800xbf16, #tpu.memory_space<vmem>>, vector<16x800xbf16>
    tpu.vector_store %arg5[%c16, %c0_4], %2 {strides = array<i32>} : memref<400x800xbf16, #tpu.memory_space<vmem>>, vector<16x800xbf16>,
    %c0_5 = arith.constant 0 : index
    %c2 = arith.constant 2 : index
    %4 = vector.load %arg1[%c0_5, %c2] : memref<16x884xbf16, #tpu.memory_space<vmem>>, vector<16x800xbf16>
    %c32 = arith.constant 32 : index
    %c0_6 = arith.constant 0 : index
    %5 = vector.load %arg5[%c32, %c0_6] : memref<400x800xbf16, #tpu.memory_space<vmem>>, vector<16x800xbf16>
    tpu.vector_store %arg5[%c32, %c0_6], %4 {strides = array<i32>} : memref<400x800xbf16, #tpu.memory_space<vmem>>, vector<16x800xbf16>,
    %c0_7 = arith.constant 0 : index
    %c3 = arith.constant 3 : index
    %6 = vector.load %arg1[%c0_7, %c3] : memref<16x884xbf16, #tpu.memory_space<vmem>>, vector<16x800xbf16>
    %c48 = arith.constant 48 : index
    %c0_8 = arith.constant 0 : index
    %7 = vector.load %arg5[%c48, %c0_8] : memref<400x800xbf16, #tpu.memory_space<vmem>>, vector<16x800xbf16>
    tpu.vector_store %arg5[%c48, %c0_8], %6 {strides = array<i32>} : memref<400x800xbf16, #tpu.memory_space<vmem>>, vector<16x800xbf16>,
    %c0_9 = arith.constant 0 : index
    %c4 = arith.constant 4 : index
    %8 = vector.load %arg1[%c0_9, %c4] : memref<16x884xbf16, #tpu.memory_space<vmem>>, vector<16x800xbf16>
    %c64 = arith.constant 64 : index
    %c0_10 = arith.constant 0 : index
    %9 = vector.load %arg5[%c64, %c0_10] : memref<400x800xbf16, #tpu.memory_space<vmem>>, vector<16x800xbf16>
    tpu.vector_store %arg5[%c64, %c0_10], %8 {strides = array<i32>} : memref<400x800xbf16, #tpu.memory_space<vmem>>, vector<16x800xbf16>,
    %c0_11 = arith.constant 0 : index
    %c20 = arith.constant 20 : index
    %10 = vector.load %arg1[%c0_11, %c20] : memref<16x884xbf16, #tpu.memory_space<vmem>>, vector<16x800xbf16>
    %c80 = arith.constant 80 : index
    %c0_12 = arith.constant 0 : index
    %11 = vector.load %arg5[%c80, %c0_12] : memref<400x800xbf16, #tpu.memory_space<vmem>>, vector<16x800xbf16>
    tpu.vector_store %arg5[%c80, %c0_12], %10 {strides = array<i32>} : memref<400x800xbf16, #tpu.memory_space<vmem>>, vector<16x800xbf16>,
    %c0_13 = arith.constant 0 : index
    %c21 = arith.constant 21 : index
    %12 = vector.load %arg1[%c0_13, %c21] : memref<16x884xbf16, #tpu.memory_space<vmem>>, vector<16x800xbf16>
    %c96 = arith.constant 96 : index
    %c0_14 = arith.constant 0 : index
    %13 = vector.load %arg5[%c96, %c0_14] : memref<400x800xbf16, #tpu.memory_space<vmem>>, vector<16x800xbf16>
    tpu.vector_store %arg5[%c96, %c0_14], %12 {strides = array<i32>} : memref<400x800xbf16, #tpu.memory_space<vmem>>, vector<16x800xbf16>,
    %c0_15 = arith.constant 0 : index
    %c22 = arith.constant 22 : index
    %14 = vector.load %arg1[%c0_15, %c22] : memref<16x884xbf16, #tpu.memory_space<vmem>>, vector<16x800xbf16>
    %c112 = arith.constant 112 : index
    %c0_16 = arith.constant 0 : index
    %15 = vector.load %arg5[%c112, %c0_16] : memref<400x800xbf16, #tpu.memory_space<vmem>>, vector<16x800xbf16>
    tpu.vector_store %arg5[%c112, %c0_16], %14 {strides = array<i32>} : memref<400x800xbf16, #tpu.memory_space<vmem>>, vector<16x800xbf16>,
    %c0_17 = arith.constant 0 : index
    %c23 = arith.constant 23 : index
    %16 = vector.load %arg1[%c0_17, %c23] : memref<16x884xbf16, #tpu.memory_space<vmem>>, vector<16x800xbf16>
    %c128 = arith.constant 128 : index
    %c0_18 = arith.constant 0 : index
    %17 = vector.load %arg5[%c128, %c0_18] : memref<400x800xbf16, #tpu.memory_space<vmem>>, vector<16x800xbf16>
    tpu.vector_store %arg5[%c128, %c0_18], %16 {strides = array<i32>} : memref<400x800xbf16, #tpu.memory_space<vmem>>, vector<16x800xbf16>,
    %c0_19 = arith.constant 0 : index
    %c24 = arith.constant 24 : index
    %18 = vector.load %arg1[%c0_19, %c24] : memref<16x884xbf16, #tpu.memory_space<vmem>>, vector<16x800xbf16>
    %c144 = arith.constant 144 : index
    %c0_20 = arith.constant 0 : index
    %19 = vector.load %arg5[%c144, %c0_20] : memref<400x800xbf16, #tpu.memory_space<vmem>>, vector<16x800xbf16>
    tpu.vector_store %arg5[%c144, %c0_20], %18 {strides = array<i32>} : memref<400x800xbf16, #tpu.memory_space<vmem>>, vector<16x800xbf16>,
    %c0_21 = arith.constant 0 : index
    %c40 = arith.constant 40 : index
    %20 = vector.load %arg1[%c0_21, %c40] : memref<16x884xbf16, #tpu.memory_space<vmem>>, vector<16x800xbf16>
    %c160 = arith.constant 160 : index
    %c0_22 = arith.constant 0 : index
    %21 = vector.load %arg5[%c160, %c0_22] : memref<400x800xbf16, #tpu.memory_space<vmem>>, vector<16x800xbf16>
    tpu.vector_store %arg5[%c160, %c0_22], %20 {strides = array<i32>} : memref<400x800xbf16, #tpu.memory_space<vmem>>, vector<16x800xbf16>,
    %c0_23 = arith.constant 0 : index
    %c41 = arith.constant 41 : index
    %22 = vector.load %arg1[%c0_23, %c41] : memref<16x884xbf16, #tpu.memory_space<vmem>>, vector<16x800xbf16>
    %c176 = arith.constant 176 : index
    %c0_24 = arith.constant 0 : index
    %23 = vector.load %arg5[%c176, %c0_24] : memref<400x800xbf16, #tpu.memory_space<vmem>>, vector<16x800xbf16>
    tpu.vector_store %arg5[%c176, %c0_24], %22 {strides = array<i32>} : memref<400x800xbf16, #tpu.memory_space<vmem>>, vector<16x800xbf16>,
    %c0_25 = arith.constant 0 : index
    %c42 = arith.constant 42 : index
    %24 = vector.load %arg1[%c0_25, %c42] : memref<16x884xbf16, #tpu.memory_space<vmem>>, vector<16x800xbf16>
    %c192 = arith.constant 192 : index
    %c0_26 = arith.constant 0 : index
    %25 = vector.load %arg5[%c192, %c0_26] : memref<400x800xbf16, #tpu.memory_space<vmem>>, vector<16x800xbf16>
    tpu.vector_store %arg5[%c192, %c0_26], %24 {strides = array<i32>} : memref<400x800xbf16, #tpu.memory_space<vmem>>, vector<16x800xbf16>,
    %c0_27 = arith.constant 0 : index
    %c43 = arith.constant 43 : index
    %26 = vector.load %arg1[%c0_27, %c43] : memref<16x884xbf16, #tpu.memory_space<vmem>>, vector<16x800xbf16>
    %c208 = arith.constant 208 : index
    %c0_28 = arith.constant 0 : index
    %27 = vector.load %arg5[%c208, %c0_28] : memref<400x800xbf16, #tpu.memory_space<vmem>>, vector<16x800xbf16>
    tpu.vector_store %arg5[%c208, %c0_28], %26 {strides = array<i32>} : memref<400x800xbf16, #tpu.memory_space<vmem>>, vector<16x800xbf16>,
    %c0_29 = arith.constant 0 : index
    %c44 = arith.constant 44 : index
    %28 = vector.load %arg1[%c0_29, %c44] : memref<16x884xbf16, #tpu.memory_space<vmem>>, vector<16x800xbf16>
    %c224 = arith.constant 224 : index
    %c0_30 = arith.constant 0 : index
    %29 = vector.load %arg5[%c224, %c0_30] : memref<400x800xbf16, #tpu.memory_space<vmem>>, vector<16x800xbf16>
    tpu.vector_store %arg5[%c224, %c0_30], %28 {strides = array<i32>} : memref<400x800xbf16, #tpu.memory_space<vmem>>, vector<16x800xbf16>,
    %c0_31 = arith.constant 0 : index
    %c60 = arith.constant 60 : index
    %30 = vector.load %arg1[%c0_31, %c60] : memref<16x884xbf16, #tpu.memory_space<vmem>>, vector<16x800xbf16>
    %c240 = arith.constant 240 : index
    %c0_32 = arith.constant 0 : index
    %31 = vector.load %arg5[%c240, %c0_32] : memref<400x800xbf16, #tpu.memory_space<vmem>>, vector<16x800xbf16>
    tpu.vector_store %arg5[%c240, %c0_32], %30 {strides = array<i32>} : memref<400x800xbf16, #tpu.memory_space<vmem>>, vector<16x800xbf16>,
    %c0_33 = arith.constant 0 : index
    %c61 = arith.constant 61 : index
    %32 = vector.load %arg1[%c0_33, %c61] : memref<16x884xbf16, #tpu.memory_space<vmem>>, vector<16x800xbf16>
    %c256 = arith.constant 256 : index
    %c0_34 = arith.constant 0 : index
    %33 = vector.load %arg5[%c256, %c0_34] : memref<400x800xbf16, #tpu.memory_space<vmem>>, vector<16x800xbf16>
    tpu.vector_store %arg5[%c256, %c0_34], %32 {strides = array<i32>} : memref<400x800xbf16, #tpu.memory_space<vmem>>, vector<16x800xbf16>,
    %c0_35 = arith.constant 0 : index
    %c62 = arith.constant 62 : index
    %34 = vector.load %arg1[%c0_35, %c62] : memref<16x884xbf16, #tpu.memory_space<vmem>>, vector<16x800xbf16>
    %c272 = arith.constant 272 : index
    %c0_36 = arith.constant 0 : index
    %35 = vector.load %arg5[%c272, %c0_36] : memref<400x800xbf16, #tpu.memory_space<vmem>>, vector<16x800xbf16>
    tpu.vector_store %arg5[%c272, %c0_36], %34 {strides = array<i32>} : memref<400x800xbf16, #tpu.memory_space<vmem>>, vector<16x800xbf16>,
    %c0_37 = arith.constant 0 : index
    %c63 = arith.constant 63 : index
    %36 = vector.load %arg1[%c0_37, %c63] : memref<16x884xbf16, #tpu.memory_space<vmem>>, vector<16x800xbf16>
    %c288 = arith.constant 288 : index
    %c0_38 = arith.constant 0 : index
    %37 = vector.load %arg5[%c288, %c0_38] : memref<400x800xbf16, #tpu.memory_space<vmem>>, vector<16x800xbf16>
    tpu.vector_store %arg5[%c288, %c0_38], %36 {strides = array<i32>} : memref<400x800xbf16, #tpu.memory_space<vmem>>, vector<16x800xbf16>,
    %c0_39 = arith.constant 0 : index
    %c64_40 = arith.constant 64 : index
    %38 = vector.load %arg1[%c0_39, %c64_40] : memref<16x884xbf16, #tpu.memory_space<vmem>>, vector<16x800xbf16>
    %c304 = arith.constant 304 : index
    %c0_41 = arith.constant 0 : index
    %39 = vector.load %arg5[%c304, %c0_41] : memref<400x800xbf16, #tpu.memory_space<vmem>>, vector<16x800xbf16>
    tpu.vector_store %arg5[%c304, %c0_41], %38 {strides = array<i32>} : memref<400x800xbf16, #tpu.memory_space<vmem>>, vector<16x800xbf16>,
    %c0_42 = arith.constant 0 : index
    %c80_43 = arith.constant 80 : index
    %40 = vector.load %arg1[%c0_42, %c80_43] : memref<16x884xbf16, #tpu.memory_space<vmem>>, vector<16x800xbf16>
    %c320 = arith.constant 320 : index
    %c0_44 = arith.constant 0 : index
    %41 = vector.load %arg5[%c320, %c0_44] : memref<400x800xbf16, #tpu.memory_space<vmem>>, vector<16x800xbf16>
    tpu.vector_store %arg5[%c320, %c0_44], %40 {strides = array<i32>} : memref<400x800xbf16, #tpu.memory_space<vmem>>, vector<16x800xbf16>,
    %c0_45 = arith.constant 0 : index
    %c81 = arith.constant 81 : index
    %42 = vector.load %arg1[%c0_45, %c81] : memref<16x884xbf16, #tpu.memory_space<vmem>>, vector<16x800xbf16>
    %c336 = arith.constant 336 : index
    %c0_46 = arith.constant 0 : index
    %43 = vector.load %arg5[%c336, %c0_46] : memref<400x800xbf16, #tpu.memory_space<vmem>>, vector<16x800xbf16>
    tpu.vector_store %arg5[%c336, %c0_46], %42 {strides = array<i32>} : memref<400x800xbf16, #tpu.memory_space<vmem>>, vector<16x800xbf16>,
    %c0_47 = arith.constant 0 : index
    %c82 = arith.constant 82 : index
    %44 = vector.load %arg1[%c0_47, %c82] : memref<16x884xbf16, #tpu.memory_space<vmem>>, vector<16x800xbf16>
    %c352 = arith.constant 352 : index
    %c0_48 = arith.constant 0 : index
    %45 = vector.load %arg5[%c352, %c0_48] : memref<400x800xbf16, #tpu.memory_space<vmem>>, vector<16x800xbf16>
    tpu.vector_store %arg5[%c352, %c0_48], %44 {strides = array<i32>} : memref<400x800xbf16, #tpu.memory_space<vmem>>, vector<16x800xbf16>,
    %c0_49 = arith.constant 0 : index
    %c83 = arith.constant 83 : index
    %46 = vector.load %arg1[%c0_49, %c83] : memref<16x884xbf16, #tpu.memory_space<vmem>>, vector<16x800xbf16>
    %c368 = arith.constant 368 : index
    %c0_50 = arith.constant 0 : index
    %47 = vector.load %arg5[%c368, %c0_50] : memref<400x800xbf16, #tpu.memory_space<vmem>>, vector<16x800xbf16>
    tpu.vector_store %arg5[%c368, %c0_50], %46 {strides = array<i32>} : memref<400x800xbf16, #tpu.memory_space<vmem>>, vector<16x800xbf16>,
    %c0_51 = arith.constant 0 : index
    %c84 = arith.constant 84 : index
    %48 = vector.load %arg1[%c0_51, %c84] : memref<16x884xbf16, #tpu.memory_space<vmem>>, vector<16x800xbf16>
    %c384 = arith.constant 384 : index
    %c0_52 = arith.constant 0 : index
    %49 = vector.load %arg5[%c384, %c0_52] : memref<400x800xbf16, #tpu.memory_space<vmem>>, vector<16x800xbf16>
    tpu.vector_store %arg5[%c384, %c0_52], %48 {strides = array<i32>} : memref<400x800xbf16, #tpu.memory_space<vmem>>, vector<16x800xbf16>,
    %c0_53 = arith.constant 0 : index
    %c0_54 = arith.constant 0 : index
    %50 = vector.load %arg2[%c0_53, %c0_54] : memref<16x400xbf16, #tpu.memory_space<vmem>>, vector<16x400xbf16>
    %c0_55 = arith.constant 0 : index
    %c0_56 = arith.constant 0 : index
    %51 = vector.load %arg5[%c0_55, %c0_56] : memref<400x800xbf16, #tpu.memory_space<vmem>>, vector<400x800xbf16>
    %cst = arith.constant dense<0.000000e+00> : vector<16x800xf32>
    %52 = tpu.matmul %50, %51, %cst {dimension_numbers = #tpu.dot_dimension_numbers<[1], [0], [0], [1], [0, 0, 1, 1], [], []>} : vector<16x400xbf16>, vector<400x800xbf16>, vector<16x800xf32> -> vector<16x800xf32>
    %c0_57 = arith.constant 0 : index
    %c0_58 = arith.constant 0 : index
    %53 = vector.load %arg3[%c0_57, %c0_58] : memref<16x1xf32, #tpu.memory_space<vmem>>, vector<16x1xf32>
    %54 = vector.broadcast %53 : vector<16x1xf32> to vector<16x800xf32>
    %55 = arith.addf %52, %54 : vector<16x800xf32>
    %cst_59 = arith.constant 0.000000e+00 : f32
    %56 = vector.broadcast %cst_59 : f32 to vector<16x800xf32>
    %57 = arith.cmpf oge, %55, %56 : vector<16x800xf32>
    %cst_60 = arith.constant 1.000000e-01 : f32
    %58 = vector.broadcast %cst_60 : f32 to vector<16x800xf32>
    %59 = arith.mulf %58, %55 : vector<16x800xf32>
    %60 = arith.select %57, %55, %59 : vector<16x800xi1>, vector<16x800xf32>
    %c0_61 = arith.constant 0 : index
    %c0_62 = arith.constant 0 : index
    %61 = vector.load %arg4[%c0_61, %c0_62] : memref<16x800xf32, #tpu.memory_space<vmem>>, vector<16x800xf32>
    tpu.vector_store %arg4[%c0_61, %c0_62], %60 {strides = array<i32>} : memref<16x800xf32, #tpu.memory_space<vmem>>, vector<16x800xf32>,
    return
  }
  func.func @transform_0(%arg0: i32) -> (i32, i32) {
    %c0_i32 = arith.constant 0 : i32
    %c0_i32_0 = arith.constant 0 : i32
    %c0_i32_1 = arith.constant 0 : i32
    return %c0_i32, %c0_i32_0 : i32, i32
  }
  func.func @transform_1(%arg0: i32) -> (i32, i32) {
    %c0_i32 = arith.constant 0 : i32
    %c0_i32_0 = arith.constant 0 : i32
    %c0_i32_1 = arith.constant 0 : i32
    return %c0_i32, %c0_i32_0 : i32, i32
  }
  func.func @transform_2(%arg0: i32) -> (i32, i32) {
    %c0_i32 = arith.constant 0 : i32
    %c0_i32_0 = arith.constant 0 : i32
    %c0_i32_1 = arith.constant 0 : i32
    return %c0_i32, %c0_i32_0 : i32, i32
  }
  func.func @transform_3(%arg0: i32) -> (i32, i32) {
    %c0_i32 = arith.constant 0 : i32
    %c0_i32_0 = arith.constant 0 : i32
    %c0_i32_1 = arith.constant 0 : i32
    return %c0_i32, %c0_i32_0 : i32, i32
  }
}

module attributes {stable_mosaic.version = 11 : i64} {
  func.func @kernel(%arg0: i32, %arg1: memref<16x392xbf16, #tpu.memory_space<vmem>>, %arg2: memref<16x400xbf16, #tpu.memory_space<vmem>>, %arg3: memref<16x1xf32, #tpu.memory_space<vmem>>, %arg4: memref<1x340xf32, #tpu.memory_space<vmem>>, %arg5: memref<16x400xbf16, #tpu.memory_space<vmem>>, %arg6: memref<16x1xf32, #tpu.memory_space<vmem>>, %arg7: memref<16x288xf32, #tpu.memory_space<vmem>>, %arg8: memref<400x340xbf16, #tpu.memory_space<vmem>>, %arg9: memref<400x288xbf16, #tpu.memory_space<vmem>>) attributes {dimension_semantics = [#tpu.dimension_semantics<arbitrary>], iteration_bounds = array<i64: 1>, scalar_prefetch = 0 : i64, scratch_operands = 2 : i64, tpu.core_type = #tpu.core_type<tc>, window_params = [{pipeline_mode = #tpu.pipeline_mode<synchronous>, transform_indices = @transform_0, window_bounds = array<i64: 16, 392>}, {pipeline_mode = #tpu.pipeline_mode<synchronous>, transform_indices = @transform_1, window_bounds = array<i64: 16, 400>}, {pipeline_mode = #tpu.pipeline_mode<synchronous>, transform_indices = @transform_2, window_bounds = array<i64: 16, 1>}, {pipeline_mode = #tpu.pipeline_mode<synchronous>, transform_indices = @transform_3, window_bounds = array<i64: 1, 340>}, {pipeline_mode = #tpu.pipeline_mode<synchronous>, transform_indices = @transform_4, window_bounds = array<i64: 16, 400>}, {pipeline_mode = #tpu.pipeline_mode<synchronous>, transform_indices = @transform_5, window_bounds = array<i64: 16, 1>}, {pipeline_mode = #tpu.pipeline_mode<synchronous>, transform_indices = @transform_6, window_bounds = array<i64: 16, 288>}]} {
    %c0 = arith.constant 0 : index
    %c0_0 = arith.constant 0 : index
    %0 = vector.load %arg1[%c0, %c0_0] : memref<16x392xbf16, #tpu.memory_space<vmem>>, vector<16x340xbf16>
    %c0_1 = arith.constant 0 : index
    %c0_2 = arith.constant 0 : index
    %1 = vector.load %arg8[%c0_1, %c0_2] : memref<400x340xbf16, #tpu.memory_space<vmem>>, vector<16x340xbf16>
    tpu.vector_store %arg8[%c0_1, %c0_2], %0 {strides = array<i32>} : memref<400x340xbf16, #tpu.memory_space<vmem>>, vector<16x340xbf16>,
    %c0_3 = arith.constant 0 : index
    %c1 = arith.constant 1 : index
    %2 = vector.load %arg1[%c0_3, %c1] : memref<16x392xbf16, #tpu.memory_space<vmem>>, vector<16x340xbf16>
    %c16 = arith.constant 16 : index
    %c0_4 = arith.constant 0 : index
    %3 = vector.load %arg8[%c16, %c0_4] : memref<400x340xbf16, #tpu.memory_space<vmem>>, vector<16x340xbf16>
    tpu.vector_store %arg8[%c16, %c0_4], %2 {strides = array<i32>} : memref<400x340xbf16, #tpu.memory_space<vmem>>, vector<16x340xbf16>,
    %c0_5 = arith.constant 0 : index
    %c2 = arith.constant 2 : index
    %4 = vector.load %arg1[%c0_5, %c2] : memref<16x392xbf16, #tpu.memory_space<vmem>>, vector<16x340xbf16>
    %c32 = arith.constant 32 : index
    %c0_6 = arith.constant 0 : index
    %5 = vector.load %arg8[%c32, %c0_6] : memref<400x340xbf16, #tpu.memory_space<vmem>>, vector<16x340xbf16>
    tpu.vector_store %arg8[%c32, %c0_6], %4 {strides = array<i32>} : memref<400x340xbf16, #tpu.memory_space<vmem>>, vector<16x340xbf16>,
    %c0_7 = arith.constant 0 : index
    %c3 = arith.constant 3 : index
    %6 = vector.load %arg1[%c0_7, %c3] : memref<16x392xbf16, #tpu.memory_space<vmem>>, vector<16x340xbf16>
    %c48 = arith.constant 48 : index
    %c0_8 = arith.constant 0 : index
    %7 = vector.load %arg8[%c48, %c0_8] : memref<400x340xbf16, #tpu.memory_space<vmem>>, vector<16x340xbf16>
    tpu.vector_store %arg8[%c48, %c0_8], %6 {strides = array<i32>} : memref<400x340xbf16, #tpu.memory_space<vmem>>, vector<16x340xbf16>,
    %c0_9 = arith.constant 0 : index
    %c4 = arith.constant 4 : index
    %8 = vector.load %arg1[%c0_9, %c4] : memref<16x392xbf16, #tpu.memory_space<vmem>>, vector<16x340xbf16>
    %c64 = arith.constant 64 : index
    %c0_10 = arith.constant 0 : index
    %9 = vector.load %arg8[%c64, %c0_10] : memref<400x340xbf16, #tpu.memory_space<vmem>>, vector<16x340xbf16>
    tpu.vector_store %arg8[%c64, %c0_10], %8 {strides = array<i32>} : memref<400x340xbf16, #tpu.memory_space<vmem>>, vector<16x340xbf16>,
    %c0_11 = arith.constant 0 : index
    %c12 = arith.constant 12 : index
    %10 = vector.load %arg1[%c0_11, %c12] : memref<16x392xbf16, #tpu.memory_space<vmem>>, vector<16x340xbf16>
    %c80 = arith.constant 80 : index
    %c0_12 = arith.constant 0 : index
    %11 = vector.load %arg8[%c80, %c0_12] : memref<400x340xbf16, #tpu.memory_space<vmem>>, vector<16x340xbf16>
    tpu.vector_store %arg8[%c80, %c0_12], %10 {strides = array<i32>} : memref<400x340xbf16, #tpu.memory_space<vmem>>, vector<16x340xbf16>,
    %c0_13 = arith.constant 0 : index
    %c13 = arith.constant 13 : index
    %12 = vector.load %arg1[%c0_13, %c13] : memref<16x392xbf16, #tpu.memory_space<vmem>>, vector<16x340xbf16>
    %c96 = arith.constant 96 : index
    %c0_14 = arith.constant 0 : index
    %13 = vector.load %arg8[%c96, %c0_14] : memref<400x340xbf16, #tpu.memory_space<vmem>>, vector<16x340xbf16>
    tpu.vector_store %arg8[%c96, %c0_14], %12 {strides = array<i32>} : memref<400x340xbf16, #tpu.memory_space<vmem>>, vector<16x340xbf16>,
    %c0_15 = arith.constant 0 : index
    %c14 = arith.constant 14 : index
    %14 = vector.load %arg1[%c0_15, %c14] : memref<16x392xbf16, #tpu.memory_space<vmem>>, vector<16x340xbf16>
    %c112 = arith.constant 112 : index
    %c0_16 = arith.constant 0 : index
    %15 = vector.load %arg8[%c112, %c0_16] : memref<400x340xbf16, #tpu.memory_space<vmem>>, vector<16x340xbf16>
    tpu.vector_store %arg8[%c112, %c0_16], %14 {strides = array<i32>} : memref<400x340xbf16, #tpu.memory_space<vmem>>, vector<16x340xbf16>,
    %c0_17 = arith.constant 0 : index
    %c15 = arith.constant 15 : index
    %16 = vector.load %arg1[%c0_17, %c15] : memref<16x392xbf16, #tpu.memory_space<vmem>>, vector<16x340xbf16>
    %c128 = arith.constant 128 : index
    %c0_18 = arith.constant 0 : index
    %17 = vector.load %arg8[%c128, %c0_18] : memref<400x340xbf16, #tpu.memory_space<vmem>>, vector<16x340xbf16>
    tpu.vector_store %arg8[%c128, %c0_18], %16 {strides = array<i32>} : memref<400x340xbf16, #tpu.memory_space<vmem>>, vector<16x340xbf16>,
    %c0_19 = arith.constant 0 : index
    %c16_20 = arith.constant 16 : index
    %18 = vector.load %arg1[%c0_19, %c16_20] : memref<16x392xbf16, #tpu.memory_space<vmem>>, vector<16x340xbf16>
    %c144 = arith.constant 144 : index
    %c0_21 = arith.constant 0 : index
    %19 = vector.load %arg8[%c144, %c0_21] : memref<400x340xbf16, #tpu.memory_space<vmem>>, vector<16x340xbf16>
    tpu.vector_store %arg8[%c144, %c0_21], %18 {strides = array<i32>} : memref<400x340xbf16, #tpu.memory_space<vmem>>, vector<16x340xbf16>,
    %c0_22 = arith.constant 0 : index
    %c24 = arith.constant 24 : index
    %20 = vector.load %arg1[%c0_22, %c24] : memref<16x392xbf16, #tpu.memory_space<vmem>>, vector<16x340xbf16>
    %c160 = arith.constant 160 : index
    %c0_23 = arith.constant 0 : index
    %21 = vector.load %arg8[%c160, %c0_23] : memref<400x340xbf16, #tpu.memory_space<vmem>>, vector<16x340xbf16>
    tpu.vector_store %arg8[%c160, %c0_23], %20 {strides = array<i32>} : memref<400x340xbf16, #tpu.memory_space<vmem>>, vector<16x340xbf16>,
    %c0_24 = arith.constant 0 : index
    %c25 = arith.constant 25 : index
    %22 = vector.load %arg1[%c0_24, %c25] : memref<16x392xbf16, #tpu.memory_space<vmem>>, vector<16x340xbf16>
    %c176 = arith.constant 176 : index
    %c0_25 = arith.constant 0 : index
    %23 = vector.load %arg8[%c176, %c0_25] : memref<400x340xbf16, #tpu.memory_space<vmem>>, vector<16x340xbf16>
    tpu.vector_store %arg8[%c176, %c0_25], %22 {strides = array<i32>} : memref<400x340xbf16, #tpu.memory_space<vmem>>, vector<16x340xbf16>,
    %c0_26 = arith.constant 0 : index
    %c26 = arith.constant 26 : index
    %24 = vector.load %arg1[%c0_26, %c26] : memref<16x392xbf16, #tpu.memory_space<vmem>>, vector<16x340xbf16>
    %c192 = arith.constant 192 : index
    %c0_27 = arith.constant 0 : index
    %25 = vector.load %arg8[%c192, %c0_27] : memref<400x340xbf16, #tpu.memory_space<vmem>>, vector<16x340xbf16>
    tpu.vector_store %arg8[%c192, %c0_27], %24 {strides = array<i32>} : memref<400x340xbf16, #tpu.memory_space<vmem>>, vector<16x340xbf16>,
    %c0_28 = arith.constant 0 : index
    %c27 = arith.constant 27 : index
    %26 = vector.load %arg1[%c0_28, %c27] : memref<16x392xbf16, #tpu.memory_space<vmem>>, vector<16x340xbf16>
    %c208 = arith.constant 208 : index
    %c0_29 = arith.constant 0 : index
    %27 = vector.load %arg8[%c208, %c0_29] : memref<400x340xbf16, #tpu.memory_space<vmem>>, vector<16x340xbf16>
    tpu.vector_store %arg8[%c208, %c0_29], %26 {strides = array<i32>} : memref<400x340xbf16, #tpu.memory_space<vmem>>, vector<16x340xbf16>,
    %c0_30 = arith.constant 0 : index
    %c28 = arith.constant 28 : index
    %28 = vector.load %arg1[%c0_30, %c28] : memref<16x392xbf16, #tpu.memory_space<vmem>>, vector<16x340xbf16>
    %c224 = arith.constant 224 : index
    %c0_31 = arith.constant 0 : index
    %29 = vector.load %arg8[%c224, %c0_31] : memref<400x340xbf16, #tpu.memory_space<vmem>>, vector<16x340xbf16>
    tpu.vector_store %arg8[%c224, %c0_31], %28 {strides = array<i32>} : memref<400x340xbf16, #tpu.memory_space<vmem>>, vector<16x340xbf16>,
    %c0_32 = arith.constant 0 : index
    %c36 = arith.constant 36 : index
    %30 = vector.load %arg1[%c0_32, %c36] : memref<16x392xbf16, #tpu.memory_space<vmem>>, vector<16x340xbf16>
    %c240 = arith.constant 240 : index
    %c0_33 = arith.constant 0 : index
    %31 = vector.load %arg8[%c240, %c0_33] : memref<400x340xbf16, #tpu.memory_space<vmem>>, vector<16x340xbf16>
    tpu.vector_store %arg8[%c240, %c0_33], %30 {strides = array<i32>} : memref<400x340xbf16, #tpu.memory_space<vmem>>, vector<16x340xbf16>,
    %c0_34 = arith.constant 0 : index
    %c37 = arith.constant 37 : index
    %32 = vector.load %arg1[%c0_34, %c37] : memref<16x392xbf16, #tpu.memory_space<vmem>>, vector<16x340xbf16>
    %c256 = arith.constant 256 : index
    %c0_35 = arith.constant 0 : index
    %33 = vector.load %arg8[%c256, %c0_35] : memref<400x340xbf16, #tpu.memory_space<vmem>>, vector<16x340xbf16>
    tpu.vector_store %arg8[%c256, %c0_35], %32 {strides = array<i32>} : memref<400x340xbf16, #tpu.memory_space<vmem>>, vector<16x340xbf16>,
    %c0_36 = arith.constant 0 : index
    %c38 = arith.constant 38 : index
    %34 = vector.load %arg1[%c0_36, %c38] : memref<16x392xbf16, #tpu.memory_space<vmem>>, vector<16x340xbf16>
    %c272 = arith.constant 272 : index
    %c0_37 = arith.constant 0 : index
    %35 = vector.load %arg8[%c272, %c0_37] : memref<400x340xbf16, #tpu.memory_space<vmem>>, vector<16x340xbf16>
    tpu.vector_store %arg8[%c272, %c0_37], %34 {strides = array<i32>} : memref<400x340xbf16, #tpu.memory_space<vmem>>, vector<16x340xbf16>,
    %c0_38 = arith.constant 0 : index
    %c39 = arith.constant 39 : index
    %36 = vector.load %arg1[%c0_38, %c39] : memref<16x392xbf16, #tpu.memory_space<vmem>>, vector<16x340xbf16>
    %c288 = arith.constant 288 : index
    %c0_39 = arith.constant 0 : index
    %37 = vector.load %arg8[%c288, %c0_39] : memref<400x340xbf16, #tpu.memory_space<vmem>>, vector<16x340xbf16>
    tpu.vector_store %arg8[%c288, %c0_39], %36 {strides = array<i32>} : memref<400x340xbf16, #tpu.memory_space<vmem>>, vector<16x340xbf16>,
    %c0_40 = arith.constant 0 : index
    %c40 = arith.constant 40 : index
    %38 = vector.load %arg1[%c0_40, %c40] : memref<16x392xbf16, #tpu.memory_space<vmem>>, vector<16x340xbf16>
    %c304 = arith.constant 304 : index
    %c0_41 = arith.constant 0 : index
    %39 = vector.load %arg8[%c304, %c0_41] : memref<400x340xbf16, #tpu.memory_space<vmem>>, vector<16x340xbf16>
    tpu.vector_store %arg8[%c304, %c0_41], %38 {strides = array<i32>} : memref<400x340xbf16, #tpu.memory_space<vmem>>, vector<16x340xbf16>,
    %c0_42 = arith.constant 0 : index
    %c48_43 = arith.constant 48 : index
    %40 = vector.load %arg1[%c0_42, %c48_43] : memref<16x392xbf16, #tpu.memory_space<vmem>>, vector<16x340xbf16>
    %c320 = arith.constant 320 : index
    %c0_44 = arith.constant 0 : index
    %41 = vector.load %arg8[%c320, %c0_44] : memref<400x340xbf16, #tpu.memory_space<vmem>>, vector<16x340xbf16>
    tpu.vector_store %arg8[%c320, %c0_44], %40 {strides = array<i32>} : memref<400x340xbf16, #tpu.memory_space<vmem>>, vector<16x340xbf16>,
    %c0_45 = arith.constant 0 : index
    %c49 = arith.constant 49 : index
    %42 = vector.load %arg1[%c0_45, %c49] : memref<16x392xbf16, #tpu.memory_space<vmem>>, vector<16x340xbf16>
    %c336 = arith.constant 336 : index
    %c0_46 = arith.constant 0 : index
    %43 = vector.load %arg8[%c336, %c0_46] : memref<400x340xbf16, #tpu.memory_space<vmem>>, vector<16x340xbf16>
    tpu.vector_store %arg8[%c336, %c0_46], %42 {strides = array<i32>} : memref<400x340xbf16, #tpu.memory_space<vmem>>, vector<16x340xbf16>,
    %c0_47 = arith.constant 0 : index
    %c50 = arith.constant 50 : index
    %44 = vector.load %arg1[%c0_47, %c50] : memref<16x392xbf16, #tpu.memory_space<vmem>>, vector<16x340xbf16>
    %c352 = arith.constant 352 : index
    %c0_48 = arith.constant 0 : index
    %45 = vector.load %arg8[%c352, %c0_48] : memref<400x340xbf16, #tpu.memory_space<vmem>>, vector<16x340xbf16>
    tpu.vector_store %arg8[%c352, %c0_48], %44 {strides = array<i32>} : memref<400x340xbf16, #tpu.memory_space<vmem>>, vector<16x340xbf16>,
    %c0_49 = arith.constant 0 : index
    %c51 = arith.constant 51 : index
    %46 = vector.load %arg1[%c0_49, %c51] : memref<16x392xbf16, #tpu.memory_space<vmem>>, vector<16x340xbf16>
    %c368 = arith.constant 368 : index
    %c0_50 = arith.constant 0 : index
    %47 = vector.load %arg8[%c368, %c0_50] : memref<400x340xbf16, #tpu.memory_space<vmem>>, vector<16x340xbf16>
    tpu.vector_store %arg8[%c368, %c0_50], %46 {strides = array<i32>} : memref<400x340xbf16, #tpu.memory_space<vmem>>, vector<16x340xbf16>,
    %c0_51 = arith.constant 0 : index
    %c52 = arith.constant 52 : index
    %48 = vector.load %arg1[%c0_51, %c52] : memref<16x392xbf16, #tpu.memory_space<vmem>>, vector<16x340xbf16>
    %c384 = arith.constant 384 : index
    %c0_52 = arith.constant 0 : index
    %49 = vector.load %arg8[%c384, %c0_52] : memref<400x340xbf16, #tpu.memory_space<vmem>>, vector<16x340xbf16>
    tpu.vector_store %arg8[%c384, %c0_52], %48 {strides = array<i32>} : memref<400x340xbf16, #tpu.memory_space<vmem>>, vector<16x340xbf16>,
    %c0_53 = arith.constant 0 : index
    %c0_54 = arith.constant 0 : index
    %50 = vector.load %arg2[%c0_53, %c0_54] : memref<16x400xbf16, #tpu.memory_space<vmem>>, vector<16x400xbf16>
    %c0_55 = arith.constant 0 : index
    %c0_56 = arith.constant 0 : index
    %51 = vector.load %arg8[%c0_55, %c0_56] : memref<400x340xbf16, #tpu.memory_space<vmem>>, vector<400x340xbf16>
    %cst = arith.constant dense<0.000000e+00> : vector<16x340xf32>
    %52 = tpu.matmul %50, %51, %cst {dimension_numbers = #tpu.dot_dimension_numbers<[1], [0], [0], [1], [0, 0, 1, 1], [], []>} : vector<16x400xbf16>, vector<400x340xbf16>, vector<16x340xf32> -> vector<16x340xf32>
    %c0_57 = arith.constant 0 : index
    %c0_58 = arith.constant 0 : index
    %53 = vector.load %arg3[%c0_57, %c0_58] : memref<16x1xf32, #tpu.memory_space<vmem>>, vector<16x1xf32>
    %54 = vector.broadcast %53 : vector<16x1xf32> to vector<16x340xf32>
    %55 = arith.addf %52, %54 : vector<16x340xf32>
    %cst_59 = arith.constant 0.000000e+00 : f32
    %56 = vector.broadcast %cst_59 : f32 to vector<16x340xf32>
    %57 = arith.cmpf oge, %55, %56 : vector<16x340xf32>
    %cst_60 = arith.constant 1.000000e-01 : f32
    %58 = vector.broadcast %cst_60 : f32 to vector<16x340xf32>
    %59 = arith.mulf %58, %55 : vector<16x340xf32>
    %60 = arith.select %57, %55, %59 : vector<16x340xi1>, vector<16x340xf32>
    %c0_61 = arith.constant 0 : index
    %c0_62 = arith.constant 0 : index
    %61 = vector.load %arg4[%c0_61, %c0_62] : memref<1x340xf32, #tpu.memory_space<vmem>>, vector<1x340xf32>
    %62 = vector.broadcast %61 : vector<1x340xf32> to vector<16x340xf32>
    %63 = arith.mulf %60, %62 : vector<16x340xf32>
    %64 = arith.truncf %63 : vector<16x340xf32> to vector<16x340xbf16>
    %65 = vector.extract_strided_slice %64 {offsets = [0, 0], sizes = [16, 288], strides = [1, 1]} : vector<16x340xbf16> to vector<16x288xbf16>
    %c0_63 = arith.constant 0 : index
    %c0_64 = arith.constant 0 : index
    %66 = vector.load %arg9[%c0_63, %c0_64] : memref<400x288xbf16, #tpu.memory_space<vmem>>, vector<16x288xbf16>
    tpu.vector_store %arg9[%c0_63, %c0_64], %65 {strides = array<i32>} : memref<400x288xbf16, #tpu.memory_space<vmem>>, vector<16x288xbf16>,
    %67 = vector.extract_strided_slice %64 {offsets = [0, 1], sizes = [16, 288], strides = [1, 1]} : vector<16x340xbf16> to vector<16x288xbf16>
    %c16_65 = arith.constant 16 : index
    %c0_66 = arith.constant 0 : index
    %68 = vector.load %arg9[%c16_65, %c0_66] : memref<400x288xbf16, #tpu.memory_space<vmem>>, vector<16x288xbf16>
    tpu.vector_store %arg9[%c16_65, %c0_66], %67 {strides = array<i32>} : memref<400x288xbf16, #tpu.memory_space<vmem>>, vector<16x288xbf16>,
    %69 = vector.extract_strided_slice %64 {offsets = [0, 2], sizes = [16, 288], strides = [1, 1]} : vector<16x340xbf16> to vector<16x288xbf16>
    %c32_67 = arith.constant 32 : index
    %c0_68 = arith.constant 0 : index
    %70 = vector.load %arg9[%c32_67, %c0_68] : memref<400x288xbf16, #tpu.memory_space<vmem>>, vector<16x288xbf16>
    tpu.vector_store %arg9[%c32_67, %c0_68], %69 {strides = array<i32>} : memref<400x288xbf16, #tpu.memory_space<vmem>>, vector<16x288xbf16>,
    %71 = vector.extract_strided_slice %64 {offsets = [0, 3], sizes = [16, 288], strides = [1, 1]} : vector<16x340xbf16> to vector<16x288xbf16>
    %c48_69 = arith.constant 48 : index
    %c0_70 = arith.constant 0 : index
    %72 = vector.load %arg9[%c48_69, %c0_70] : memref<400x288xbf16, #tpu.memory_space<vmem>>, vector<16x288xbf16>
    tpu.vector_store %arg9[%c48_69, %c0_70], %71 {strides = array<i32>} : memref<400x288xbf16, #tpu.memory_space<vmem>>, vector<16x288xbf16>,
    %73 = vector.extract_strided_slice %64 {offsets = [0, 4], sizes = [16, 288], strides = [1, 1]} : vector<16x340xbf16> to vector<16x288xbf16>
    %c64_71 = arith.constant 64 : index
    %c0_72 = arith.constant 0 : index
    %74 = vector.load %arg9[%c64_71, %c0_72] : memref<400x288xbf16, #tpu.memory_space<vmem>>, vector<16x288xbf16>
    tpu.vector_store %arg9[%c64_71, %c0_72], %73 {strides = array<i32>} : memref<400x288xbf16, #tpu.memory_space<vmem>>, vector<16x288xbf16>,
    %75 = vector.extract_strided_slice %64 {offsets = [0, 12], sizes = [16, 288], strides = [1, 1]} : vector<16x340xbf16> to vector<16x288xbf16>
    %c80_73 = arith.constant 80 : index
    %c0_74 = arith.constant 0 : index
    %76 = vector.load %arg9[%c80_73, %c0_74] : memref<400x288xbf16, #tpu.memory_space<vmem>>, vector<16x288xbf16>
    tpu.vector_store %arg9[%c80_73, %c0_74], %75 {strides = array<i32>} : memref<400x288xbf16, #tpu.memory_space<vmem>>, vector<16x288xbf16>,
    %77 = vector.extract_strided_slice %64 {offsets = [0, 13], sizes = [16, 288], strides = [1, 1]} : vector<16x340xbf16> to vector<16x288xbf16>
    %c96_75 = arith.constant 96 : index
    %c0_76 = arith.constant 0 : index
    %78 = vector.load %arg9[%c96_75, %c0_76] : memref<400x288xbf16, #tpu.memory_space<vmem>>, vector<16x288xbf16>
    tpu.vector_store %arg9[%c96_75, %c0_76], %77 {strides = array<i32>} : memref<400x288xbf16, #tpu.memory_space<vmem>>, vector<16x288xbf16>,
    %79 = vector.extract_strided_slice %64 {offsets = [0, 14], sizes = [16, 288], strides = [1, 1]} : vector<16x340xbf16> to vector<16x288xbf16>
    %c112_77 = arith.constant 112 : index
    %c0_78 = arith.constant 0 : index
    %80 = vector.load %arg9[%c112_77, %c0_78] : memref<400x288xbf16, #tpu.memory_space<vmem>>, vector<16x288xbf16>
    tpu.vector_store %arg9[%c112_77, %c0_78], %79 {strides = array<i32>} : memref<400x288xbf16, #tpu.memory_space<vmem>>, vector<16x288xbf16>,
    %81 = vector.extract_strided_slice %64 {offsets = [0, 15], sizes = [16, 288], strides = [1, 1]} : vector<16x340xbf16> to vector<16x288xbf16>
    %c128_79 = arith.constant 128 : index
    %c0_80 = arith.constant 0 : index
    %82 = vector.load %arg9[%c128_79, %c0_80] : memref<400x288xbf16, #tpu.memory_space<vmem>>, vector<16x288xbf16>
    tpu.vector_store %arg9[%c128_79, %c0_80], %81 {strides = array<i32>} : memref<400x288xbf16, #tpu.memory_space<vmem>>, vector<16x288xbf16>,
    %83 = vector.extract_strided_slice %64 {offsets = [0, 16], sizes = [16, 288], strides = [1, 1]} : vector<16x340xbf16> to vector<16x288xbf16>
    %c144_81 = arith.constant 144 : index
    %c0_82 = arith.constant 0 : index
    %84 = vector.load %arg9[%c144_81, %c0_82] : memref<400x288xbf16, #tpu.memory_space<vmem>>, vector<16x288xbf16>
    tpu.vector_store %arg9[%c144_81, %c0_82], %83 {strides = array<i32>} : memref<400x288xbf16, #tpu.memory_space<vmem>>, vector<16x288xbf16>,
    %85 = vector.extract_strided_slice %64 {offsets = [0, 24], sizes = [16, 288], strides = [1, 1]} : vector<16x340xbf16> to vector<16x288xbf16>
    %c160_83 = arith.constant 160 : index
    %c0_84 = arith.constant 0 : index
    %86 = vector.load %arg9[%c160_83, %c0_84] : memref<400x288xbf16, #tpu.memory_space<vmem>>, vector<16x288xbf16>
    tpu.vector_store %arg9[%c160_83, %c0_84], %85 {strides = array<i32>} : memref<400x288xbf16, #tpu.memory_space<vmem>>, vector<16x288xbf16>,
    %87 = vector.extract_strided_slice %64 {offsets = [0, 25], sizes = [16, 288], strides = [1, 1]} : vector<16x340xbf16> to vector<16x288xbf16>
    %c176_85 = arith.constant 176 : index
    %c0_86 = arith.constant 0 : index
    %88 = vector.load %arg9[%c176_85, %c0_86] : memref<400x288xbf16, #tpu.memory_space<vmem>>, vector<16x288xbf16>
    tpu.vector_store %arg9[%c176_85, %c0_86], %87 {strides = array<i32>} : memref<400x288xbf16, #tpu.memory_space<vmem>>, vector<16x288xbf16>,
    %89 = vector.extract_strided_slice %64 {offsets = [0, 26], sizes = [16, 288], strides = [1, 1]} : vector<16x340xbf16> to vector<16x288xbf16>
    %c192_87 = arith.constant 192 : index
    %c0_88 = arith.constant 0 : index
    %90 = vector.load %arg9[%c192_87, %c0_88] : memref<400x288xbf16, #tpu.memory_space<vmem>>, vector<16x288xbf16>
    tpu.vector_store %arg9[%c192_87, %c0_88], %89 {strides = array<i32>} : memref<400x288xbf16, #tpu.memory_space<vmem>>, vector<16x288xbf16>,
    %91 = vector.extract_strided_slice %64 {offsets = [0, 27], sizes = [16, 288], strides = [1, 1]} : vector<16x340xbf16> to vector<16x288xbf16>
    %c208_89 = arith.constant 208 : index
    %c0_90 = arith.constant 0 : index
    %92 = vector.load %arg9[%c208_89, %c0_90] : memref<400x288xbf16, #tpu.memory_space<vmem>>, vector<16x288xbf16>
    tpu.vector_store %arg9[%c208_89, %c0_90], %91 {strides = array<i32>} : memref<400x288xbf16, #tpu.memory_space<vmem>>, vector<16x288xbf16>,
    %93 = vector.extract_strided_slice %64 {offsets = [0, 28], sizes = [16, 288], strides = [1, 1]} : vector<16x340xbf16> to vector<16x288xbf16>
    %c224_91 = arith.constant 224 : index
    %c0_92 = arith.constant 0 : index
    %94 = vector.load %arg9[%c224_91, %c0_92] : memref<400x288xbf16, #tpu.memory_space<vmem>>, vector<16x288xbf16>
    tpu.vector_store %arg9[%c224_91, %c0_92], %93 {strides = array<i32>} : memref<400x288xbf16, #tpu.memory_space<vmem>>, vector<16x288xbf16>,
    %95 = vector.extract_strided_slice %64 {offsets = [0, 36], sizes = [16, 288], strides = [1, 1]} : vector<16x340xbf16> to vector<16x288xbf16>
    %c240_93 = arith.constant 240 : index
    %c0_94 = arith.constant 0 : index
    %96 = vector.load %arg9[%c240_93, %c0_94] : memref<400x288xbf16, #tpu.memory_space<vmem>>, vector<16x288xbf16>
    tpu.vector_store %arg9[%c240_93, %c0_94], %95 {strides = array<i32>} : memref<400x288xbf16, #tpu.memory_space<vmem>>, vector<16x288xbf16>,
    %97 = vector.extract_strided_slice %64 {offsets = [0, 37], sizes = [16, 288], strides = [1, 1]} : vector<16x340xbf16> to vector<16x288xbf16>
    %c256_95 = arith.constant 256 : index
    %c0_96 = arith.constant 0 : index
    %98 = vector.load %arg9[%c256_95, %c0_96] : memref<400x288xbf16, #tpu.memory_space<vmem>>, vector<16x288xbf16>
    tpu.vector_store %arg9[%c256_95, %c0_96], %97 {strides = array<i32>} : memref<400x288xbf16, #tpu.memory_space<vmem>>, vector<16x288xbf16>,
    %99 = vector.extract_strided_slice %64 {offsets = [0, 38], sizes = [16, 288], strides = [1, 1]} : vector<16x340xbf16> to vector<16x288xbf16>
    %c272_97 = arith.constant 272 : index
    %c0_98 = arith.constant 0 : index
    %100 = vector.load %arg9[%c272_97, %c0_98] : memref<400x288xbf16, #tpu.memory_space<vmem>>, vector<16x288xbf16>
    tpu.vector_store %arg9[%c272_97, %c0_98], %99 {strides = array<i32>} : memref<400x288xbf16, #tpu.memory_space<vmem>>, vector<16x288xbf16>,
    %101 = vector.extract_strided_slice %64 {offsets = [0, 39], sizes = [16, 288], strides = [1, 1]} : vector<16x340xbf16> to vector<16x288xbf16>
    %c288_99 = arith.constant 288 : index
    %c0_100 = arith.constant 0 : index
    %102 = vector.load %arg9[%c288_99, %c0_100] : memref<400x288xbf16, #tpu.memory_space<vmem>>, vector<16x288xbf16>
    tpu.vector_store %arg9[%c288_99, %c0_100], %101 {strides = array<i32>} : memref<400x288xbf16, #tpu.memory_space<vmem>>, vector<16x288xbf16>,
    %103 = vector.extract_strided_slice %64 {offsets = [0, 40], sizes = [16, 288], strides = [1, 1]} : vector<16x340xbf16> to vector<16x288xbf16>
    %c304_101 = arith.constant 304 : index
    %c0_102 = arith.constant 0 : index
    %104 = vector.load %arg9[%c304_101, %c0_102] : memref<400x288xbf16, #tpu.memory_space<vmem>>, vector<16x288xbf16>
    tpu.vector_store %arg9[%c304_101, %c0_102], %103 {strides = array<i32>} : memref<400x288xbf16, #tpu.memory_space<vmem>>, vector<16x288xbf16>,
    %105 = vector.extract_strided_slice %64 {offsets = [0, 48], sizes = [16, 288], strides = [1, 1]} : vector<16x340xbf16> to vector<16x288xbf16>
    %c320_103 = arith.constant 320 : index
    %c0_104 = arith.constant 0 : index
    %106 = vector.load %arg9[%c320_103, %c0_104] : memref<400x288xbf16, #tpu.memory_space<vmem>>, vector<16x288xbf16>
    tpu.vector_store %arg9[%c320_103, %c0_104], %105 {strides = array<i32>} : memref<400x288xbf16, #tpu.memory_space<vmem>>, vector<16x288xbf16>,
    %107 = vector.extract_strided_slice %64 {offsets = [0, 49], sizes = [16, 288], strides = [1, 1]} : vector<16x340xbf16> to vector<16x288xbf16>
    %c336_105 = arith.constant 336 : index
    %c0_106 = arith.constant 0 : index
    %108 = vector.load %arg9[%c336_105, %c0_106] : memref<400x288xbf16, #tpu.memory_space<vmem>>, vector<16x288xbf16>
    tpu.vector_store %arg9[%c336_105, %c0_106], %107 {strides = array<i32>} : memref<400x288xbf16, #tpu.memory_space<vmem>>, vector<16x288xbf16>,
    %109 = vector.extract_strided_slice %64 {offsets = [0, 50], sizes = [16, 288], strides = [1, 1]} : vector<16x340xbf16> to vector<16x288xbf16>
    %c352_107 = arith.constant 352 : index
    %c0_108 = arith.constant 0 : index
    %110 = vector.load %arg9[%c352_107, %c0_108] : memref<400x288xbf16, #tpu.memory_space<vmem>>, vector<16x288xbf16>
    tpu.vector_store %arg9[%c352_107, %c0_108], %109 {strides = array<i32>} : memref<400x288xbf16, #tpu.memory_space<vmem>>, vector<16x288xbf16>,
    %111 = vector.extract_strided_slice %64 {offsets = [0, 51], sizes = [16, 288], strides = [1, 1]} : vector<16x340xbf16> to vector<16x288xbf16>
    %c368_109 = arith.constant 368 : index
    %c0_110 = arith.constant 0 : index
    %112 = vector.load %arg9[%c368_109, %c0_110] : memref<400x288xbf16, #tpu.memory_space<vmem>>, vector<16x288xbf16>
    tpu.vector_store %arg9[%c368_109, %c0_110], %111 {strides = array<i32>} : memref<400x288xbf16, #tpu.memory_space<vmem>>, vector<16x288xbf16>,
    %113 = vector.extract_strided_slice %64 {offsets = [0, 52], sizes = [16, 288], strides = [1, 1]} : vector<16x340xbf16> to vector<16x288xbf16>
    %c384_111 = arith.constant 384 : index
    %c0_112 = arith.constant 0 : index
    %114 = vector.load %arg9[%c384_111, %c0_112] : memref<400x288xbf16, #tpu.memory_space<vmem>>, vector<16x288xbf16>
    tpu.vector_store %arg9[%c384_111, %c0_112], %113 {strides = array<i32>} : memref<400x288xbf16, #tpu.memory_space<vmem>>, vector<16x288xbf16>,
    %c0_113 = arith.constant 0 : index
    %c0_114 = arith.constant 0 : index
    %115 = vector.load %arg5[%c0_113, %c0_114] : memref<16x400xbf16, #tpu.memory_space<vmem>>, vector<16x400xbf16>
    %c0_115 = arith.constant 0 : index
    %c0_116 = arith.constant 0 : index
    %116 = vector.load %arg9[%c0_115, %c0_116] : memref<400x288xbf16, #tpu.memory_space<vmem>>, vector<400x288xbf16>
    %cst_117 = arith.constant dense<0.000000e+00> : vector<16x288xf32>
    %117 = tpu.matmul %115, %116, %cst_117 {dimension_numbers = #tpu.dot_dimension_numbers<[1], [0], [0], [1], [0, 0, 1, 1], [], []>} : vector<16x400xbf16>, vector<400x288xbf16>, vector<16x288xf32> -> vector<16x288xf32>
    %c0_118 = arith.constant 0 : index
    %c0_119 = arith.constant 0 : index
    %118 = vector.load %arg6[%c0_118, %c0_119] : memref<16x1xf32, #tpu.memory_space<vmem>>, vector<16x1xf32>
    %119 = vector.broadcast %118 : vector<16x1xf32> to vector<16x288xf32>
    %120 = arith.addf %117, %119 : vector<16x288xf32>
    %cst_120 = arith.constant 0.000000e+00 : f32
    %121 = vector.broadcast %cst_120 : f32 to vector<16x288xf32>
    %122 = arith.cmpf oge, %120, %121 : vector<16x288xf32>
    %cst_121 = arith.constant 1.000000e-01 : f32
    %123 = vector.broadcast %cst_121 : f32 to vector<16x288xf32>
    %124 = arith.mulf %123, %120 : vector<16x288xf32>
    %125 = arith.select %122, %120, %124 : vector<16x288xi1>, vector<16x288xf32>
    %c0_122 = arith.constant 0 : index
    %c0_123 = arith.constant 0 : index
    %126 = vector.load %arg7[%c0_122, %c0_123] : memref<16x288xf32, #tpu.memory_space<vmem>>, vector<16x288xf32>
    tpu.vector_store %arg7[%c0_122, %c0_123], %125 {strides = array<i32>} : memref<16x288xf32, #tpu.memory_space<vmem>>, vector<16x288xf32>,
    return
  }
  func.func @transform_0(%arg0: i32) -> (i32, i32) {
    %c0_i32 = arith.constant 0 : i32
    %c0_i32_0 = arith.constant 0 : i32
    %c0_i32_1 = arith.constant 0 : i32
    return %c0_i32, %c0_i32_0 : i32, i32
  }
  func.func @transform_1(%arg0: i32) -> (i32, i32) {
    %c0_i32 = arith.constant 0 : i32
    %c0_i32_0 = arith.constant 0 : i32
    %c0_i32_1 = arith.constant 0 : i32
    return %c0_i32, %c0_i32_0 : i32, i32
  }
  func.func @transform_2(%arg0: i32) -> (i32, i32) {
    %c0_i32 = arith.constant 0 : i32
    %c0_i32_0 = arith.constant 0 : i32
    %c0_i32_1 = arith.constant 0 : i32
    return %c0_i32, %c0_i32_0 : i32, i32
  }
  func.func @transform_3(%arg0: i32) -> (i32, i32) {
    %c0_i32 = arith.constant 0 : i32
    %c0_i32_0 = arith.constant 0 : i32
    %c0_i32_1 = arith.constant 0 : i32
    return %c0_i32, %c0_i32_0 : i32, i32
  }
  func.func @transform_4(%arg0: i32) -> (i32, i32) {
    %c0_i32 = arith.constant 0 : i32
    %c0_i32_0 = arith.constant 0 : i32
    %c0_i32_1 = arith.constant 0 : i32
    return %c0_i32, %c0_i32_0 : i32, i32
  }
  func.func @transform_5(%arg0: i32) -> (i32, i32) {
    %c0_i32 = arith.constant 0 : i32
    %c0_i32_0 = arith.constant 0 : i32
    %c0_i32_1 = arith.constant 0 : i32
    return %c0_i32, %c0_i32_0 : i32, i32
  }
  func.func @transform_6(%arg0: i32) -> (i32, i32) {
    %c0_i32 = arith.constant 0 : i32
    %c0_i32_0 = arith.constant 0 : i32
    %c0_i32_1 = arith.constant 0 : i32
    return %c0_i32, %c0_i32_0 : i32, i32
  }
}

module attributes {stable_mosaic.version = 11 : i64} {
  func.func @kernel(%arg0: i32, %arg1: memref<16x340xbf16, #tpu.memory_space<vmem>>, %arg2: memref<32x400xbf16, #tpu.memory_space<vmem>>, %arg3: memref<32x1xf32, #tpu.memory_space<vmem>>, %arg4: memref<32x288xf32, #tpu.memory_space<vmem>>, %arg5: memref<400x288xbf16, #tpu.memory_space<vmem>>) attributes {dimension_semantics = [#tpu.dimension_semantics<arbitrary>], iteration_bounds = array<i64: 1>, scalar_prefetch = 0 : i64, scratch_operands = 1 : i64, tpu.core_type = #tpu.core_type<tc>, window_params = [{pipeline_mode = #tpu.pipeline_mode<synchronous>, transform_indices = @transform_0, window_bounds = array<i64: 16, 340>}, {pipeline_mode = #tpu.pipeline_mode<synchronous>, transform_indices = @transform_1, window_bounds = array<i64: 32, 400>}, {pipeline_mode = #tpu.pipeline_mode<synchronous>, transform_indices = @transform_2, window_bounds = array<i64: 32, 1>}, {pipeline_mode = #tpu.pipeline_mode<synchronous>, transform_indices = @transform_3, window_bounds = array<i64: 32, 288>}]} {
    %c0 = arith.constant 0 : index
    %c0_0 = arith.constant 0 : index
    %0 = vector.load %arg1[%c0, %c0_0] : memref<16x340xbf16, #tpu.memory_space<vmem>>, vector<16x288xbf16>
    %c0_1 = arith.constant 0 : index
    %c0_2 = arith.constant 0 : index
    %1 = vector.load %arg5[%c0_1, %c0_2] : memref<400x288xbf16, #tpu.memory_space<vmem>>, vector<16x288xbf16>
    tpu.vector_store %arg5[%c0_1, %c0_2], %0 {strides = array<i32>} : memref<400x288xbf16, #tpu.memory_space<vmem>>, vector<16x288xbf16>,
    %c0_3 = arith.constant 0 : index
    %c1 = arith.constant 1 : index
    %2 = vector.load %arg1[%c0_3, %c1] : memref<16x340xbf16, #tpu.memory_space<vmem>>, vector<16x288xbf16>
    %c16 = arith.constant 16 : index
    %c0_4 = arith.constant 0 : index
    %3 = vector.load %arg5[%c16, %c0_4] : memref<400x288xbf16, #tpu.memory_space<vmem>>, vector<16x288xbf16>
    tpu.vector_store %arg5[%c16, %c0_4], %2 {strides = array<i32>} : memref<400x288xbf16, #tpu.memory_space<vmem>>, vector<16x288xbf16>,
    %c0_5 = arith.constant 0 : index
    %c2 = arith.constant 2 : index
    %4 = vector.load %arg1[%c0_5, %c2] : memref<16x340xbf16, #tpu.memory_space<vmem>>, vector<16x288xbf16>
    %c32 = arith.constant 32 : index
    %c0_6 = arith.constant 0 : index
    %5 = vector.load %arg5[%c32, %c0_6] : memref<400x288xbf16, #tpu.memory_space<vmem>>, vector<16x288xbf16>
    tpu.vector_store %arg5[%c32, %c0_6], %4 {strides = array<i32>} : memref<400x288xbf16, #tpu.memory_space<vmem>>, vector<16x288xbf16>,
    %c0_7 = arith.constant 0 : index
    %c3 = arith.constant 3 : index
    %6 = vector.load %arg1[%c0_7, %c3] : memref<16x340xbf16, #tpu.memory_space<vmem>>, vector<16x288xbf16>
    %c48 = arith.constant 48 : index
    %c0_8 = arith.constant 0 : index
    %7 = vector.load %arg5[%c48, %c0_8] : memref<400x288xbf16, #tpu.memory_space<vmem>>, vector<16x288xbf16>
    tpu.vector_store %arg5[%c48, %c0_8], %6 {strides = array<i32>} : memref<400x288xbf16, #tpu.memory_space<vmem>>, vector<16x288xbf16>,
    %c0_9 = arith.constant 0 : index
    %c4 = arith.constant 4 : index
    %8 = vector.load %arg1[%c0_9, %c4] : memref<16x340xbf16, #tpu.memory_space<vmem>>, vector<16x288xbf16>
    %c64 = arith.constant 64 : index
    %c0_10 = arith.constant 0 : index
    %9 = vector.load %arg5[%c64, %c0_10] : memref<400x288xbf16, #tpu.memory_space<vmem>>, vector<16x288xbf16>
    tpu.vector_store %arg5[%c64, %c0_10], %8 {strides = array<i32>} : memref<400x288xbf16, #tpu.memory_space<vmem>>, vector<16x288xbf16>,
    %c0_11 = arith.constant 0 : index
    %c12 = arith.constant 12 : index
    %10 = vector.load %arg1[%c0_11, %c12] : memref<16x340xbf16, #tpu.memory_space<vmem>>, vector<16x288xbf16>
    %c80 = arith.constant 80 : index
    %c0_12 = arith.constant 0 : index
    %11 = vector.load %arg5[%c80, %c0_12] : memref<400x288xbf16, #tpu.memory_space<vmem>>, vector<16x288xbf16>
    tpu.vector_store %arg5[%c80, %c0_12], %10 {strides = array<i32>} : memref<400x288xbf16, #tpu.memory_space<vmem>>, vector<16x288xbf16>,
    %c0_13 = arith.constant 0 : index
    %c13 = arith.constant 13 : index
    %12 = vector.load %arg1[%c0_13, %c13] : memref<16x340xbf16, #tpu.memory_space<vmem>>, vector<16x288xbf16>
    %c96 = arith.constant 96 : index
    %c0_14 = arith.constant 0 : index
    %13 = vector.load %arg5[%c96, %c0_14] : memref<400x288xbf16, #tpu.memory_space<vmem>>, vector<16x288xbf16>
    tpu.vector_store %arg5[%c96, %c0_14], %12 {strides = array<i32>} : memref<400x288xbf16, #tpu.memory_space<vmem>>, vector<16x288xbf16>,
    %c0_15 = arith.constant 0 : index
    %c14 = arith.constant 14 : index
    %14 = vector.load %arg1[%c0_15, %c14] : memref<16x340xbf16, #tpu.memory_space<vmem>>, vector<16x288xbf16>
    %c112 = arith.constant 112 : index
    %c0_16 = arith.constant 0 : index
    %15 = vector.load %arg5[%c112, %c0_16] : memref<400x288xbf16, #tpu.memory_space<vmem>>, vector<16x288xbf16>
    tpu.vector_store %arg5[%c112, %c0_16], %14 {strides = array<i32>} : memref<400x288xbf16, #tpu.memory_space<vmem>>, vector<16x288xbf16>,
    %c0_17 = arith.constant 0 : index
    %c15 = arith.constant 15 : index
    %16 = vector.load %arg1[%c0_17, %c15] : memref<16x340xbf16, #tpu.memory_space<vmem>>, vector<16x288xbf16>
    %c128 = arith.constant 128 : index
    %c0_18 = arith.constant 0 : index
    %17 = vector.load %arg5[%c128, %c0_18] : memref<400x288xbf16, #tpu.memory_space<vmem>>, vector<16x288xbf16>
    tpu.vector_store %arg5[%c128, %c0_18], %16 {strides = array<i32>} : memref<400x288xbf16, #tpu.memory_space<vmem>>, vector<16x288xbf16>,
    %c0_19 = arith.constant 0 : index
    %c16_20 = arith.constant 16 : index
    %18 = vector.load %arg1[%c0_19, %c16_20] : memref<16x340xbf16, #tpu.memory_space<vmem>>, vector<16x288xbf16>
    %c144 = arith.constant 144 : index
    %c0_21 = arith.constant 0 : index
    %19 = vector.load %arg5[%c144, %c0_21] : memref<400x288xbf16, #tpu.memory_space<vmem>>, vector<16x288xbf16>
    tpu.vector_store %arg5[%c144, %c0_21], %18 {strides = array<i32>} : memref<400x288xbf16, #tpu.memory_space<vmem>>, vector<16x288xbf16>,
    %c0_22 = arith.constant 0 : index
    %c24 = arith.constant 24 : index
    %20 = vector.load %arg1[%c0_22, %c24] : memref<16x340xbf16, #tpu.memory_space<vmem>>, vector<16x288xbf16>
    %c160 = arith.constant 160 : index
    %c0_23 = arith.constant 0 : index
    %21 = vector.load %arg5[%c160, %c0_23] : memref<400x288xbf16, #tpu.memory_space<vmem>>, vector<16x288xbf16>
    tpu.vector_store %arg5[%c160, %c0_23], %20 {strides = array<i32>} : memref<400x288xbf16, #tpu.memory_space<vmem>>, vector<16x288xbf16>,
    %c0_24 = arith.constant 0 : index
    %c25 = arith.constant 25 : index
    %22 = vector.load %arg1[%c0_24, %c25] : memref<16x340xbf16, #tpu.memory_space<vmem>>, vector<16x288xbf16>
    %c176 = arith.constant 176 : index
    %c0_25 = arith.constant 0 : index
    %23 = vector.load %arg5[%c176, %c0_25] : memref<400x288xbf16, #tpu.memory_space<vmem>>, vector<16x288xbf16>
    tpu.vector_store %arg5[%c176, %c0_25], %22 {strides = array<i32>} : memref<400x288xbf16, #tpu.memory_space<vmem>>, vector<16x288xbf16>,
    %c0_26 = arith.constant 0 : index
    %c26 = arith.constant 26 : index
    %24 = vector.load %arg1[%c0_26, %c26] : memref<16x340xbf16, #tpu.memory_space<vmem>>, vector<16x288xbf16>
    %c192 = arith.constant 192 : index
    %c0_27 = arith.constant 0 : index
    %25 = vector.load %arg5[%c192, %c0_27] : memref<400x288xbf16, #tpu.memory_space<vmem>>, vector<16x288xbf16>
    tpu.vector_store %arg5[%c192, %c0_27], %24 {strides = array<i32>} : memref<400x288xbf16, #tpu.memory_space<vmem>>, vector<16x288xbf16>,
    %c0_28 = arith.constant 0 : index
    %c27 = arith.constant 27 : index
    %26 = vector.load %arg1[%c0_28, %c27] : memref<16x340xbf16, #tpu.memory_space<vmem>>, vector<16x288xbf16>
    %c208 = arith.constant 208 : index
    %c0_29 = arith.constant 0 : index
    %27 = vector.load %arg5[%c208, %c0_29] : memref<400x288xbf16, #tpu.memory_space<vmem>>, vector<16x288xbf16>
    tpu.vector_store %arg5[%c208, %c0_29], %26 {strides = array<i32>} : memref<400x288xbf16, #tpu.memory_space<vmem>>, vector<16x288xbf16>,
    %c0_30 = arith.constant 0 : index
    %c28 = arith.constant 28 : index
    %28 = vector.load %arg1[%c0_30, %c28] : memref<16x340xbf16, #tpu.memory_space<vmem>>, vector<16x288xbf16>
    %c224 = arith.constant 224 : index
    %c0_31 = arith.constant 0 : index
    %29 = vector.load %arg5[%c224, %c0_31] : memref<400x288xbf16, #tpu.memory_space<vmem>>, vector<16x288xbf16>
    tpu.vector_store %arg5[%c224, %c0_31], %28 {strides = array<i32>} : memref<400x288xbf16, #tpu.memory_space<vmem>>, vector<16x288xbf16>,
    %c0_32 = arith.constant 0 : index
    %c36 = arith.constant 36 : index
    %30 = vector.load %arg1[%c0_32, %c36] : memref<16x340xbf16, #tpu.memory_space<vmem>>, vector<16x288xbf16>
    %c240 = arith.constant 240 : index
    %c0_33 = arith.constant 0 : index
    %31 = vector.load %arg5[%c240, %c0_33] : memref<400x288xbf16, #tpu.memory_space<vmem>>, vector<16x288xbf16>
    tpu.vector_store %arg5[%c240, %c0_33], %30 {strides = array<i32>} : memref<400x288xbf16, #tpu.memory_space<vmem>>, vector<16x288xbf16>,
    %c0_34 = arith.constant 0 : index
    %c37 = arith.constant 37 : index
    %32 = vector.load %arg1[%c0_34, %c37] : memref<16x340xbf16, #tpu.memory_space<vmem>>, vector<16x288xbf16>
    %c256 = arith.constant 256 : index
    %c0_35 = arith.constant 0 : index
    %33 = vector.load %arg5[%c256, %c0_35] : memref<400x288xbf16, #tpu.memory_space<vmem>>, vector<16x288xbf16>
    tpu.vector_store %arg5[%c256, %c0_35], %32 {strides = array<i32>} : memref<400x288xbf16, #tpu.memory_space<vmem>>, vector<16x288xbf16>,
    %c0_36 = arith.constant 0 : index
    %c38 = arith.constant 38 : index
    %34 = vector.load %arg1[%c0_36, %c38] : memref<16x340xbf16, #tpu.memory_space<vmem>>, vector<16x288xbf16>
    %c272 = arith.constant 272 : index
    %c0_37 = arith.constant 0 : index
    %35 = vector.load %arg5[%c272, %c0_37] : memref<400x288xbf16, #tpu.memory_space<vmem>>, vector<16x288xbf16>
    tpu.vector_store %arg5[%c272, %c0_37], %34 {strides = array<i32>} : memref<400x288xbf16, #tpu.memory_space<vmem>>, vector<16x288xbf16>,
    %c0_38 = arith.constant 0 : index
    %c39 = arith.constant 39 : index
    %36 = vector.load %arg1[%c0_38, %c39] : memref<16x340xbf16, #tpu.memory_space<vmem>>, vector<16x288xbf16>
    %c288 = arith.constant 288 : index
    %c0_39 = arith.constant 0 : index
    %37 = vector.load %arg5[%c288, %c0_39] : memref<400x288xbf16, #tpu.memory_space<vmem>>, vector<16x288xbf16>
    tpu.vector_store %arg5[%c288, %c0_39], %36 {strides = array<i32>} : memref<400x288xbf16, #tpu.memory_space<vmem>>, vector<16x288xbf16>,
    %c0_40 = arith.constant 0 : index
    %c40 = arith.constant 40 : index
    %38 = vector.load %arg1[%c0_40, %c40] : memref<16x340xbf16, #tpu.memory_space<vmem>>, vector<16x288xbf16>
    %c304 = arith.constant 304 : index
    %c0_41 = arith.constant 0 : index
    %39 = vector.load %arg5[%c304, %c0_41] : memref<400x288xbf16, #tpu.memory_space<vmem>>, vector<16x288xbf16>
    tpu.vector_store %arg5[%c304, %c0_41], %38 {strides = array<i32>} : memref<400x288xbf16, #tpu.memory_space<vmem>>, vector<16x288xbf16>,
    %c0_42 = arith.constant 0 : index
    %c48_43 = arith.constant 48 : index
    %40 = vector.load %arg1[%c0_42, %c48_43] : memref<16x340xbf16, #tpu.memory_space<vmem>>, vector<16x288xbf16>
    %c320 = arith.constant 320 : index
    %c0_44 = arith.constant 0 : index
    %41 = vector.load %arg5[%c320, %c0_44] : memref<400x288xbf16, #tpu.memory_space<vmem>>, vector<16x288xbf16>
    tpu.vector_store %arg5[%c320, %c0_44], %40 {strides = array<i32>} : memref<400x288xbf16, #tpu.memory_space<vmem>>, vector<16x288xbf16>,
    %c0_45 = arith.constant 0 : index
    %c49 = arith.constant 49 : index
    %42 = vector.load %arg1[%c0_45, %c49] : memref<16x340xbf16, #tpu.memory_space<vmem>>, vector<16x288xbf16>
    %c336 = arith.constant 336 : index
    %c0_46 = arith.constant 0 : index
    %43 = vector.load %arg5[%c336, %c0_46] : memref<400x288xbf16, #tpu.memory_space<vmem>>, vector<16x288xbf16>
    tpu.vector_store %arg5[%c336, %c0_46], %42 {strides = array<i32>} : memref<400x288xbf16, #tpu.memory_space<vmem>>, vector<16x288xbf16>,
    %c0_47 = arith.constant 0 : index
    %c50 = arith.constant 50 : index
    %44 = vector.load %arg1[%c0_47, %c50] : memref<16x340xbf16, #tpu.memory_space<vmem>>, vector<16x288xbf16>
    %c352 = arith.constant 352 : index
    %c0_48 = arith.constant 0 : index
    %45 = vector.load %arg5[%c352, %c0_48] : memref<400x288xbf16, #tpu.memory_space<vmem>>, vector<16x288xbf16>
    tpu.vector_store %arg5[%c352, %c0_48], %44 {strides = array<i32>} : memref<400x288xbf16, #tpu.memory_space<vmem>>, vector<16x288xbf16>,
    %c0_49 = arith.constant 0 : index
    %c51 = arith.constant 51 : index
    %46 = vector.load %arg1[%c0_49, %c51] : memref<16x340xbf16, #tpu.memory_space<vmem>>, vector<16x288xbf16>
    %c368 = arith.constant 368 : index
    %c0_50 = arith.constant 0 : index
    %47 = vector.load %arg5[%c368, %c0_50] : memref<400x288xbf16, #tpu.memory_space<vmem>>, vector<16x288xbf16>
    tpu.vector_store %arg5[%c368, %c0_50], %46 {strides = array<i32>} : memref<400x288xbf16, #tpu.memory_space<vmem>>, vector<16x288xbf16>,
    %c0_51 = arith.constant 0 : index
    %c52 = arith.constant 52 : index
    %48 = vector.load %arg1[%c0_51, %c52] : memref<16x340xbf16, #tpu.memory_space<vmem>>, vector<16x288xbf16>
    %c384 = arith.constant 384 : index
    %c0_52 = arith.constant 0 : index
    %49 = vector.load %arg5[%c384, %c0_52] : memref<400x288xbf16, #tpu.memory_space<vmem>>, vector<16x288xbf16>
    tpu.vector_store %arg5[%c384, %c0_52], %48 {strides = array<i32>} : memref<400x288xbf16, #tpu.memory_space<vmem>>, vector<16x288xbf16>,
    %c0_53 = arith.constant 0 : index
    %c0_54 = arith.constant 0 : index
    %50 = vector.load %arg2[%c0_53, %c0_54] : memref<32x400xbf16, #tpu.memory_space<vmem>>, vector<32x400xbf16>
    %c0_55 = arith.constant 0 : index
    %c0_56 = arith.constant 0 : index
    %51 = vector.load %arg5[%c0_55, %c0_56] : memref<400x288xbf16, #tpu.memory_space<vmem>>, vector<400x288xbf16>
    %cst = arith.constant dense<0.000000e+00> : vector<32x288xf32>
    %52 = tpu.matmul %50, %51, %cst {dimension_numbers = #tpu.dot_dimension_numbers<[1], [0], [0], [1], [0, 0, 1, 1], [], []>} : vector<32x400xbf16>, vector<400x288xbf16>, vector<32x288xf32> -> vector<32x288xf32>
    %c0_57 = arith.constant 0 : index
    %c0_58 = arith.constant 0 : index
    %53 = vector.load %arg3[%c0_57, %c0_58] : memref<32x1xf32, #tpu.memory_space<vmem>>, vector<32x1xf32>
    %54 = vector.broadcast %53 : vector<32x1xf32> to vector<32x288xf32>
    %55 = arith.addf %52, %54 : vector<32x288xf32>
    %cst_59 = arith.constant 0.000000e+00 : f32
    %56 = vector.broadcast %cst_59 : f32 to vector<32x288xf32>
    %57 = arith.cmpf oge, %55, %56 : vector<32x288xf32>
    %cst_60 = arith.constant 1.000000e-01 : f32
    %58 = vector.broadcast %cst_60 : f32 to vector<32x288xf32>
    %59 = arith.mulf %58, %55 : vector<32x288xf32>
    %60 = arith.select %57, %55, %59 : vector<32x288xi1>, vector<32x288xf32>
    %c0_61 = arith.constant 0 : index
    %c0_62 = arith.constant 0 : index
    %61 = vector.load %arg4[%c0_61, %c0_62] : memref<32x288xf32, #tpu.memory_space<vmem>>, vector<32x288xf32>
    tpu.vector_store %arg4[%c0_61, %c0_62], %60 {strides = array<i32>} : memref<32x288xf32, #tpu.memory_space<vmem>>, vector<32x288xf32>,
    return
  }
  func.func @transform_0(%arg0: i32) -> (i32, i32) {
    %c0_i32 = arith.constant 0 : i32
    %c0_i32_0 = arith.constant 0 : i32
    %c0_i32_1 = arith.constant 0 : i32
    return %c0_i32, %c0_i32_0 : i32, i32
  }
  func.func @transform_1(%arg0: i32) -> (i32, i32) {
    %c0_i32 = arith.constant 0 : i32
    %c0_i32_0 = arith.constant 0 : i32
    %c0_i32_1 = arith.constant 0 : i32
    return %c0_i32, %c0_i32_0 : i32, i32
  }
  func.func @transform_2(%arg0: i32) -> (i32, i32) {
    %c0_i32 = arith.constant 0 : i32
    %c0_i32_0 = arith.constant 0 : i32
    %c0_i32_1 = arith.constant 0 : i32
    return %c0_i32, %c0_i32_0 : i32, i32
  }
  func.func @transform_3(%arg0: i32) -> (i32, i32) {
    %c0_i32 = arith.constant 0 : i32
    %c0_i32_0 = arith.constant 0 : i32
    %c0_i32_1 = arith.constant 0 : i32
    return %c0_i32, %c0_i32_0 : i32, i32
  }
}

module attributes {stable_mosaic.version = 11 : i64} {
  func.func @kernel(%arg0: i32, %arg1: memref<32x236xbf16, #tpu.memory_space<vmem>>, %arg2: memref<32x800xbf16, #tpu.memory_space<vmem>>, %arg3: memref<32x1xf32, #tpu.memory_space<vmem>>, %arg4: memref<1x200xf32, #tpu.memory_space<vmem>>, %arg5: memref<32x800xbf16, #tpu.memory_space<vmem>>, %arg6: memref<32x1xf32, #tpu.memory_space<vmem>>, %arg7: memref<1x164xf32, #tpu.memory_space<vmem>>, %arg8: memref<32x800xbf16, #tpu.memory_space<vmem>>, %arg9: memref<32x1xf32, #tpu.memory_space<vmem>>, %arg10: memref<32x128xf32, #tpu.memory_space<vmem>>, %arg11: memref<800x200xbf16, #tpu.memory_space<vmem>>, %arg12: memref<800x164xbf16, #tpu.memory_space<vmem>>, %arg13: memref<800x128xbf16, #tpu.memory_space<vmem>>) attributes {dimension_semantics = [#tpu.dimension_semantics<arbitrary>], iteration_bounds = array<i64: 1>, scalar_prefetch = 0 : i64, scratch_operands = 3 : i64, tpu.core_type = #tpu.core_type<tc>, window_params = [{pipeline_mode = #tpu.pipeline_mode<synchronous>, transform_indices = @transform_0, window_bounds = array<i64: 32, 236>}, {pipeline_mode = #tpu.pipeline_mode<synchronous>, transform_indices = @transform_1, window_bounds = array<i64: 32, 800>}, {pipeline_mode = #tpu.pipeline_mode<synchronous>, transform_indices = @transform_2, window_bounds = array<i64: 32, 1>}, {pipeline_mode = #tpu.pipeline_mode<synchronous>, transform_indices = @transform_3, window_bounds = array<i64: 1, 200>}, {pipeline_mode = #tpu.pipeline_mode<synchronous>, transform_indices = @transform_4, window_bounds = array<i64: 32, 800>}, {pipeline_mode = #tpu.pipeline_mode<synchronous>, transform_indices = @transform_5, window_bounds = array<i64: 32, 1>}, {pipeline_mode = #tpu.pipeline_mode<synchronous>, transform_indices = @transform_6, window_bounds = array<i64: 1, 164>}, {pipeline_mode = #tpu.pipeline_mode<synchronous>, transform_indices = @transform_7, window_bounds = array<i64: 32, 800>}, {pipeline_mode = #tpu.pipeline_mode<synchronous>, transform_indices = @transform_8, window_bounds = array<i64: 32, 1>}, {pipeline_mode = #tpu.pipeline_mode<synchronous>, transform_indices = @transform_9, window_bounds = array<i64: 32, 128>}]} {
    %c0 = arith.constant 0 : index
    %c0_0 = arith.constant 0 : index
    %0 = vector.load %arg1[%c0, %c0_0] : memref<32x236xbf16, #tpu.memory_space<vmem>>, vector<32x200xbf16>
    %c0_1 = arith.constant 0 : index
    %c0_2 = arith.constant 0 : index
    %1 = vector.load %arg11[%c0_1, %c0_2] : memref<800x200xbf16, #tpu.memory_space<vmem>>, vector<32x200xbf16>
    tpu.vector_store %arg11[%c0_1, %c0_2], %0 {strides = array<i32>} : memref<800x200xbf16, #tpu.memory_space<vmem>>, vector<32x200xbf16>,
    %c0_3 = arith.constant 0 : index
    %c1 = arith.constant 1 : index
    %2 = vector.load %arg1[%c0_3, %c1] : memref<32x236xbf16, #tpu.memory_space<vmem>>, vector<32x200xbf16>
    %c32 = arith.constant 32 : index
    %c0_4 = arith.constant 0 : index
    %3 = vector.load %arg11[%c32, %c0_4] : memref<800x200xbf16, #tpu.memory_space<vmem>>, vector<32x200xbf16>
    tpu.vector_store %arg11[%c32, %c0_4], %2 {strides = array<i32>} : memref<800x200xbf16, #tpu.memory_space<vmem>>, vector<32x200xbf16>,
    %c0_5 = arith.constant 0 : index
    %c2 = arith.constant 2 : index
    %4 = vector.load %arg1[%c0_5, %c2] : memref<32x236xbf16, #tpu.memory_space<vmem>>, vector<32x200xbf16>
    %c64 = arith.constant 64 : index
    %c0_6 = arith.constant 0 : index
    %5 = vector.load %arg11[%c64, %c0_6] : memref<800x200xbf16, #tpu.memory_space<vmem>>, vector<32x200xbf16>
    tpu.vector_store %arg11[%c64, %c0_6], %4 {strides = array<i32>} : memref<800x200xbf16, #tpu.memory_space<vmem>>, vector<32x200xbf16>,
    %c0_7 = arith.constant 0 : index
    %c3 = arith.constant 3 : index
    %6 = vector.load %arg1[%c0_7, %c3] : memref<32x236xbf16, #tpu.memory_space<vmem>>, vector<32x200xbf16>
    %c96 = arith.constant 96 : index
    %c0_8 = arith.constant 0 : index
    %7 = vector.load %arg11[%c96, %c0_8] : memref<800x200xbf16, #tpu.memory_space<vmem>>, vector<32x200xbf16>
    tpu.vector_store %arg11[%c96, %c0_8], %6 {strides = array<i32>} : memref<800x200xbf16, #tpu.memory_space<vmem>>, vector<32x200xbf16>,
    %c0_9 = arith.constant 0 : index
    %c4 = arith.constant 4 : index
    %8 = vector.load %arg1[%c0_9, %c4] : memref<32x236xbf16, #tpu.memory_space<vmem>>, vector<32x200xbf16>
    %c128 = arith.constant 128 : index
    %c0_10 = arith.constant 0 : index
    %9 = vector.load %arg11[%c128, %c0_10] : memref<800x200xbf16, #tpu.memory_space<vmem>>, vector<32x200xbf16>
    tpu.vector_store %arg11[%c128, %c0_10], %8 {strides = array<i32>} : memref<800x200xbf16, #tpu.memory_space<vmem>>, vector<32x200xbf16>,
    %c0_11 = arith.constant 0 : index
    %c8 = arith.constant 8 : index
    %10 = vector.load %arg1[%c0_11, %c8] : memref<32x236xbf16, #tpu.memory_space<vmem>>, vector<32x200xbf16>
    %c160 = arith.constant 160 : index
    %c0_12 = arith.constant 0 : index
    %11 = vector.load %arg11[%c160, %c0_12] : memref<800x200xbf16, #tpu.memory_space<vmem>>, vector<32x200xbf16>
    tpu.vector_store %arg11[%c160, %c0_12], %10 {strides = array<i32>} : memref<800x200xbf16, #tpu.memory_space<vmem>>, vector<32x200xbf16>,
    %c0_13 = arith.constant 0 : index
    %c9 = arith.constant 9 : index
    %12 = vector.load %arg1[%c0_13, %c9] : memref<32x236xbf16, #tpu.memory_space<vmem>>, vector<32x200xbf16>
    %c192 = arith.constant 192 : index
    %c0_14 = arith.constant 0 : index
    %13 = vector.load %arg11[%c192, %c0_14] : memref<800x200xbf16, #tpu.memory_space<vmem>>, vector<32x200xbf16>
    tpu.vector_store %arg11[%c192, %c0_14], %12 {strides = array<i32>} : memref<800x200xbf16, #tpu.memory_space<vmem>>, vector<32x200xbf16>,
    %c0_15 = arith.constant 0 : index
    %c10 = arith.constant 10 : index
    %14 = vector.load %arg1[%c0_15, %c10] : memref<32x236xbf16, #tpu.memory_space<vmem>>, vector<32x200xbf16>
    %c224 = arith.constant 224 : index
    %c0_16 = arith.constant 0 : index
    %15 = vector.load %arg11[%c224, %c0_16] : memref<800x200xbf16, #tpu.memory_space<vmem>>, vector<32x200xbf16>
    tpu.vector_store %arg11[%c224, %c0_16], %14 {strides = array<i32>} : memref<800x200xbf16, #tpu.memory_space<vmem>>, vector<32x200xbf16>,
    %c0_17 = arith.constant 0 : index
    %c11 = arith.constant 11 : index
    %16 = vector.load %arg1[%c0_17, %c11] : memref<32x236xbf16, #tpu.memory_space<vmem>>, vector<32x200xbf16>
    %c256 = arith.constant 256 : index
    %c0_18 = arith.constant 0 : index
    %17 = vector.load %arg11[%c256, %c0_18] : memref<800x200xbf16, #tpu.memory_space<vmem>>, vector<32x200xbf16>
    tpu.vector_store %arg11[%c256, %c0_18], %16 {strides = array<i32>} : memref<800x200xbf16, #tpu.memory_space<vmem>>, vector<32x200xbf16>,
    %c0_19 = arith.constant 0 : index
    %c12 = arith.constant 12 : index
    %18 = vector.load %arg1[%c0_19, %c12] : memref<32x236xbf16, #tpu.memory_space<vmem>>, vector<32x200xbf16>
    %c288 = arith.constant 288 : index
    %c0_20 = arith.constant 0 : index
    %19 = vector.load %arg11[%c288, %c0_20] : memref<800x200xbf16, #tpu.memory_space<vmem>>, vector<32x200xbf16>
    tpu.vector_store %arg11[%c288, %c0_20], %18 {strides = array<i32>} : memref<800x200xbf16, #tpu.memory_space<vmem>>, vector<32x200xbf16>,
    %c0_21 = arith.constant 0 : index
    %c16 = arith.constant 16 : index
    %20 = vector.load %arg1[%c0_21, %c16] : memref<32x236xbf16, #tpu.memory_space<vmem>>, vector<32x200xbf16>
    %c320 = arith.constant 320 : index
    %c0_22 = arith.constant 0 : index
    %21 = vector.load %arg11[%c320, %c0_22] : memref<800x200xbf16, #tpu.memory_space<vmem>>, vector<32x200xbf16>
    tpu.vector_store %arg11[%c320, %c0_22], %20 {strides = array<i32>} : memref<800x200xbf16, #tpu.memory_space<vmem>>, vector<32x200xbf16>,
    %c0_23 = arith.constant 0 : index
    %c17 = arith.constant 17 : index
    %22 = vector.load %arg1[%c0_23, %c17] : memref<32x236xbf16, #tpu.memory_space<vmem>>, vector<32x200xbf16>
    %c352 = arith.constant 352 : index
    %c0_24 = arith.constant 0 : index
    %23 = vector.load %arg11[%c352, %c0_24] : memref<800x200xbf16, #tpu.memory_space<vmem>>, vector<32x200xbf16>
    tpu.vector_store %arg11[%c352, %c0_24], %22 {strides = array<i32>} : memref<800x200xbf16, #tpu.memory_space<vmem>>, vector<32x200xbf16>,
    %c0_25 = arith.constant 0 : index
    %c18 = arith.constant 18 : index
    %24 = vector.load %arg1[%c0_25, %c18] : memref<32x236xbf16, #tpu.memory_space<vmem>>, vector<32x200xbf16>
    %c384 = arith.constant 384 : index
    %c0_26 = arith.constant 0 : index
    %25 = vector.load %arg11[%c384, %c0_26] : memref<800x200xbf16, #tpu.memory_space<vmem>>, vector<32x200xbf16>
    tpu.vector_store %arg11[%c384, %c0_26], %24 {strides = array<i32>} : memref<800x200xbf16, #tpu.memory_space<vmem>>, vector<32x200xbf16>,
    %c0_27 = arith.constant 0 : index
    %c19 = arith.constant 19 : index
    %26 = vector.load %arg1[%c0_27, %c19] : memref<32x236xbf16, #tpu.memory_space<vmem>>, vector<32x200xbf16>
    %c416 = arith.constant 416 : index
    %c0_28 = arith.constant 0 : index
    %27 = vector.load %arg11[%c416, %c0_28] : memref<800x200xbf16, #tpu.memory_space<vmem>>, vector<32x200xbf16>
    tpu.vector_store %arg11[%c416, %c0_28], %26 {strides = array<i32>} : memref<800x200xbf16, #tpu.memory_space<vmem>>, vector<32x200xbf16>,
    %c0_29 = arith.constant 0 : index
    %c20 = arith.constant 20 : index
    %28 = vector.load %arg1[%c0_29, %c20] : memref<32x236xbf16, #tpu.memory_space<vmem>>, vector<32x200xbf16>
    %c448 = arith.constant 448 : index
    %c0_30 = arith.constant 0 : index
    %29 = vector.load %arg11[%c448, %c0_30] : memref<800x200xbf16, #tpu.memory_space<vmem>>, vector<32x200xbf16>
    tpu.vector_store %arg11[%c448, %c0_30], %28 {strides = array<i32>} : memref<800x200xbf16, #tpu.memory_space<vmem>>, vector<32x200xbf16>,
    %c0_31 = arith.constant 0 : index
    %c24 = arith.constant 24 : index
    %30 = vector.load %arg1[%c0_31, %c24] : memref<32x236xbf16, #tpu.memory_space<vmem>>, vector<32x200xbf16>
    %c480 = arith.constant 480 : index
    %c0_32 = arith.constant 0 : index
    %31 = vector.load %arg11[%c480, %c0_32] : memref<800x200xbf16, #tpu.memory_space<vmem>>, vector<32x200xbf16>
    tpu.vector_store %arg11[%c480, %c0_32], %30 {strides = array<i32>} : memref<800x200xbf16, #tpu.memory_space<vmem>>, vector<32x200xbf16>,
    %c0_33 = arith.constant 0 : index
    %c25 = arith.constant 25 : index
    %32 = vector.load %arg1[%c0_33, %c25] : memref<32x236xbf16, #tpu.memory_space<vmem>>, vector<32x200xbf16>
    %c512 = arith.constant 512 : index
    %c0_34 = arith.constant 0 : index
    %33 = vector.load %arg11[%c512, %c0_34] : memref<800x200xbf16, #tpu.memory_space<vmem>>, vector<32x200xbf16>
    tpu.vector_store %arg11[%c512, %c0_34], %32 {strides = array<i32>} : memref<800x200xbf16, #tpu.memory_space<vmem>>, vector<32x200xbf16>,
    %c0_35 = arith.constant 0 : index
    %c26 = arith.constant 26 : index
    %34 = vector.load %arg1[%c0_35, %c26] : memref<32x236xbf16, #tpu.memory_space<vmem>>, vector<32x200xbf16>
    %c544 = arith.constant 544 : index
    %c0_36 = arith.constant 0 : index
    %35 = vector.load %arg11[%c544, %c0_36] : memref<800x200xbf16, #tpu.memory_space<vmem>>, vector<32x200xbf16>
    tpu.vector_store %arg11[%c544, %c0_36], %34 {strides = array<i32>} : memref<800x200xbf16, #tpu.memory_space<vmem>>, vector<32x200xbf16>,
    %c0_37 = arith.constant 0 : index
    %c27 = arith.constant 27 : index
    %36 = vector.load %arg1[%c0_37, %c27] : memref<32x236xbf16, #tpu.memory_space<vmem>>, vector<32x200xbf16>
    %c576 = arith.constant 576 : index
    %c0_38 = arith.constant 0 : index
    %37 = vector.load %arg11[%c576, %c0_38] : memref<800x200xbf16, #tpu.memory_space<vmem>>, vector<32x200xbf16>
    tpu.vector_store %arg11[%c576, %c0_38], %36 {strides = array<i32>} : memref<800x200xbf16, #tpu.memory_space<vmem>>, vector<32x200xbf16>,
    %c0_39 = arith.constant 0 : index
    %c28 = arith.constant 28 : index
    %38 = vector.load %arg1[%c0_39, %c28] : memref<32x236xbf16, #tpu.memory_space<vmem>>, vector<32x200xbf16>
    %c608 = arith.constant 608 : index
    %c0_40 = arith.constant 0 : index
    %39 = vector.load %arg11[%c608, %c0_40] : memref<800x200xbf16, #tpu.memory_space<vmem>>, vector<32x200xbf16>
    tpu.vector_store %arg11[%c608, %c0_40], %38 {strides = array<i32>} : memref<800x200xbf16, #tpu.memory_space<vmem>>, vector<32x200xbf16>,
    %c0_41 = arith.constant 0 : index
    %c32_42 = arith.constant 32 : index
    %40 = vector.load %arg1[%c0_41, %c32_42] : memref<32x236xbf16, #tpu.memory_space<vmem>>, vector<32x200xbf16>
    %c640 = arith.constant 640 : index
    %c0_43 = arith.constant 0 : index
    %41 = vector.load %arg11[%c640, %c0_43] : memref<800x200xbf16, #tpu.memory_space<vmem>>, vector<32x200xbf16>
    tpu.vector_store %arg11[%c640, %c0_43], %40 {strides = array<i32>} : memref<800x200xbf16, #tpu.memory_space<vmem>>, vector<32x200xbf16>,
    %c0_44 = arith.constant 0 : index
    %c33 = arith.constant 33 : index
    %42 = vector.load %arg1[%c0_44, %c33] : memref<32x236xbf16, #tpu.memory_space<vmem>>, vector<32x200xbf16>
    %c672 = arith.constant 672 : index
    %c0_45 = arith.constant 0 : index
    %43 = vector.load %arg11[%c672, %c0_45] : memref<800x200xbf16, #tpu.memory_space<vmem>>, vector<32x200xbf16>
    tpu.vector_store %arg11[%c672, %c0_45], %42 {strides = array<i32>} : memref<800x200xbf16, #tpu.memory_space<vmem>>, vector<32x200xbf16>,
    %c0_46 = arith.constant 0 : index
    %c34 = arith.constant 34 : index
    %44 = vector.load %arg1[%c0_46, %c34] : memref<32x236xbf16, #tpu.memory_space<vmem>>, vector<32x200xbf16>
    %c704 = arith.constant 704 : index
    %c0_47 = arith.constant 0 : index
    %45 = vector.load %arg11[%c704, %c0_47] : memref<800x200xbf16, #tpu.memory_space<vmem>>, vector<32x200xbf16>
    tpu.vector_store %arg11[%c704, %c0_47], %44 {strides = array<i32>} : memref<800x200xbf16, #tpu.memory_space<vmem>>, vector<32x200xbf16>,
    %c0_48 = arith.constant 0 : index
    %c35 = arith.constant 35 : index
    %46 = vector.load %arg1[%c0_48, %c35] : memref<32x236xbf16, #tpu.memory_space<vmem>>, vector<32x200xbf16>
    %c736 = arith.constant 736 : index
    %c0_49 = arith.constant 0 : index
    %47 = vector.load %arg11[%c736, %c0_49] : memref<800x200xbf16, #tpu.memory_space<vmem>>, vector<32x200xbf16>
    tpu.vector_store %arg11[%c736, %c0_49], %46 {strides = array<i32>} : memref<800x200xbf16, #tpu.memory_space<vmem>>, vector<32x200xbf16>,
    %c0_50 = arith.constant 0 : index
    %c36 = arith.constant 36 : index
    %48 = vector.load %arg1[%c0_50, %c36] : memref<32x236xbf16, #tpu.memory_space<vmem>>, vector<32x200xbf16>
    %c768 = arith.constant 768 : index
    %c0_51 = arith.constant 0 : index
    %49 = vector.load %arg11[%c768, %c0_51] : memref<800x200xbf16, #tpu.memory_space<vmem>>, vector<32x200xbf16>
    tpu.vector_store %arg11[%c768, %c0_51], %48 {strides = array<i32>} : memref<800x200xbf16, #tpu.memory_space<vmem>>, vector<32x200xbf16>,
    %c0_52 = arith.constant 0 : index
    %c0_53 = arith.constant 0 : index
    %50 = vector.load %arg2[%c0_52, %c0_53] : memref<32x800xbf16, #tpu.memory_space<vmem>>, vector<32x800xbf16>
    %c0_54 = arith.constant 0 : index
    %c0_55 = arith.constant 0 : index
    %51 = vector.load %arg11[%c0_54, %c0_55] : memref<800x200xbf16, #tpu.memory_space<vmem>>, vector<800x200xbf16>
    %cst = arith.constant dense<0.000000e+00> : vector<32x200xf32>
    %52 = tpu.matmul %50, %51, %cst {dimension_numbers = #tpu.dot_dimension_numbers<[1], [0], [0], [1], [0, 0, 1, 1], [], []>} : vector<32x800xbf16>, vector<800x200xbf16>, vector<32x200xf32> -> vector<32x200xf32>
    %c0_56 = arith.constant 0 : index
    %c0_57 = arith.constant 0 : index
    %53 = vector.load %arg3[%c0_56, %c0_57] : memref<32x1xf32, #tpu.memory_space<vmem>>, vector<32x1xf32>
    %54 = vector.broadcast %53 : vector<32x1xf32> to vector<32x200xf32>
    %55 = arith.addf %52, %54 : vector<32x200xf32>
    %cst_58 = arith.constant 0.000000e+00 : f32
    %56 = vector.broadcast %cst_58 : f32 to vector<32x200xf32>
    %57 = arith.cmpf oge, %55, %56 : vector<32x200xf32>
    %cst_59 = arith.constant 1.000000e-01 : f32
    %58 = vector.broadcast %cst_59 : f32 to vector<32x200xf32>
    %59 = arith.mulf %58, %55 : vector<32x200xf32>
    %60 = arith.select %57, %55, %59 : vector<32x200xi1>, vector<32x200xf32>
    %c0_60 = arith.constant 0 : index
    %c0_61 = arith.constant 0 : index
    %61 = vector.load %arg4[%c0_60, %c0_61] : memref<1x200xf32, #tpu.memory_space<vmem>>, vector<1x200xf32>
    %62 = vector.broadcast %61 : vector<1x200xf32> to vector<32x200xf32>
    %63 = arith.mulf %60, %62 : vector<32x200xf32>
    %64 = arith.truncf %63 : vector<32x200xf32> to vector<32x200xbf16>
    %65 = vector.extract_strided_slice %64 {offsets = [0, 0], sizes = [32, 164], strides = [1, 1]} : vector<32x200xbf16> to vector<32x164xbf16>
    %c0_62 = arith.constant 0 : index
    %c0_63 = arith.constant 0 : index
    %66 = vector.load %arg12[%c0_62, %c0_63] : memref<800x164xbf16, #tpu.memory_space<vmem>>, vector<32x164xbf16>
    tpu.vector_store %arg12[%c0_62, %c0_63], %65 {strides = array<i32>} : memref<800x164xbf16, #tpu.memory_space<vmem>>, vector<32x164xbf16>,
    %67 = vector.extract_strided_slice %64 {offsets = [0, 1], sizes = [32, 164], strides = [1, 1]} : vector<32x200xbf16> to vector<32x164xbf16>
    %c32_64 = arith.constant 32 : index
    %c0_65 = arith.constant 0 : index
    %68 = vector.load %arg12[%c32_64, %c0_65] : memref<800x164xbf16, #tpu.memory_space<vmem>>, vector<32x164xbf16>
    tpu.vector_store %arg12[%c32_64, %c0_65], %67 {strides = array<i32>} : memref<800x164xbf16, #tpu.memory_space<vmem>>, vector<32x164xbf16>,
    %69 = vector.extract_strided_slice %64 {offsets = [0, 2], sizes = [32, 164], strides = [1, 1]} : vector<32x200xbf16> to vector<32x164xbf16>
    %c64_66 = arith.constant 64 : index
    %c0_67 = arith.constant 0 : index
    %70 = vector.load %arg12[%c64_66, %c0_67] : memref<800x164xbf16, #tpu.memory_space<vmem>>, vector<32x164xbf16>
    tpu.vector_store %arg12[%c64_66, %c0_67], %69 {strides = array<i32>} : memref<800x164xbf16, #tpu.memory_space<vmem>>, vector<32x164xbf16>,
    %71 = vector.extract_strided_slice %64 {offsets = [0, 3], sizes = [32, 164], strides = [1, 1]} : vector<32x200xbf16> to vector<32x164xbf16>
    %c96_68 = arith.constant 96 : index
    %c0_69 = arith.constant 0 : index
    %72 = vector.load %arg12[%c96_68, %c0_69] : memref<800x164xbf16, #tpu.memory_space<vmem>>, vector<32x164xbf16>
    tpu.vector_store %arg12[%c96_68, %c0_69], %71 {strides = array<i32>} : memref<800x164xbf16, #tpu.memory_space<vmem>>, vector<32x164xbf16>,
    %73 = vector.extract_strided_slice %64 {offsets = [0, 4], sizes = [32, 164], strides = [1, 1]} : vector<32x200xbf16> to vector<32x164xbf16>
    %c128_70 = arith.constant 128 : index
    %c0_71 = arith.constant 0 : index
    %74 = vector.load %arg12[%c128_70, %c0_71] : memref<800x164xbf16, #tpu.memory_space<vmem>>, vector<32x164xbf16>
    tpu.vector_store %arg12[%c128_70, %c0_71], %73 {strides = array<i32>} : memref<800x164xbf16, #tpu.memory_space<vmem>>, vector<32x164xbf16>,
    %75 = vector.extract_strided_slice %64 {offsets = [0, 8], sizes = [32, 164], strides = [1, 1]} : vector<32x200xbf16> to vector<32x164xbf16>
    %c160_72 = arith.constant 160 : index
    %c0_73 = arith.constant 0 : index
    %76 = vector.load %arg12[%c160_72, %c0_73] : memref<800x164xbf16, #tpu.memory_space<vmem>>, vector<32x164xbf16>
    tpu.vector_store %arg12[%c160_72, %c0_73], %75 {strides = array<i32>} : memref<800x164xbf16, #tpu.memory_space<vmem>>, vector<32x164xbf16>,
    %77 = vector.extract_strided_slice %64 {offsets = [0, 9], sizes = [32, 164], strides = [1, 1]} : vector<32x200xbf16> to vector<32x164xbf16>
    %c192_74 = arith.constant 192 : index
    %c0_75 = arith.constant 0 : index
    %78 = vector.load %arg12[%c192_74, %c0_75] : memref<800x164xbf16, #tpu.memory_space<vmem>>, vector<32x164xbf16>
    tpu.vector_store %arg12[%c192_74, %c0_75], %77 {strides = array<i32>} : memref<800x164xbf16, #tpu.memory_space<vmem>>, vector<32x164xbf16>,
    %79 = vector.extract_strided_slice %64 {offsets = [0, 10], sizes = [32, 164], strides = [1, 1]} : vector<32x200xbf16> to vector<32x164xbf16>
    %c224_76 = arith.constant 224 : index
    %c0_77 = arith.constant 0 : index
    %80 = vector.load %arg12[%c224_76, %c0_77] : memref<800x164xbf16, #tpu.memory_space<vmem>>, vector<32x164xbf16>
    tpu.vector_store %arg12[%c224_76, %c0_77], %79 {strides = array<i32>} : memref<800x164xbf16, #tpu.memory_space<vmem>>, vector<32x164xbf16>,
    %81 = vector.extract_strided_slice %64 {offsets = [0, 11], sizes = [32, 164], strides = [1, 1]} : vector<32x200xbf16> to vector<32x164xbf16>
    %c256_78 = arith.constant 256 : index
    %c0_79 = arith.constant 0 : index
    %82 = vector.load %arg12[%c256_78, %c0_79] : memref<800x164xbf16, #tpu.memory_space<vmem>>, vector<32x164xbf16>
    tpu.vector_store %arg12[%c256_78, %c0_79], %81 {strides = array<i32>} : memref<800x164xbf16, #tpu.memory_space<vmem>>, vector<32x164xbf16>,
    %83 = vector.extract_strided_slice %64 {offsets = [0, 12], sizes = [32, 164], strides = [1, 1]} : vector<32x200xbf16> to vector<32x164xbf16>
    %c288_80 = arith.constant 288 : index
    %c0_81 = arith.constant 0 : index
    %84 = vector.load %arg12[%c288_80, %c0_81] : memref<800x164xbf16, #tpu.memory_space<vmem>>, vector<32x164xbf16>
    tpu.vector_store %arg12[%c288_80, %c0_81], %83 {strides = array<i32>} : memref<800x164xbf16, #tpu.memory_space<vmem>>, vector<32x164xbf16>,
    %85 = vector.extract_strided_slice %64 {offsets = [0, 16], sizes = [32, 164], strides = [1, 1]} : vector<32x200xbf16> to vector<32x164xbf16>
    %c320_82 = arith.constant 320 : index
    %c0_83 = arith.constant 0 : index
    %86 = vector.load %arg12[%c320_82, %c0_83] : memref<800x164xbf16, #tpu.memory_space<vmem>>, vector<32x164xbf16>
    tpu.vector_store %arg12[%c320_82, %c0_83], %85 {strides = array<i32>} : memref<800x164xbf16, #tpu.memory_space<vmem>>, vector<32x164xbf16>,
    %87 = vector.extract_strided_slice %64 {offsets = [0, 17], sizes = [32, 164], strides = [1, 1]} : vector<32x200xbf16> to vector<32x164xbf16>
    %c352_84 = arith.constant 352 : index
    %c0_85 = arith.constant 0 : index
    %88 = vector.load %arg12[%c352_84, %c0_85] : memref<800x164xbf16, #tpu.memory_space<vmem>>, vector<32x164xbf16>
    tpu.vector_store %arg12[%c352_84, %c0_85], %87 {strides = array<i32>} : memref<800x164xbf16, #tpu.memory_space<vmem>>, vector<32x164xbf16>,
    %89 = vector.extract_strided_slice %64 {offsets = [0, 18], sizes = [32, 164], strides = [1, 1]} : vector<32x200xbf16> to vector<32x164xbf16>
    %c384_86 = arith.constant 384 : index
    %c0_87 = arith.constant 0 : index
    %90 = vector.load %arg12[%c384_86, %c0_87] : memref<800x164xbf16, #tpu.memory_space<vmem>>, vector<32x164xbf16>
    tpu.vector_store %arg12[%c384_86, %c0_87], %89 {strides = array<i32>} : memref<800x164xbf16, #tpu.memory_space<vmem>>, vector<32x164xbf16>,
    %91 = vector.extract_strided_slice %64 {offsets = [0, 19], sizes = [32, 164], strides = [1, 1]} : vector<32x200xbf16> to vector<32x164xbf16>
    %c416_88 = arith.constant 416 : index
    %c0_89 = arith.constant 0 : index
    %92 = vector.load %arg12[%c416_88, %c0_89] : memref<800x164xbf16, #tpu.memory_space<vmem>>, vector<32x164xbf16>
    tpu.vector_store %arg12[%c416_88, %c0_89], %91 {strides = array<i32>} : memref<800x164xbf16, #tpu.memory_space<vmem>>, vector<32x164xbf16>,
    %93 = vector.extract_strided_slice %64 {offsets = [0, 20], sizes = [32, 164], strides = [1, 1]} : vector<32x200xbf16> to vector<32x164xbf16>
    %c448_90 = arith.constant 448 : index
    %c0_91 = arith.constant 0 : index
    %94 = vector.load %arg12[%c448_90, %c0_91] : memref<800x164xbf16, #tpu.memory_space<vmem>>, vector<32x164xbf16>
    tpu.vector_store %arg12[%c448_90, %c0_91], %93 {strides = array<i32>} : memref<800x164xbf16, #tpu.memory_space<vmem>>, vector<32x164xbf16>,
    %95 = vector.extract_strided_slice %64 {offsets = [0, 24], sizes = [32, 164], strides = [1, 1]} : vector<32x200xbf16> to vector<32x164xbf16>
    %c480_92 = arith.constant 480 : index
    %c0_93 = arith.constant 0 : index
    %96 = vector.load %arg12[%c480_92, %c0_93] : memref<800x164xbf16, #tpu.memory_space<vmem>>, vector<32x164xbf16>
    tpu.vector_store %arg12[%c480_92, %c0_93], %95 {strides = array<i32>} : memref<800x164xbf16, #tpu.memory_space<vmem>>, vector<32x164xbf16>,
    %97 = vector.extract_strided_slice %64 {offsets = [0, 25], sizes = [32, 164], strides = [1, 1]} : vector<32x200xbf16> to vector<32x164xbf16>
    %c512_94 = arith.constant 512 : index
    %c0_95 = arith.constant 0 : index
    %98 = vector.load %arg12[%c512_94, %c0_95] : memref<800x164xbf16, #tpu.memory_space<vmem>>, vector<32x164xbf16>
    tpu.vector_store %arg12[%c512_94, %c0_95], %97 {strides = array<i32>} : memref<800x164xbf16, #tpu.memory_space<vmem>>, vector<32x164xbf16>,
    %99 = vector.extract_strided_slice %64 {offsets = [0, 26], sizes = [32, 164], strides = [1, 1]} : vector<32x200xbf16> to vector<32x164xbf16>
    %c544_96 = arith.constant 544 : index
    %c0_97 = arith.constant 0 : index
    %100 = vector.load %arg12[%c544_96, %c0_97] : memref<800x164xbf16, #tpu.memory_space<vmem>>, vector<32x164xbf16>
    tpu.vector_store %arg12[%c544_96, %c0_97], %99 {strides = array<i32>} : memref<800x164xbf16, #tpu.memory_space<vmem>>, vector<32x164xbf16>,
    %101 = vector.extract_strided_slice %64 {offsets = [0, 27], sizes = [32, 164], strides = [1, 1]} : vector<32x200xbf16> to vector<32x164xbf16>
    %c576_98 = arith.constant 576 : index
    %c0_99 = arith.constant 0 : index
    %102 = vector.load %arg12[%c576_98, %c0_99] : memref<800x164xbf16, #tpu.memory_space<vmem>>, vector<32x164xbf16>
    tpu.vector_store %arg12[%c576_98, %c0_99], %101 {strides = array<i32>} : memref<800x164xbf16, #tpu.memory_space<vmem>>, vector<32x164xbf16>,
    %103 = vector.extract_strided_slice %64 {offsets = [0, 28], sizes = [32, 164], strides = [1, 1]} : vector<32x200xbf16> to vector<32x164xbf16>
    %c608_100 = arith.constant 608 : index
    %c0_101 = arith.constant 0 : index
    %104 = vector.load %arg12[%c608_100, %c0_101] : memref<800x164xbf16, #tpu.memory_space<vmem>>, vector<32x164xbf16>
    tpu.vector_store %arg12[%c608_100, %c0_101], %103 {strides = array<i32>} : memref<800x164xbf16, #tpu.memory_space<vmem>>, vector<32x164xbf16>,
    %105 = vector.extract_strided_slice %64 {offsets = [0, 32], sizes = [32, 164], strides = [1, 1]} : vector<32x200xbf16> to vector<32x164xbf16>
    %c640_102 = arith.constant 640 : index
    %c0_103 = arith.constant 0 : index
    %106 = vector.load %arg12[%c640_102, %c0_103] : memref<800x164xbf16, #tpu.memory_space<vmem>>, vector<32x164xbf16>
    tpu.vector_store %arg12[%c640_102, %c0_103], %105 {strides = array<i32>} : memref<800x164xbf16, #tpu.memory_space<vmem>>, vector<32x164xbf16>,
    %107 = vector.extract_strided_slice %64 {offsets = [0, 33], sizes = [32, 164], strides = [1, 1]} : vector<32x200xbf16> to vector<32x164xbf16>
    %c672_104 = arith.constant 672 : index
    %c0_105 = arith.constant 0 : index
    %108 = vector.load %arg12[%c672_104, %c0_105] : memref<800x164xbf16, #tpu.memory_space<vmem>>, vector<32x164xbf16>
    tpu.vector_store %arg12[%c672_104, %c0_105], %107 {strides = array<i32>} : memref<800x164xbf16, #tpu.memory_space<vmem>>, vector<32x164xbf16>,
    %109 = vector.extract_strided_slice %64 {offsets = [0, 34], sizes = [32, 164], strides = [1, 1]} : vector<32x200xbf16> to vector<32x164xbf16>
    %c704_106 = arith.constant 704 : index
    %c0_107 = arith.constant 0 : index
    %110 = vector.load %arg12[%c704_106, %c0_107] : memref<800x164xbf16, #tpu.memory_space<vmem>>, vector<32x164xbf16>
    tpu.vector_store %arg12[%c704_106, %c0_107], %109 {strides = array<i32>} : memref<800x164xbf16, #tpu.memory_space<vmem>>, vector<32x164xbf16>,
    %111 = vector.extract_strided_slice %64 {offsets = [0, 35], sizes = [32, 164], strides = [1, 1]} : vector<32x200xbf16> to vector<32x164xbf16>
    %c736_108 = arith.constant 736 : index
    %c0_109 = arith.constant 0 : index
    %112 = vector.load %arg12[%c736_108, %c0_109] : memref<800x164xbf16, #tpu.memory_space<vmem>>, vector<32x164xbf16>
    tpu.vector_store %arg12[%c736_108, %c0_109], %111 {strides = array<i32>} : memref<800x164xbf16, #tpu.memory_space<vmem>>, vector<32x164xbf16>,
    %113 = vector.extract_strided_slice %64 {offsets = [0, 36], sizes = [32, 164], strides = [1, 1]} : vector<32x200xbf16> to vector<32x164xbf16>
    %c768_110 = arith.constant 768 : index
    %c0_111 = arith.constant 0 : index
    %114 = vector.load %arg12[%c768_110, %c0_111] : memref<800x164xbf16, #tpu.memory_space<vmem>>, vector<32x164xbf16>
    tpu.vector_store %arg12[%c768_110, %c0_111], %113 {strides = array<i32>} : memref<800x164xbf16, #tpu.memory_space<vmem>>, vector<32x164xbf16>,
    %c0_112 = arith.constant 0 : index
    %c0_113 = arith.constant 0 : index
    %115 = vector.load %arg5[%c0_112, %c0_113] : memref<32x800xbf16, #tpu.memory_space<vmem>>, vector<32x800xbf16>
    %c0_114 = arith.constant 0 : index
    %c0_115 = arith.constant 0 : index
    %116 = vector.load %arg12[%c0_114, %c0_115] : memref<800x164xbf16, #tpu.memory_space<vmem>>, vector<800x164xbf16>
    %cst_116 = arith.constant dense<0.000000e+00> : vector<32x164xf32>
    %117 = tpu.matmul %115, %116, %cst_116 {dimension_numbers = #tpu.dot_dimension_numbers<[1], [0], [0], [1], [0, 0, 1, 1], [], []>} : vector<32x800xbf16>, vector<800x164xbf16>, vector<32x164xf32> -> vector<32x164xf32>
    %c0_117 = arith.constant 0 : index
    %c0_118 = arith.constant 0 : index
    %118 = vector.load %arg6[%c0_117, %c0_118] : memref<32x1xf32, #tpu.memory_space<vmem>>, vector<32x1xf32>
    %119 = vector.broadcast %118 : vector<32x1xf32> to vector<32x164xf32>
    %120 = arith.addf %117, %119 : vector<32x164xf32>
    %cst_119 = arith.constant 0.000000e+00 : f32
    %121 = vector.broadcast %cst_119 : f32 to vector<32x164xf32>
    %122 = arith.cmpf oge, %120, %121 : vector<32x164xf32>
    %cst_120 = arith.constant 1.000000e-01 : f32
    %123 = vector.broadcast %cst_120 : f32 to vector<32x164xf32>
    %124 = arith.mulf %123, %120 : vector<32x164xf32>
    %125 = arith.select %122, %120, %124 : vector<32x164xi1>, vector<32x164xf32>
    %c0_121 = arith.constant 0 : index
    %c0_122 = arith.constant 0 : index
    %126 = vector.load %arg7[%c0_121, %c0_122] : memref<1x164xf32, #tpu.memory_space<vmem>>, vector<1x164xf32>
    %127 = vector.broadcast %126 : vector<1x164xf32> to vector<32x164xf32>
    %128 = arith.mulf %125, %127 : vector<32x164xf32>
    %129 = arith.truncf %128 : vector<32x164xf32> to vector<32x164xbf16>
    %130 = vector.extract_strided_slice %129 {offsets = [0, 0], sizes = [32, 128], strides = [1, 1]} : vector<32x164xbf16> to vector<32x128xbf16>
    %c0_123 = arith.constant 0 : index
    %c0_124 = arith.constant 0 : index
    %131 = vector.load %arg13[%c0_123, %c0_124] : memref<800x128xbf16, #tpu.memory_space<vmem>>, vector<32x128xbf16>
    tpu.vector_store %arg13[%c0_123, %c0_124], %130 {strides = array<i32>} : memref<800x128xbf16, #tpu.memory_space<vmem>>, vector<32x128xbf16>,
    %132 = vector.extract_strided_slice %129 {offsets = [0, 1], sizes = [32, 128], strides = [1, 1]} : vector<32x164xbf16> to vector<32x128xbf16>
    %c32_125 = arith.constant 32 : index
    %c0_126 = arith.constant 0 : index
    %133 = vector.load %arg13[%c32_125, %c0_126] : memref<800x128xbf16, #tpu.memory_space<vmem>>, vector<32x128xbf16>
    tpu.vector_store %arg13[%c32_125, %c0_126], %132 {strides = array<i32>} : memref<800x128xbf16, #tpu.memory_space<vmem>>, vector<32x128xbf16>,
    %134 = vector.extract_strided_slice %129 {offsets = [0, 2], sizes = [32, 128], strides = [1, 1]} : vector<32x164xbf16> to vector<32x128xbf16>
    %c64_127 = arith.constant 64 : index
    %c0_128 = arith.constant 0 : index
    %135 = vector.load %arg13[%c64_127, %c0_128] : memref<800x128xbf16, #tpu.memory_space<vmem>>, vector<32x128xbf16>
    tpu.vector_store %arg13[%c64_127, %c0_128], %134 {strides = array<i32>} : memref<800x128xbf16, #tpu.memory_space<vmem>>, vector<32x128xbf16>,
    %136 = vector.extract_strided_slice %129 {offsets = [0, 3], sizes = [32, 128], strides = [1, 1]} : vector<32x164xbf16> to vector<32x128xbf16>
    %c96_129 = arith.constant 96 : index
    %c0_130 = arith.constant 0 : index
    %137 = vector.load %arg13[%c96_129, %c0_130] : memref<800x128xbf16, #tpu.memory_space<vmem>>, vector<32x128xbf16>
    tpu.vector_store %arg13[%c96_129, %c0_130], %136 {strides = array<i32>} : memref<800x128xbf16, #tpu.memory_space<vmem>>, vector<32x128xbf16>,
    %138 = vector.extract_strided_slice %129 {offsets = [0, 4], sizes = [32, 128], strides = [1, 1]} : vector<32x164xbf16> to vector<32x128xbf16>
    %c128_131 = arith.constant 128 : index
    %c0_132 = arith.constant 0 : index
    %139 = vector.load %arg13[%c128_131, %c0_132] : memref<800x128xbf16, #tpu.memory_space<vmem>>, vector<32x128xbf16>
    tpu.vector_store %arg13[%c128_131, %c0_132], %138 {strides = array<i32>} : memref<800x128xbf16, #tpu.memory_space<vmem>>, vector<32x128xbf16>,
    %140 = vector.extract_strided_slice %129 {offsets = [0, 8], sizes = [32, 128], strides = [1, 1]} : vector<32x164xbf16> to vector<32x128xbf16>
    %c160_133 = arith.constant 160 : index
    %c0_134 = arith.constant 0 : index
    %141 = vector.load %arg13[%c160_133, %c0_134] : memref<800x128xbf16, #tpu.memory_space<vmem>>, vector<32x128xbf16>
    tpu.vector_store %arg13[%c160_133, %c0_134], %140 {strides = array<i32>} : memref<800x128xbf16, #tpu.memory_space<vmem>>, vector<32x128xbf16>,
    %142 = vector.extract_strided_slice %129 {offsets = [0, 9], sizes = [32, 128], strides = [1, 1]} : vector<32x164xbf16> to vector<32x128xbf16>
    %c192_135 = arith.constant 192 : index
    %c0_136 = arith.constant 0 : index
    %143 = vector.load %arg13[%c192_135, %c0_136] : memref<800x128xbf16, #tpu.memory_space<vmem>>, vector<32x128xbf16>
    tpu.vector_store %arg13[%c192_135, %c0_136], %142 {strides = array<i32>} : memref<800x128xbf16, #tpu.memory_space<vmem>>, vector<32x128xbf16>,
    %144 = vector.extract_strided_slice %129 {offsets = [0, 10], sizes = [32, 128], strides = [1, 1]} : vector<32x164xbf16> to vector<32x128xbf16>
    %c224_137 = arith.constant 224 : index
    %c0_138 = arith.constant 0 : index
    %145 = vector.load %arg13[%c224_137, %c0_138] : memref<800x128xbf16, #tpu.memory_space<vmem>>, vector<32x128xbf16>
    tpu.vector_store %arg13[%c224_137, %c0_138], %144 {strides = array<i32>} : memref<800x128xbf16, #tpu.memory_space<vmem>>, vector<32x128xbf16>,
    %146 = vector.extract_strided_slice %129 {offsets = [0, 11], sizes = [32, 128], strides = [1, 1]} : vector<32x164xbf16> to vector<32x128xbf16>
    %c256_139 = arith.constant 256 : index
    %c0_140 = arith.constant 0 : index
    %147 = vector.load %arg13[%c256_139, %c0_140] : memref<800x128xbf16, #tpu.memory_space<vmem>>, vector<32x128xbf16>
    tpu.vector_store %arg13[%c256_139, %c0_140], %146 {strides = array<i32>} : memref<800x128xbf16, #tpu.memory_space<vmem>>, vector<32x128xbf16>,
    %148 = vector.extract_strided_slice %129 {offsets = [0, 12], sizes = [32, 128], strides = [1, 1]} : vector<32x164xbf16> to vector<32x128xbf16>
    %c288_141 = arith.constant 288 : index
    %c0_142 = arith.constant 0 : index
    %149 = vector.load %arg13[%c288_141, %c0_142] : memref<800x128xbf16, #tpu.memory_space<vmem>>, vector<32x128xbf16>
    tpu.vector_store %arg13[%c288_141, %c0_142], %148 {strides = array<i32>} : memref<800x128xbf16, #tpu.memory_space<vmem>>, vector<32x128xbf16>,
    %150 = vector.extract_strided_slice %129 {offsets = [0, 16], sizes = [32, 128], strides = [1, 1]} : vector<32x164xbf16> to vector<32x128xbf16>
    %c320_143 = arith.constant 320 : index
    %c0_144 = arith.constant 0 : index
    %151 = vector.load %arg13[%c320_143, %c0_144] : memref<800x128xbf16, #tpu.memory_space<vmem>>, vector<32x128xbf16>
    tpu.vector_store %arg13[%c320_143, %c0_144], %150 {strides = array<i32>} : memref<800x128xbf16, #tpu.memory_space<vmem>>, vector<32x128xbf16>,
    %152 = vector.extract_strided_slice %129 {offsets = [0, 17], sizes = [32, 128], strides = [1, 1]} : vector<32x164xbf16> to vector<32x128xbf16>
    %c352_145 = arith.constant 352 : index
    %c0_146 = arith.constant 0 : index
    %153 = vector.load %arg13[%c352_145, %c0_146] : memref<800x128xbf16, #tpu.memory_space<vmem>>, vector<32x128xbf16>
    tpu.vector_store %arg13[%c352_145, %c0_146], %152 {strides = array<i32>} : memref<800x128xbf16, #tpu.memory_space<vmem>>, vector<32x128xbf16>,
    %154 = vector.extract_strided_slice %129 {offsets = [0, 18], sizes = [32, 128], strides = [1, 1]} : vector<32x164xbf16> to vector<32x128xbf16>
    %c384_147 = arith.constant 384 : index
    %c0_148 = arith.constant 0 : index
    %155 = vector.load %arg13[%c384_147, %c0_148] : memref<800x128xbf16, #tpu.memory_space<vmem>>, vector<32x128xbf16>
    tpu.vector_store %arg13[%c384_147, %c0_148], %154 {strides = array<i32>} : memref<800x128xbf16, #tpu.memory_space<vmem>>, vector<32x128xbf16>,
    %156 = vector.extract_strided_slice %129 {offsets = [0, 19], sizes = [32, 128], strides = [1, 1]} : vector<32x164xbf16> to vector<32x128xbf16>
    %c416_149 = arith.constant 416 : index
    %c0_150 = arith.constant 0 : index
    %157 = vector.load %arg13[%c416_149, %c0_150] : memref<800x128xbf16, #tpu.memory_space<vmem>>, vector<32x128xbf16>
    tpu.vector_store %arg13[%c416_149, %c0_150], %156 {strides = array<i32>} : memref<800x128xbf16, #tpu.memory_space<vmem>>, vector<32x128xbf16>,
    %158 = vector.extract_strided_slice %129 {offsets = [0, 20], sizes = [32, 128], strides = [1, 1]} : vector<32x164xbf16> to vector<32x128xbf16>
    %c448_151 = arith.constant 448 : index
    %c0_152 = arith.constant 0 : index
    %159 = vector.load %arg13[%c448_151, %c0_152] : memref<800x128xbf16, #tpu.memory_space<vmem>>, vector<32x128xbf16>
    tpu.vector_store %arg13[%c448_151, %c0_152], %158 {strides = array<i32>} : memref<800x128xbf16, #tpu.memory_space<vmem>>, vector<32x128xbf16>,
    %160 = vector.extract_strided_slice %129 {offsets = [0, 24], sizes = [32, 128], strides = [1, 1]} : vector<32x164xbf16> to vector<32x128xbf16>
    %c480_153 = arith.constant 480 : index
    %c0_154 = arith.constant 0 : index
    %161 = vector.load %arg13[%c480_153, %c0_154] : memref<800x128xbf16, #tpu.memory_space<vmem>>, vector<32x128xbf16>
    tpu.vector_store %arg13[%c480_153, %c0_154], %160 {strides = array<i32>} : memref<800x128xbf16, #tpu.memory_space<vmem>>, vector<32x128xbf16>,
    %162 = vector.extract_strided_slice %129 {offsets = [0, 25], sizes = [32, 128], strides = [1, 1]} : vector<32x164xbf16> to vector<32x128xbf16>
    %c512_155 = arith.constant 512 : index
    %c0_156 = arith.constant 0 : index
    %163 = vector.load %arg13[%c512_155, %c0_156] : memref<800x128xbf16, #tpu.memory_space<vmem>>, vector<32x128xbf16>
    tpu.vector_store %arg13[%c512_155, %c0_156], %162 {strides = array<i32>} : memref<800x128xbf16, #tpu.memory_space<vmem>>, vector<32x128xbf16>,
    %164 = vector.extract_strided_slice %129 {offsets = [0, 26], sizes = [32, 128], strides = [1, 1]} : vector<32x164xbf16> to vector<32x128xbf16>
    %c544_157 = arith.constant 544 : index
    %c0_158 = arith.constant 0 : index
    %165 = vector.load %arg13[%c544_157, %c0_158] : memref<800x128xbf16, #tpu.memory_space<vmem>>, vector<32x128xbf16>
    tpu.vector_store %arg13[%c544_157, %c0_158], %164 {strides = array<i32>} : memref<800x128xbf16, #tpu.memory_space<vmem>>, vector<32x128xbf16>,
    %166 = vector.extract_strided_slice %129 {offsets = [0, 27], sizes = [32, 128], strides = [1, 1]} : vector<32x164xbf16> to vector<32x128xbf16>
    %c576_159 = arith.constant 576 : index
    %c0_160 = arith.constant 0 : index
    %167 = vector.load %arg13[%c576_159, %c0_160] : memref<800x128xbf16, #tpu.memory_space<vmem>>, vector<32x128xbf16>
    tpu.vector_store %arg13[%c576_159, %c0_160], %166 {strides = array<i32>} : memref<800x128xbf16, #tpu.memory_space<vmem>>, vector<32x128xbf16>,
    %168 = vector.extract_strided_slice %129 {offsets = [0, 28], sizes = [32, 128], strides = [1, 1]} : vector<32x164xbf16> to vector<32x128xbf16>
    %c608_161 = arith.constant 608 : index
    %c0_162 = arith.constant 0 : index
    %169 = vector.load %arg13[%c608_161, %c0_162] : memref<800x128xbf16, #tpu.memory_space<vmem>>, vector<32x128xbf16>
    tpu.vector_store %arg13[%c608_161, %c0_162], %168 {strides = array<i32>} : memref<800x128xbf16, #tpu.memory_space<vmem>>, vector<32x128xbf16>,
    %170 = vector.extract_strided_slice %129 {offsets = [0, 32], sizes = [32, 128], strides = [1, 1]} : vector<32x164xbf16> to vector<32x128xbf16>
    %c640_163 = arith.constant 640 : index
    %c0_164 = arith.constant 0 : index
    %171 = vector.load %arg13[%c640_163, %c0_164] : memref<800x128xbf16, #tpu.memory_space<vmem>>, vector<32x128xbf16>
    tpu.vector_store %arg13[%c640_163, %c0_164], %170 {strides = array<i32>} : memref<800x128xbf16, #tpu.memory_space<vmem>>, vector<32x128xbf16>,
    %172 = vector.extract_strided_slice %129 {offsets = [0, 33], sizes = [32, 128], strides = [1, 1]} : vector<32x164xbf16> to vector<32x128xbf16>
    %c672_165 = arith.constant 672 : index
    %c0_166 = arith.constant 0 : index
    %173 = vector.load %arg13[%c672_165, %c0_166] : memref<800x128xbf16, #tpu.memory_space<vmem>>, vector<32x128xbf16>
    tpu.vector_store %arg13[%c672_165, %c0_166], %172 {strides = array<i32>} : memref<800x128xbf16, #tpu.memory_space<vmem>>, vector<32x128xbf16>,
    %174 = vector.extract_strided_slice %129 {offsets = [0, 34], sizes = [32, 128], strides = [1, 1]} : vector<32x164xbf16> to vector<32x128xbf16>
    %c704_167 = arith.constant 704 : index
    %c0_168 = arith.constant 0 : index
    %175 = vector.load %arg13[%c704_167, %c0_168] : memref<800x128xbf16, #tpu.memory_space<vmem>>, vector<32x128xbf16>
    tpu.vector_store %arg13[%c704_167, %c0_168], %174 {strides = array<i32>} : memref<800x128xbf16, #tpu.memory_space<vmem>>, vector<32x128xbf16>,
    %176 = vector.extract_strided_slice %129 {offsets = [0, 35], sizes = [32, 128], strides = [1, 1]} : vector<32x164xbf16> to vector<32x128xbf16>
    %c736_169 = arith.constant 736 : index
    %c0_170 = arith.constant 0 : index
    %177 = vector.load %arg13[%c736_169, %c0_170] : memref<800x128xbf16, #tpu.memory_space<vmem>>, vector<32x128xbf16>
    tpu.vector_store %arg13[%c736_169, %c0_170], %176 {strides = array<i32>} : memref<800x128xbf16, #tpu.memory_space<vmem>>, vector<32x128xbf16>,
    %178 = vector.extract_strided_slice %129 {offsets = [0, 36], sizes = [32, 128], strides = [1, 1]} : vector<32x164xbf16> to vector<32x128xbf16>
    %c768_171 = arith.constant 768 : index
    %c0_172 = arith.constant 0 : index
    %179 = vector.load %arg13[%c768_171, %c0_172] : memref<800x128xbf16, #tpu.memory_space<vmem>>, vector<32x128xbf16>
    tpu.vector_store %arg13[%c768_171, %c0_172], %178 {strides = array<i32>} : memref<800x128xbf16, #tpu.memory_space<vmem>>, vector<32x128xbf16>,
    %c0_173 = arith.constant 0 : index
    %c0_174 = arith.constant 0 : index
    %180 = vector.load %arg8[%c0_173, %c0_174] : memref<32x800xbf16, #tpu.memory_space<vmem>>, vector<32x800xbf16>
    %c0_175 = arith.constant 0 : index
    %c0_176 = arith.constant 0 : index
    %181 = vector.load %arg13[%c0_175, %c0_176] : memref<800x128xbf16, #tpu.memory_space<vmem>>, vector<800x128xbf16>
    %cst_177 = arith.constant dense<0.000000e+00> : vector<32x128xf32>
    %182 = tpu.matmul %180, %181, %cst_177 {dimension_numbers = #tpu.dot_dimension_numbers<[1], [0], [0], [1], [0, 0, 1, 1], [], []>} : vector<32x800xbf16>, vector<800x128xbf16>, vector<32x128xf32> -> vector<32x128xf32>
    %c0_178 = arith.constant 0 : index
    %c0_179 = arith.constant 0 : index
    %183 = vector.load %arg9[%c0_178, %c0_179] : memref<32x1xf32, #tpu.memory_space<vmem>>, vector<32x1xf32>
    %184 = vector.broadcast %183 : vector<32x1xf32> to vector<32x128xf32>
    %185 = arith.addf %182, %184 : vector<32x128xf32>
    %cst_180 = arith.constant 0.000000e+00 : f32
    %186 = vector.broadcast %cst_180 : f32 to vector<32x128xf32>
    %187 = arith.cmpf oge, %185, %186 : vector<32x128xf32>
    %cst_181 = arith.constant 1.000000e-01 : f32
    %188 = vector.broadcast %cst_181 : f32 to vector<32x128xf32>
    %189 = arith.mulf %188, %185 : vector<32x128xf32>
    %190 = arith.select %187, %185, %189 : vector<32x128xi1>, vector<32x128xf32>
    %c0_182 = arith.constant 0 : index
    %c0_183 = arith.constant 0 : index
    %191 = vector.load %arg10[%c0_182, %c0_183] : memref<32x128xf32, #tpu.memory_space<vmem>>, vector<32x128xf32>
    tpu.vector_store %arg10[%c0_182, %c0_183], %190 {strides = array<i32>} : memref<32x128xf32, #tpu.memory_space<vmem>>, vector<32x128xf32>,
    return
  }
  func.func @transform_0(%arg0: i32) -> (i32, i32) {
    %c0_i32 = arith.constant 0 : i32
    %c0_i32_0 = arith.constant 0 : i32
    %c0_i32_1 = arith.constant 0 : i32
    return %c0_i32, %c0_i32_0 : i32, i32
  }
  func.func @transform_1(%arg0: i32) -> (i32, i32) {
    %c0_i32 = arith.constant 0 : i32
    %c0_i32_0 = arith.constant 0 : i32
    %c0_i32_1 = arith.constant 0 : i32
    return %c0_i32, %c0_i32_0 : i32, i32
  }
  func.func @transform_2(%arg0: i32) -> (i32, i32) {
    %c0_i32 = arith.constant 0 : i32
    %c0_i32_0 = arith.constant 0 : i32
    %c0_i32_1 = arith.constant 0 : i32
    return %c0_i32, %c0_i32_0 : i32, i32
  }
  func.func @transform_3(%arg0: i32) -> (i32, i32) {
    %c0_i32 = arith.constant 0 : i32
    %c0_i32_0 = arith.constant 0 : i32
    %c0_i32_1 = arith.constant 0 : i32
    return %c0_i32, %c0_i32_0 : i32, i32
  }
  func.func @transform_4(%arg0: i32) -> (i32, i32) {
    %c0_i32 = arith.constant 0 : i32
    %c0_i32_0 = arith.constant 0 : i32
    %c0_i32_1 = arith.constant 0 : i32
    return %c0_i32, %c0_i32_0 : i32, i32
  }
  func.func @transform_5(%arg0: i32) -> (i32, i32) {
    %c0_i32 = arith.constant 0 : i32
    %c0_i32_0 = arith.constant 0 : i32
    %c0_i32_1 = arith.constant 0 : i32
    return %c0_i32, %c0_i32_0 : i32, i32
  }
  func.func @transform_6(%arg0: i32) -> (i32, i32) {
    %c0_i32 = arith.constant 0 : i32
    %c0_i32_0 = arith.constant 0 : i32
    %c0_i32_1 = arith.constant 0 : i32
    return %c0_i32, %c0_i32_0 : i32, i32
  }
  func.func @transform_7(%arg0: i32) -> (i32, i32) {
    %c0_i32 = arith.constant 0 : i32
    %c0_i32_0 = arith.constant 0 : i32
    %c0_i32_1 = arith.constant 0 : i32
    return %c0_i32, %c0_i32_0 : i32, i32
  }
  func.func @transform_8(%arg0: i32) -> (i32, i32) {
    %c0_i32 = arith.constant 0 : i32
    %c0_i32_0 = arith.constant 0 : i32
    %c0_i32_1 = arith.constant 0 : i32
    return %c0_i32, %c0_i32_0 : i32, i32
  }
  func.func @transform_9(%arg0: i32) -> (i32, i32) {
    %c0_i32 = arith.constant 0 : i32
    %c0_i32_0 = arith.constant 0 : i32
    %c0_i32_1 = arith.constant 0 : i32
    return %c0_i32, %c0_i32_0 : i32, i32
  }
}

module attributes {stable_mosaic.version = 11 : i64} {
  func.func @kernel(%arg0: i32, %arg1: memref<32x244xbf16, #tpu.memory_space<vmem>>, %arg2: memref<16x288xbf16, #tpu.memory_space<vmem>>, %arg3: memref<1x222xf32, #tpu.memory_space<vmem>>, %arg4: memref<16x144xbf16, #tpu.memory_space<vmem>>, %arg5: memref<16x222xbf16, #tpu.memory_space<vmem>>, %arg6: memref<16x144xbf16, #tpu.memory_space<vmem>>, %arg7: memref<16x200xf32, #tpu.memory_space<vmem>>, %arg8: memref<288x222xbf16, #tpu.memory_space<vmem>>, %arg9: memref<144x200xbf16, #tpu.memory_space<vmem>>, %arg10: memref<144x200xbf16, #tpu.memory_space<vmem>>) attributes {dimension_semantics = [#tpu.dimension_semantics<arbitrary>], iteration_bounds = array<i64: 1>, scalar_prefetch = 0 : i64, scratch_operands = 3 : i64, tpu.core_type = #tpu.core_type<tc>, window_params = [{pipeline_mode = #tpu.pipeline_mode<synchronous>, transform_indices = @transform_0, window_bounds = array<i64: 32, 244>}, {pipeline_mode = #tpu.pipeline_mode<synchronous>, transform_indices = @transform_1, window_bounds = array<i64: 16, 288>}, {pipeline_mode = #tpu.pipeline_mode<synchronous>, transform_indices = @transform_2, window_bounds = array<i64: 1, 222>}, {pipeline_mode = #tpu.pipeline_mode<synchronous>, transform_indices = @transform_3, window_bounds = array<i64: 16, 144>}, {pipeline_mode = #tpu.pipeline_mode<synchronous>, transform_indices = @transform_4, window_bounds = array<i64: 16, 222>}, {pipeline_mode = #tpu.pipeline_mode<synchronous>, transform_indices = @transform_5, window_bounds = array<i64: 16, 144>}, {pipeline_mode = #tpu.pipeline_mode<synchronous>, transform_indices = @transform_6, window_bounds = array<i64: 16, 200>}]} {
    %c0 = arith.constant 0 : index
    %c0_0 = arith.constant 0 : index
    %0 = vector.load %arg1[%c0, %c0_0] : memref<32x244xbf16, #tpu.memory_space<vmem>>, vector<32x222xbf16>
    %c0_1 = arith.constant 0 : index
    %c0_2 = arith.constant 0 : index
    %1 = vector.load %arg8[%c0_1, %c0_2] : memref<288x222xbf16, #tpu.memory_space<vmem>>, vector<32x222xbf16>
    tpu.vector_store %arg8[%c0_1, %c0_2], %0 {strides = array<i32>} : memref<288x222xbf16, #tpu.memory_space<vmem>>, vector<32x222xbf16>,
    %c0_3 = arith.constant 0 : index
    %c1 = arith.constant 1 : index
    %2 = vector.load %arg1[%c0_3, %c1] : memref<32x244xbf16, #tpu.memory_space<vmem>>, vector<32x222xbf16>
    %c32 = arith.constant 32 : index
    %c0_4 = arith.constant 0 : index
    %3 = vector.load %arg8[%c32, %c0_4] : memref<288x222xbf16, #tpu.memory_space<vmem>>, vector<32x222xbf16>
    tpu.vector_store %arg8[%c32, %c0_4], %2 {strides = array<i32>} : memref<288x222xbf16, #tpu.memory_space<vmem>>, vector<32x222xbf16>,
    %c0_5 = arith.constant 0 : index
    %c2 = arith.constant 2 : index
    %4 = vector.load %arg1[%c0_5, %c2] : memref<32x244xbf16, #tpu.memory_space<vmem>>, vector<32x222xbf16>
    %c64 = arith.constant 64 : index
    %c0_6 = arith.constant 0 : index
    %5 = vector.load %arg8[%c64, %c0_6] : memref<288x222xbf16, #tpu.memory_space<vmem>>, vector<32x222xbf16>
    tpu.vector_store %arg8[%c64, %c0_6], %4 {strides = array<i32>} : memref<288x222xbf16, #tpu.memory_space<vmem>>, vector<32x222xbf16>,
    %c0_7 = arith.constant 0 : index
    %c10 = arith.constant 10 : index
    %6 = vector.load %arg1[%c0_7, %c10] : memref<32x244xbf16, #tpu.memory_space<vmem>>, vector<32x222xbf16>
    %c96 = arith.constant 96 : index
    %c0_8 = arith.constant 0 : index
    %7 = vector.load %arg8[%c96, %c0_8] : memref<288x222xbf16, #tpu.memory_space<vmem>>, vector<32x222xbf16>
    tpu.vector_store %arg8[%c96, %c0_8], %6 {strides = array<i32>} : memref<288x222xbf16, #tpu.memory_space<vmem>>, vector<32x222xbf16>,
    %c0_9 = arith.constant 0 : index
    %c11 = arith.constant 11 : index
    %8 = vector.load %arg1[%c0_9, %c11] : memref<32x244xbf16, #tpu.memory_space<vmem>>, vector<32x222xbf16>
    %c128 = arith.constant 128 : index
    %c0_10 = arith.constant 0 : index
    %9 = vector.load %arg8[%c128, %c0_10] : memref<288x222xbf16, #tpu.memory_space<vmem>>, vector<32x222xbf16>
    tpu.vector_store %arg8[%c128, %c0_10], %8 {strides = array<i32>} : memref<288x222xbf16, #tpu.memory_space<vmem>>, vector<32x222xbf16>,
    %c0_11 = arith.constant 0 : index
    %c12 = arith.constant 12 : index
    %10 = vector.load %arg1[%c0_11, %c12] : memref<32x244xbf16, #tpu.memory_space<vmem>>, vector<32x222xbf16>
    %c160 = arith.constant 160 : index
    %c0_12 = arith.constant 0 : index
    %11 = vector.load %arg8[%c160, %c0_12] : memref<288x222xbf16, #tpu.memory_space<vmem>>, vector<32x222xbf16>
    tpu.vector_store %arg8[%c160, %c0_12], %10 {strides = array<i32>} : memref<288x222xbf16, #tpu.memory_space<vmem>>, vector<32x222xbf16>,
    %c0_13 = arith.constant 0 : index
    %c20 = arith.constant 20 : index
    %12 = vector.load %arg1[%c0_13, %c20] : memref<32x244xbf16, #tpu.memory_space<vmem>>, vector<32x222xbf16>
    %c192 = arith.constant 192 : index
    %c0_14 = arith.constant 0 : index
    %13 = vector.load %arg8[%c192, %c0_14] : memref<288x222xbf16, #tpu.memory_space<vmem>>, vector<32x222xbf16>
    tpu.vector_store %arg8[%c192, %c0_14], %12 {strides = array<i32>} : memref<288x222xbf16, #tpu.memory_space<vmem>>, vector<32x222xbf16>,
    %c0_15 = arith.constant 0 : index
    %c21 = arith.constant 21 : index
    %14 = vector.load %arg1[%c0_15, %c21] : memref<32x244xbf16, #tpu.memory_space<vmem>>, vector<32x222xbf16>
    %c224 = arith.constant 224 : index
    %c0_16 = arith.constant 0 : index
    %15 = vector.load %arg8[%c224, %c0_16] : memref<288x222xbf16, #tpu.memory_space<vmem>>, vector<32x222xbf16>
    tpu.vector_store %arg8[%c224, %c0_16], %14 {strides = array<i32>} : memref<288x222xbf16, #tpu.memory_space<vmem>>, vector<32x222xbf16>,
    %c0_17 = arith.constant 0 : index
    %c22 = arith.constant 22 : index
    %16 = vector.load %arg1[%c0_17, %c22] : memref<32x244xbf16, #tpu.memory_space<vmem>>, vector<32x222xbf16>
    %c256 = arith.constant 256 : index
    %c0_18 = arith.constant 0 : index
    %17 = vector.load %arg8[%c256, %c0_18] : memref<288x222xbf16, #tpu.memory_space<vmem>>, vector<32x222xbf16>
    tpu.vector_store %arg8[%c256, %c0_18], %16 {strides = array<i32>} : memref<288x222xbf16, #tpu.memory_space<vmem>>, vector<32x222xbf16>,
    %c0_19 = arith.constant 0 : index
    %c0_20 = arith.constant 0 : index
    %18 = vector.load %arg2[%c0_19, %c0_20] : memref<16x288xbf16, #tpu.memory_space<vmem>>, vector<16x288xbf16>
    %c0_21 = arith.constant 0 : index
    %c0_22 = arith.constant 0 : index
    %19 = vector.load %arg8[%c0_21, %c0_22] : memref<288x222xbf16, #tpu.memory_space<vmem>>, vector<288x222xbf16>
    %cst = arith.constant dense<0.000000e+00> : vector<16x222xf32>
    %20 = tpu.matmul %18, %19, %cst {dimension_numbers = #tpu.dot_dimension_numbers<[1], [0], [0], [1], [0, 0, 1, 1], [], []>} : vector<16x288xbf16>, vector<288x222xbf16>, vector<16x222xf32> -> vector<16x222xf32>
    %cst_23 = arith.constant 0.000000e+00 : f32
    %21 = vector.broadcast %cst_23 : f32 to vector<16x222xf32>
    %22 = arith.cmpf oge, %20, %21 : vector<16x222xf32>
    %cst_24 = arith.constant 1.000000e-01 : f32
    %23 = vector.broadcast %cst_24 : f32 to vector<16x222xf32>
    %24 = arith.mulf %23, %20 : vector<16x222xf32>
    %25 = arith.select %22, %20, %24 : vector<16x222xi1>, vector<16x222xf32>
    %c0_25 = arith.constant 0 : index
    %c0_26 = arith.constant 0 : index
    %26 = vector.load %arg3[%c0_25, %c0_26] : memref<1x222xf32, #tpu.memory_space<vmem>>, vector<1x222xf32>
    %27 = vector.broadcast %26 : vector<1x222xf32> to vector<16x222xf32>
    %28 = arith.mulf %25, %27 : vector<16x222xf32>
    %29 = arith.truncf %28 : vector<16x222xf32> to vector<16x222xbf16>
    %30 = vector.extract_strided_slice %29 {offsets = [0, 0], sizes = [16, 200], strides = [1, 1]} : vector<16x222xbf16> to vector<16x200xbf16>
    %c0_27 = arith.constant 0 : index
    %c0_28 = arith.constant 0 : index
    %31 = vector.load %arg9[%c0_27, %c0_28] : memref<144x200xbf16, #tpu.memory_space<vmem>>, vector<16x200xbf16>
    tpu.vector_store %arg9[%c0_27, %c0_28], %30 {strides = array<i32>} : memref<144x200xbf16, #tpu.memory_space<vmem>>, vector<16x200xbf16>,
    %32 = vector.extract_strided_slice %29 {offsets = [0, 1], sizes = [16, 200], strides = [1, 1]} : vector<16x222xbf16> to vector<16x200xbf16>
    %c16 = arith.constant 16 : index
    %c0_29 = arith.constant 0 : index
    %33 = vector.load %arg9[%c16, %c0_29] : memref<144x200xbf16, #tpu.memory_space<vmem>>, vector<16x200xbf16>
    tpu.vector_store %arg9[%c16, %c0_29], %32 {strides = array<i32>} : memref<144x200xbf16, #tpu.memory_space<vmem>>, vector<16x200xbf16>,
    %34 = vector.extract_strided_slice %29 {offsets = [0, 2], sizes = [16, 200], strides = [1, 1]} : vector<16x222xbf16> to vector<16x200xbf16>
    %c32_30 = arith.constant 32 : index
    %c0_31 = arith.constant 0 : index
    %35 = vector.load %arg9[%c32_30, %c0_31] : memref<144x200xbf16, #tpu.memory_space<vmem>>, vector<16x200xbf16>
    tpu.vector_store %arg9[%c32_30, %c0_31], %34 {strides = array<i32>} : memref<144x200xbf16, #tpu.memory_space<vmem>>, vector<16x200xbf16>,
    %36 = vector.extract_strided_slice %29 {offsets = [0, 10], sizes = [16, 200], strides = [1, 1]} : vector<16x222xbf16> to vector<16x200xbf16>
    %c48 = arith.constant 48 : index
    %c0_32 = arith.constant 0 : index
    %37 = vector.load %arg9[%c48, %c0_32] : memref<144x200xbf16, #tpu.memory_space<vmem>>, vector<16x200xbf16>
    tpu.vector_store %arg9[%c48, %c0_32], %36 {strides = array<i32>} : memref<144x200xbf16, #tpu.memory_space<vmem>>, vector<16x200xbf16>,
    %38 = vector.extract_strided_slice %29 {offsets = [0, 11], sizes = [16, 200], strides = [1, 1]} : vector<16x222xbf16> to vector<16x200xbf16>
    %c64_33 = arith.constant 64 : index
    %c0_34 = arith.constant 0 : index
    %39 = vector.load %arg9[%c64_33, %c0_34] : memref<144x200xbf16, #tpu.memory_space<vmem>>, vector<16x200xbf16>
    tpu.vector_store %arg9[%c64_33, %c0_34], %38 {strides = array<i32>} : memref<144x200xbf16, #tpu.memory_space<vmem>>, vector<16x200xbf16>,
    %40 = vector.extract_strided_slice %29 {offsets = [0, 12], sizes = [16, 200], strides = [1, 1]} : vector<16x222xbf16> to vector<16x200xbf16>
    %c80 = arith.constant 80 : index
    %c0_35 = arith.constant 0 : index
    %41 = vector.load %arg9[%c80, %c0_35] : memref<144x200xbf16, #tpu.memory_space<vmem>>, vector<16x200xbf16>
    tpu.vector_store %arg9[%c80, %c0_35], %40 {strides = array<i32>} : memref<144x200xbf16, #tpu.memory_space<vmem>>, vector<16x200xbf16>,
    %42 = vector.extract_strided_slice %29 {offsets = [0, 20], sizes = [16, 200], strides = [1, 1]} : vector<16x222xbf16> to vector<16x200xbf16>
    %c96_36 = arith.constant 96 : index
    %c0_37 = arith.constant 0 : index
    %43 = vector.load %arg9[%c96_36, %c0_37] : memref<144x200xbf16, #tpu.memory_space<vmem>>, vector<16x200xbf16>
    tpu.vector_store %arg9[%c96_36, %c0_37], %42 {strides = array<i32>} : memref<144x200xbf16, #tpu.memory_space<vmem>>, vector<16x200xbf16>,
    %44 = vector.extract_strided_slice %29 {offsets = [0, 21], sizes = [16, 200], strides = [1, 1]} : vector<16x222xbf16> to vector<16x200xbf16>
    %c112 = arith.constant 112 : index
    %c0_38 = arith.constant 0 : index
    %45 = vector.load %arg9[%c112, %c0_38] : memref<144x200xbf16, #tpu.memory_space<vmem>>, vector<16x200xbf16>
    tpu.vector_store %arg9[%c112, %c0_38], %44 {strides = array<i32>} : memref<144x200xbf16, #tpu.memory_space<vmem>>, vector<16x200xbf16>,
    %46 = vector.extract_strided_slice %29 {offsets = [0, 22], sizes = [16, 200], strides = [1, 1]} : vector<16x222xbf16> to vector<16x200xbf16>
    %c128_39 = arith.constant 128 : index
    %c0_40 = arith.constant 0 : index
    %47 = vector.load %arg9[%c128_39, %c0_40] : memref<144x200xbf16, #tpu.memory_space<vmem>>, vector<16x200xbf16>
    tpu.vector_store %arg9[%c128_39, %c0_40], %46 {strides = array<i32>} : memref<144x200xbf16, #tpu.memory_space<vmem>>, vector<16x200xbf16>,
    %c0_41 = arith.constant 0 : index
    %c0_42 = arith.constant 0 : index
    %48 = vector.load %arg4[%c0_41, %c0_42] : memref<16x144xbf16, #tpu.memory_space<vmem>>, vector<16x144xbf16>
    %c0_43 = arith.constant 0 : index
    %c0_44 = arith.constant 0 : index
    %49 = vector.load %arg9[%c0_43, %c0_44] : memref<144x200xbf16, #tpu.memory_space<vmem>>, vector<144x200xbf16>
    %cst_45 = arith.constant dense<0.000000e+00> : vector<16x200xf32>
    %50 = tpu.matmul %48, %49, %cst_45 {dimension_numbers = #tpu.dot_dimension_numbers<[1], [0], [0], [1], [0, 0, 1, 1], [], []>} : vector<16x144xbf16>, vector<144x200xbf16>, vector<16x200xf32> -> vector<16x200xf32>
    %c0_46 = arith.constant 0 : index
    %c0_47 = arith.constant 0 : index
    %51 = vector.load %arg5[%c0_46, %c0_47] : memref<16x222xbf16, #tpu.memory_space<vmem>>, vector<16x200xbf16>
    %c0_48 = arith.constant 0 : index
    %c0_49 = arith.constant 0 : index
    %52 = vector.load %arg10[%c0_48, %c0_49] : memref<144x200xbf16, #tpu.memory_space<vmem>>, vector<16x200xbf16>
    tpu.vector_store %arg10[%c0_48, %c0_49], %51 {strides = array<i32>} : memref<144x200xbf16, #tpu.memory_space<vmem>>, vector<16x200xbf16>,
    %c0_50 = arith.constant 0 : index
    %c1_51 = arith.constant 1 : index
    %53 = vector.load %arg5[%c0_50, %c1_51] : memref<16x222xbf16, #tpu.memory_space<vmem>>, vector<16x200xbf16>
    %c16_52 = arith.constant 16 : index
    %c0_53 = arith.constant 0 : index
    %54 = vector.load %arg10[%c16_52, %c0_53] : memref<144x200xbf16, #tpu.memory_space<vmem>>, vector<16x200xbf16>
    tpu.vector_store %arg10[%c16_52, %c0_53], %53 {strides = array<i32>} : memref<144x200xbf16, #tpu.memory_space<vmem>>, vector<16x200xbf16>,
    %c0_54 = arith.constant 0 : index
    %c2_55 = arith.constant 2 : index
    %55 = vector.load %arg5[%c0_54, %c2_55] : memref<16x222xbf16, #tpu.memory_space<vmem>>, vector<16x200xbf16>
    %c32_56 = arith.constant 32 : index
    %c0_57 = arith.constant 0 : index
    %56 = vector.load %arg10[%c32_56, %c0_57] : memref<144x200xbf16, #tpu.memory_space<vmem>>, vector<16x200xbf16>
    tpu.vector_store %arg10[%c32_56, %c0_57], %55 {strides = array<i32>} : memref<144x200xbf16, #tpu.memory_space<vmem>>, vector<16x200xbf16>,
    %c0_58 = arith.constant 0 : index
    %c10_59 = arith.constant 10 : index
    %57 = vector.load %arg5[%c0_58, %c10_59] : memref<16x222xbf16, #tpu.memory_space<vmem>>, vector<16x200xbf16>
    %c48_60 = arith.constant 48 : index
    %c0_61 = arith.constant 0 : index
    %58 = vector.load %arg10[%c48_60, %c0_61] : memref<144x200xbf16, #tpu.memory_space<vmem>>, vector<16x200xbf16>
    tpu.vector_store %arg10[%c48_60, %c0_61], %57 {strides = array<i32>} : memref<144x200xbf16, #tpu.memory_space<vmem>>, vector<16x200xbf16>,
    %c0_62 = arith.constant 0 : index
    %c11_63 = arith.constant 11 : index
    %59 = vector.load %arg5[%c0_62, %c11_63] : memref<16x222xbf16, #tpu.memory_space<vmem>>, vector<16x200xbf16>
    %c64_64 = arith.constant 64 : index
    %c0_65 = arith.constant 0 : index
    %60 = vector.load %arg10[%c64_64, %c0_65] : memref<144x200xbf16, #tpu.memory_space<vmem>>, vector<16x200xbf16>
    tpu.vector_store %arg10[%c64_64, %c0_65], %59 {strides = array<i32>} : memref<144x200xbf16, #tpu.memory_space<vmem>>, vector<16x200xbf16>,
    %c0_66 = arith.constant 0 : index
    %c12_67 = arith.constant 12 : index
    %61 = vector.load %arg5[%c0_66, %c12_67] : memref<16x222xbf16, #tpu.memory_space<vmem>>, vector<16x200xbf16>
    %c80_68 = arith.constant 80 : index
    %c0_69 = arith.constant 0 : index
    %62 = vector.load %arg10[%c80_68, %c0_69] : memref<144x200xbf16, #tpu.memory_space<vmem>>, vector<16x200xbf16>
    tpu.vector_store %arg10[%c80_68, %c0_69], %61 {strides = array<i32>} : memref<144x200xbf16, #tpu.memory_space<vmem>>, vector<16x200xbf16>,
    %c0_70 = arith.constant 0 : index
    %c20_71 = arith.constant 20 : index
    %63 = vector.load %arg5[%c0_70, %c20_71] : memref<16x222xbf16, #tpu.memory_space<vmem>>, vector<16x200xbf16>
    %c96_72 = arith.constant 96 : index
    %c0_73 = arith.constant 0 : index
    %64 = vector.load %arg10[%c96_72, %c0_73] : memref<144x200xbf16, #tpu.memory_space<vmem>>, vector<16x200xbf16>
    tpu.vector_store %arg10[%c96_72, %c0_73], %63 {strides = array<i32>} : memref<144x200xbf16, #tpu.memory_space<vmem>>, vector<16x200xbf16>,
    %c0_74 = arith.constant 0 : index
    %c21_75 = arith.constant 21 : index
    %65 = vector.load %arg5[%c0_74, %c21_75] : memref<16x222xbf16, #tpu.memory_space<vmem>>, vector<16x200xbf16>
    %c112_76 = arith.constant 112 : index
    %c0_77 = arith.constant 0 : index
    %66 = vector.load %arg10[%c112_76, %c0_77] : memref<144x200xbf16, #tpu.memory_space<vmem>>, vector<16x200xbf16>
    tpu.vector_store %arg10[%c112_76, %c0_77], %65 {strides = array<i32>} : memref<144x200xbf16, #tpu.memory_space<vmem>>, vector<16x200xbf16>,
    %c0_78 = arith.constant 0 : index
    %c22_79 = arith.constant 22 : index
    %67 = vector.load %arg5[%c0_78, %c22_79] : memref<16x222xbf16, #tpu.memory_space<vmem>>, vector<16x200xbf16>
    %c128_80 = arith.constant 128 : index
    %c0_81 = arith.constant 0 : index
    %68 = vector.load %arg10[%c128_80, %c0_81] : memref<144x200xbf16, #tpu.memory_space<vmem>>, vector<16x200xbf16>
    tpu.vector_store %arg10[%c128_80, %c0_81], %67 {strides = array<i32>} : memref<144x200xbf16, #tpu.memory_space<vmem>>, vector<16x200xbf16>,
    %c0_82 = arith.constant 0 : index
    %c0_83 = arith.constant 0 : index
    %69 = vector.load %arg6[%c0_82, %c0_83] : memref<16x144xbf16, #tpu.memory_space<vmem>>, vector<16x144xbf16>
    %c0_84 = arith.constant 0 : index
    %c0_85 = arith.constant 0 : index
    %70 = vector.load %arg10[%c0_84, %c0_85] : memref<144x200xbf16, #tpu.memory_space<vmem>>, vector<144x200xbf16>
    %cst_86 = arith.constant dense<0.000000e+00> : vector<16x200xf32>
    %71 = tpu.matmul %69, %70, %cst_86 {dimension_numbers = #tpu.dot_dimension_numbers<[1], [0], [0], [1], [0, 0, 1, 1], [], []>} : vector<16x144xbf16>, vector<144x200xbf16>, vector<16x200xf32> -> vector<16x200xf32>
    %72 = arith.addf %50, %71 : vector<16x200xf32>
    %cst_87 = arith.constant 0.000000e+00 : f32
    %73 = vector.broadcast %cst_87 : f32 to vector<16x200xf32>
    %74 = arith.cmpf oge, %72, %73 : vector<16x200xf32>
    %cst_88 = arith.constant 1.000000e-01 : f32
    %75 = vector.broadcast %cst_88 : f32 to vector<16x200xf32>
    %76 = arith.mulf %75, %72 : vector<16x200xf32>
    %77 = arith.select %74, %72, %76 : vector<16x200xi1>, vector<16x200xf32>
    %c0_89 = arith.constant 0 : index
    %c0_90 = arith.constant 0 : index
    %78 = vector.load %arg7[%c0_89, %c0_90] : memref<16x200xf32, #tpu.memory_space<vmem>>, vector<16x200xf32>
    tpu.vector_store %arg7[%c0_89, %c0_90], %77 {strides = array<i32>} : memref<16x200xf32, #tpu.memory_space<vmem>>, vector<16x200xf32>,
    return
  }
  func.func @transform_0(%arg0: i32) -> (i32, i32) {
    %c0_i32 = arith.constant 0 : i32
    %c0_i32_0 = arith.constant 0 : i32
    %c0_i32_1 = arith.constant 0 : i32
    return %c0_i32, %c0_i32_0 : i32, i32
  }
  func.func @transform_1(%arg0: i32) -> (i32, i32) {
    %c0_i32 = arith.constant 0 : i32
    %c0_i32_0 = arith.constant 0 : i32
    %c0_i32_1 = arith.constant 0 : i32
    return %c0_i32, %c0_i32_0 : i32, i32
  }
  func.func @transform_2(%arg0: i32) -> (i32, i32) {
    %c0_i32 = arith.constant 0 : i32
    %c0_i32_0 = arith.constant 0 : i32
    %c0_i32_1 = arith.constant 0 : i32
    return %c0_i32, %c0_i32_0 : i32, i32
  }
  func.func @transform_3(%arg0: i32) -> (i32, i32) {
    %c0_i32 = arith.constant 0 : i32
    %c0_i32_0 = arith.constant 0 : i32
    %c0_i32_1 = arith.constant 0 : i32
    return %c0_i32, %c0_i32_0 : i32, i32
  }
  func.func @transform_4(%arg0: i32) -> (i32, i32) {
    %c0_i32 = arith.constant 0 : i32
    %c0_i32_0 = arith.constant 0 : i32
    %c0_i32_1 = arith.constant 0 : i32
    return %c0_i32, %c0_i32_0 : i32, i32
  }
  func.func @transform_5(%arg0: i32) -> (i32, i32) {
    %c0_i32 = arith.constant 0 : i32
    %c0_i32_0 = arith.constant 0 : i32
    %c0_i32_1 = arith.constant 0 : i32
    return %c0_i32, %c0_i32_0 : i32, i32
  }
  func.func @transform_6(%arg0: i32) -> (i32, i32) {
    %c0_i32 = arith.constant 0 : i32
    %c0_i32_0 = arith.constant 0 : i32
    %c0_i32_1 = arith.constant 0 : i32
    return %c0_i32, %c0_i32_0 : i32, i32
  }
}

module attributes {stable_mosaic.version = 11 : i64} {
  func.func @kernel(%arg0: i32, %arg1: memref<16x686xbf16, #tpu.memory_space<vmem>>, %arg2: memref<2x144xbf16, #tpu.memory_space<vmem>>, %arg3: memref<2x648xf32, #tpu.memory_space<vmem>>, %arg4: memref<144x648xbf16, #tpu.memory_space<vmem>>) attributes {dimension_semantics = [#tpu.dimension_semantics<arbitrary>], iteration_bounds = array<i64: 1>, scalar_prefetch = 0 : i64, scratch_operands = 1 : i64, tpu.core_type = #tpu.core_type<tc>, window_params = [{pipeline_mode = #tpu.pipeline_mode<synchronous>, transform_indices = @transform_0, window_bounds = array<i64: 16, 686>}, {pipeline_mode = #tpu.pipeline_mode<synchronous>, transform_indices = @transform_1, window_bounds = array<i64: 2, 144>}, {pipeline_mode = #tpu.pipeline_mode<synchronous>, transform_indices = @transform_2, window_bounds = array<i64: 2, 648>}]} {
    %c0 = arith.constant 0 : index
    %c0_0 = arith.constant 0 : index
    %0 = vector.load %arg1[%c0, %c0_0] : memref<16x686xbf16, #tpu.memory_space<vmem>>, vector<16x648xbf16>
    %c0_1 = arith.constant 0 : index
    %c0_2 = arith.constant 0 : index
    %1 = vector.load %arg4[%c0_1, %c0_2] : memref<144x648xbf16, #tpu.memory_space<vmem>>, vector<16x648xbf16>
    tpu.vector_store %arg4[%c0_1, %c0_2], %0 {strides = array<i32>} : memref<144x648xbf16, #tpu.memory_space<vmem>>, vector<16x648xbf16>,
    %c0_3 = arith.constant 0 : index
    %c1 = arith.constant 1 : index
    %2 = vector.load %arg1[%c0_3, %c1] : memref<16x686xbf16, #tpu.memory_space<vmem>>, vector<16x648xbf16>
    %c16 = arith.constant 16 : index
    %c0_4 = arith.constant 0 : index
    %3 = vector.load %arg4[%c16, %c0_4] : memref<144x648xbf16, #tpu.memory_space<vmem>>, vector<16x648xbf16>
    tpu.vector_store %arg4[%c16, %c0_4], %2 {strides = array<i32>} : memref<144x648xbf16, #tpu.memory_space<vmem>>, vector<16x648xbf16>,
    %c0_5 = arith.constant 0 : index
    %c2 = arith.constant 2 : index
    %4 = vector.load %arg1[%c0_5, %c2] : memref<16x686xbf16, #tpu.memory_space<vmem>>, vector<16x648xbf16>
    %c32 = arith.constant 32 : index
    %c0_6 = arith.constant 0 : index
    %5 = vector.load %arg4[%c32, %c0_6] : memref<144x648xbf16, #tpu.memory_space<vmem>>, vector<16x648xbf16>
    tpu.vector_store %arg4[%c32, %c0_6], %4 {strides = array<i32>} : memref<144x648xbf16, #tpu.memory_space<vmem>>, vector<16x648xbf16>,
    %c0_7 = arith.constant 0 : index
    %c18 = arith.constant 18 : index
    %6 = vector.load %arg1[%c0_7, %c18] : memref<16x686xbf16, #tpu.memory_space<vmem>>, vector<16x648xbf16>
    %c48 = arith.constant 48 : index
    %c0_8 = arith.constant 0 : index
    %7 = vector.load %arg4[%c48, %c0_8] : memref<144x648xbf16, #tpu.memory_space<vmem>>, vector<16x648xbf16>
    tpu.vector_store %arg4[%c48, %c0_8], %6 {strides = array<i32>} : memref<144x648xbf16, #tpu.memory_space<vmem>>, vector<16x648xbf16>,
    %c0_9 = arith.constant 0 : index
    %c19 = arith.constant 19 : index
    %8 = vector.load %arg1[%c0_9, %c19] : memref<16x686xbf16, #tpu.memory_space<vmem>>, vector<16x648xbf16>
    %c64 = arith.constant 64 : index
    %c0_10 = arith.constant 0 : index
    %9 = vector.load %arg4[%c64, %c0_10] : memref<144x648xbf16, #tpu.memory_space<vmem>>, vector<16x648xbf16>
    tpu.vector_store %arg4[%c64, %c0_10], %8 {strides = array<i32>} : memref<144x648xbf16, #tpu.memory_space<vmem>>, vector<16x648xbf16>,
    %c0_11 = arith.constant 0 : index
    %c20 = arith.constant 20 : index
    %10 = vector.load %arg1[%c0_11, %c20] : memref<16x686xbf16, #tpu.memory_space<vmem>>, vector<16x648xbf16>
    %c80 = arith.constant 80 : index
    %c0_12 = arith.constant 0 : index
    %11 = vector.load %arg4[%c80, %c0_12] : memref<144x648xbf16, #tpu.memory_space<vmem>>, vector<16x648xbf16>
    tpu.vector_store %arg4[%c80, %c0_12], %10 {strides = array<i32>} : memref<144x648xbf16, #tpu.memory_space<vmem>>, vector<16x648xbf16>,
    %c0_13 = arith.constant 0 : index
    %c36 = arith.constant 36 : index
    %12 = vector.load %arg1[%c0_13, %c36] : memref<16x686xbf16, #tpu.memory_space<vmem>>, vector<16x648xbf16>
    %c96 = arith.constant 96 : index
    %c0_14 = arith.constant 0 : index
    %13 = vector.load %arg4[%c96, %c0_14] : memref<144x648xbf16, #tpu.memory_space<vmem>>, vector<16x648xbf16>
    tpu.vector_store %arg4[%c96, %c0_14], %12 {strides = array<i32>} : memref<144x648xbf16, #tpu.memory_space<vmem>>, vector<16x648xbf16>,
    %c0_15 = arith.constant 0 : index
    %c37 = arith.constant 37 : index
    %14 = vector.load %arg1[%c0_15, %c37] : memref<16x686xbf16, #tpu.memory_space<vmem>>, vector<16x648xbf16>
    %c112 = arith.constant 112 : index
    %c0_16 = arith.constant 0 : index
    %15 = vector.load %arg4[%c112, %c0_16] : memref<144x648xbf16, #tpu.memory_space<vmem>>, vector<16x648xbf16>
    tpu.vector_store %arg4[%c112, %c0_16], %14 {strides = array<i32>} : memref<144x648xbf16, #tpu.memory_space<vmem>>, vector<16x648xbf16>,
    %c0_17 = arith.constant 0 : index
    %c38 = arith.constant 38 : index
    %16 = vector.load %arg1[%c0_17, %c38] : memref<16x686xbf16, #tpu.memory_space<vmem>>, vector<16x648xbf16>
    %c128 = arith.constant 128 : index
    %c0_18 = arith.constant 0 : index
    %17 = vector.load %arg4[%c128, %c0_18] : memref<144x648xbf16, #tpu.memory_space<vmem>>, vector<16x648xbf16>
    tpu.vector_store %arg4[%c128, %c0_18], %16 {strides = array<i32>} : memref<144x648xbf16, #tpu.memory_space<vmem>>, vector<16x648xbf16>,
    %c0_19 = arith.constant 0 : index
    %c0_20 = arith.constant 0 : index
    %18 = vector.load %arg2[%c0_19, %c0_20] : memref<2x144xbf16, #tpu.memory_space<vmem>>, vector<2x144xbf16>
    %c0_21 = arith.constant 0 : index
    %c0_22 = arith.constant 0 : index
    %19 = vector.load %arg4[%c0_21, %c0_22] : memref<144x648xbf16, #tpu.memory_space<vmem>>, vector<144x648xbf16>
    %cst = arith.constant dense<0.000000e+00> : vector<2x648xf32>
    %20 = tpu.matmul %18, %19, %cst {dimension_numbers = #tpu.dot_dimension_numbers<[1], [0], [0], [1], [0, 0, 1, 1], [], []>} : vector<2x144xbf16>, vector<144x648xbf16>, vector<2x648xf32> -> vector<2x648xf32>
    %c0_23 = arith.constant 0 : index
    %c0_24 = arith.constant 0 : index
    %21 = vector.load %arg3[%c0_23, %c0_24] : memref<2x648xf32, #tpu.memory_space<vmem>>, vector<2x648xf32>
    tpu.vector_store %arg3[%c0_23, %c0_24], %20 {strides = array<i32>} : memref<2x648xf32, #tpu.memory_space<vmem>>, vector<2x648xf32>,
    return
  }
  func.func @transform_0(%arg0: i32) -> (i32, i32) {
    %c0_i32 = arith.constant 0 : i32
    %c0_i32_0 = arith.constant 0 : i32
    %c0_i32_1 = arith.constant 0 : i32
    return %c0_i32, %c0_i32_0 : i32, i32
  }
  func.func @transform_1(%arg0: i32) -> (i32, i32) {
    %c0_i32 = arith.constant 0 : i32
    %c0_i32_0 = arith.constant 0 : i32
    %c0_i32_1 = arith.constant 0 : i32
    return %c0_i32, %c0_i32_0 : i32, i32
  }
  func.func @transform_2(%arg0: i32) -> (i32, i32) {
    %c0_i32 = arith.constant 0 : i32
    %c0_i32_0 = arith.constant 0 : i32
    %c0_i32_1 = arith.constant 0 : i32
    return %c0_i32, %c0_i32_0 : i32, i32
  }
}

</mosaic_0001>

<bundles_post_ra>
// kernel: net_forward.6
= control target key start
LH: loop header
LB: loop body
LE: loop exit
PB: predicated region body
PF: predicated region fallthrough
CT: control target
= control target key end

     0   :  { %s2718_s20 = smov 127   ;;  %s2719_s21 = smov 126   ;;  %vm118_vm0 = vcmask 1039360   ;;  %vm190_vm1 = vcmask 1031168   ;;  %vm262_vm2 = vcmask 1022976   ;;  %vm334_vm3 = vcmask 1014784   ;;  %s3697_s0 = inlined_call_operand.vmem [shape: bf16[16,884], index: 0, kind: input, shape index: {}]   ;;  %s3698_s1 = inlined_call_operand.vmem [shape: bf16[16,400], index: 1, kind: input, shape index: {}]   ;;  %s3699_s2 = inlined_call_operand.vmem [shape: f32[16,1], index: 2, kind: input, shape index: {}]   ;;  %s3700_s3 = inlined_call_operand.vmem [shape: f32[16,800], index: 3, kind: output, shape index: {}]  }
   0x1   :  { %v67_v0 = vld [vmem:[%s3697_s0] sm:$0xff]  ;;  %v2781_v5 = vld [vmem:[%s3697_s0 + $0xc] ss:$28 sps:$4 sm:$0xff]   ;;  %s2720_s22 = smov 125   ;;  %s2721_s23 = smov 124   ;;  %v2838_v6 = vld [vmem:[%s3697_s0 + $0x10] sm:$0xff] }
   0x2   :  { %v71_v1 = vld [vmem:[%s3697_s0 + $0x1c] sm:$0xff]  ;;  %v2776_v4 = vld [vmem:[%s3697_s0 + $0x8] ss:$28 sps:$4 sm:$0xff]   ;;  %2095 = vmatprep.subr.bf16.mxu1 %v2781_v5  ;;  %s2722_s24 = smov 108   ;;  %s2723_s25 = smov 107   ;;  %v2843_v7 = vld [vmem:[%s3697_s0 + $0x2c] sm:$0xff] }
   0x3   :  { %v2769_v2 = vcombine.high %v67_v0, %v71_v1  ;;  %v2771_v3 = vcombine.low %v67_v0, %v71_v1  ;;  %2096 = vmatpush1.bf16.msra.mxu1 %v2776_v4  ;;  %s2724_s26 = smov 106   ;;  %s2725_s27 = smov 105   ;;  %v2851_v8 = vcombine.low %v2838_v6, %v2843_v7  ;;  %v2892_v9 = vld [vmem:[%s3697_s0 + $0x10] ss:$28 sps:$4 sm:$0xff]   ;;  %v2685_v10 = vld [vmem:[%s3698_s1 + $0x4] ss:$16 sps:$4 sm:$0xff]  }
   0x4   :  { %s2726_s5 = smov 104   ;;  %s2727_s6 = smov 88   ;;  %63 = vst [vmem:[#allocation2 + $0x20] sm:$0xff] %v2892_v9  ;;  %2041 = vmatprep.mubr.bf16.mxu0 %v2685_v10  ;;  %2127 = vmatprep.mubr.bf16.mxu1 %v2685_v10  ;;  %vm3707_vm4 = vcmask 883712   ;;  %vm3704_vm5 = vcmask 875520   ;;  %vm3703_vm6 = vcmask 867328  }
   0x5   :  { %106 = vrot.lane.b32.xlu0 %v2769_v2, %s2718_s20  ;;  %104 = vrot.lane.b32.xlu1 %v2771_v3, %s2718_s20  ;;  %s2728_s7 = smov 87   ;;  %s2729_s8 = smov 86   ;;  %vm3706_vm7 = vcmask 859136   ;;  %vm3705_vm8 = vcmask 850944   ;;  %vm3709_vm9 = vcmask 719872   ;;  %vm3708_vm10 = vcmask 711680  }
   0x6   :  { %2009 = vmatprep.subr.bf16.mxu0 %v2769_v2  ;;  %s2730_s11 = smov 85   ;;  %s2731_s12 = smov 84   ;;  %vm3711_vm11 = vcmask 703488   ;;  %vm3710_vm12 = vcmask 695296   ;;  %vm1054_vm13 = vcmask 687104   ;;  %vm3712_vm14 = vcmask 556032  }
   0x7   :  { %2010 = vmatpush1.bf16.msra.mxu0 %v2771_v3  ;;  %s3701_s13 = smov 68   ;;  %s2733_s16 = smov 67   ;;  %vm1198_vm15 = vcmask 547840  }
   0x8   :  { %s2734_s17 = smov 66   ;;  %s2735_s18 = smov 65  }
   0x9   :  { %108 = vrot.lane.b32.xlu0 %v2776_v4, %s2718_s20  ;;  %178 = vrot.lane.b32.xlu1 %v2769_v2, %s2719_s21  ;;  %s2736_s19 = smov 64   ;;  %s2737_s28 = smov 48  }
   0xa   :  { %s2738_s29 = smov 47   ;;  %s2739_s30 = smov 46  }
   0xb   :  { %s2740_s10 = smov 45   ;;  %s2741_s4 = smov 44  }
   0xd   :  { %180 = vrot.lane.b32.xlu0 %v2776_v4, %s2719_s21  ;;  %176 = vrot.lane.b32.xlu1 %v2771_v3, %s2719_s21 }
  0x11   :  { %250 = vrot.lane.b32.xlu0 %v2769_v2, %s2720_s22  ;;  %252 = vrot.lane.b32.xlu1 %v2776_v4, %s2720_s22 }
  0x15   :  { %248 = vrot.lane.b32.xlu0 %v2771_v3, %s2720_s22  ;;  %322 = vrot.lane.b32.xlu1 %v2769_v2, %s2721_s23 }
  0x19   :  { %324 = vrot.lane.b32.xlu0 %v2776_v4, %s2721_s23  ;;  %320 = vrot.lane.b32.xlu1 %v2771_v3, %s2721_s23 }
  0x1d   :  { %394 = vrot.lane.b32.xlu0 %v2769_v2, %s2722_s24  ;;  %396 = vrot.lane.b32.xlu1 %v2776_v4, %s2722_s24 }
  0x21   :  { %392 = vrot.lane.b32.xlu0 %v2771_v3, %s2722_s24  ;;  %466 = vrot.lane.b32.xlu1 %v2769_v2, %s2723_s25 }
  0x25   :  { %468 = vrot.lane.b32.xlu0 %v2776_v4, %s2723_s25  ;;  %464 = vrot.lane.b32.xlu1 %v2771_v3, %s2723_s25 }
  0x29   :  { %538 = vrot.lane.b32.xlu0 %v2769_v2, %s2724_s26  ;;  %540 = vrot.lane.b32.xlu1 %v2776_v4, %s2724_s26 }
  0x2d   :  { %536 = vrot.lane.b32.xlu0 %v2771_v3, %s2724_s26  ;;  %610 = vrot.lane.b32.xlu1 %v2769_v2, %s2725_s27 }
  0x31   :  { %612 = vrot.lane.b32.xlu0 %v2776_v4, %s2725_s27  ;;  %608 = vrot.lane.b32.xlu1 %v2771_v3, %s2725_s27 }
  0x35   :  { %682 = vrot.lane.b32.xlu0 %v2769_v2, %s2726_s5  ;;  %684 = vrot.lane.b32.xlu1 %v2776_v4, %s2726_s5 }
  0x39   :  { %110 = vrot.lane.b32.xlu0 %v2781_v5, %s2718_s20  ;;  %112 = vrot.lane.b32.xlu1 %v2851_v8, %s2718_s20 }
  0x3d   :  { %680 = vrot.lane.b32.xlu0 %v2771_v3, %s2726_s5  ;;  %754 = vrot.lane.b32.xlu1 %v2769_v2, %s2727_s6 }
  0x41   :  { %756 = vrot.lane.b32.xlu0 %v2776_v4, %s2727_s6  ;;  %182 = vrot.lane.b32.xlu1 %v2781_v5, %s2719_s21 }
  0x45   :  { %184 = vrot.lane.b32.xlu0 %v2851_v8, %s2719_s21  ;;  %752 = vrot.lane.b32.xlu1 %v2771_v3, %s2727_s6 }
  0x49   :  { %826 = vrot.lane.b32.xlu0 %v2769_v2, %s2728_s7  ;;  %828 = vrot.lane.b32.xlu1 %v2776_v4, %s2728_s7 }
  0x4d   :  { %254 = vrot.lane.b32.xlu0 %v2781_v5, %s2720_s22  ;;  %256 = vrot.lane.b32.xlu1 %v2851_v8, %s2720_s22 }
  0x51   :  { %824 = vrot.lane.b32.xlu0 %v2771_v3, %s2728_s7  ;;  %898 = vrot.lane.b32.xlu1 %v2769_v2, %s2729_s8 }
  0x55   :  { %900 = vrot.lane.b32.xlu0 %v2776_v4, %s2729_s8  ;;  %326 = vrot.lane.b32.xlu1 %v2781_v5, %s2721_s23 }
  0x59   :  { %328 = vrot.lane.b32.xlu0 %v2851_v8, %s2721_s23  ;;  %896 = vrot.lane.b32.xlu1 %v2771_v3, %s2729_s8 }
  0x5d   :  { %970 = vrot.lane.b32.xlu0 %v2769_v2, %s2730_s11  ;;  %972 = vrot.lane.b32.xlu1 %v2776_v4, %s2730_s11 }
  0x61   :  { %398 = vrot.lane.b32.xlu0 %v2781_v5, %s2722_s24  ;;  %400 = vrot.lane.b32.xlu1 %v2851_v8, %s2722_s24 }
  0x65   :  { %968 = vrot.lane.b32.xlu0 %v2771_v3, %s2730_s11  ;;  %1042 = vrot.lane.b32.xlu1 %v2769_v2, %s2731_s12 }
  0x69   :  { %1044 = vrot.lane.b32.xlu0 %v2776_v4, %s2731_s12  ;;  %470 = vrot.lane.b32.xlu1 %v2781_v5, %s2723_s25 }
  0x6d   :  { %472 = vrot.lane.b32.xlu0 %v2851_v8, %s2723_s25  ;;  %1040 = vrot.lane.b32.xlu1 %v2771_v3, %s2731_s12 }
  0x71   :  { %1114 = vrot.lane.b32.xlu0 %v2769_v2, %s3701_s13  ;;  %1116 = vrot.lane.b32.xlu1 %v2776_v4, %s3701_s13 }
  0x75   :  { %542 = vrot.lane.b32.xlu0 %v2781_v5, %s2724_s26  ;;  %544 = vrot.lane.b32.xlu1 %v2851_v8, %s2724_s26 }
  0x77   :  { %v107_v11 = vpop.permute.xlu0 %106  ;;  %v105_v12 = vpop.permute.xlu1 %104 }
  0x78   :  { %v119_v13 = vsel %vm118_vm0, %v105_v12, %v107_v11 }
  0x79   :  { %1112 = vrot.lane.b32.xlu0 %v2771_v3, %s3701_s13  ;;  %1186 = vrot.lane.b32.xlu1 %v2769_v2, %s2733_s16 }
  0x7b   :  { %v2931_v14 = vpop.permute.xlu0 %108  ;;  %v179_v15 = vpop.permute.xlu1 %178 }
  0x7c   :  { %v120_v16 = vsel %vm118_vm0, %v107_v11, %v2931_v14 }
  0x7d   :  { %1188 = vrot.lane.b32.xlu0 %v2776_v4, %s2733_s16  ;;  %614 = vrot.lane.b32.xlu1 %v2781_v5, %s2725_s27 }
  0x7e   :  { %2011 = vmatprep.subr.bf16.mxu0 %v120_v16 }
  0x7f   :  { %v2939_v17 = vpop.permute.xlu0 %180  ;;  %v177_v18 = vpop.permute.xlu1 %176  ;;  %2012 = vmatpush1.bf16.msra.mxu0 %v119_v13  ;;  %v3055_v13 = vld [vmem:[%s3697_s0 + $0x14] ss:$28 sps:$4 sm:$0xff]  }
  0x80   :  { %v192_v19 = vsel %vm190_vm1, %v179_v15, %v2939_v17  ;;  %v191_v20 = vsel %vm190_vm1, %v177_v18, %v179_v15 }
  0x81   :  { %616 = vrot.lane.b32.xlu0 %v2851_v8, %s2725_s27  ;;  %1184 = vrot.lane.b32.xlu1 %v2771_v3, %s2733_s16 }
  0x82   :  { %2013 = vmatprep.subr.bf16.mxu0 %v192_v19 }
  0x83   :  { %v251_v21 = vpop.permute.xlu0 %250  ;;  %v2948_v22 = vpop.permute.xlu1 %252  ;;  %2014 = vmatpush1.bf16.msra.mxu0 %v191_v20 }
  0x84   :  { %v264_v23 = vsel %vm262_vm2, %v251_v21, %v2948_v22 }
  0x85   :  { %1258 = vrot.lane.b32.xlu0 %v2769_v2, %s2734_s17  ;;  %1260 = vrot.lane.b32.xlu1 %v2776_v4, %s2734_s17 }
  0x86   :  { %2015 = vmatprep.subr.bf16.mxu0 %v264_v23 }
  0x87   :  { %v249_v24 = vpop.permute.xlu0 %248  ;;  %v323_v25 = vpop.permute.xlu1 %322 }
  0x88   :  { %v263_v26 = vsel %vm262_vm2, %v249_v24, %v251_v21 }
  0x89   :  { %686 = vrot.lane.b32.xlu0 %v2781_v5, %s2726_s5  ;;  %688 = vrot.lane.b32.xlu1 %v2851_v8, %s2726_s5 }
  0x8a   :  { %2016 = vmatpush1.bf16.msra.mxu0 %v263_v26 }
  0x8b   :  { %v2961_v27 = vpop.permute.xlu0 %324  ;;  %v321_v28 = vpop.permute.xlu1 %320 }
  0x8c   :  { %v336_v29 = vsel %vm334_vm3, %v323_v25, %v2961_v27  ;;  %v335_v30 = vsel %vm334_vm3, %v321_v28, %v323_v25  ;;  %v2675_v28 = vld [vmem:[%s3697_s0 + $0x8] ss:$28 sps:$4 sm:$0xff]  }
  0x8d   :  { %1256 = vrot.lane.b32.xlu0 %v2771_v3, %s2734_s17  ;;  %1330 = vrot.lane.b32.xlu1 %v2769_v2, %s2735_s18 }
  0x8e   :  { %2017 = vmatprep.subr.bf16.mxu0 %v336_v29 }
  0x8f   :  { %v395_v31 = vpop.permute.xlu0 %394  ;;  %v2970_v32 = vpop.permute.xlu1 %396  ;;  %2018 = vmatpush1.bf16.msra.mxu0 %v335_v30 }
  0x90   :  { %v408_v33 = vsel %vm3707_vm4, %v395_v31, %v2970_v32 }
  0x91   :  { %1332 = vrot.lane.b32.xlu0 %v2776_v4, %s2735_s18  ;;  %758 = vrot.lane.b32.xlu1 %v2781_v5, %s2727_s6 }
  0x92   :  { %2019 = vmatprep.subr.bf16.mxu0 %v408_v33 }
  0x93   :  { %v393_v34 = vpop.permute.xlu0 %392  ;;  %v467_v35 = vpop.permute.xlu1 %466 }
  0x94   :  { %v407_v36 = vsel %vm3707_vm4, %v393_v34, %v395_v31 }
  0x95   :  { %760 = vrot.lane.b32.xlu0 %v2851_v8, %s2727_s6  ;;  %1328 = vrot.lane.b32.xlu1 %v2771_v3, %s2735_s18 }
  0x96   :  { %2020 = vmatpush1.bf16.msra.mxu0 %v407_v36 }
  0x97   :  { %v2983_v37 = vpop.permute.xlu0 %468  ;;  %v465_v38 = vpop.permute.xlu1 %464 }
  0x98   :  { %v480_v39 = vsel %vm3704_vm5, %v467_v35, %v2983_v37  ;;  %v479_v40 = vsel %vm3704_vm5, %v465_v38, %v467_v35 }
  0x99   :  { %1402 = vrot.lane.b32.xlu0 %v2769_v2, %s2736_s19  ;;  %1404 = vrot.lane.b32.xlu1 %v2776_v4, %s2736_s19 }
  0x9a   :  { %2021 = vmatprep.subr.bf16.mxu0 %v480_v39 }
  0x9b   :  { %v539_v41 = vpop.permute.xlu0 %538  ;;  %v2992_v42 = vpop.permute.xlu1 %540  ;;  %2022 = vmatpush1.bf16.msra.mxu0 %v479_v40 }
  0x9c   :  { %v552_v43 = vsel %vm3703_vm6, %v539_v41, %v2992_v42 }
  0x9d   :  { %830 = vrot.lane.b32.xlu0 %v2781_v5, %s2728_s7  ;;  %832 = vrot.lane.b32.xlu1 %v2851_v8, %s2728_s7 }
  0x9e   :  { %2023 = vmatprep.subr.bf16.mxu0 %v552_v43  ;;  %v2678_v43 = vld [vmem:[%s3697_s0 + $0x18] ss:$28 sps:$4 sm:$0xff]  }
  0x9f   :  { %v537_v44 = vpop.permute.xlu0 %536  ;;  %v611_v45 = vpop.permute.xlu1 %610 }
  0xa0   :  { %v551_v46 = vsel %vm3703_vm6, %v537_v44, %v539_v41  ;;  %v3125_v41 = vcombine.high %v2838_v6, %v2843_v7 }
  0xa1   :  { %1400 = vrot.lane.b32.xlu0 %v2771_v3, %s2736_s19  ;;  %1474 = vrot.lane.b32.xlu1 %v2769_v2, %s2737_s28 }
  0xa2   :  { %2024 = vmatpush1.bf16.msra.mxu0 %v551_v46 }
  0xa3   :  { %v3005_v47 = vpop.permute.xlu0 %612  ;;  %v609_v48 = vpop.permute.xlu1 %608 }
  0xa4   :  { %v624_v49 = vsel %vm3706_vm7, %v611_v45, %v3005_v47  ;;  %v623_v50 = vsel %vm3706_vm7, %v609_v48, %v611_v45  ;;  %v2681_v48 = vld [vmem:[%s3697_s0 + $0x18] ss:$28 sps:$4 sm:$0xff]  }
  0xa5   :  { %1476 = vrot.lane.b32.xlu0 %v2776_v4, %s2737_s28  ;;  %902 = vrot.lane.b32.xlu1 %v2781_v5, %s2729_s8 }
  0xa6   :  { %2025 = vmatprep.subr.bf16.mxu0 %v624_v49 }
  0xa7   :  { %v683_v51 = vpop.permute.xlu0 %682  ;;  %v3014_v52 = vpop.permute.xlu1 %684  ;;  %2026 = vmatpush1.bf16.msra.mxu0 %v623_v50 }
  0xa8   :  { %v696_v53 = vsel %vm3705_vm8, %v683_v51, %v3014_v52 }
  0xa9   :  { %904 = vrot.lane.b32.xlu0 %v2851_v8, %s2729_s8  ;;  %1472 = vrot.lane.b32.xlu1 %v2771_v3, %s2737_s28 }
  0xaa   :  { %2027 = vmatprep.subr.bf16.mxu0 %v696_v53 }
  0xab   :  { %v111_v54 = vpop.permute.xlu0 %110  ;;  %v3022_v55 = vpop.permute.xlu1 %112 }
  0xac   :  { %v121_v56 = vsel %vm118_vm0, %v2931_v14, %v111_v54  ;;  %v122_v57 = vsel %vm118_vm0, %v111_v54, %v3022_v55 }
  0xad   :  { %1546 = vrot.lane.b32.xlu0 %v2769_v2, %s2738_s29  ;;  %1548 = vrot.lane.b32.xlu1 %v2776_v4, %s2738_s29 }
  0xae   :  { %2097 = vmatprep.subr.bf16.mxu1 %v122_v57  ;;  %v2682_v57 = vld [vmem:[%s3697_s0 + $0x18] ss:$28 sps:$4 sm:$0xff]  }
  0xaf   :  { %v681_v58 = vpop.permute.xlu0 %680  ;;  %v755_v59 = vpop.permute.xlu1 %754  ;;  %2098 = vmatpush1.bf16.msra.mxu1 %v121_v56 }
  0xb0   :  { %v695_v60 = vsel %vm3705_vm8, %v681_v58, %v683_v51 }
  0xb1   :  { %974 = vrot.lane.b32.xlu0 %v2781_v5, %s2730_s11  ;;  %976 = vrot.lane.b32.xlu1 %v2851_v8, %s2730_s11 }
  0xb2   :  { %2028 = vmatpush1.bf16.msra.mxu0 %v695_v60 }
  0xb3   :  { %v3037_v61 = vpop.permute.xlu0 %756  ;;  %v183_v62 = vpop.permute.xlu1 %182 }
  0xb4   :  { %v768_v63 = vsel %vm3709_vm9, %v755_v59, %v3037_v61  ;;  %v193_v0 = vsel %vm190_vm1, %v2939_v17, %v183_v62 }
  0xb5   :  { %1544 = vrot.lane.b32.xlu0 %v2771_v3, %s2738_s29  ;;  %1618 = vrot.lane.b32.xlu1 %v2769_v2, %s2739_s30 }
  0xb6   :  { %2029 = vmatprep.subr.bf16.mxu0 %v768_v63 }
  0xb7   :  { %v3047_v1 = vpop.permute.xlu0 %184  ;;  %v753_v10 = vpop.permute.xlu1 %752 }
  0xb8   :  { %v194_v11 = vsel %vm190_vm1, %v183_v62, %v3047_v1  ;;  %v767_v12 = vsel %vm3709_vm9, %v753_v10, %v755_v59 }
  0xb9   :  { %1620 = vrot.lane.b32.xlu0 %v2776_v4, %s2739_s30  ;;  %1046 = vrot.lane.b32.xlu1 %v2781_v5, %s2731_s12 }
  0xba   :  { %2030 = vmatpush1.bf16.msra.mxu0 %v767_v12  ;;  %2099 = vmatprep.subr.bf16.mxu1 %v194_v11  ;;  %v3190_v11 = vld [vmem:[%s3698_s1] ss:$16 sps:$4 sm:$0xff]  }
  0xbb   :  { %v827_v14 = vpop.permute.xlu0 %826  ;;  %v3061_v15 = vpop.permute.xlu1 %828  ;;  %2100 = vmatpush1.bf16.msra.mxu1 %v193_v0 }
  0xbc   :  { %v840_v16 = vsel %vm3708_vm10, %v827_v14, %v3061_v15 }
  0xbd   :  { %1048 = vrot.lane.b32.xlu0 %v2851_v8, %s2731_s12  ;;  %1616 = vrot.lane.b32.xlu1 %v2771_v3, %s2739_s30 }
  0xbe   :  { %2031 = vmatprep.subr.bf16.mxu0 %v840_v16  ;;  %v3197_v16 = vld [vmem:[%s3698_s1 + $0xc] ss:$16 sps:$4 sm:$0xff]  }
  0xbf   :  { %v255_v17 = vpop.permute.xlu0 %254  ;;  %v3069_v18 = vpop.permute.xlu1 %256 }
  0xc0   :  { %v265_v19 = vsel %vm262_vm2, %v2948_v22, %v255_v17  ;;  %v266_v20 = vsel %vm262_vm2, %v255_v17, %v3069_v18 }
  0xc1   :  { %1690 = vrot.lane.b32.xlu0 %v2769_v2, %s2740_s10  ;;  %1692 = vrot.lane.b32.xlu1 %v2776_v4, %s2740_s10  ;;  %v2673_v2 = vld [vmem:[%s3697_s0 + $0x4] ss:$28 sps:$4 sm:$0xff]  }
  0xc2   :  { %2101 = vmatprep.subr.bf16.mxu1 %v266_v20 }
  0xc3   :  { %v825_v21 = vpop.permute.xlu0 %824  ;;  %v899_v23 = vpop.permute.xlu1 %898  ;;  %2102 = vmatpush1.bf16.msra.mxu1 %v265_v19 }
  0xc4   :  { %v839_v24 = vsel %vm3708_vm10, %v825_v21, %v827_v14 }
  0xc5   :  { %1118 = vrot.lane.b32.xlu0 %v2781_v5, %s3701_s13  ;;  %1120 = vrot.lane.b32.xlu1 %v2851_v8, %s3701_s13 }
  0xc6   :  { %2032 = vmatpush1.bf16.msra.mxu0 %v839_v24  ;;  %v2684_v24 = vld [vmem:[%s3697_s0 + $0x18] ss:$28 sps:$4 sm:$0xff]  }
  0xc7   :  { %v3087_v22 = vpop.permute.xlu0 %900  ;;  %v327_v4 = vpop.permute.xlu1 %326 }
  0xc8   :  { %v912_v25 = vsel %vm3711_vm11, %v899_v23, %v3087_v22  ;;  %v337_v26 = vsel %vm334_vm3, %v2961_v27, %v327_v4 }
  0xc9   :  { %1688 = vrot.lane.b32.xlu0 %v2771_v3, %s2740_s10  ;;  %1762 = vrot.lane.b32.xlu1 %v2673_v2, %s2741_s4  ;;  %v2677_v3 = vld [vmem:[%s3697_s0] ss:$28 sps:$4 sm:$0xff]  }
  0xca   :  { %2033 = vmatprep.subr.bf16.mxu0 %v912_v25 }
  0xcb   :  { %v3099_v29 = vpop.permute.xlu0 %328  ;;  %v897_v30 = vpop.permute.xlu1 %896 }
  0xcc   :  { %v338_v31 = vsel %vm334_vm3, %v327_v4, %v3099_v29  ;;  %v911_v33 = vsel %vm3711_vm11, %v897_v30, %v899_v23 }
  0xcd   :  { %1764 = vrot.lane.b32.xlu0 %v2675_v28, %s2741_s4  ;;  %1190 = vrot.lane.b32.xlu1 %v2781_v5, %s2733_s16 }
  0xce   :  { %2034 = vmatpush1.bf16.msra.mxu0 %v911_v33  ;;  %2103 = vmatprep.subr.bf16.mxu1 %v338_v31  ;;  %v2688_v33 = vld [vmem:[%s3697_s0 + $0x18] ss:$28 sps:$4 sm:$0xff]  }
  0xcf   :  { %v971_v27 = vpop.permute.xlu0 %970  ;;  %v3110_v34 = vpop.permute.xlu1 %972  ;;  %2104 = vmatpush1.bf16.msra.mxu1 %v337_v26 }
  0xd0   :  { %v984_v35 = vsel %vm3710_vm12, %v971_v27, %v3110_v34 }
  0xd1   :  { %1192 = vrot.lane.b32.xlu0 %v2851_v8, %s2733_s16  ;;  %1760 = vrot.lane.b32.xlu1 %v2677_v3, %s2741_s4 }
  0xd2   :  { %2035 = vmatprep.subr.bf16.mxu0 %v984_v35 }
  0xd3   :  { %v399_v36 = vpop.permute.xlu0 %398  ;;  %v3117_v38 = vpop.permute.xlu1 %400 }
  0xd4   :  { %v409_v39 = vsel %vm3707_vm4, %v2970_v32, %v399_v36  ;;  %v410_v40 = vsel %vm3707_vm4, %v399_v36, %v3117_v38  ;;  %vm1414_vm4 = vcmask 523264  }
  0xd5   :  { %1262 = vrot.lane.b32.xlu0 %v2781_v5, %s2734_s17  ;;  %1264 = vrot.lane.b32.xlu1 %v2851_v8, %s2734_s17 }
  0xd6   :  { %2105 = vmatprep.subr.bf16.mxu1 %v410_v40 }
  0xd7   :  { %v969_v44 = vpop.permute.xlu0 %968  ;;  %v1043_v32 = vpop.permute.xlu1 %1042  ;;  %2106 = vmatpush1.bf16.msra.mxu1 %v409_v39 }
  0xd8   :  { %v983_v45 = vsel %vm3710_vm12, %v969_v44, %v971_v27  ;;  %v2713_v44 = vld [vmem:[%s3697_s0 + $0x18] ss:$28 sps:$4 sm:$0xff]  }
  0xd9   :  { %114 = vrot.lane.b32.xlu0 %v3125_v41, %s2718_s20  ;;  %116 = vrot.lane.b32.xlu1 %v2678_v43, %s2718_s20  ;;  %v2689_v43 = vld [vmem:[%s3697_s0 + $0x18] ss:$28 sps:$4 sm:$0xff]  }
  0xda   :  { %2036 = vmatpush1.bf16.msra.mxu0 %v983_v45 }
  0xdb   :  { %v3138_v6 = vpop.permute.xlu0 %1044  ;;  %v471_v7 = vpop.permute.xlu1 %470 }
  0xdc   :  { %v1056_v8 = vsel %vm1054_vm13, %v1043_v32, %v3138_v6  ;;  %v481_v46 = vsel %vm3704_vm5, %v2983_v37, %v471_v7 }
  0xdd   :  { %1334 = vrot.lane.b32.xlu0 %v2781_v5, %s2735_s18  ;;  %1336 = vrot.lane.b32.xlu1 %v2892_v9, %s2735_s18 }
  0xde   :  { %2037 = vmatprep.subr.bf16.mxu0 %v1056_v8 }
  0xdf   :  { %v3151_v49 = vpop.permute.xlu0 %472  ;;  %v1041_v50 = vpop.permute.xlu1 %1040 }
  0xe0   :  { %v482_v51 = vsel %vm3704_vm5, %v471_v7, %v3151_v49  ;;  %v1055_v53 = vsel %vm1054_vm13, %v1041_v50, %v1043_v32  ;;  %vm1270_vm5 = vcmask 539648   ;;  %v2690_v7 = vld [vmem:[%s3697_s0 + $0xc] ss:$28 sps:$4 sm:$0xff]   ;;  %v2691_v50 = vld [vmem:[%s3697_s0 + $0x18] ss:$28 sps:$4 sm:$0xff]  }
  0xe1   :  { %186 = vrot.lane.b32.xlu0 %v3125_v41, %s2719_s21  ;;  %188 = vrot.lane.b32.xlu1 %v2681_v48, %s2719_s21 }
  0xe2   :  { %2038 = vmatpush1.bf16.msra.mxu0 %v1055_v53  ;;  %2107 = vmatprep.subr.bf16.mxu1 %v482_v51 }
  0xe3   :  { %v1115_v37 = vpop.permute.xlu0 %1114  ;;  %v3159_v54 = vpop.permute.xlu1 %1116  ;;  %2108 = vmatpush1.bf16.msra.mxu1 %v481_v46 }
  0xe4   :  { %v1128_v56 = vsel %vm3712_vm14, %v1115_v37, %v3159_v54 }
  0xe5   :  { %1406 = vrot.lane.b32.xlu0 %v2781_v5, %s2736_s19  ;;  %1408 = vrot.lane.b32.xlu1 %v2892_v9, %s2736_s19 }
  0xe6   :  { %2039 = vmatprep.subr.bf16.mxu0 %v1128_v56 }
  0xe7   :  { %v543_v58 = vpop.permute.xlu0 %542  ;;  %v3170_v59 = vpop.permute.xlu1 %544 }
  0xe8   :  { %v553_v60 = vsel %vm3703_vm6, %v2992_v42, %v543_v58  ;;  %v554_v62 = vsel %vm3703_vm6, %v543_v58, %v3170_v59  ;;  %v2683_v42 = vld [vmem:[%s3697_s0 + $0x18] ss:$28 sps:$4 sm:$0xff]   ;;  %vm2005_vm6 = vcmask 130048  }
  0xe9   :  { %258 = vrot.lane.b32.xlu0 %v3125_v41, %s2720_s22  ;;  %260 = vrot.lane.b32.xlu1 %v2682_v57, %s2720_s22 }
  0xea   :  { %2109 = vmatprep.subr.bf16.mxu1 %v554_v62 }
  0xeb   :  { %v1113_v63 = vpop.permute.xlu0 %1112  ;;  %v1187_v0 = vpop.permute.xlu1 %1186  ;;  %2110 = vmatpush1.bf16.msra.mxu1 %v553_v60 }
  0xec   :  { %v1127_v10 = vsel %vm3712_vm14, %v1113_v63, %v1115_v37 }
  0xed   :  { %1478 = vrot.lane.b32.xlu0 %v2781_v5, %s2737_s28  ;;  %1480 = vrot.lane.b32.xlu1 %v2892_v9, %s2737_s28 }
  0xee   :  { %2040 = vmatpush1.bf16.msra.mxu0 %v1127_v10 }
  0xef   :  { %v3192_v12 = vpop.permute.xlu0 %1188  ;;  %v615_v14 = vpop.permute.xlu1 %614 }
  0xf0   :  { %v1200_v17 = vsel %vm1198_vm15, %v1187_v0, %v3192_v12  ;;  %v625_v19 = vsel %vm3706_vm7, %v3005_v47, %v615_v14 }
  0xf1   :  { %330 = vrot.lane.b32.xlu0 %v3125_v41, %s2721_s23  ;;  %332 = vrot.lane.b32.xlu1 %v2683_v42, %s2721_s23  ;;  %v2694_v42 = vld [vmem:[%s3697_s0 + $0x18] ss:$28 sps:$4 sm:$0xff]  }
  0xf2   :  { %2052 = vmatprep.subr.bf16.mxu0 %v1200_v17  ;;  %2042 = vmatmul.mubr.bf16.vlgmr.msra.gmra.mrb[0].mxu0 %v3190_v11 }
  0xf3   :  { %v3207_v20 = vpop.permute.xlu0 %616  ;;  %v1185_v21 = vpop.permute.xlu1 %1184  ;;  %2588 = vmatprep.mubr.msk.bf16.mxu0 %vm2005_vm6, %v3197_v16 }
  0xf4   :  { %v626_v23 = vsel %vm3706_vm7, %v615_v14, %v3207_v20  ;;  %v1199_v47 = vsel %vm1198_vm15, %v1185_v21, %v1187_v0  ;;  %vm65_vm7 = vcmask 261120  }
  0xf5   :  { %1550 = vrot.lane.b32.xlu0 %v2781_v5, %s2738_s29  ;;  %1552 = vrot.lane.b32.xlu1 %v2892_v9, %s2738_s29  ;;  %66 = vst.msk [vmem:[#allocation2 + $0x30] sm:$0xff] %vm65_vm7, %v2713_v44 }
  0xf6   :  { %2053 = vmatpush1.bf16.msra.mxu0 %v1199_v47  ;;  %2111 = vmatprep.subr.bf16.mxu1 %v626_v23 }
  0xf7   :  { %v1259_v2 = vpop.permute.xlu0 %1258  ;;  %v3221_v4 = vpop.permute.xlu1 %1260  ;;  %2112 = vmatpush1.bf16.msra.mxu1 %v625_v19 }
  0xf8   :  { %v1272_v25 = vsel %vm1270_vm5, %v1259_v2, %v3221_v4 }
  0xf9   :  { %402 = vrot.lane.b32.xlu0 %v3125_v41, %s2722_s24  ;;  %404 = vrot.lane.b32.xlu1 %v2684_v24, %s2722_s24  ;;  %v2742_v24 = vmov 0  }
  0xfa   :  { %2054 = vmatprep.subr.bf16.mxu0 %v1272_v25  ;;  %2663 = vset.pattern.permute.xlu0 %v2742_v24  ;;  %v2696_v25 = vld [vmem:[%s3697_s0 + $0x18] ss:$28 sps:$4 sm:$0xff]  }
  0xfb   :  { %v687_v26 = vpop.permute.xlu0 %686  ;;  %v3228_v28 = vpop.permute.xlu1 %688  ;;  %2664 = vset.pattern.permute.xlu1 %v2742_v24 }
  0xfc   :  { %v697_v30 = vsel %vm3705_vm8, %v3014_v52, %v687_v26  ;;  %v698_v31 = vsel %vm3705_vm8, %v687_v26, %v3228_v28  ;;  %vm1342_vm8 = vcmask 531456  }
  0xfd   :  { %1622 = vrot.lane.b32.xlu0 %v2781_v5, %s2739_s30  ;;  %1624 = vrot.lane.b32.xlu1 %v2892_v9, %s2739_s30 }
  0xfe   :  { %2113 = vmatprep.subr.bf16.mxu1 %v698_v31 }
  0xff   :  { %v1257_v3 = vpop.permute.xlu0 %1256  ;;  %v1331_v27 = vpop.permute.xlu1 %1330  ;;  %2114 = vmatpush1.bf16.msra.mxu1 %v697_v30 }
 0x100   :  { %v1271_v35 = vsel %vm1270_vm5, %v1257_v3, %v1259_v2  ;;  %v2697_v3 = vld [vmem:[%s3697_s0 + $0x18] ss:$28 sps:$4 sm:$0xff]  }
 0x101   :  { %474 = vrot.lane.b32.xlu0 %v3125_v41, %s2723_s25  ;;  %476 = vrot.lane.b32.xlu1 %v2688_v33, %s2723_s25 }
 0x102   :  { %2055 = vmatpush1.bf16.msra.mxu0 %v1271_v35 }
 0x103   :  { %v3245_v52 = vpop.permute.xlu0 %1332  ;;  %v759_v36 = vpop.permute.xlu1 %758 }
 0x104   :  { %v1344_v39 = vsel %vm1342_vm8, %v1331_v27, %v3245_v52  ;;  %v769_v40 = vsel %vm3709_vm9, %v3037_v61, %v759_v36 }
 0x105   :  { %1694 = vrot.lane.b32.xlu0 %v2781_v5, %s2740_s10  ;;  %1696 = vrot.lane.b32.xlu1 %v2892_v9, %s2740_s10 }
 0x106   :  { %2056 = vmatprep.subr.bf16.mxu0 %v1344_v39 }
 0x107   :  { %v3261_v32 = vpop.permute.xlu0 %760  ;;  %v1329_v45 = vpop.permute.xlu1 %1328 }
 0x108   :  { %v770_v5 = vsel %vm3709_vm9, %v759_v36, %v3261_v32  ;;  %v1343_v61 = vsel %vm1342_vm8, %v1329_v45, %v1331_v27  ;;  %vm1558_vm9 = vcmask 384000   ;;  %v2700_v45 = vld [vmem:[%s3697_s0 + $0x18] ss:$28 sps:$4 sm:$0xff]  }
 0x109   :  { %546 = vrot.lane.b32.xlu0 %v3125_v41, %s2724_s26  ;;  %548 = vrot.lane.b32.xlu1 %v2689_v43, %s2724_s26 }
 0x10a   :  { %2057 = vmatpush1.bf16.msra.mxu0 %v1343_v61  ;;  %2115 = vmatprep.subr.bf16.mxu1 %v770_v5 }
 0x10b   :  { %v1403_v8 = vpop.permute.xlu0 %1402  ;;  %v3273_v46 = vpop.permute.xlu1 %1404  ;;  %2116 = vmatpush1.bf16.msra.mxu1 %v769_v40 }
 0x10c   :  { %v1416_v48 = vsel %vm1414_vm4, %v1403_v8, %v3273_v46 }
 0x10d   :  { %1766 = vrot.lane.b32.xlu0 %v2690_v7, %s2741_s4  ;;  %1768 = vrot.lane.b32.xlu1 %v2892_v9, %s2741_s4  ;;  %v2692_v9 = vld [vmem:[%s3697_s0 + $0x18] ss:$28 sps:$4 sm:$0xff]  }
 0x10e   :  { %2058 = vmatprep.subr.bf16.mxu0 %v1416_v48 }
 0x10f   :  { %v831_v51 = vpop.permute.xlu0 %830  ;;  %v3283_v53 = vpop.permute.xlu1 %832 }
 0x110   :  { %v841_v37 = vsel %vm3708_vm10, %v3061_v15, %v831_v51  ;;  %v842_v56 = vsel %vm3708_vm10, %v831_v51, %v3283_v53  ;;  %vm1486_vm10 = vcmask 392192   ;;  %v2693_v15 = vld [vmem:[%s3697_s0 + $0x18] ss:$28 sps:$4 sm:$0xff]  }
 0x111   :  { %618 = vrot.lane.b32.xlu0 %v3125_v41, %s2725_s27  ;;  %620 = vrot.lane.b32.xlu1 %v2691_v50, %s2725_s27 }
 0x112   :  { %2117 = vmatprep.subr.bf16.mxu1 %v842_v56 }
 0x113   :  { %v1401_v57 = vpop.permute.xlu0 %1400  ;;  %v1475_v58 = vpop.permute.xlu1 %1474  ;;  %2118 = vmatpush1.bf16.msra.mxu1 %v841_v37  ;;  %v2703_v37 = vld [vmem:[%s3697_s0 + $0x18] ss:$28 sps:$4 sm:$0xff]  }
 0x114   :  { %v1415_v60 = vsel %vm1414_vm4, %v1401_v57, %v1403_v8 }
 0x115   :  { %690 = vrot.lane.b32.xlu0 %v3125_v41, %s2726_s5  ;;  %692 = vrot.lane.b32.xlu1 %v2692_v9, %s2726_s5 }
 0x116   :  { %2059 = vmatpush1.bf16.msra.mxu0 %v1415_v60 }
 0x117   :  { %v3302_v62 = vpop.permute.xlu0 %1476  ;;  %v903_v63 = vpop.permute.xlu1 %902 }
 0x118   :  { %v1488_v0 = vsel %vm1486_vm10, %v1475_v58, %v3302_v62  ;;  %v913_v10 = vsel %vm3711_vm11, %v3087_v22, %v903_v63  ;;  %v2695_v22 = vld [vmem:[%s3697_s0 + $0x18] ss:$28 sps:$4 sm:$0xff]  }
 0x119   :  { %762 = vrot.lane.b32.xlu0 %v3125_v41, %s2727_s6  ;;  %764 = vrot.lane.b32.xlu1 %v2693_v15, %s2727_s6 }
 0x11a   :  { %2060 = vmatprep.subr.bf16.mxu0 %v1488_v0 }
 0x11b   :  { %v3314_v14 = vpop.permute.xlu0 %904  ;;  %v1473_v17 = vpop.permute.xlu1 %1472 }
 0x11c   :  { %v914_v19 = vsel %vm3711_vm11, %v903_v63, %v3314_v14  ;;  %v1487_v21 = vsel %vm1486_vm10, %v1473_v17, %v1475_v58  ;;  %vm1702_vm11 = vcmask 367616  }
 0x11d   :  { %834 = vrot.lane.b32.xlu0 %v3125_v41, %s2728_s7  ;;  %836 = vrot.lane.b32.xlu1 %v2694_v42, %s2728_s7 }
 0x11e   :  { %2061 = vmatpush1.bf16.msra.mxu0 %v1487_v21  ;;  %2119 = vmatprep.subr.bf16.mxu1 %v914_v19  ;;  %v2706_v19 = vld [vmem:[%s3697_s0 + $0x18] ss:$28 sps:$4 sm:$0xff]  }
 0x11f   :  { %v1547_v23 = vpop.permute.xlu0 %1546  ;;  %v3325_v47 = vpop.permute.xlu1 %1548  ;;  %2120 = vmatpush1.bf16.msra.mxu1 %v913_v10 }
 0x120   :  { %v1560_v2 = vsel %vm1558_vm9, %v1547_v23, %v3325_v47 }
 0x121   :  { %906 = vrot.lane.b32.xlu0 %v3125_v41, %s2729_s8  ;;  %908 = vrot.lane.b32.xlu1 %v2695_v22, %s2729_s8 }
 0x122   :  { %2062 = vmatprep.subr.bf16.mxu0 %v1560_v2 }
 0x123   :  { %v975_v26 = vpop.permute.xlu0 %974  ;;  %v3337_v30 = vpop.permute.xlu1 %976 }
 0x124   :  { %v985_v31 = vsel %vm3710_vm12, %v3110_v34, %v975_v26  ;;  %v986_v33 = vsel %vm3710_vm12, %v975_v26, %v3337_v30  ;;  %vm1630_vm12 = vcmask 375808   ;;  %v2698_v34 = vld [vmem:[%s3697_s0 + $0x18] ss:$28 sps:$4 sm:$0xff]  }
 0x125   :  { %978 = vrot.lane.b32.xlu0 %v3125_v41, %s2730_s11  ;;  %980 = vrot.lane.b32.xlu1 %v2696_v25, %s2730_s11  ;;  %s3713_s11 = smov 68   ;;  %v3437_v25 = vld [vmem:[%s3698_s1 + $0x8] ss:$16 sps:$4 sm:$0xff]  }
 0x126   :  { %2121 = vmatprep.subr.bf16.mxu1 %v986_v33 }
 0x127   :  { %v1545_v27 = vpop.permute.xlu0 %1544  ;;  %v1619_v35 = vpop.permute.xlu1 %1618  ;;  %2122 = vmatpush1.bf16.msra.mxu1 %v985_v31 }
 0x128   :  { %v1559_v36 = vsel %vm1558_vm9, %v1545_v27, %v1547_v23  ;;  %v2708_v27 = vld [vmem:[%s3697_s0 + $0x18] ss:$28 sps:$4 sm:$0xff]  }
 0x129   :  { %1050 = vrot.lane.b32.xlu0 %v3125_v41, %s2731_s12  ;;  %1052 = vrot.lane.b32.xlu1 %v2697_v3, %s2731_s12 }
 0x12a   :  { %2063 = vmatpush1.bf16.msra.mxu0 %v1559_v36 }
 0x12b   :  { %v3356_v39 = vpop.permute.xlu0 %1620  ;;  %v1047_v40 = vpop.permute.xlu1 %1046 }
 0x12c   :  { %v1632_v43 = vsel %vm1630_vm12, %v1619_v35, %v3356_v39  ;;  %v1057_v44 = vsel %vm1054_vm13, %v3138_v6, %v1047_v40  ;;  %v2701_v6 = vld [vmem:[%s3697_s0 + $0x18] ss:$28 sps:$4 sm:$0xff]  }
 0x12d   :  { %1122 = vrot.lane.b32.xlu0 %v3125_v41, %s3713_s11  ;;  %1124 = vrot.lane.b32.xlu1 %v2698_v34, %s3713_s11  ;;  %v2714_v34 = vld [vmem:[#allocation2 + $0x20] sm:$0xff] }
 0x12e   :  { %2064 = vmatprep.subr.bf16.mxu0 %v1632_v43  ;;  %v3460_v43 = vld [vmem:[%s3698_s1 + $0x4] ss:$16 sps:$4 sm:$0xff]  }
 0x12f   :  { %v3368_v5 = vpop.permute.xlu0 %1048  ;;  %v1617_v61 = vpop.permute.xlu1 %1616 }
 0x130   :  { %v1058_v7 = vsel %vm1054_vm13, %v1047_v40, %v3368_v5  ;;  %v1631_v8 = vsel %vm1630_vm12, %v1617_v61, %v1619_v35 }
 0x131   :  { %1194 = vrot.lane.b32.xlu0 %v3125_v41, %s2733_s16  ;;  %1196 = vrot.lane.b32.xlu1 %v2700_v45, %s2733_s16 }
 0x132   :  { %2065 = vmatpush1.bf16.msra.mxu0 %v1631_v8  ;;  %2123 = vmatprep.subr.bf16.mxu1 %v1058_v7  ;;  %v1974_v8 = vld [vmem:[%s3699_s2] sm:$0xff] }
 0x133   :  { %v1691_v48 = vpop.permute.xlu0 %1690  ;;  %v3379_v50 = vpop.permute.xlu1 %1692  ;;  %2124 = vmatpush1.bf16.msra.mxu1 %v1057_v44 }
 0x134   :  { %v1704_v51 = vsel %vm1702_vm11, %v1691_v48, %v3379_v50 }
 0x135   :  { %1266 = vrot.lane.b32.xlu0 %v3125_v41, %s2734_s17  ;;  %1268 = vrot.lane.b32.xlu1 %v2701_v6, %s2734_s17  ;;  %v2704_v41 = vld [vmem:[%s3697_s0 + $0x18] ss:$28 sps:$4 sm:$0xff]  }
 0x136   :  { %2066 = vmatprep.subr.bf16.mxu0 %v1704_v51 }
 0x137   :  { %v1119_v56 = vpop.permute.xlu0 %1118  ;;  %v3389_v9 = vpop.permute.xlu1 %1120 }
 0x138   :  { %v1129_v57 = vsel %vm3712_vm14, %v3159_v54, %v1119_v56  ;;  %v1130_v58 = vsel %vm3712_vm14, %v1119_v56, %v3389_v9  ;;  %vm1774_vm14 = vcmask 359424   ;;  %v2705_v54 = vld [vmem:[%s3697_s0 + $0x18] ss:$28 sps:$4 sm:$0xff]  }
 0x139   :  { %1338 = vrot.lane.b32.xlu0 %v3055_v13, %s2735_s18  ;;  %1340 = vrot.lane.b32.xlu1 %v2703_v37, %s2735_s18 }
 0x13a   :  { %2125 = vmatprep.subr.bf16.mxu1 %v1130_v58 }
 0x13b   :  { %v1689_v60 = vpop.permute.xlu0 %1688  ;;  %v1763_v15 = vpop.permute.xlu1 %1762  ;;  %2126 = vmatpush1.bf16.msra.mxu1 %v1129_v57 }
 0x13c   :  { %v1703_v63 = vsel %vm1702_vm11, %v1689_v60, %v1691_v48 }
 0x13d   :  { %1410 = vrot.lane.b32.xlu0 %v3055_v13, %s2736_s19  ;;  %1412 = vrot.lane.b32.xlu1 %v2704_v41, %s2736_s19 }
 0x13e   :  { %2067 = vmatpush1.bf16.msra.mxu0 %v1703_v63  ;;  %2128 = vmatmul.mubr.bf16.vlgmr.msra.gmra.mrb[0].mxu1 %v3190_v11 }
 0x13f   :  { %v3409_v0 = vpop.permute.xlu0 %1764  ;;  %v1191_v10 = vpop.permute.xlu1 %1190  ;;  %2589 = vmatprep.mubr.msk.bf16.mxu1 %vm2005_vm6, %v3197_v16 }
 0x140   :  { %v1776_v42 = vsel %vm1774_vm14, %v1763_v15, %v3409_v0  ;;  %v1201_v17 = vsel %vm1198_vm15, %v3192_v12, %v1191_v10  ;;  %v2707_v12 = vld [vmem:[%s3697_s0 + $0x18] ss:$28 sps:$4 sm:$0xff]  }
 0x141   :  { %1482 = vrot.lane.b32.xlu0 %v3055_v13, %s2737_s28  ;;  %1484 = vrot.lane.b32.xlu1 %v2705_v54, %s2737_s28 }
 0x142   :  { %2068 = vmatprep.subr.bf16.mxu0 %v1776_v42 }
 0x143   :  { %v3423_v21 = vpop.permute.xlu0 %1192  ;;  %v1761_v22 = vpop.permute.xlu1 %1760 }
 0x144   :  { %v1202_v23 = vsel %vm1198_vm15, %v1191_v10, %v3423_v21  ;;  %v1775_v2 = vsel %vm1774_vm14, %v1761_v22, %v1763_v15 }
 0x145   :  { %1554 = vrot.lane.b32.xlu0 %v3055_v13, %s2738_s29  ;;  %1556 = vrot.lane.b32.xlu1 %v2706_v19, %s2738_s29 }
 0x146   :  { %2069 = vmatpush1.bf16.msra.mxu0 %v1775_v2  ;;  %2138 = vmatprep.subr.bf16.mxu1 %v1202_v23 }
 0x147   :  { %v1263_v26 = vpop.permute.xlu0 %1262  ;;  %v3439_v31 = vpop.permute.xlu1 %1264  ;;  %2139 = vmatpush1.bf16.msra.mxu1 %v1201_v17  ;;  %2181 = vmatprep.subr.bf16.mxu0 %v3055_v13 }
 0x148   :  { %v1273_v33 = vsel %vm1270_vm5, %v3221_v4, %v1263_v26  ;;  %v1274_v3 = vsel %vm1270_vm5, %v1263_v26, %v3439_v31 }
 0x149   :  { %1626 = vrot.lane.b32.xlu0 %v3055_v13, %s2739_s30  ;;  %1628 = vrot.lane.b32.xlu1 %v2707_v12, %s2739_s30 }
 0x14a   :  { %2085 = vmatmul.mubr.bf16.vlgmr.msra.gmra.mrb[0].mxu0 %v3437_v25  ;;  %2140 = vmatprep.subr.bf16.mxu1 %v1274_v3 }
 0x14b   :  { %v115_v35 = vpop.permute.xlu0 %114  ;;  %v117_v36 = vpop.permute.xlu1 %116  ;;  %2141 = vmatpush1.bf16.msra.mxu1 %v1273_v33  ;;  %2182 = vmatpush1.bf16.msra.mxu0 %v2714_v34 }
 0x14c   :  { %v123_v4 = vsel %vm118_vm0, %v3022_v55, %v115_v35  ;;  %v124_v40 = vsel %vm118_vm0, %v115_v35, %v117_v36  ;;  %138 = vst.msk [vmem:[#allocation2 + $0x68] sm:$0xff] %vm65_vm7, %v117_v36  ;;  %2213 = vmatprep.mubr.bf16.mxu0 %v3460_v43  ;;  %v2712_v55 = vld [vmem:[%s3697_s0 + $0x18] ss:$28 sps:$4 sm:$0xff]   ;;  %vm3714_vm0 = vcmask 883712  }
 0x14d   :  { %1698 = vrot.lane.b32.xlu0 %v3055_v13, %s2740_s10  ;;  %1700 = vrot.lane.b32.xlu1 %v2708_v27, %s2740_s10 }
 0x14e   :  { %2183 = vmatprep.subr.bf16.mxu0 %v124_v40 }
 0x14f   :  { %v1335_v44 = vpop.permute.xlu0 %1334  ;;  %v3469_v45 = vpop.permute.xlu1 %1336  ;;  %2184 = vmatpush1.bf16.msra.mxu0 %v123_v4 }
 0x150   :  { %v1345_v61 = vsel %vm1342_vm8, %v3245_v52, %v1335_v44  ;;  %v1346_v7 = vsel %vm1342_vm8, %v1335_v44, %v3469_v45  ;;  %v1975_v52 = vld [vmem:[%s3699_s2 + $0x8] sm:$0xff] }
 0x151   :  { %1770 = vrot.lane.b32.xlu0 %v3055_v13, %s2741_s4  ;;  %1772 = vrot.lane.b32.xlu1 %v2712_v55, %s2741_s4 }
 0x152   :  { %2142 = vmatprep.subr.bf16.mxu1 %v1346_v7 }
 0x153   :  { %v187_v6 = vpop.permute.xlu0 %186  ;;  %v189_v48 = vpop.permute.xlu1 %188  ;;  %2143 = vmatpush1.bf16.msra.mxu1 %v1345_v61 }
 0x154   :  { %v195_v51 = vsel %vm190_vm1, %v3047_v1, %v187_v6  ;;  %v196_v37 = vsel %vm190_vm1, %v187_v6, %v189_v48  ;;  %210 = vst.msk [vmem:[#allocation2 + $0xa0] sm:$0xff] %vm65_vm7, %v189_v48  ;;  %vm3715_vm1 = vmmov %vm3714_vm0 }
 0x155   :  { %2185 = vmatprep.subr.bf16.mxu0 %v196_v37  ;;  %1978 = vperm.xlu0 %2663, %v1974_v8  }
 0x156   :  { %2186 = vmatpush1.bf16.msra.mxu0 %v195_v51  ;;  %1983 = vperm.xlu1 %2664, %v1975_v52  }
 0x157   :  { %v1407_v13 = vpop.permute.xlu0 %1406  ;;  %v3488_v56 = vpop.permute.xlu1 %1408 }
 0x158   :  { %v1417_v57 = vsel %vm1414_vm4, %v3273_v46, %v1407_v13  ;;  %v1418_v58 = vsel %vm1414_vm4, %v1407_v13, %v3488_v56 }
 0x159   :  { %2144 = vmatprep.subr.bf16.mxu1 %v1418_v58 }
 0x15a   :  { %2145 = vmatpush1.bf16.msra.mxu1 %v1417_v57 }
 0x15b   :  { %v259_v1 = vpop.permute.xlu0 %258  ;;  %v261_v41 = vpop.permute.xlu1 %260 }
 0x15c   :  { %v267_v60 = vsel %vm262_vm2, %v3069_v18, %v259_v1  ;;  %v268_v15 = vsel %vm262_vm2, %v259_v1, %v261_v41  ;;  %282 = vst.msk [vmem:[#allocation2 + $0xd8] sm:$0xff] %vm65_vm7, %v261_v41  ;;  %vm3716_vm2 = vcmask 875520  }
 0x15d   :  { %2187 = vmatprep.subr.bf16.mxu0 %v268_v15 }
 0x15e   :  { %2188 = vmatpush1.bf16.msra.mxu0 %v267_v60 }
 0x15f   :  { %v1479_v63 = vpop.permute.xlu0 %1478  ;;  %v3498_v54 = vpop.permute.xlu1 %1480 }
 0x160   :  { %v1489_v46 = vsel %vm1486_vm10, %v3302_v62, %v1479_v63  ;;  %v1490_v10 = vsel %vm1486_vm10, %v1479_v63, %v3498_v54 }
 0x161   :  { %2146 = vmatprep.subr.bf16.mxu1 %v1490_v10 }
 0x162   :  { %2147 = vmatpush1.bf16.msra.mxu1 %v1489_v46 }
 0x163   :  { %v331_v42 = vpop.permute.xlu0 %330  ;;  %v333_v17 = vpop.permute.xlu1 %332 }
 0x164   :  { %v339_v18 = vsel %vm334_vm3, %v3099_v29, %v331_v42  ;;  %v340_v19 = vsel %vm334_vm3, %v331_v42, %v333_v17  ;;  %354 = vst.msk [vmem:[#allocation2 + $0x110] sm:$0xff] %vm65_vm7, %v333_v17  ;;  %vm3717_vm3 = vmmov %vm3716_vm2 }
 0x165   :  { %2189 = vmatprep.subr.bf16.mxu0 %v340_v19 }
 0x166   :  { %2190 = vmatpush1.bf16.msra.mxu0 %v339_v18 }
 0x167   :  { %v1551_v22 = vpop.permute.xlu0 %1550  ;;  %v3508_v23 = vpop.permute.xlu1 %1552 }
 0x168   :  { %v1561_v62 = vsel %vm1558_vm9, %v3325_v47, %v1551_v22  ;;  %v1562_v2 = vsel %vm1558_vm9, %v1551_v22, %v3508_v23 }
 0x169   :  { %2148 = vmatprep.subr.bf16.mxu1 %v1562_v2 }
 0x16a   :  { %2149 = vmatpush1.bf16.msra.mxu1 %v1561_v62 }
 0x16b   :  { %v403_v12 = vpop.permute.xlu0 %402  ;;  %v405_v26 = vpop.permute.xlu1 %404 }
 0x16c   :  { %v411_v29 = vsel %vm3714_vm0, %v3117_v38, %v403_v12  ;;  %v412_v33 = vsel %vm3715_vm1, %v403_v12, %v405_v26  ;;  %426 = vst.msk [vmem:[#allocation2 + $0x148] sm:$0xff] %vm65_vm7, %v405_v26  ;;  %vm3718_vm0 = vcmask 867328  }
 0x16d   :  { %2191 = vmatprep.subr.bf16.mxu0 %v412_v33  ;;  %vm3719_vm1 = vmmov %vm3718_vm0 }
 0x16e   :  { %2192 = vmatpush1.bf16.msra.mxu0 %v411_v29 }
 0x16f   :  { %v1623_v3 = vpop.permute.xlu0 %1622  ;;  %v3518_v27 = vpop.permute.xlu1 %1624 }
 0x170   :  { %v1633_v47 = vsel %vm1630_vm12, %v3356_v39, %v1623_v3  ;;  %v1634_v35 = vsel %vm1630_vm12, %v1623_v3, %v3518_v27 }
 0x171   :  { %2150 = vmatprep.subr.bf16.mxu1 %v1634_v35 }
 0x172   :  { %2151 = vmatpush1.bf16.msra.mxu1 %v1633_v47 }
 0x173   :  { %v475_v36 = vpop.permute.xlu0 %474  ;;  %v477_v34 = vpop.permute.xlu1 %476 }
 0x174   :  { %v483_v38 = vsel %vm3716_vm2, %v3151_v49, %v475_v36  ;;  %v484_v4 = vsel %vm3717_vm3, %v475_v36, %v477_v34  ;;  %498 = vst.msk [vmem:[#allocation2 + $0x180] sm:$0xff] %vm65_vm7, %v477_v34  ;;  %vm3720_vm2 = vcmask 859136  }
 0x175   :  { %2193 = vmatprep.subr.bf16.mxu0 %v484_v4  ;;  %vm3721_vm3 = vmmov %vm3720_vm2 }
 0x176   :  { %2194 = vmatpush1.bf16.msra.mxu0 %v483_v38 }
 0x177   :  { %v1695_v40 = vpop.permute.xlu0 %1694  ;;  %v3528_v55 = vpop.permute.xlu1 %1696 }
 0x178   :  { %v1705_v39 = vsel %vm1702_vm11, %v3379_v50, %v1695_v40  ;;  %v1706_v44 = vsel %vm1702_vm11, %v1695_v40, %v3528_v55 }
 0x179   :  { %2152 = vmatprep.subr.bf16.mxu1 %v1706_v44 }
 0x17a   :  { %2153 = vmatpush1.bf16.msra.mxu1 %v1705_v39 }
 0x17b   :  { %v547_v61 = vpop.permute.xlu0 %546  ;;  %v549_v7 = vpop.permute.xlu1 %548 }
 0x17c   :  { %v555_v49 = vsel %vm3718_vm0, %v3170_v59, %v547_v61  ;;  %v556_v8 = vsel %vm3719_vm1, %v547_v61, %v549_v7  ;;  %570 = vst.msk [vmem:[#allocation2 + $0x1b8] sm:$0xff] %vm65_vm7, %v549_v7  ;;  %vm3722_vm0 = vcmask 850944  }
 0x17d   :  { %2195 = vmatprep.subr.bf16.mxu0 %v556_v8  ;;  %vm3723_vm1 = vmmov %vm3722_vm0 }
 0x17e   :  { %2196 = vmatpush1.bf16.msra.mxu0 %v555_v49 }
 0x17f   :  { %v1767_v6 = vpop.permute.xlu0 %1766  ;;  %v3538_v48 = vpop.permute.xlu1 %1768 }
 0x180   :  { %v1777_v50 = vsel %vm1774_vm14, %v3409_v0, %v1767_v6  ;;  %v1778_v52 = vsel %vm1774_vm14, %v1767_v6, %v3538_v48 }
 0x181   :  { %2154 = vmatprep.subr.bf16.mxu1 %v1778_v52 }
 0x182   :  { %2155 = vmatpush1.bf16.msra.mxu1 %v1777_v50 }
 0x183   :  { %v619_v51 = vpop.permute.xlu0 %618  ;;  %v621_v37 = vpop.permute.xlu1 %620 }
 0x184   :  { %v627_v59 = vsel %vm3720_vm2, %v3207_v20, %v619_v51  ;;  %v628_v13 = vsel %vm3721_vm3, %v619_v51, %v621_v37  ;;  %642 = vst.msk [vmem:[#allocation2 + $0x1f0] sm:$0xff] %vm65_vm7, %v621_v37  ;;  %v1805_v20 = vld [vmem:[#allocation2 + $0x30] sm:$0xff]  ;;  %vm3724_vm2 = vcmask 719872  }
 0x185   :  { %2171 = vmatmul.mubr.bf16.vlgmr.msra.gmra.mrb[0].mxu1 %v3437_v25  ;;  %2197 = vmatprep.subr.bf16.mxu0 %v628_v13  ;;  %vm3725_vm3 = vmmov %vm3724_vm2  ;;  %v1854_v13 = vld [vmem:[#allocation2 + $0x1b8] sm:$0xff] }
 0x186   :  { %2198 = vmatpush1.bf16.msra.mxu0 %v627_v59  ;;  %2299 = vmatprep.mubr.bf16.mxu1 %v3460_v43 }
 0x187   :  { %v691_v0 = vpop.permute.xlu0 %690  ;;  %v693_v57 = vpop.permute.xlu1 %692 }
 0x188   :  { %v699_v58 = vsel %vm3722_vm0, %v3228_v28, %v691_v0  ;;  %v700_v1 = vsel %vm3723_vm1, %v691_v0, %v693_v57  ;;  %714 = vst.msk [vmem:[#allocation2 + $0x228] sm:$0xff] %vm65_vm7, %v693_v57  ;;  %vm3726_vm0 = vcmask 711680  }
 0x189   :  { %2199 = vmatprep.subr.bf16.mxu0 %v700_v1  ;;  %vm3727_vm1 = vmmov %vm3726_vm0  ;;  %v2717_v1 = vld [vmem:[%s3698_s1 + $0xc] ss:$16 sps:$4 sm:$0xff]  }
 0x18a   :  { %2200 = vmatpush1.bf16.msra.mxu0 %v699_v58 }
 0x18b   :  { %v763_v41 = vpop.permute.xlu0 %762  ;;  %v765_v60 = vpop.permute.xlu1 %764  ;;  %v1861_v15 = vld [vmem:[#allocation2 + $0x1f0] sm:$0xff] }
 0x18c   :  { %v771_v63 = vsel %vm3724_vm2, %v3261_v32, %v763_v41  ;;  %v772_v43 = vsel %vm3725_vm3, %v763_v41, %v765_v60  ;;  %786 = vst.msk [vmem:[#allocation2 + $0x260] sm:$0xff] %vm65_vm7, %v765_v60  ;;  %2592 = vmatprep.subr.bf16.mxu1 %v1861_v15  ;;  %v1812_v32 = vld [vmem:[#allocation2 + $0x68] sm:$0xff]  ;;  %vm3728_vm2 = vcmask 703488  }
 0x18d   :  { %2593 = vmatpush3.bf16.msra.mxu1 %v1805_v20  ;;  %2201 = vmatprep.subr.bf16.mxu0 %v772_v43  ;;  %vm3729_vm3 = vmmov %vm3728_vm2 }
 0x18e   :  { %2202 = vmatpush1.bf16.msra.mxu0 %v771_v63 }
 0x18f   :  { %v835_v28 = vpop.permute.xlu0 %834  ;;  %v837_v46 = vpop.permute.xlu1 %836  ;;  %v1868_v10 = vld [vmem:[#allocation2 + $0x228] sm:$0xff] }
 0x190   :  { %v843_v42 = vsel %vm3726_vm0, %v3283_v53, %v835_v28  ;;  %v844_v17 = vsel %vm3727_vm1, %v835_v28, %v837_v46  ;;  %858 = vst.msk [vmem:[#allocation2 + $0x298] sm:$0xff] %vm65_vm7, %v837_v46  ;;  %2594 = vmatprep.subr.bf16.mxu1 %v1868_v10  ;;  %v1819_v53 = vld [vmem:[#allocation2 + $0xa0] sm:$0xff]  ;;  %vm3730_vm0 = vcmask 695296  }
 0x191   :  { %2595 = vmatpush3.bf16.msra.mxu1 %v1812_v32  ;;  %2203 = vmatprep.subr.bf16.mxu0 %v844_v17  ;;  %vm3731_vm1 = vmmov %vm3730_vm0 }
 0x192   :  { %2204 = vmatpush1.bf16.msra.mxu0 %v843_v42 }
 0x193   :  { %v907_v18 = vpop.permute.xlu0 %906  ;;  %v909_v19 = vpop.permute.xlu1 %908  ;;  %v1875_v22 = vld [vmem:[#allocation2 + $0x260] sm:$0xff] }
 0x194   :  { %v915_v62 = vsel %vm3728_vm2, %v3314_v14, %v907_v18  ;;  %v916_v2 = vsel %vm3729_vm3, %v907_v18, %v909_v19  ;;  %930 = vst.msk [vmem:[#allocation2 + $0x2d0] sm:$0xff] %vm65_vm7, %v909_v19  ;;  %2596 = vmatprep.subr.bf16.mxu1 %v1875_v22  ;;  %v1826_v14 = vld [vmem:[#allocation2 + $0xd8] sm:$0xff]  ;;  %vm3732_vm2 = vcmask 556032  }
 0x195   :  { %2597 = vmatpush3.bf16.msra.mxu1 %v1819_v53  ;;  %2205 = vmatprep.subr.bf16.mxu0 %v916_v2  ;;  %vm3733_vm3 = vmmov %vm3732_vm2 }
 0x196   :  { %2206 = vmatpush1.bf16.msra.mxu0 %v915_v62 }
 0x197   :  { %v979_v12 = vpop.permute.xlu0 %978  ;;  %v981_v26 = vpop.permute.xlu1 %980  ;;  %v1882_v29 = vld [vmem:[#allocation2 + $0x298] sm:$0xff] }
 0x198   :  { %v987_v33 = vsel %vm3730_vm0, %v3337_v30, %v979_v12  ;;  %v988_v3 = vsel %vm3731_vm1, %v979_v12, %v981_v26  ;;  %1002 = vst.msk [vmem:[#allocation2 + $0x308] sm:$0xff] %vm65_vm7, %v981_v26  ;;  %2598 = vmatprep.subr.bf16.mxu1 %v1882_v29  ;;  %v1833_v30 = vld [vmem:[#allocation2 + $0x110] sm:$0xff] }
 0x199   :  { %2599 = vmatpush3.bf16.msra.mxu1 %v1826_v14  ;;  %2207 = vmatprep.subr.bf16.mxu0 %v988_v3 }
 0x19a   :  { %2208 = vmatpush1.bf16.msra.mxu0 %v987_v33 }
 0x19b   :  { %v1051_v47 = vpop.permute.xlu0 %1050  ;;  %v1053_v35 = vpop.permute.xlu1 %1052  ;;  %v1889_v36 = vld [vmem:[#allocation2 + $0x2d0] sm:$0xff] }
 0x19c   :  { %v1059_v34 = vsel %vm1054_vm13, %v3368_v5, %v1051_v47  ;;  %v1060_v38 = vsel %vm1054_vm13, %v1051_v47, %v1053_v35  ;;  %1074 = vst.msk [vmem:[#allocation2 + $0x340] sm:$0xff] %vm65_vm7, %v1053_v35  ;;  %2600 = vmatprep.subr.bf16.mxu1 %v1889_v36  ;;  %v1840_v5 = vld [vmem:[#allocation2 + $0x148] sm:$0xff] }
 0x19d   :  { %2601 = vmatpush3.bf16.msra.mxu1 %v1833_v30  ;;  %2209 = vmatprep.subr.bf16.mxu0 %v1060_v38 }
 0x19e   :  { %2210 = vmatpush1.bf16.msra.mxu0 %v1059_v34 }
 0x19f   :  { %v1123_v4 = vpop.permute.xlu0 %1122  ;;  %v1125_v40 = vpop.permute.xlu1 %1124  ;;  %v1896_v39 = vld [vmem:[#allocation2 + $0x308] sm:$0xff] }
 0x1a0   :  { %v1131_v44 = vsel %vm3732_vm2, %v3389_v9, %v1123_v4  ;;  %v1132_v61 = vsel %vm3733_vm3, %v1123_v4, %v1125_v40  ;;  %1146 = vst.msk [vmem:[#allocation2 + $0x378] sm:$0xff] %vm65_vm7, %v1125_v40  ;;  %2602 = vmatprep.subr.bf16.mxu1 %v1896_v39  ;;  %v1847_v9 = vld [vmem:[#allocation2 + $0x180] sm:$0xff] }
 0x1a1   :  { %2603 = vmatpush3.bf16.msra.mxu1 %v1840_v5  ;;  %2211 = vmatprep.subr.bf16.mxu0 %v1132_v61 }
 0x1a2   :  { %2212 = vmatpush1.bf16.msra.mxu0 %v1131_v44 }
 0x1a3   :  { %v1195_v7 = vpop.permute.xlu0 %1194  ;;  %v1197_v49 = vpop.permute.xlu1 %1196  ;;  %v1903_v8 = vld [vmem:[#allocation2 + $0x340] sm:$0xff] }
 0x1a4   :  { %v1203_v6 = vsel %vm1198_vm15, %v3423_v21, %v1195_v7  ;;  %v1204_v50 = vsel %vm1198_vm15, %v1195_v7, %v1197_v49  ;;  %1218 = vst.msk [vmem:[#allocation2 + $0x3b0] sm:$0xff] %vm65_vm7, %v1197_v49  ;;  %2604 = vmatprep.subr.bf16.mxu1 %v1903_v8 }
 0x1a5   :  { %2605 = vmatpush3.bf16.msra.mxu1 %v1847_v9  ;;  %2224 = vmatprep.subr.bf16.mxu0 %v1204_v50 }
 0x1a6   :  { %2214 = vmatmul.mubr.bf16.vlgmr.msra.gmra.mrb[4].mxu0 %v3190_v11 }
 0x1a7   :  { %v1267_v52 = vpop.permute.xlu0 %1266  ;;  %v1269_v51 = vpop.permute.xlu1 %1268  ;;  %v1910_v37 = vld [vmem:[#allocation2 + $0x378] sm:$0xff]  ;;  %2225 = vmatpush1.bf16.msra.mxu0 %v1203_v6  ;;  %2590 = vmatprep.mubr.msk.bf16.mxu0 %vm2005_vm6, %v3197_v16 }
 0x1a8   :  { %v1275_v21 = vsel %vm1270_vm5, %v3439_v31, %v1267_v52  ;;  %v1276_v59 = vsel %vm1270_vm5, %v1267_v52, %v1269_v51  ;;  %1290 = vst.msk [vmem:[#allocation2 + $0x3e8] sm:$0xff] %vm65_vm7, %v1269_v51  ;;  %2606 = vmatprep.subr.bf16.mxu1 %v1910_v37  ;;  %v2716_v31 = vld [vmem:[%s3698_s1] ss:$16 sps:$4 sm:$0xff]  }
 0x1a9   :  { %2607 = vmatpush3.bf16.msra.mxu1 %v1854_v13  ;;  %2226 = vmatprep.subr.bf16.mxu0 %v1276_v59 }
 0x1aa   :  { %2308 = vmatprep.subr.bf16.mxu1 %v2742_v24 }
 0x1ab   :  { %v1339_v11 = vpop.permute.xlu0 %1338  ;;  %v1341_v0 = vpop.permute.xlu1 %1340  ;;  %v1917_v57 = vld [vmem:[#allocation2 + $0x3b0] sm:$0xff]  ;;  %2227 = vmatpush1.bf16.msra.mxu0 %v1275_v21 }
 0x1ac   :  { %v1347_v16 = vsel %vm1342_vm8, %v3469_v45, %v1339_v11  ;;  %v1348_v58 = vsel %vm1342_vm8, %v1339_v11, %v1341_v0  ;;  %1362 = vst.msk [vmem:[#allocation2 + $0x420] sm:$0xff] %vm65_vm7, %v1341_v0  ;;  %2300 = vmatmul.mubr.bf16.vlgmr.msra.gmra.mrb[4].mxu1 %v2716_v31 }
 0x1ad   :  { %2309 = vmatpush1.bf16.msra.mxu1 %v1917_v57  ;;  %2228 = vmatprep.subr.bf16.mxu0 %v1348_v58 }
 0x1ae   :  { %2310 = vmatprep.subr.bf16.mxu1 %v2742_v24  ;;  %2591 = vmatprep.mubr.msk.bf16.mxu1 %vm2005_vm6, %v2717_v1 }
 0x1af   :  { %v1411_v45 = vpop.permute.xlu0 %1410  ;;  %v1413_v20 = vpop.permute.xlu1 %1412  ;;  %v1924_v41 = vld [vmem:[#allocation2 + $0x3e8] sm:$0xff]  ;;  %2229 = vmatpush1.bf16.msra.mxu0 %v1347_v16 }
 0x1b0   :  { %v1419_v60 = vsel %vm1414_vm4, %v3488_v56, %v1411_v45  ;;  %v1420_v15 = vsel %vm1414_vm4, %v1411_v45, %v1413_v20  ;;  %1434 = vst.msk [vmem:[#allocation2 + $0x458] sm:$0xff] %vm65_vm7, %v1413_v20 }
 0x1b1   :  { %2311 = vmatpush1.bf16.msra.mxu1 %v1924_v41  ;;  %2230 = vmatprep.subr.bf16.mxu0 %v1420_v15 }
 0x1b2   :  { %2312 = vmatprep.subr.bf16.mxu1 %v2742_v24 }
 0x1b3   :  { %v1483_v63 = vpop.permute.xlu0 %1482  ;;  %v1485_v43 = vpop.permute.xlu1 %1484  ;;  %v1931_v28 = vld [vmem:[#allocation2 + $0x420] sm:$0xff]  ;;  %2231 = vmatpush1.bf16.msra.mxu0 %v1419_v60 }
 0x1b4   :  { %v1491_v46 = vsel %vm1486_vm10, %v3498_v54, %v1483_v63  ;;  %v1492_v10 = vsel %vm1486_vm10, %v1483_v63, %v1485_v43  ;;  %1506 = vst.msk [vmem:[#allocation2 + $0x490] sm:$0xff] %vm65_vm7, %v1485_v43 }
 0x1b5   :  { %2313 = vmatpush1.bf16.msra.mxu1 %v1931_v28  ;;  %2232 = vmatprep.subr.bf16.mxu0 %v1492_v10 }
 0x1b6   :  { %2314 = vmatprep.subr.bf16.mxu1 %v2742_v24 }
 0x1b7   :  { %v1555_v56 = vpop.permute.xlu0 %1554  ;;  %v1557_v42 = vpop.permute.xlu1 %1556  ;;  %v1938_v17 = vld [vmem:[#allocation2 + $0x458] sm:$0xff]  ;;  %2233 = vmatpush1.bf16.msra.mxu0 %v1491_v46 }
 0x1b8   :  { %v1563_v32 = vsel %vm1558_vm9, %v3508_v23, %v1555_v56  ;;  %v1564_v18 = vsel %vm1558_vm9, %v1555_v56, %v1557_v42  ;;  %1578 = vst.msk [vmem:[#allocation2 + $0x4c8] sm:$0xff] %vm65_vm7, %v1557_v42 }
 0x1b9   :  { %2315 = vmatpush1.bf16.msra.mxu1 %v1938_v17  ;;  %2234 = vmatprep.subr.bf16.mxu0 %v1564_v18 }
 0x1ba   :  { %2316 = vmatprep.subr.bf16.mxu1 %v2742_v24 }
 0x1bb   :  { %v1627_v54 = vpop.permute.xlu0 %1626  ;;  %v1629_v19 = vpop.permute.xlu1 %1628  ;;  %v1945_v22 = vld [vmem:[#allocation2 + $0x490] sm:$0xff]  ;;  %2235 = vmatpush1.bf16.msra.mxu0 %v1563_v32 }
 0x1bc   :  { %v1635_v62 = vsel %vm1630_vm12, %v3518_v27, %v1627_v54  ;;  %v1636_v2 = vsel %vm1630_vm12, %v1627_v54, %v1629_v19  ;;  %1650 = vst.msk [vmem:[#allocation2 + $0x500] sm:$0xff] %vm65_vm7, %v1629_v19 }
 0x1bd   :  { %2317 = vmatpush1.bf16.msra.mxu1 %v1945_v22  ;;  %2236 = vmatprep.subr.bf16.mxu0 %v1636_v2 }
 0x1be   :  { %2318 = vmatprep.subr.bf16.mxu1 %v2742_v24 }
 0x1bf   :  { %v1699_v23 = vpop.permute.xlu0 %1698  ;;  %v1701_v53 = vpop.permute.xlu1 %1700  ;;  %v1952_v12 = vld [vmem:[#allocation2 + $0x4c8] sm:$0xff]  ;;  %2237 = vmatpush1.bf16.msra.mxu0 %v1635_v62 }
 0x1c0   :  { %v1707_v26 = vsel %vm1702_vm11, %v3528_v55, %v1699_v23  ;;  %v1708_v29 = vsel %vm1702_vm11, %v1699_v23, %v1701_v53  ;;  %1722 = vst.msk [vmem:[#allocation2 + $0x538] sm:$0xff] %vm65_vm7, %v1701_v53 }
 0x1c1   :  { %2319 = vmatpush1.bf16.msra.mxu1 %v1952_v12  ;;  %2238 = vmatprep.subr.bf16.mxu0 %v1708_v29 }
 0x1c2   :  { %2320 = vmatprep.subr.bf16.mxu1 %v2742_v24 }
 0x1c3   :  { %v1771_v27 = vpop.permute.xlu0 %1770  ;;  %v1773_v33 = vpop.permute.xlu1 %1772  ;;  %v1959_v3 = vld [vmem:[#allocation2 + $0x500] sm:$0xff]  ;;  %2239 = vmatpush1.bf16.msra.mxu0 %v1707_v26 }
 0x1c4   :  { %v1779_v14 = vsel %vm1774_vm14, %v3538_v48, %v1771_v27  ;;  %v1780_v47 = vsel %vm1774_vm14, %v1771_v27, %v1773_v33  ;;  %1794 = vst.msk [vmem:[#allocation2 + $0x570] sm:$0xff] %vm65_vm7, %v1773_v33 }
 0x1c5   :  { %2321 = vmatpush1.bf16.msra.mxu1 %v1959_v3  ;;  %2240 = vmatprep.subr.bf16.mxu0 %v1780_v47 }
 0x1c6   :  { %2322 = vmatprep.subr.bf16.mxu1 %v2742_v24 }
 0x1c7   :  { %v1966_v55 = vld [vmem:[#allocation2 + $0x538] sm:$0xff]  ;;  %2241 = vmatpush1.bf16.msra.mxu0 %v1779_v14 }
 0x1c9   :  { %2323 = vmatpush1.bf16.msra.mxu1 %v1966_v55 }
 0x1ca   :  { %2324 = vmatprep.subr.bf16.mxu1 %v2742_v24  ;;  %2257 = vmatmul.mubr.bf16.vlgmr.msra.gmra.mrb[4].mxu0 %v3437_v25 }
 0x1cb   :  { %v1973_v35 = vld [vmem:[#allocation2 + $0x570] sm:$0xff] }
 0x1cd   :  { %2325 = vmatpush1.bf16.msra.mxu1 %v1973_v35 }
 0x1d0   :  { %2341 = vmatmul.mubr.bf16.vlgmr.msra.gmra.mrb[8].mxu1 %v3437_v25 }
 0x1d4   :  { %v3635_v48 = vpop.permute.xlu0 %1978 }
 0x1d5   :  { %v3637_v34 = vpop.permute.xlu1 %1983 }
 0x21d   :  { %v2086_v36 = vpop.f32.mrb[0].mxu0 }
 0x21e   :  { %v2614_v38 = vadd.f32 %v2086_v36, %v3635_v48  ;;  %v2088_v30 = vpop.f32.mrb[1].mxu0 }
 0x21f   :  { %v2615_v4 = vadd.f32 %v2088_v30, %v3635_v48  ;;  %v2090_v40 = vpop.f32.mrb[2].mxu0 }
 0x220   :  { %vm2349_vm4 = vcmp.ge.f32.partialorder %v2614_v38, 0.0  ;;  %v2363_v39 = vmul.f32 0.1, %v2614_v38  ;;  %v2616_v24 = vadd.f32 %v2090_v40, %v3637_v34  ;;  %v2092_v44 = vpop.f32.mrb[3].mxu0 }
 0x221   :  { %vm2350_vm5 = vcmp.ge.f32.partialorder %v2615_v4, 0.0  ;;  %v2364_v61 = vmul.f32 0.1, %v2615_v4  ;;  %v2617_v25 = vadd.f32 %v2092_v44, %v3637_v34 }
 0x222   :  { %v2377_v5 = vsel %vm2349_vm4, %v2614_v38, %v2363_v39  ;;  %vm2356_vm6 = vcmp.ge.f32.partialorder %v2616_v24, 0.0  ;;  %v2370_v7 = vmul.f32 0.1, %v2616_v24 }
 0x223   :  { %2391 = vst [vmem:[%s3700_s3] sm:$0xff] %v2377_v5  ;;  %v2378_v49 = vsel %vm2350_vm5, %v2615_v4, %v2364_v61  ;;  %vm2357_vm8 = vcmp.ge.f32.partialorder %v2617_v25, 0.0  ;;  %v2371_v8 = vmul.f32 0.1, %v2617_v25 }
 0x224   :  { %2392 = vst [vmem:[%s3700_s3 + $0x8] sm:$0xff] %v2378_v49  ;;  %v2384_v6 = vsel %vm2356_vm6, %v2616_v24, %v2370_v7 }
 0x225   :  { %2398 = vst [vmem:[%s3700_s3 + $0x38] sm:$0xff] %v2384_v6  ;;  %v2385_v50 = vsel %vm2357_vm8, %v2617_v25, %v2371_v8 }
 0x226   :  { %2399 = vst [vmem:[%s3700_s3 + $0x40] sm:$0xff] %v2385_v50 }
 0x258   :  { %v2172_v9 = vpop.f32.mrb[0].mxu1 }
 0x259   :  { %v2618_v52 = vadd.f32 %v2172_v9, %v3635_v48  ;;  %v2174_v51 = vpop.f32.mrb[1].mxu1 }
 0x25a   :  { %v2619_v37 = vadd.f32 %v2174_v51, %v3635_v48  ;;  %v2176_v21 = vpop.f32.mrb[2].mxu1 }
 0x25b   :  { %vm2351_vm9 = vcmp.ge.f32.partialorder %v2618_v52, 0.0  ;;  %v2365_v59 = vmul.f32 0.1, %v2618_v52  ;;  %v2620_v13 = vadd.f32 %v2176_v21, %v3637_v34  ;;  %v2178_v11 = vpop.f32.mrb[3].mxu1 }
 0x25c   :  { %vm2352_vm10 = vcmp.ge.f32.partialorder %v2619_v37, 0.0  ;;  %v2366_v0 = vmul.f32 0.1, %v2619_v37  ;;  %v2621_v57 = vadd.f32 %v2178_v11, %v3637_v34 }
 0x25d   :  { %v2379_v16 = vsel %vm2351_vm9, %v2618_v52, %v2365_v59  ;;  %vm2358_vm11 = vcmp.ge.f32.partialorder %v2620_v13, 0.0  ;;  %v2372_v58 = vmul.f32 0.1, %v2620_v13 }
 0x25e   :  { %2393 = vst [vmem:[%s3700_s3 + $0x10] sm:$0xff] %v2379_v16  ;;  %v2380_v31 = vsel %vm2352_vm10, %v2619_v37, %v2366_v0  ;;  %vm2359_vm12 = vcmp.ge.f32.partialorder %v2621_v57, 0.0  ;;  %v2373_v1 = vmul.f32 0.1, %v2621_v57 }
 0x25f   :  { %2394 = vst [vmem:[%s3700_s3 + $0x18] sm:$0xff] %v2380_v31  ;;  %v2386_v45 = vsel %vm2358_vm11, %v2620_v13, %v2372_v58 }
 0x260   :  { %2400 = vst [vmem:[%s3700_s3 + $0x48] sm:$0xff] %v2386_v45  ;;  %v2387_v20 = vsel %vm2359_vm12, %v2621_v57, %v2373_v1 }
 0x261   :  { %2401 = vst [vmem:[%s3700_s3 + $0x50] sm:$0xff] %v2387_v20 }
 0x27f   :  { %v2608_v41 = vpop.f32.mrb[4].mxu1 }
 0x280   :  { %v2609_v60 = vpop.f32.mrb[5].mxu1 }
 0x281   :  { %v2610_v15 = vadd.f32 %v2609_v60, %v2608_v41  ;;  %v2611_v63 = vpop.f32.mrb[6].mxu1 }
 0x282   :  { %v2612_v43 = vpop.f32.mrb[7].mxu1 }
 0x283   :  { %v2613_v28 = vadd.f32 %v2612_v43, %v2611_v63  ;;  %v2302_v2 = vadd.f32 %v2610_v15, %v3635_v48 }
 0x285   :  { %v2305_v3 = vadd.f32 %v2613_v28, %v3637_v34 }
 0x29d   :  { %v2258_v46 = vpop.f32.mrb[4].mxu0 }
 0x29e   :  { %v2622_v10 = vadd.f32 %v2258_v46, %v3635_v48  ;;  %v2260_v56 = vpop.f32.mrb[5].mxu0 }
 0x29f   :  { %v2623_v42 = vadd.f32 %v2260_v56, %v3635_v48  ;;  %v2262_v17 = vpop.f32.mrb[6].mxu0 }
 0x2a0   :  { %vm2353_vm13 = vcmp.ge.f32.partialorder %v2622_v10, 0.0  ;;  %v2367_v32 = vmul.f32 0.1, %v2622_v10  ;;  %v2624_v18 = vadd.f32 %v2262_v17, %v3637_v34  ;;  %v2264_v54 = vpop.f32.mrb[7].mxu0 }
 0x2a1   :  { %vm2354_vm14 = vcmp.ge.f32.partialorder %v2623_v42, 0.0  ;;  %v2368_v19 = vmul.f32 0.1, %v2623_v42  ;;  %v2625_v22 = vadd.f32 %v2264_v54, %v3637_v34 }
 0x2a2   :  { %v2381_v62 = vsel %vm2353_vm13, %v2622_v10, %v2367_v32  ;;  %vm2360_vm15 = vcmp.ge.f32.partialorder %v2624_v18, 0.0  ;;  %v2374_v23 = vmul.f32 0.1, %v2624_v18 }
 0x2a3   :  { %2395 = vst [vmem:[%s3700_s3 + $0x20] sm:$0xff] %v2381_v62  ;;  %v2342_v53 = vpop.f32.mrb[8].mxu1  ;;  %v2382_v12 = vsel %vm2354_vm14, %v2623_v42, %v2368_v19  ;;  %vm2361_vm0 = vcmp.ge.f32.partialorder %v2625_v22, 0.0  ;;  %v2375_v26 = vmul.f32 0.1, %v2625_v22 }
 0x2a4   :  { %v2343_v29 = vadd.f32 %v2342_v53, %v2302_v2  ;;  %2396 = vst [vmem:[%s3700_s3 + $0x28] sm:$0xff] %v2382_v12  ;;  %v2344_v27 = vpop.f32.mrb[9].mxu1  ;;  %v2388_v33 = vsel %vm2360_vm15, %v2624_v18, %v2374_v23 }
 0x2a5   :  { %2402 = vst [vmem:[%s3700_s3 + $0x58] sm:$0xff] %v2388_v33  ;;  %v2345_v14 = vpop.f32.mrb[10].mxu1  ;;  %v2389_v47 = vsel %vm2361_vm0, %v2625_v22, %v2375_v26 }
 0x2a6   :  { %vm2355_vm1 = vcmp.ge.f32.partialorder %v2343_v29, 0.0  ;;  %v2369_v55 = vmul.f32 0.1, %v2343_v29  ;;  %v2346_v35 = vadd.f32 %v2345_v14, %v2305_v3  ;;  %2403 = vst [vmem:[%s3700_s3 + $0x60] sm:$0xff] %v2389_v47  ;;  %v2347_v48 = vpop.f32.mrb[11].mxu1 }
 0x2a8   :  { %v2383_v36 = vsel %vm2355_vm1, %v2343_v29, %v2369_v55  ;;  %vm2362_vm2 = vcmp.ge.f32.partialorder %v2346_v35, 0.0  ;;  %v2376_v38 = vmul.f32 0.1, %v2346_v35 }
 0x2a9   :  { %2397 = vst.msk [vmem:[%s3700_s3 + $0x30] sm:$0xff] %vm65_vm7, %v2383_v36 }
 0x2aa   :  { %v2390_v34 = vsel %vm2362_vm2, %v2346_v35, %v2376_v38 }
 0x2ab   :  { %2404 = vst.msk [vmem:[%s3700_s3 + $0x68] sm:$0xff] %vm65_vm7, %v2390_v34 }

// kernel: net_forward.7
= control target key start
LH: loop header
LB: loop body
LE: loop exit
PB: predicated region body
PF: predicated region fallthrough
CT: control target
= control target key end

     0   :  { %s2040_s25 = smov 127   ;;  %s2041_s30 = smov 126   ;;  %vm46_vm0 = vcmask 687104   ;;  %v2055_v19 = vmov 0   ;;  %vm71_vm1 = vcmask 1039360   ;;  %vm103_vm2 = vcmask 1031168   ;;  %s2802_s0 = inlined_call_operand.vmem [shape: bf16[16,392], index: 0, kind: input, shape index: {}]   ;;  %s2803_s1 = inlined_call_operand.vmem [shape: bf16[16,400], index: 1, kind: input, shape index: {}]   ;;  %s2804_s2 = inlined_call_operand.vmem [shape: f32[16,1], index: 2, kind: input, shape index: {}]   ;;  %s2805_s3 = inlined_call_operand.vmem [shape: f32[1,340], index: 3, kind: input, shape index: {}]   ;;  %s2806_s4 = inlined_call_operand.vmem [shape: bf16[16,400], index: 4, kind: input, shape index: {}]   ;;  %s2807_s5 = inlined_call_operand.vmem [shape: f32[16,1], index: 5, kind: input, shape index: {}]   ;;  %s2808_s6 = inlined_call_operand.vmem [shape: f32[16,288], index: 6, kind: output, shape index: {}]  }
   0x1   :  { %v2103_v0 = vld [vmem:[%s2802_s0 + $0x4] ss:$16 sps:$4 sm:$0xff]   ;;  %v2108_v1 = vld [vmem:[%s2802_s0] ss:$16 sps:$4 sm:$0xff]   ;;  %v2006_v2 = vld [vmem:[%s2802_s0 + $0x8] ss:$16 sps:$4 sm:$0xff]   ;;  %2002 = vset.pattern.permute.xlu0 %v2055_v19  ;;  %2001 = vset.pattern.permute.xlu1 %v2055_v19 }
   0x2   :  { %67 = vrot.lane.b32.xlu0 %v2103_v0, %s2040_s25  ;;  %960 = vmatprep.subr.bf16.mxu0 %v2103_v0  ;;  %v2007_v3 = vld [vmem:[%s2802_s0 + $0x8] ss:$16 sps:$4 sm:$0xff]   ;;  %s2042_s9 = smov 125   ;;  %s2043_s12 = smov 124   ;;  %v2030_v18 = vld [vmem:[%s2803_s1 + $0x4] ss:$16 sps:$4 sm:$0xff]  }
   0x3   :  { %65 = vrot.lane.b32.xlu1 %v2108_v1, %s2040_s25  ;;  %961 = vmatpush1.bf16.msra.mxu0 %v2108_v1  ;;  %v2008_v4 = vld [vmem:[%s2802_s0 + $0x8] ss:$16 sps:$4 sm:$0xff]   ;;  %s2044_s15 = smov 116   ;;  %s2045_s18 = smov 115   ;;  %vm135_vm3 = vcmask 1022976   ;;  %vm167_vm4 = vcmask 1014784  }
   0x4   :  { %v2009_v5 = vld [vmem:[%s2802_s0 + $0x8] ss:$16 sps:$4 sm:$0xff]   ;;  %s2046_s23 = smov 114   ;;  %s2047_s27 = smov 113   ;;  %1078 = vmatprep.mubr.bf16.mxu1 %v2030_v18  ;;  %992 = vmatprep.mubr.bf16.mxu0 %v2030_v18  ;;  %vm199_vm5 = vcmask 949248   ;;  %vm231_vm6 = vcmask 941056  }
   0x5   :  { %v2010_v6 = vld [vmem:[%s2802_s0 + $0x8] ss:$16 sps:$4 sm:$0xff]   ;;  %s2048_s7 = smov 112   ;;  %s2049_s11 = smov 104   ;;  %vm263_vm7 = vcmask 932864   ;;  %v925_v61 = vld [vmem:[%s2804_s2] sm:$0xff] }
   0x6   :  { %69 = vrot.lane.b32.xlu0 %v2006_v2, %s2040_s25  ;;  %v2011_v7 = vld [vmem:[%s2802_s0 + $0x8] ss:$16 sps:$4 sm:$0xff]   ;;  %s2050_s16 = smov 103   ;;  %s2051_s20 = smov 102   ;;  %vm295_vm8 = vcmask 924672   ;;  %vm327_vm9 = vcmask 916480  }
   0x7   :  { %99 = vrot.lane.b32.xlu1 %v2103_v0, %s2041_s30  ;;  %v2027_v8 = vld [vmem:[%s2802_s0 + $0x8] ss:$16 sps:$4 sm:$0xff]   ;;  %s2052_s24 = smov 101   ;;  %s2053_s29 = smov 100   ;;  %vm359_vm10 = vcmask 850944   ;;  %vm391_vm11 = vcmask 842752  }
   0x8   :  { %v2012_v9 = vld [vmem:[%s2802_s0 + $0x8] ss:$16 sps:$4 sm:$0xff]   ;;  %47 = vst.msk [vmem:[#allocation2 + $0x10] sm:$0xff] %vm46_vm0, %v2027_v8  ;;  %s2054_s17 = smov 92   ;;  %s2056_s22 = smov 91   ;;  %vm2819_vm12 = vcmask 834560  }
   0x9   :  { %v2013_v10 = vld [vmem:[%s2802_s0 + $0x8] ss:$16 sps:$4 sm:$0xff]   ;;  %s2811_s8 = smov 90   ;;  %s2809_s14 = smov 89   ;;  %vm2817_vm13 = vcmask 826368   ;;  %vm2815_vm14 = vcmask 818176  }
   0xa   :  { %101 = vrot.lane.b32.xlu0 %v2007_v3, %s2041_s30  ;;  %v2014_v11 = vld [vmem:[%s2802_s0 + $0x8] ss:$16 sps:$4 sm:$0xff]   ;;  %s2059_s26 = smov 88   ;;  %s2060_s13 = smov 80   ;;  %vm2816_vm15 = vcmask 752640  }
   0xb   :  { %97 = vrot.lane.b32.xlu1 %v2108_v1, %s2041_s30  ;;  %v2015_v12 = vld [vmem:[%s2802_s0 + $0x8] ss:$16 sps:$4 sm:$0xff]   ;;  %s2064_s28 = smov 76  }
   0xc   :  { %v2016_v13 = vld [vmem:[%s2802_s0 + $0x8] ss:$16 sps:$4 sm:$0xff]  }
   0xd   :  { %v2017_v14 = vld [vmem:[%s2802_s0 + $0x8] ss:$16 sps:$4 sm:$0xff]  }
   0xe   :  { %131 = vrot.lane.b32.xlu0 %v2103_v0, %s2042_s9  ;;  %v2018_v15 = vld [vmem:[%s2802_s0 + $0x8] ss:$16 sps:$4 sm:$0xff]  }
   0xf   :  { %133 = vrot.lane.b32.xlu1 %v2008_v4, %s2042_s9  ;;  %v2019_v16 = vld [vmem:[%s2802_s0 + $0x8] ss:$16 sps:$4 sm:$0xff]  }
  0x10   :  { %v2020_v17 = vld [vmem:[%s2802_s0 + $0x8] ss:$16 sps:$4 sm:$0xff]  }
  0x11   :  { %v2021_v20 = vld [vmem:[%s2802_s0 + $0x8] ss:$16 sps:$4 sm:$0xff]  }
  0x12   :  { %129 = vrot.lane.b32.xlu0 %v2108_v1, %s2042_s9  ;;  %v2022_v21 = vld [vmem:[%s2802_s0 + $0x8] ss:$16 sps:$4 sm:$0xff]  }
  0x13   :  { %163 = vrot.lane.b32.xlu1 %v2103_v0, %s2043_s12  ;;  %v2023_v22 = vld [vmem:[%s2802_s0 + $0x8] ss:$16 sps:$4 sm:$0xff]  }
  0x14   :  { %v2024_v23 = vld [vmem:[%s2802_s0 + $0x8] ss:$16 sps:$4 sm:$0xff]  }
  0x15   :  { %v2276_v24 = vld [vmem:[%s2802_s0 + $0x8] ss:$16 sps:$4 sm:$0xff]  }
  0x16   :  { %165 = vrot.lane.b32.xlu0 %v2009_v5, %s2043_s12  ;;  %v657_v25 = vld [vmem:[%s2802_s0 + $0x8] sm:$0xff]  ;;  %v659_v26 = vld [vmem:[%s2802_s0 + $0x18] sm:$0xff]  ;;  %s2061_s0 = smov 79  }
  0x17   :  { %161 = vrot.lane.b32.xlu1 %v2108_v1, %s2043_s12  ;;  %v2289_v30 = vcombine.high %v657_v25, %v659_v26  ;;  %v926_v62 = vld [vmem:[%s2804_s2 + $0x8] sm:$0xff] }
  0x1a   :  { %195 = vrot.lane.b32.xlu0 %v2103_v0, %s2044_s15 }
  0x1b   :  { %197 = vrot.lane.b32.xlu1 %v2010_v6, %s2044_s15 }
  0x1e   :  { %193 = vrot.lane.b32.xlu0 %v2108_v1, %s2044_s15 }
  0x1f   :  { %227 = vrot.lane.b32.xlu1 %v2103_v0, %s2045_s18 }
  0x22   :  { %229 = vrot.lane.b32.xlu0 %v2011_v7, %s2045_s18 }
  0x23   :  { %225 = vrot.lane.b32.xlu1 %v2108_v1, %s2045_s18 }
  0x26   :  { %259 = vrot.lane.b32.xlu0 %v2103_v0, %s2046_s23 }
  0x27   :  { %261 = vrot.lane.b32.xlu1 %v2012_v9, %s2046_s23  ;;  %v852_v9 = vld [vmem:[#allocation2 + $0x10] sm:$0xff] }
  0x2a   :  { %257 = vrot.lane.b32.xlu0 %v2108_v1, %s2046_s23 }
  0x2b   :  { %291 = vrot.lane.b32.xlu1 %v2103_v0, %s2047_s27 }
  0x2e   :  { %293 = vrot.lane.b32.xlu0 %v2013_v10, %s2047_s27 }
  0x2f   :  { %289 = vrot.lane.b32.xlu1 %v2108_v1, %s2047_s27 }
  0x32   :  { %323 = vrot.lane.b32.xlu0 %v2103_v0, %s2048_s7 }
  0x33   :  { %325 = vrot.lane.b32.xlu1 %v2014_v11, %s2048_s7 }
  0x36   :  { %321 = vrot.lane.b32.xlu0 %v2108_v1, %s2048_s7 }
  0x37   :  { %355 = vrot.lane.b32.xlu1 %v2103_v0, %s2049_s11 }
  0x3a   :  { %357 = vrot.lane.b32.xlu0 %v2015_v12, %s2049_s11 }
  0x3b   :  { %353 = vrot.lane.b32.xlu1 %v2108_v1, %s2049_s11 }
  0x3e   :  { %387 = vrot.lane.b32.xlu0 %v2103_v0, %s2050_s16 }
  0x3f   :  { %389 = vrot.lane.b32.xlu1 %v2016_v13, %s2050_s16 }
  0x42   :  { %385 = vrot.lane.b32.xlu0 %v2108_v1, %s2050_s16 }
  0x43   :  { %419 = vrot.lane.b32.xlu1 %v2103_v0, %s2051_s20 }
  0x46   :  { %421 = vrot.lane.b32.xlu0 %v2017_v14, %s2051_s20 }
  0x47   :  { %417 = vrot.lane.b32.xlu1 %v2108_v1, %s2051_s20 }
  0x4a   :  { %451 = vrot.lane.b32.xlu0 %v2103_v0, %s2052_s24 }
  0x4b   :  { %453 = vrot.lane.b32.xlu1 %v2018_v15, %s2052_s24 }
  0x4e   :  { %449 = vrot.lane.b32.xlu0 %v2108_v1, %s2052_s24 }
  0x4f   :  { %483 = vrot.lane.b32.xlu1 %v2103_v0, %s2053_s29 }
  0x52   :  { %485 = vrot.lane.b32.xlu0 %v2019_v16, %s2053_s29 }
  0x53   :  { %481 = vrot.lane.b32.xlu1 %v2108_v1, %s2053_s29 }
  0x56   :  { %515 = vrot.lane.b32.xlu0 %v2103_v0, %s2054_s17 }
  0x57   :  { %517 = vrot.lane.b32.xlu1 %v2020_v17, %s2054_s17 }
  0x5a   :  { %513 = vrot.lane.b32.xlu0 %v2108_v1, %s2054_s17 }
  0x5b   :  { %547 = vrot.lane.b32.xlu1 %v2103_v0, %s2056_s22 }
  0x5e   :  { %549 = vrot.lane.b32.xlu0 %v2021_v20, %s2056_s22 }
  0x5f   :  { %545 = vrot.lane.b32.xlu1 %v2108_v1, %s2056_s22 }
  0x62   :  { %579 = vrot.lane.b32.xlu0 %v2103_v0, %s2811_s8 }
  0x63   :  { %581 = vrot.lane.b32.xlu1 %v2022_v21, %s2811_s8 }
  0x66   :  { %577 = vrot.lane.b32.xlu0 %v2108_v1, %s2811_s8  ;;  %s2062_s8 = smov 78  }
  0x67   :  { %611 = vrot.lane.b32.xlu1 %v2103_v0, %s2809_s14 }
  0x6a   :  { %613 = vrot.lane.b32.xlu0 %v2023_v22, %s2809_s14 }
  0x6b   :  { %609 = vrot.lane.b32.xlu1 %v2108_v1, %s2809_s14  ;;  %s2813_s14 = smov 77  }
  0x6e   :  { %643 = vrot.lane.b32.xlu0 %v2103_v0, %s2059_s26 }
  0x6f   :  { %645 = vrot.lane.b32.xlu1 %v2024_v23, %s2059_s26 }
  0x72   :  { %641 = vrot.lane.b32.xlu0 %v2108_v1, %s2059_s26 }
  0x73   :  { %678 = vrot.lane.b32.xlu1 %v2103_v0, %s2060_s13 }
  0x74   :  { %v68_v27 = vpop.permute.xlu0 %67 }
  0x75   :  { %v66_v28 = vpop.permute.xlu1 %65 }
  0x76   :  { %v72_v29 = vsel %vm71_vm1, %v66_v28, %v68_v27  ;;  %680 = vrot.lane.b32.xlu0 %v2276_v24, %s2060_s13 }
  0x77   :  { %676 = vrot.lane.b32.xlu1 %v2108_v1, %s2060_s13 }
  0x78   :  { %v70_v31 = vpop.permute.xlu0 %69 }
  0x79   :  { %v73_v32 = vsel %vm71_vm1, %v68_v27, %v70_v31  ;;  %79 = vst.msk [vmem:[#allocation2 + $0x28] sm:$0xff] %vm46_vm0, %v70_v31  ;;  %v100_v33 = vpop.permute.xlu1 %99 }
  0x7a   :  { %682 = vrot.lane.b32.xlu0 %v2289_v30, %s2060_s13  ;;  %962 = vmatprep.subr.bf16.mxu0 %v73_v32 }
  0x7b   :  { %716 = vrot.lane.b32.xlu1 %v2103_v0, %s2061_s0  ;;  %963 = vmatpush1.bf16.msra.mxu0 %v72_v29 }
  0x7c   :  { %v102_v34 = vpop.permute.xlu0 %101 }
  0x7d   :  { %v105_v35 = vsel %vm103_vm2, %v100_v33, %v102_v34  ;;  %111 = vst.msk [vmem:[#allocation2 + $0x40] sm:$0xff] %vm46_vm0, %v102_v34  ;;  %v98_v36 = vpop.permute.xlu1 %97 }
  0x7e   :  { %v104_v37 = vsel %vm103_vm2, %v98_v36, %v100_v33  ;;  %718 = vrot.lane.b32.xlu0 %v2276_v24, %s2061_s0  ;;  %964 = vmatprep.subr.bf16.mxu0 %v105_v35 }
  0x7f   :  { %714 = vrot.lane.b32.xlu1 %v2108_v1, %s2061_s0  ;;  %965 = vmatpush1.bf16.msra.mxu0 %v104_v37 }
  0x80   :  { %v132_v38 = vpop.permute.xlu0 %131  ;;  %v855_v20 = vld [vmem:[#allocation2 + $0x28] sm:$0xff] }
  0x81   :  { %v134_v39 = vpop.permute.xlu1 %133 }
  0x82   :  { %v137_v40 = vsel %vm135_vm3, %v132_v38, %v134_v39  ;;  %143 = vst.msk [vmem:[#allocation2 + $0x58] sm:$0xff] %vm46_vm0, %v134_v39  ;;  %720 = vrot.lane.b32.xlu0 %v2289_v30, %s2061_s0 }
  0x83   :  { %754 = vrot.lane.b32.xlu1 %v2103_v0, %s2062_s8  ;;  %966 = vmatprep.subr.bf16.mxu0 %v137_v40 }
  0x84   :  { %v130_v41 = vpop.permute.xlu0 %129  ;;  %v858_v28 = vld [vmem:[#allocation2 + $0x40] sm:$0xff] }
  0x85   :  { %v136_v42 = vsel %vm135_vm3, %v130_v41, %v132_v38  ;;  %v164_v43 = vpop.permute.xlu1 %163 }
  0x86   :  { %756 = vrot.lane.b32.xlu0 %v2276_v24, %s2062_s8  ;;  %967 = vmatpush1.bf16.msra.mxu0 %v136_v42 }
  0x87   :  { %752 = vrot.lane.b32.xlu1 %v2108_v1, %s2062_s8 }
  0x88   :  { %v166_v44 = vpop.permute.xlu0 %165 }
  0x89   :  { %v169_v45 = vsel %vm167_vm4, %v164_v43, %v166_v44  ;;  %175 = vst.msk [vmem:[#allocation2 + $0x70] sm:$0xff] %vm46_vm0, %v166_v44  ;;  %v162_v46 = vpop.permute.xlu1 %161  ;;  %v861_v34 = vld [vmem:[#allocation2 + $0x58] sm:$0xff] }
  0x8a   :  { %v168_v47 = vsel %vm167_vm4, %v162_v46, %v164_v43  ;;  %758 = vrot.lane.b32.xlu0 %v2289_v30, %s2062_s8  ;;  %968 = vmatprep.subr.bf16.mxu0 %v169_v45 }
  0x8b   :  { %792 = vrot.lane.b32.xlu1 %v2103_v0, %s2813_s14  ;;  %969 = vmatpush1.bf16.msra.mxu0 %v168_v47 }
  0x8c   :  { %v196_v48 = vpop.permute.xlu0 %195 }
  0x8d   :  { %v198_v49 = vpop.permute.xlu1 %197 }
  0x8e   :  { %v201_v50 = vsel %vm199_vm5, %v196_v48, %v198_v49  ;;  %207 = vst.msk [vmem:[#allocation2 + $0x88] sm:$0xff] %vm46_vm0, %v198_v49  ;;  %794 = vrot.lane.b32.xlu0 %v2276_v24, %s2813_s14 }
  0x8f   :  { %790 = vrot.lane.b32.xlu1 %v2108_v1, %s2813_s14  ;;  %970 = vmatprep.subr.bf16.mxu0 %v201_v50 }
  0x90   :  { %v194_v51 = vpop.permute.xlu0 %193  ;;  %v864_v42 = vld [vmem:[#allocation2 + $0x70] sm:$0xff] }
  0x91   :  { %v200_v52 = vsel %vm199_vm5, %v194_v51, %v196_v48  ;;  %v228_v53 = vpop.permute.xlu1 %227 }
  0x92   :  { %796 = vrot.lane.b32.xlu0 %v2289_v30, %s2813_s14  ;;  %971 = vmatpush1.bf16.msra.mxu0 %v200_v52 }
  0x93   :  { %830 = vrot.lane.b32.xlu1 %v2103_v0, %s2064_s28 }
  0x94   :  { %v230_v54 = vpop.permute.xlu0 %229 }
  0x95   :  { %v233_v55 = vsel %vm231_vm6, %v228_v53, %v230_v54  ;;  %239 = vst.msk [vmem:[#allocation2 + $0xa0] sm:$0xff] %vm46_vm0, %v230_v54  ;;  %v226_v56 = vpop.permute.xlu1 %225  ;;  %v867_v48 = vld [vmem:[#allocation2 + $0x88] sm:$0xff] }
  0x96   :  { %v232_v57 = vsel %vm231_vm6, %v226_v56, %v228_v53  ;;  %832 = vrot.lane.b32.xlu0 %v2276_v24, %s2064_s28  ;;  %972 = vmatprep.subr.bf16.mxu0 %v233_v55 }
  0x97   :  { %828 = vrot.lane.b32.xlu1 %v2108_v1, %s2064_s28  ;;  %973 = vmatpush1.bf16.msra.mxu0 %v232_v57  ;;  %v2028_v57 = vld [vmem:[%s2803_s1] ss:$16 sps:$4 sm:$0xff]  }
  0x98   :  { %v260_v58 = vpop.permute.xlu0 %259 }
  0x99   :  { %v262_v59 = vpop.permute.xlu1 %261 }
  0x9a   :  { %v265_v60 = vsel %vm263_vm7, %v260_v58, %v262_v59  ;;  %271 = vst.msk [vmem:[#allocation2 + $0xb8] sm:$0xff] %vm46_vm0, %v262_v59  ;;  %834 = vrot.lane.b32.xlu0 %v2289_v30, %s2064_s28  ;;  %v2031_v59 = vld [vmem:[%s2803_s1 + $0xc] ss:$16 sps:$4 sm:$0xff]  }
  0x9b   :  { %974 = vmatprep.subr.bf16.mxu0 %v265_v60  ;;  %929 = vperm.xlu1 %2001, %v925_v61  }
  0x9c   :  { %v258_v63 = vpop.permute.xlu0 %257  ;;  %v870_v56 = vld [vmem:[#allocation2 + $0xa0] sm:$0xff] }
  0x9d   :  { %v264_v0 = vsel %vm263_vm7, %v258_v63, %v260_v58  ;;  %v292_v1 = vpop.permute.xlu1 %291 }
  0x9e   :  { %975 = vmatpush1.bf16.msra.mxu0 %v264_v0  ;;  %934 = vperm.xlu0 %2002, %v926_v62  }
  0xa0   :  { %v294_v2 = vpop.permute.xlu0 %293 }
  0xa1   :  { %v297_v3 = vsel %vm295_vm8, %v292_v1, %v294_v2  ;;  %303 = vst.msk [vmem:[#allocation2 + $0xd0] sm:$0xff] %vm46_vm0, %v294_v2  ;;  %v290_v4 = vpop.permute.xlu1 %289  ;;  %v873_v0 = vld [vmem:[#allocation2 + $0xb8] sm:$0xff] }
  0xa2   :  { %v296_v5 = vsel %vm295_vm8, %v290_v4, %v292_v1  ;;  %976 = vmatprep.subr.bf16.mxu0 %v297_v3 }
  0xa3   :  { %977 = vmatpush1.bf16.msra.mxu0 %v296_v5 }
  0xa4   :  { %v324_v6 = vpop.permute.xlu0 %323 }
  0xa5   :  { %v326_v7 = vpop.permute.xlu1 %325 }
  0xa6   :  { %v329_v8 = vsel %vm327_vm9, %v324_v6, %v326_v7  ;;  %335 = vst.msk [vmem:[#allocation2 + $0xe8] sm:$0xff] %vm46_vm0, %v326_v7 }
  0xa7   :  { %978 = vmatprep.subr.bf16.mxu0 %v329_v8 }
  0xa8   :  { %v322_v10 = vpop.permute.xlu0 %321  ;;  %v876_v11 = vld [vmem:[#allocation2 + $0xd0] sm:$0xff] }
  0xa9   :  { %v328_v12 = vsel %vm327_vm9, %v322_v10, %v324_v6  ;;  %v356_v13 = vpop.permute.xlu1 %355  ;;  %1916 = vmatprep.subr.bf16.mxu1 %v876_v11 }
  0xaa   :  { %1917 = vmatpush3.bf16.msra.mxu1 %v852_v9  ;;  %979 = vmatpush1.bf16.msra.mxu0 %v328_v12 }
  0xac   :  { %v358_v14 = vpop.permute.xlu0 %357 }
  0xad   :  { %v361_v15 = vsel %vm359_vm10, %v356_v13, %v358_v14  ;;  %367 = vst.msk [vmem:[#allocation2 + $0x100] sm:$0xff] %vm46_vm0, %v358_v14  ;;  %v354_v16 = vpop.permute.xlu1 %353  ;;  %v879_v17 = vld [vmem:[#allocation2 + $0xe8] sm:$0xff] }
  0xae   :  { %v360_v18 = vsel %vm359_vm10, %v354_v16, %v356_v13  ;;  %1918 = vmatprep.subr.bf16.mxu1 %v879_v17  ;;  %980 = vmatprep.subr.bf16.mxu0 %v361_v15 }
  0xaf   :  { %1919 = vmatpush3.bf16.msra.mxu1 %v855_v20  ;;  %981 = vmatpush1.bf16.msra.mxu0 %v360_v18 }
  0xb0   :  { %v388_v21 = vpop.permute.xlu0 %387 }
  0xb1   :  { %v390_v22 = vpop.permute.xlu1 %389 }
  0xb2   :  { %v393_v23 = vsel %vm391_vm11, %v388_v21, %v390_v22  ;;  %399 = vst.msk [vmem:[#allocation2 + $0x118] sm:$0xff] %vm46_vm0, %v390_v22 }
  0xb3   :  { %982 = vmatprep.subr.bf16.mxu0 %v393_v23 }
  0xb4   :  { %v386_v24 = vpop.permute.xlu0 %385  ;;  %v882_v25 = vld [vmem:[#allocation2 + $0x100] sm:$0xff] }
  0xb5   :  { %v392_v26 = vsel %vm391_vm11, %v386_v24, %v388_v21  ;;  %v420_v27 = vpop.permute.xlu1 %419  ;;  %1920 = vmatprep.subr.bf16.mxu1 %v882_v25 }
  0xb6   :  { %1921 = vmatpush3.bf16.msra.mxu1 %v858_v28  ;;  %983 = vmatpush1.bf16.msra.mxu0 %v392_v26 }
  0xb8   :  { %v422_v29 = vpop.permute.xlu0 %421 }
  0xb9   :  { %v425_v30 = vsel %vm2819_vm12, %v420_v27, %v422_v29  ;;  %431 = vst.msk [vmem:[#allocation2 + $0x130] sm:$0xff] %vm46_vm0, %v422_v29  ;;  %v418_v31 = vpop.permute.xlu1 %417  ;;  %v885_v32 = vld [vmem:[#allocation2 + $0x118] sm:$0xff] }
  0xba   :  { %v424_v33 = vsel %vm2819_vm12, %v418_v31, %v420_v27  ;;  %1922 = vmatprep.subr.bf16.mxu1 %v885_v32  ;;  %984 = vmatprep.subr.bf16.mxu0 %v425_v30  ;;  %vm2821_vm12 = vcmask 719872  }
  0xbb   :  { %1923 = vmatpush3.bf16.msra.mxu1 %v861_v34  ;;  %985 = vmatpush1.bf16.msra.mxu0 %v424_v33 }
  0xbc   :  { %v452_v35 = vpop.permute.xlu0 %451 }
  0xbd   :  { %v454_v36 = vpop.permute.xlu1 %453 }
  0xbe   :  { %v457_v37 = vsel %vm2817_vm13, %v452_v35, %v454_v36  ;;  %463 = vst.msk [vmem:[#allocation2 + $0x148] sm:$0xff] %vm46_vm0, %v454_v36 }
  0xbf   :  { %986 = vmatprep.subr.bf16.mxu0 %v457_v37 }
  0xc0   :  { %v450_v38 = vpop.permute.xlu0 %449  ;;  %v888_v39 = vld [vmem:[#allocation2 + $0x130] sm:$0xff] }
  0xc1   :  { %v456_v40 = vsel %vm2817_vm13, %v450_v38, %v452_v35  ;;  %v484_v41 = vpop.permute.xlu1 %483  ;;  %1924 = vmatprep.subr.bf16.mxu1 %v888_v39  ;;  %vm2827_vm13 = vcmask 736256  }
  0xc2   :  { %1925 = vmatpush3.bf16.msra.mxu1 %v864_v42  ;;  %987 = vmatpush1.bf16.msra.mxu0 %v456_v40 }
  0xc4   :  { %v486_v43 = vpop.permute.xlu0 %485 }
  0xc5   :  { %v489_v44 = vsel %vm2815_vm14, %v484_v41, %v486_v43  ;;  %495 = vst.msk [vmem:[#allocation2 + $0x160] sm:$0xff] %vm46_vm0, %v486_v43  ;;  %v482_v45 = vpop.permute.xlu1 %481  ;;  %v891_v46 = vld [vmem:[#allocation2 + $0x148] sm:$0xff] }
  0xc6   :  { %v488_v47 = vsel %vm2815_vm14, %v482_v45, %v484_v41  ;;  %1926 = vmatprep.subr.bf16.mxu1 %v891_v46  ;;  %988 = vmatprep.subr.bf16.mxu0 %v489_v44  ;;  %vm2818_vm14 = vcmask 744448  }
  0xc7   :  { %1927 = vmatpush3.bf16.msra.mxu1 %v867_v48  ;;  %989 = vmatpush1.bf16.msra.mxu0 %v488_v47 }
  0xc8   :  { %v516_v49 = vpop.permute.xlu0 %515 }
  0xc9   :  { %v518_v50 = vpop.permute.xlu1 %517 }
  0xca   :  { %v521_v51 = vsel %vm2816_vm15, %v516_v49, %v518_v50  ;;  %527 = vst.msk [vmem:[#allocation2 + $0x178] sm:$0xff] %vm46_vm0, %v518_v50 }
  0xcb   :  { %990 = vmatprep.subr.bf16.mxu0 %v521_v51 }
  0xcc   :  { %v514_v52 = vpop.permute.xlu0 %513  ;;  %v894_v53 = vld [vmem:[#allocation2 + $0x160] sm:$0xff] }
  0xcd   :  { %v520_v54 = vsel %vm2816_vm15, %v514_v52, %v516_v49  ;;  %v548_v55 = vpop.permute.xlu1 %547  ;;  %1928 = vmatprep.subr.bf16.mxu1 %v894_v53  ;;  %vm956_vm15 = vcmask 130048  }
  0xce   :  { %1929 = vmatpush3.bf16.msra.mxu1 %v870_v56  ;;  %991 = vmatpush1.bf16.msra.mxu0 %v520_v54 }
  0xd0   :  { %v550_v58 = vpop.permute.xlu0 %549 }
  0xd1   :  { %v553_v60 = vsel %vm2818_vm14, %v548_v55, %v550_v58  ;;  %559 = vst.msk [vmem:[#allocation2 + $0x190] sm:$0xff] %vm46_vm0, %v550_v58  ;;  %v546_v61 = vpop.permute.xlu1 %545  ;;  %v897_v62 = vld [vmem:[#allocation2 + $0x178] sm:$0xff]  ;;  %993 = vmatmul.mubr.bf16.vlgmr.msra.gmra.mrb[0].mxu0 %v2028_v57 }
  0xd2   :  { %v552_v63 = vsel %vm2818_vm14, %v546_v61, %v548_v55  ;;  %1930 = vmatprep.subr.bf16.mxu1 %v897_v62  ;;  %1003 = vmatprep.subr.bf16.mxu0 %v553_v60  ;;  %vm2820_vm14 = vcmask 728064  }
  0xd3   :  { %1931 = vmatpush3.bf16.msra.mxu1 %v873_v0  ;;  %1004 = vmatpush1.bf16.msra.mxu0 %v552_v63 }
  0xd4   :  { %v580_v1 = vpop.permute.xlu0 %579  ;;  %1087 = vmatprep.subr.bf16.mxu1 %v2055_v19  ;;  %1908 = vmatprep.mubr.msk.bf16.mxu0 %vm956_vm15, %v2031_v59 }
  0xd5   :  { %v582_v2 = vpop.permute.xlu1 %581 }
  0xd6   :  { %v585_v3 = vsel %vm2827_vm13, %v580_v1, %v582_v2  ;;  %591 = vst.msk [vmem:[#allocation2 + $0x1a8] sm:$0xff] %vm46_vm0, %v582_v2  ;;  %1079 = vmatmul.mubr.bf16.vlgmr.msra.gmra.mrb[0].mxu1 %v2028_v57  ;;  %v2033_v57 = vld [vmem:[%s2803_s1 + $0x8] ss:$16 sps:$4 sm:$0xff]  }
  0xd7   :  { %1005 = vmatprep.subr.bf16.mxu0 %v585_v3  ;;  %1909 = vmatprep.mubr.msk.bf16.mxu1 %vm956_vm15, %v2031_v59 }
  0xd8   :  { %v578_v4 = vpop.permute.xlu0 %577  ;;  %v900_v5 = vld [vmem:[#allocation2 + $0x190] sm:$0xff] }
  0xd9   :  { %v584_v6 = vsel %vm2827_vm13, %v578_v4, %v580_v1  ;;  %v612_v7 = vpop.permute.xlu1 %611  ;;  %1088 = vmatpush1.bf16.msra.mxu1 %v900_v5  ;;  %v1148_v4 = vlaneseq }
  0xda   :  { %1089 = vmatprep.subr.bf16.mxu1 %v2055_v19  ;;  %1006 = vmatpush1.bf16.msra.mxu0 %v584_v6 }
  0xdb   :  { %v1149_v5 = vshrl.u32 %v1148_v4, 7 }
  0xdc   :  { %v614_v8 = vpop.permute.xlu0 %613 }
  0xdd   :  { %v617_v9 = vsel %vm2820_vm14, %v612_v7, %v614_v8  ;;  %623 = vst.msk [vmem:[#allocation2 + $0x1c0] sm:$0xff] %vm46_vm0, %v614_v8  ;;  %v610_v10 = vpop.permute.xlu1 %609  ;;  %v903_v11 = vld [vmem:[#allocation2 + $0x1a8] sm:$0xff]  ;;  %v1150_v8 = vsub.s32 0, %v1149_v5 }
  0xde   :  { %v616_v12 = vsel %vm2820_vm14, %v610_v10, %v612_v7  ;;  %1090 = vmatpush1.bf16.msra.mxu1 %v903_v11  ;;  %1007 = vmatprep.subr.bf16.mxu0 %v617_v9  ;;  %vm2822_vm14 = vcmask 654336   ;;  %v1146_v10 = vld [vmem:[%s2805_s3] sm:$0x7] }
  0xdf   :  { %1091 = vmatprep.subr.bf16.mxu1 %v2055_v19  ;;  %1008 = vmatpush1.bf16.msra.mxu0 %v616_v12  ;;  %v1154_v12 = vsub.s32 1, %v1149_v5 }
  0xe0   :  { %v644_v13 = vpop.permute.xlu0 %643 }
  0xe1   :  { %v646_v14 = vpop.permute.xlu1 %645 }
  0xe2   :  { %v649_v15 = vsel %vm2821_vm12, %v644_v13, %v646_v14  ;;  %655 = vst.msk [vmem:[#allocation2 + $0x1d8] sm:$0xff] %vm46_vm0, %v646_v14 }
  0xe3   :  { %1009 = vmatprep.subr.bf16.mxu0 %v649_v15 }
  0xe4   :  { %v642_v16 = vpop.permute.xlu0 %641  ;;  %v906_v17 = vld [vmem:[#allocation2 + $0x1c0] sm:$0xff] }
  0xe5   :  { %v648_v18 = vsel %vm2821_vm12, %v642_v16, %v644_v13  ;;  %v679_v20 = vpop.permute.xlu1 %678  ;;  %1092 = vmatpush1.bf16.msra.mxu1 %v906_v17  ;;  %vm2823_vm12 = vcmask 646144  }
  0xe6   :  { %1010 = vmatpush1.bf16.msra.mxu0 %v648_v18  ;;  %1093 = vmatprep.subr.bf16.mxu1 %v2055_v19 }
  0xe8   :  { %v681_v21 = vpop.permute.xlu0 %680 }
  0xe9   :  { %v686_v22 = vsel %vm2822_vm14, %v679_v20, %v681_v21  ;;  %v677_v23 = vpop.permute.xlu1 %676  ;;  %v909_v24 = vld [vmem:[#allocation2 + $0x1d8] sm:$0xff] }
  0xea   :  { %v685_v25 = vsel %vm2822_vm14, %v677_v23, %v679_v20  ;;  %1011 = vmatprep.subr.bf16.mxu0 %v686_v22  ;;  %1094 = vmatpush1.bf16.msra.mxu1 %v909_v24  ;;  %v1151_v20 = vrot.slane %v1146_v10, %v1150_v8  ;;  %v1155_v24 = vrot.slane %v1146_v10, %v1154_v12 }
  0xeb   :  { %1095 = vmatprep.subr.bf16.mxu1 %v2055_v19  ;;  %1012 = vmatpush1.bf16.msra.mxu0 %v685_v25 }
  0xec   :  { %v683_v26 = vpop.permute.xlu0 %682 }
  0xed   :  { %v687_v27 = vsel %vm2822_vm14, %v681_v21, %v683_v26  ;;  %v717_v28 = vpop.permute.xlu1 %716  ;;  %vm2824_vm14 = vcmask 637952  }
  0xee   :  { %693 = vst.msk [vmem:[#allocation2 + $0x1f0] sm:$0xff] %vm46_vm0, %v687_v27 }
  0xf0   :  { %v719_v29 = vpop.permute.xlu0 %718 }
  0xf1   :  { %v724_v30 = vsel %vm2823_vm12, %v717_v28, %v719_v29  ;;  %v715_v31 = vpop.permute.xlu1 %714 }
  0xf2   :  { %v723_v32 = vsel %vm2823_vm12, %v715_v31, %v717_v28  ;;  %1013 = vmatprep.subr.bf16.mxu0 %v724_v30 }
  0xf3   :  { %1014 = vmatpush1.bf16.msra.mxu0 %v723_v32 }
  0xf4   :  { %v721_v33 = vpop.permute.xlu0 %720 }
  0xf5   :  { %v725_v34 = vsel %vm2823_vm12, %v719_v29, %v721_v33  ;;  %v755_v35 = vpop.permute.xlu1 %754  ;;  %v912_v36 = vld [vmem:[#allocation2 + $0x1f0] sm:$0xff]  ;;  %vm2826_vm12 = vcmask 629760  }
  0xf6   :  { %731 = vst.msk [vmem:[#allocation2 + $0x208] sm:$0xff] %vm46_vm0, %v725_v34  ;;  %1096 = vmatpush1.bf16.msra.mxu1 %v912_v36 }
  0xf7   :  { %1097 = vmatprep.subr.bf16.mxu1 %v2055_v19 }
  0xf8   :  { %v757_v37 = vpop.permute.xlu0 %756 }
  0xf9   :  { %v762_v38 = vsel %vm2824_vm14, %v755_v35, %v757_v37  ;;  %v753_v39 = vpop.permute.xlu1 %752 }
  0xfa   :  { %v761_v40 = vsel %vm2824_vm14, %v753_v39, %v755_v35  ;;  %1015 = vmatprep.subr.bf16.mxu0 %v762_v38  ;;  %v1158_v38 = vsub.s32 2, %v1149_v5 }
  0xfb   :  { %1016 = vmatpush1.bf16.msra.mxu0 %v761_v40 }
  0xfc   :  { %v759_v41 = vpop.permute.xlu0 %758 }
  0xfd   :  { %v763_v42 = vsel %vm2824_vm14, %v757_v37, %v759_v41  ;;  %v793_v43 = vpop.permute.xlu1 %792  ;;  %v915_v44 = vld [vmem:[#allocation2 + $0x208] sm:$0xff]  ;;  %vm2825_vm14 = vcmask 621568  }
  0xfe   :  { %769 = vst.msk [vmem:[#allocation2 + $0x220] sm:$0xff] %vm46_vm0, %v763_v42  ;;  %1098 = vmatpush1.bf16.msra.mxu1 %v915_v44 }
  0xff   :  { %1099 = vmatprep.subr.bf16.mxu1 %v2055_v19 }
 0x100   :  { %v795_v45 = vpop.permute.xlu0 %794 }
 0x101   :  { %v800_v46 = vsel %vm2826_vm12, %v793_v43, %v795_v45  ;;  %v791_v47 = vpop.permute.xlu1 %790 }
 0x102   :  { %v799_v48 = vsel %vm2826_vm12, %v791_v47, %v793_v43  ;;  %1017 = vmatprep.subr.bf16.mxu0 %v800_v46  ;;  %v1159_v46 = vrot.slane %v1146_v10, %v1158_v38 }
 0x103   :  { %1018 = vmatpush1.bf16.msra.mxu0 %v799_v48 }
 0x104   :  { %v797_v49 = vpop.permute.xlu0 %796 }
 0x105   :  { %v801_v50 = vsel %vm2826_vm12, %v795_v45, %v797_v49  ;;  %v831_v51 = vpop.permute.xlu1 %830  ;;  %v918_v52 = vld [vmem:[#allocation2 + $0x220] sm:$0xff] }
 0x106   :  { %807 = vst.msk [vmem:[#allocation2 + $0x238] sm:$0xff] %vm46_vm0, %v801_v50  ;;  %1100 = vmatpush1.bf16.msra.mxu1 %v918_v52 }
 0x107   :  { %1101 = vmatprep.subr.bf16.mxu1 %v2055_v19 }
 0x108   :  { %v833_v53 = vpop.permute.xlu0 %832 }
 0x109   :  { %v838_v54 = vsel %vm2825_vm14, %v831_v51, %v833_v53  ;;  %v829_v55 = vpop.permute.xlu1 %828 }
 0x10a   :  { %v837_v56 = vsel %vm2825_vm14, %v829_v55, %v831_v51  ;;  %1019 = vmatprep.subr.bf16.mxu0 %v838_v54 }
 0x10b   :  { %1020 = vmatpush1.bf16.msra.mxu0 %v837_v56 }
 0x10c   :  { %v835_v58 = vpop.permute.xlu0 %834 }
 0x10d   :  { %v839_v59 = vsel %vm2825_vm14, %v833_v53, %v835_v58  ;;  %v921_v60 = vld [vmem:[#allocation2 + $0x238] sm:$0xff]  ;;  %v2036_v53 = vld [vmem:[%s2806_s4 + $0x4] ss:$16 sps:$4 sm:$0xff]  }
 0x10e   :  { %845 = vst.msk [vmem:[#allocation2 + $0x250] sm:$0xff] %vm46_vm0, %v839_v59  ;;  %1102 = vmatpush1.bf16.msra.mxu1 %v921_v60  ;;  %1036 = vmatmul.mubr.bf16.vlgmr.msra.gmra.mrb[0].mxu0 %v2033_v57 }
 0x10f   :  { %1103 = vmatprep.subr.bf16.mxu1 %v2055_v19  ;;  %1746 = vmatprep.mubr.bf16.mxu0 %v2036_v53 }
 0x115   :  { %v924_v61 = vld [vmem:[#allocation2 + $0x250] sm:$0xff] }
 0x116   :  { %1104 = vmatpush1.bf16.msra.mxu1 %v924_v61 }
 0x119   :  { %1120 = vmatmul.mubr.bf16.vlgmr.msra.gmra.mrb[4].mxu1 %v2033_v57 }
 0x11a   :  { %v930_v6 = vpop.permute.xlu1 %929  ;;  %1660 = vmatprep.mubr.bf16.mxu1 %v2036_v53 }
 0x11d   :  { %v935_v13 = vpop.permute.xlu0 %934 }
 0x1a9   :  { %v1932_v62 = vpop.f32.mrb[0].mxu1 }
 0x1aa   :  { %v1933_v63 = vpop.f32.mrb[1].mxu1 }
 0x1ab   :  { %v1934_v0 = vadd.f32 %v1933_v63, %v1932_v62  ;;  %v1935_v1 = vpop.f32.mrb[2].mxu1 }
 0x1ac   :  { %v1936_v2 = vpop.f32.mrb[3].mxu1 }
 0x1ad   :  { %v1937_v3 = vadd.f32 %v1936_v2, %v1935_v1  ;;  %v1081_v35 = vadd.f32 %v1934_v0, %v930_v6 }
 0x1af   :  { %v1084_v41 = vadd.f32 %v1937_v3, %v935_v13 }
 0x1e1   :  { %v1037_v7 = vpop.f32.mrb[0].mxu0 }
 0x1e2   :  { %v1960_v9 = vadd.f32 %v1037_v7, %v930_v6  ;;  %v1039_v11 = vpop.f32.mrb[1].mxu0  ;;  %v1594_v7 = vld [vmem:[%s2807_s5] sm:$0xff] }
 0x1e3   :  { %v1961_v14 = vadd.f32 %v1039_v11, %v930_v6  ;;  %v1041_v15 = vpop.f32.mrb[2].mxu0 }
 0x1e4   :  { %vm1128_vm0 = vcmp.ge.f32.partialorder %v1960_v9, 0.0  ;;  %v1134_v16 = vmul.f32 0.1, %v1960_v9  ;;  %v1962_v17 = vadd.f32 %v1041_v15, %v935_v13  ;;  %v1043_v18 = vpop.f32.mrb[3].mxu0 }
 0x1e5   :  { %vm1129_vm14 = vcmp.ge.f32.partialorder %v1961_v14, 0.0  ;;  %v1135_v21 = vmul.f32 0.1, %v1961_v14  ;;  %v1963_v22 = vadd.f32 %v1043_v18, %v935_v13 }
 0x1e6   :  { %v1140_v23 = vsel %vm1128_vm0, %v1960_v9, %v1134_v16  ;;  %vm1131_vm12 = vcmp.ge.f32.partialorder %v1962_v17, 0.0  ;;  %v1137_v25 = vmul.f32 0.1, %v1962_v17 }
 0x1e7   :  { %v1141_v26 = vsel %vm1129_vm14, %v1961_v14, %v1135_v21  ;;  %vm1132_vm13 = vcmp.ge.f32.partialorder %v1963_v22, 0.0  ;;  %v1138_v27 = vmul.f32 0.1, %v1963_v22  ;;  %v1163_v29 = vmul.f32 %v1151_v20, %v1140_v23  ;;  %v1595_v14 = vld [vmem:[%s2807_s5 + $0x8] sm:$0xff] }
 0x1e8   :  { %v1143_v28 = vsel %vm1131_vm12, %v1962_v17, %v1137_v25  ;;  %v1164_v32 = vmul.f32 %v1155_v24, %v1141_v26 }
 0x1e9   :  { %v1166_v30 = vmul.f32 %v1151_v20, %v1143_v28  ;;  %v1144_v31 = vsel %vm1132_vm13, %v1963_v22, %v1138_v27  ;;  %vm1174_vm13 = vcmask 261120  }
 0x1ea   :  { %v1167_v33 = vmul.f32 %v1155_v24, %v1144_v31 }
 0x1eb   :  { %v2432_v34 = vpack.c.bf16 %v1166_v30, %v1163_v29 }
 0x1ec   :  { %v2434_v36 = vpack.c.bf16 %v1167_v33, %v1164_v32  ;;  %v1121_v37 = vpop.f32.mrb[4].mxu1 }
 0x1ed   :  { %v1122_v39 = vadd.f32 %v1121_v37, %v1081_v35  ;;  %v1123_v40 = vpop.f32.mrb[5].mxu1 }
 0x1ee   :  { %v1124_v42 = vpop.f32.mrb[6].mxu1  ;;  %1628 = vmatprep.subr.bf16.mxu1 %v2434_v36 }
 0x1ef   :  { %vm1130_vm14 = vcmp.ge.f32.partialorder %v1122_v39, 0.0  ;;  %v1136_v43 = vmul.f32 0.1, %v1122_v39  ;;  %v1125_v44 = vadd.f32 %v1124_v42, %v1084_v41  ;;  %v1126_v45 = vpop.f32.mrb[7].mxu1  ;;  %1629 = vmatpush1.bf16.msra.mxu1 %v2432_v34 }
 0x1f1   :  { %v1142_v47 = vsel %vm1130_vm14, %v1122_v39, %v1136_v43  ;;  %vm1133_vm12 = vcmp.ge.f32.partialorder %v1125_v44, 0.0  ;;  %v1139_v48 = vmul.f32 0.1, %v1125_v44  ;;  %vm2843_vm14 = vcmask 728064  }
 0x1f2   :  { %v1165_v50 = vmul.f32 %v1159_v46, %v1142_v47 }
 0x1f3   :  { %v1145_v49 = vsel %vm1133_vm12, %v1125_v44, %v1139_v48  ;;  %vm2844_vm12 = vmmov %vm2843_vm14 }
 0x1f4   :  { %v1168_v51 = vmul.f32 %v1159_v46, %v1145_v49 }
 0x1f6   :  { %v2438_v52 = vpack.c.bf16 %v1168_v51, %v1165_v50 }
 0x1f8   :  { %1197 = vrot.lane.b32.xlu0 %v2438_v52, %s2041_s30  ;;  %1183 = vrot.lane.b32.xlu1 %v2438_v52, %s2040_s25  ;;  %1175 = vst.msk [vmem:[#allocation3 + $0x10] sm:$0xff] %vm1174_vm13, %v2438_v52 }
 0x1fc   :  { %1225 = vrot.lane.b32.xlu0 %v2438_v52, %s2043_s12  ;;  %1211 = vrot.lane.b32.xlu1 %v2438_v52, %s2042_s9 }
 0x1ff   :  { %v1521_v3 = vld [vmem:[#allocation3 + $0x10] sm:$0xff] }
 0x200   :  { %1253 = vrot.lane.b32.xlu0 %v2438_v52, %s2045_s18  ;;  %1239 = vrot.lane.b32.xlu1 %v2438_v52, %s2044_s15 }
 0x204   :  { %1281 = vrot.lane.b32.xlu0 %v2438_v52, %s2047_s27  ;;  %1267 = vrot.lane.b32.xlu1 %v2438_v52, %s2046_s23 }
 0x208   :  { %1309 = vrot.lane.b32.xlu0 %v2438_v52, %s2049_s11  ;;  %1295 = vrot.lane.b32.xlu1 %v2438_v52, %s2048_s7 }
 0x20c   :  { %1337 = vrot.lane.b32.xlu0 %v2438_v52, %s2051_s20  ;;  %1323 = vrot.lane.b32.xlu1 %v2438_v52, %s2050_s16 }
 0x210   :  { %1193 = vrot.lane.b32.xlu1 %v2432_v34, %s2041_s30  ;;  %1179 = vrot.lane.b32.xlu0 %v2432_v34, %s2040_s25 }
 0x214   :  { %1221 = vrot.lane.b32.xlu1 %v2432_v34, %s2043_s12  ;;  %1207 = vrot.lane.b32.xlu0 %v2432_v34, %s2042_s9 }
 0x218   :  { %1249 = vrot.lane.b32.xlu1 %v2432_v34, %s2045_s18  ;;  %1235 = vrot.lane.b32.xlu0 %v2432_v34, %s2044_s15 }
 0x21c   :  { %1277 = vrot.lane.b32.xlu1 %v2432_v34, %s2047_s27  ;;  %1263 = vrot.lane.b32.xlu0 %v2432_v34, %s2046_s23 }
 0x220   :  { %1305 = vrot.lane.b32.xlu1 %v2432_v34, %s2049_s11  ;;  %1291 = vrot.lane.b32.xlu0 %v2432_v34, %s2048_s7 }
 0x224   :  { %1333 = vrot.lane.b32.xlu1 %v2432_v34, %s2051_s20  ;;  %1319 = vrot.lane.b32.xlu0 %v2432_v34, %s2050_s16 }
 0x228   :  { %1181 = vrot.lane.b32.xlu1 %v2434_v36, %s2040_s25  ;;  %1347 = vrot.lane.b32.xlu0 %v2432_v34, %s2052_s24 }
 0x22c   :  { %1195 = vrot.lane.b32.xlu1 %v2434_v36, %s2041_s30  ;;  %1209 = vrot.lane.b32.xlu0 %v2434_v36, %s2042_s9  ;;  %s2828_s30 = smov 90   ;;  %s2829_s9 = smov 89  }
 0x230   :  { %1351 = vrot.lane.b32.xlu1 %v2438_v52, %s2052_s24  ;;  %1365 = vrot.lane.b32.xlu0 %v2438_v52, %s2053_s29 }
 0x234   :  { %1223 = vrot.lane.b32.xlu1 %v2434_v36, %s2043_s12  ;;  %1237 = vrot.lane.b32.xlu0 %v2434_v36, %s2044_s15  ;;  %s2830_s12 = smov 77  }
 0x238   :  { %1361 = vrot.lane.b32.xlu1 %v2432_v34, %s2053_s29  ;;  %1375 = vrot.lane.b32.xlu0 %v2432_v34, %s2054_s17 }
 0x23c   :  { %1251 = vrot.lane.b32.xlu1 %v2434_v36, %s2045_s18  ;;  %1265 = vrot.lane.b32.xlu0 %v2434_v36, %s2046_s23 }
 0x240   :  { %1379 = vrot.lane.b32.xlu1 %v2438_v52, %s2054_s17  ;;  %1393 = vrot.lane.b32.xlu0 %v2438_v52, %s2056_s22 }
 0x244   :  { %1279 = vrot.lane.b32.xlu1 %v2434_v36, %s2047_s27  ;;  %1293 = vrot.lane.b32.xlu0 %v2434_v36, %s2048_s7 }
 0x248   :  { %1389 = vrot.lane.b32.xlu1 %v2432_v34, %s2056_s22  ;;  %1403 = vrot.lane.b32.xlu0 %v2432_v34, %s2828_s30 }
 0x24c   :  { %1307 = vrot.lane.b32.xlu1 %v2434_v36, %s2049_s11  ;;  %1321 = vrot.lane.b32.xlu0 %v2434_v36, %s2050_s16 }
 0x250   :  { %1407 = vrot.lane.b32.xlu1 %v2438_v52, %s2828_s30  ;;  %1421 = vrot.lane.b32.xlu0 %v2438_v52, %s2829_s9 }
 0x254   :  { %1335 = vrot.lane.b32.xlu1 %v2434_v36, %s2051_s20  ;;  %1349 = vrot.lane.b32.xlu0 %v2434_v36, %s2052_s24 }
 0x258   :  { %1417 = vrot.lane.b32.xlu1 %v2432_v34, %s2829_s9  ;;  %1431 = vrot.lane.b32.xlu0 %v2432_v34, %s2059_s26 }
 0x25c   :  { %1363 = vrot.lane.b32.xlu1 %v2434_v36, %s2053_s29  ;;  %1377 = vrot.lane.b32.xlu0 %v2434_v36, %s2054_s17 }
 0x260   :  { %1435 = vrot.lane.b32.xlu1 %v2438_v52, %s2059_s26  ;;  %1449 = vrot.lane.b32.xlu0 %v2438_v52, %s2060_s13 }
 0x264   :  { %1391 = vrot.lane.b32.xlu1 %v2434_v36, %s2056_s22  ;;  %1405 = vrot.lane.b32.xlu0 %v2434_v36, %s2828_s30 }
 0x268   :  { %1445 = vrot.lane.b32.xlu1 %v2432_v34, %s2060_s13  ;;  %1459 = vrot.lane.b32.xlu0 %v2432_v34, %s2061_s0 }
 0x26a   :  { %v2561_v54 = vpop.permute.xlu0 %1197  ;;  %v2563_v55 = vpop.permute.xlu1 %1183 }
 0x26b   :  { %1206 = vst.msk [vmem:[#allocation3 + $0x40] sm:$0xff] %vm1174_vm13, %v2561_v54  ;;  %1192 = vst.msk [vmem:[#allocation3 + $0x28] sm:$0xff] %vm1174_vm13, %v2563_v55 }
 0x26c   :  { %1419 = vrot.lane.b32.xlu1 %v2434_v36, %s2829_s9  ;;  %1433 = vrot.lane.b32.xlu0 %v2434_v36, %s2059_s26 }
 0x26e   :  { %v2573_v56 = vpop.permute.xlu0 %1225  ;;  %v2575_v57 = vpop.permute.xlu1 %1211 }
 0x26f   :  { %1234 = vst.msk [vmem:[#allocation3 + $0x70] sm:$0xff] %vm1174_vm13, %v2573_v56  ;;  %1220 = vst.msk [vmem:[#allocation3 + $0x58] sm:$0xff] %vm1174_vm13, %v2575_v57 }
 0x270   :  { %1463 = vrot.lane.b32.xlu1 %v2438_v52, %s2061_s0  ;;  %1477 = vrot.lane.b32.xlu0 %v2438_v52, %s2062_s8 }
 0x272   :  { %v2585_v58 = vpop.permute.xlu0 %1253  ;;  %v2587_v59 = vpop.permute.xlu1 %1239  ;;  %v1524_v8 = vld [vmem:[#allocation3 + $0x28] sm:$0xff]  ;;  %v1527_v12 = vld [vmem:[#allocation3 + $0x40] sm:$0xff] }
 0x273   :  { %1262 = vst.msk [vmem:[#allocation3 + $0xa0] sm:$0xff] %vm1174_vm13, %v2585_v58  ;;  %1248 = vst.msk [vmem:[#allocation3 + $0x88] sm:$0xff] %vm1174_vm13, %v2587_v59 }
 0x274   :  { %1447 = vrot.lane.b32.xlu1 %v2434_v36, %s2060_s13  ;;  %1461 = vrot.lane.b32.xlu0 %v2434_v36, %s2061_s0 }
 0x276   :  { %v2597_v60 = vpop.permute.xlu0 %1281  ;;  %v2599_v61 = vpop.permute.xlu1 %1267  ;;  %v1530_v17 = vld [vmem:[#allocation3 + $0x58] sm:$0xff]  ;;  %v1533_v22 = vld [vmem:[#allocation3 + $0x70] sm:$0xff] }
 0x277   :  { %1290 = vst.msk [vmem:[#allocation3 + $0xd0] sm:$0xff] %vm1174_vm13, %v2597_v60  ;;  %1276 = vst.msk [vmem:[#allocation3 + $0xb8] sm:$0xff] %vm1174_vm13, %v2599_v61 }
 0x278   :  { %1473 = vrot.lane.b32.xlu1 %v2432_v34, %s2062_s8  ;;  %1487 = vrot.lane.b32.xlu0 %v2432_v34, %s2830_s12 }
 0x27a   :  { %v2609_v62 = vpop.permute.xlu0 %1309  ;;  %v2611_v63 = vpop.permute.xlu1 %1295  ;;  %v1536_v48 = vld [vmem:[#allocation3 + $0x88] sm:$0xff] }
 0x27b   :  { %1318 = vst.msk [vmem:[#allocation3 + $0x100] sm:$0xff] %vm1174_vm13, %v2609_v62  ;;  %1304 = vst.msk [vmem:[#allocation3 + $0xe8] sm:$0xff] %vm1174_vm13, %v2611_v63 }
 0x27c   :  { %1475 = vrot.lane.b32.xlu1 %v2434_v36, %s2062_s8  ;;  %1489 = vrot.lane.b32.xlu0 %v2434_v36, %s2830_s12 }
 0x27e   :  { %v2621_v0 = vpop.permute.xlu0 %1337  ;;  %v2623_v1 = vpop.permute.xlu1 %1323  ;;  %v1545_v2 = vld [vmem:[#allocation3 + $0xd0] sm:$0xff] }
 0x27f   :  { %1346 = vst.msk [vmem:[#allocation3 + $0x130] sm:$0xff] %vm1174_vm13, %v2621_v0  ;;  %1332 = vst.msk [vmem:[#allocation3 + $0x118] sm:$0xff] %vm1174_vm13, %v2623_v1  ;;  %1938 = vmatprep.subr.bf16.mxu0 %v1545_v2 }
 0x280   :  { %1939 = vmatpush3.bf16.msra.mxu0 %v1521_v3  ;;  %1491 = vrot.lane.b32.xlu1 %v2438_v52, %s2830_s12 }
 0x281   :  { %1505 = vrot.lane.b32.xlu0 %v2438_v52, %s2064_s28 }
 0x282   :  { %v1194_v4 = vpop.permute.xlu1 %1193  ;;  %v1180_v5 = vpop.permute.xlu0 %1179  ;;  %v1548_v6 = vld [vmem:[#allocation3 + $0xe8] sm:$0xff]  ;;  %v1551_v9 = vld [vmem:[#allocation3 + $0x100] sm:$0xff] }
 0x283   :  { %1940 = vmatprep.subr.bf16.mxu0 %v1548_v6 }
 0x284   :  { %1941 = vmatpush3.bf16.msra.mxu0 %v1524_v8  ;;  %1503 = vrot.lane.b32.xlu1 %v2434_v36, %s2064_s28 }
 0x285   :  { %1598 = vperm.xlu0 %2002, %v1594_v7   ;;  %1942 = vmatprep.subr.bf16.mxu0 %v1551_v9  ;;  %v1542_v9 = vld [vmem:[#allocation3 + $0xb8] sm:$0xff] }
 0x286   :  { %v1222_v10 = vpop.permute.xlu1 %1221  ;;  %v1208_v11 = vpop.permute.xlu0 %1207  ;;  %v1554_v13 = vld [vmem:[#allocation3 + $0x118] sm:$0xff]  ;;  %v1557_v18 = vld [vmem:[#allocation3 + $0x130] sm:$0xff] }
 0x288   :  { %1943 = vmatpush3.bf16.msra.mxu0 %v1527_v12  ;;  %1501 = vrot.lane.b32.xlu1 %v2432_v34, %s2064_s28 }
 0x289   :  { %1944 = vmatprep.subr.bf16.mxu0 %v1554_v13 }
 0x28a   :  { %v1250_v15 = vpop.permute.xlu1 %1249  ;;  %v1236_v16 = vpop.permute.xlu0 %1235 }
 0x28c   :  { %1945 = vmatpush3.bf16.msra.mxu0 %v1530_v17  ;;  %1603 = vperm.xlu1 %2001, %v1595_v14  }
 0x28d   :  { %1946 = vmatprep.subr.bf16.mxu0 %v1557_v18 }
 0x28e   :  { %v2643_v20 = vpop.permute.xlu1 %1277  ;;  %v1264_v21 = vpop.permute.xlu0 %1263 }
 0x290   :  { %1947 = vmatpush3.bf16.msra.mxu0 %v1533_v22 }
 0x292   :  { %v2645_v23 = vpop.permute.xlu1 %1305  ;;  %v1292_v24 = vpop.permute.xlu0 %1291 }
 0x296   :  { %v2647_v25 = vpop.permute.xlu1 %1333  ;;  %v2649_v26 = vpop.permute.xlu0 %1319 }
 0x29a   :  { %v1182_v27 = vpop.permute.xlu1 %1181  ;;  %v2651_v28 = vpop.permute.xlu0 %1347 }
 0x29b   :  { %v1185_v29 = vsel %vm71_vm1, %v1180_v5, %v1182_v27  ;;  %v1186_v30 = vsel %vm71_vm1, %v1182_v27, %v2563_v55  ;;  %vm2831_vm1 = vcmask 834560  }
 0x29c   :  { %1630 = vmatprep.subr.bf16.mxu1 %v1186_v30 }
 0x29d   :  { %1631 = vmatpush1.bf16.msra.mxu1 %v1185_v29 }
 0x29e   :  { %v1196_v31 = vpop.permute.xlu1 %1195  ;;  %v1210_v32 = vpop.permute.xlu0 %1209 }
 0x29f   :  { %v1199_v33 = vsel %vm103_vm2, %v1194_v4, %v1196_v31  ;;  %v1200_v34 = vsel %vm103_vm2, %v1196_v31, %v2561_v54  ;;  %v1213_v35 = vsel %vm135_vm3, %v1208_v11, %v1210_v32  ;;  %v1214_v36 = vsel %vm135_vm3, %v1210_v32, %v2575_v57  ;;  %vm2832_vm2 = vmmov %vm2831_vm1 }
 0x2a0   :  { %1632 = vmatprep.subr.bf16.mxu1 %v1200_v34  ;;  %vm2833_vm3 = vcmask 826368  }
 0x2a1   :  { %1633 = vmatpush1.bf16.msra.mxu1 %v1199_v33 }
 0x2a2   :  { %v2662_v37 = vpop.permute.xlu1 %1351  ;;  %v2664_v38 = vpop.permute.xlu0 %1365  ;;  %1634 = vmatprep.subr.bf16.mxu1 %v1214_v36 }
 0x2a3   :  { %1360 = vst.msk [vmem:[#allocation3 + $0x148] sm:$0xff] %vm1174_vm13, %v2662_v37  ;;  %1374 = vst.msk [vmem:[#allocation3 + $0x160] sm:$0xff] %vm1174_vm13, %v2664_v38 }
 0x2a5   :  { %1635 = vmatpush1.bf16.msra.mxu1 %v1213_v35 }
 0x2a6   :  { %v1224_v39 = vpop.permute.xlu1 %1223  ;;  %v1238_v40 = vpop.permute.xlu0 %1237 }
 0x2a7   :  { %v1227_v41 = vsel %vm167_vm4, %v1222_v10, %v1224_v39  ;;  %v1228_v42 = vsel %vm167_vm4, %v1224_v39, %v2573_v56  ;;  %v1241_v43 = vsel %vm199_vm5, %v1236_v16, %v1238_v40  ;;  %v1242_v44 = vsel %vm199_vm5, %v1238_v40, %v2587_v59  ;;  %v1539_v56 = vld [vmem:[#allocation3 + $0xa0] sm:$0xff]  ;;  %v2708_v10 = vld [vmem:[%s2806_s4] ss:$16 sps:$4 sm:$0xff]   ;;  %vm2834_vm4 = vmmov %vm2833_vm3 }
 0x2a8   :  { %1636 = vmatprep.subr.bf16.mxu1 %v1228_v42  ;;  %v2037_v16 = vld [vmem:[%s2806_s4 + $0xc] ss:$16 sps:$4 sm:$0xff]   ;;  %vm2835_vm5 = vcmask 818176  }
 0x2a9   :  { %1637 = vmatpush1.bf16.msra.mxu1 %v1227_v41 }
 0x2aa   :  { %v2676_v45 = vpop.permute.xlu1 %1361  ;;  %v2678_v46 = vpop.permute.xlu0 %1375  ;;  %v1560_v47 = vld [vmem:[#allocation3 + $0x148] sm:$0xff]  ;;  %1638 = vmatprep.subr.bf16.mxu1 %v1242_v44  ;;  %v1563_v49 = vld [vmem:[#allocation3 + $0x160] sm:$0xff] }
 0x2ab   :  { %1948 = vmatprep.subr.bf16.mxu0 %v1560_v47 }
 0x2ac   :  { %1949 = vmatpush3.bf16.msra.mxu0 %v1536_v48 }
 0x2ad   :  { %1950 = vmatprep.subr.bf16.mxu0 %v1563_v49  ;;  %1639 = vmatpush1.bf16.msra.mxu1 %v1241_v43 }
 0x2ae   :  { %v1252_v50 = vpop.permute.xlu1 %1251  ;;  %v1266_v51 = vpop.permute.xlu0 %1265 }
 0x2af   :  { %v1255_v52 = vsel %vm231_vm6, %v1250_v15, %v1252_v50  ;;  %v1256_v53 = vsel %vm231_vm6, %v1252_v50, %v2585_v58  ;;  %v1269_v54 = vsel %vm263_vm7, %v1264_v21, %v1266_v51  ;;  %v1270_v55 = vsel %vm263_vm7, %v1266_v51, %v2599_v61  ;;  %vm2836_vm6 = vmmov %vm2835_vm5 }
 0x2b0   :  { %1951 = vmatpush3.bf16.msra.mxu0 %v1539_v56  ;;  %1640 = vmatprep.subr.bf16.mxu1 %v1256_v53  ;;  %vm2837_vm7 = vcmask 752640  }
 0x2b1   :  { %1641 = vmatpush1.bf16.msra.mxu1 %v1255_v52 }
 0x2b2   :  { %v2686_v57 = vpop.permute.xlu1 %1379  ;;  %v2688_v59 = vpop.permute.xlu0 %1393  ;;  %1642 = vmatprep.subr.bf16.mxu1 %v1270_v55 }
 0x2b3   :  { %1388 = vst.msk [vmem:[#allocation3 + $0x178] sm:$0xff] %vm1174_vm13, %v2686_v57  ;;  %1402 = vst.msk [vmem:[#allocation3 + $0x190] sm:$0xff] %vm1174_vm13, %v2688_v59 }
 0x2b5   :  { %1643 = vmatpush1.bf16.msra.mxu1 %v1269_v54 }
 0x2b6   :  { %v1280_v58 = vpop.permute.xlu1 %1279  ;;  %v1294_v2 = vpop.permute.xlu0 %1293 }
 0x2b7   :  { %v1283_v61 = vsel %vm295_vm8, %v2643_v20, %v1280_v58  ;;  %v1284_v3 = vsel %vm295_vm8, %v1280_v58, %v2597_v60  ;;  %v1297_v4 = vsel %vm327_vm9, %v1292_v24, %v1294_v2  ;;  %v1298_v5 = vsel %vm327_vm9, %v1294_v2, %v2611_v63  ;;  %vm2838_vm8 = vmmov %vm2837_vm7 }
 0x2b8   :  { %1644 = vmatprep.subr.bf16.mxu1 %v1284_v3  ;;  %vm2839_vm9 = vcmask 744448  }
 0x2b9   :  { %1645 = vmatpush1.bf16.msra.mxu1 %v1283_v61 }
 0x2ba   :  { %v2701_v6 = vpop.permute.xlu1 %1389  ;;  %v2703_v7 = vpop.permute.xlu0 %1403  ;;  %v1566_v8 = vld [vmem:[#allocation3 + $0x178] sm:$0xff]  ;;  %1646 = vmatprep.subr.bf16.mxu1 %v1298_v5  ;;  %v1569_v15 = vld [vmem:[#allocation3 + $0x190] sm:$0xff] }
 0x2bb   :  { %1952 = vmatprep.subr.bf16.mxu0 %v1566_v8 }
 0x2bc   :  { %1953 = vmatpush3.bf16.msra.mxu0 %v1542_v9 }
 0x2bd   :  { %1755 = vmatprep.subr.bf16.mxu0 %v2055_v19  ;;  %1647 = vmatpush1.bf16.msra.mxu1 %v1297_v4 }
 0x2be   :  { %v1308_v60 = vpop.permute.xlu1 %1307  ;;  %v1322_v63 = vpop.permute.xlu0 %1321 }
 0x2bf   :  { %v1311_v11 = vsel %vm359_vm10, %v2645_v23, %v1308_v60  ;;  %v1312_v12 = vsel %vm359_vm10, %v1308_v60, %v2609_v62  ;;  %v1325_v13 = vsel %vm391_vm11, %v2649_v26, %v1322_v63  ;;  %v1326_v14 = vsel %vm391_vm11, %v1322_v63, %v2623_v1  ;;  %1747 = vmatmul.mubr.bf16.vlgmr.msra.gmra.mrb[4].mxu0 %v2708_v10  ;;  %vm2840_vm10 = vmmov %vm2839_vm9 }
 0x2c0   :  { %1756 = vmatpush1.bf16.msra.mxu0 %v1569_v15  ;;  %1648 = vmatprep.subr.bf16.mxu1 %v1312_v12  ;;  %vm2841_vm11 = vcmask 736256   ;;  %v2039_v15 = vld [vmem:[%s2806_s4 + $0x8] ss:$16 sps:$4 sm:$0xff]  }
 0x2c1   :  { %1649 = vmatpush1.bf16.msra.mxu1 %v1311_v11  ;;  %1757 = vmatprep.subr.bf16.mxu0 %v2055_v19  ;;  %vm2842_vm0 = vmmov %vm2841_vm11 }
 0x2c2   :  { %v1408_v17 = vpop.permute.xlu1 %1407  ;;  %v1422_v62 = vpop.permute.xlu0 %1421  ;;  %1650 = vmatprep.subr.bf16.mxu1 %v1326_v14  ;;  %1915 = vmatprep.mubr.msk.bf16.mxu0 %vm956_vm15, %v2037_v16 }
 0x2c3   :  { %1416 = vst.msk [vmem:[#allocation3 + $0x1a8] sm:$0xff] %vm1174_vm13, %v1408_v17  ;;  %1430 = vst.msk [vmem:[#allocation3 + $0x1c0] sm:$0xff] %vm1174_vm13, %v1422_v62 }
 0x2c5   :  { %1651 = vmatpush1.bf16.msra.mxu1 %v1325_v13 }
 0x2c6   :  { %v1336_v1 = vpop.permute.xlu1 %1335  ;;  %v1350_v18 = vpop.permute.xlu0 %1349 }
 0x2c7   :  { %v1339_v20 = vsel %vm2831_vm1, %v2647_v25, %v1336_v1  ;;  %v1340_v21 = vsel %vm2832_vm2, %v1336_v1, %v2621_v0  ;;  %v1353_v22 = vsel %vm2833_vm3, %v2651_v28, %v1350_v18  ;;  %v1354_v23 = vsel %vm2834_vm4, %v1350_v18, %v2662_v37 }
 0x2c8   :  { %1652 = vmatprep.subr.bf16.mxu1 %v1340_v21  ;;  %vm2845_vm1 = vcmask 719872   ;;  %vm2849_vm4 = vcmask 646144  }
 0x2c9   :  { %1653 = vmatpush1.bf16.msra.mxu1 %v1339_v20  ;;  %vm2846_vm2 = vmmov %vm2845_vm1 }
 0x2ca   :  { %v1418_v24 = vpop.permute.xlu1 %1417  ;;  %v1432_v26 = vpop.permute.xlu0 %1431  ;;  %v1572_v27 = vld [vmem:[#allocation3 + $0x1a8] sm:$0xff]  ;;  %1654 = vmatprep.subr.bf16.mxu1 %v1354_v23  ;;  %v1575_v30 = vld [vmem:[#allocation3 + $0x1c0] sm:$0xff] }
 0x2cb   :  { %1758 = vmatpush1.bf16.msra.mxu0 %v1572_v27 }
 0x2cc   :  { %1759 = vmatprep.subr.bf16.mxu0 %v2055_v19 }
 0x2cd   :  { %1655 = vmatpush1.bf16.msra.mxu1 %v1353_v22 }
 0x2ce   :  { %v1364_v25 = vpop.permute.xlu1 %1363  ;;  %v1378_v29 = vpop.permute.xlu0 %1377 }
 0x2cf   :  { %v1367_v0 = vsel %vm2835_vm5, %v2676_v45, %v1364_v25  ;;  %v1368_v28 = vsel %vm2836_vm6, %v1364_v25, %v2664_v38  ;;  %v1381_v31 = vsel %vm2837_vm7, %v2678_v46, %v1378_v29  ;;  %v1382_v32 = vsel %vm2838_vm8, %v1378_v29, %v2686_v57  ;;  %1760 = vmatpush1.bf16.msra.mxu0 %v1575_v30  ;;  %vm2850_vm5 = vmmov %vm2849_vm4 }
 0x2d0   :  { %1656 = vmatprep.subr.bf16.mxu1 %v1368_v28  ;;  %1761 = vmatprep.subr.bf16.mxu0 %v2055_v19  ;;  %vm2851_vm6 = vcmask 637952   ;;  %vm2853_vm8 = vcmask 629760  }
 0x2d1   :  { %1657 = vmatpush1.bf16.msra.mxu1 %v1367_v0  ;;  %vm2852_vm7 = vmmov %vm2851_vm6 }
 0x2d2   :  { %v1436_v33 = vpop.permute.xlu1 %1435  ;;  %v1450_v34 = vpop.permute.xlu0 %1449  ;;  %1658 = vmatprep.subr.bf16.mxu1 %v1382_v32 }
 0x2d3   :  { %1444 = vst.msk [vmem:[#allocation3 + $0x1d8] sm:$0xff] %vm1174_vm13, %v1436_v33  ;;  %1458 = vst.msk [vmem:[#allocation3 + $0x1f0] sm:$0xff] %vm1174_vm13, %v1450_v34 }
 0x2d5   :  { %1659 = vmatpush1.bf16.msra.mxu1 %v1381_v31 }
 0x2d6   :  { %v1392_v35 = vpop.permute.xlu1 %1391  ;;  %v1406_v36 = vpop.permute.xlu0 %1405 }
 0x2d7   :  { %v1395_v37 = vsel %vm2839_vm9, %v2701_v6, %v1392_v35  ;;  %v1396_v38 = vsel %vm2840_vm10, %v1392_v35, %v2688_v59  ;;  %v1409_v39 = vsel %vm2841_vm11, %v2703_v7, %v1406_v36  ;;  %v1410_v40 = vsel %vm2842_vm0, %v1406_v36, %v1408_v17  ;;  %vm2854_vm9 = vmmov %vm2853_vm8 }
 0x2d8   :  { %1671 = vmatprep.subr.bf16.mxu1 %v1396_v38  ;;  %1661 = vmatmul.mubr.bf16.vlgmr.msra.gmra.mrb[8].mxu1 %v2708_v10  ;;  %vm2855_vm10 = vcmask 621568  }
 0x2d9   :  { %1672 = vmatpush1.bf16.msra.mxu1 %v1395_v37  ;;  %1914 = vmatprep.mubr.msk.bf16.mxu1 %vm956_vm15, %v2037_v16  ;;  %vm2847_vm15 = vcmask 654336   ;;  %vm2856_vm11 = vmmov %vm2855_vm10 }
 0x2da   :  { %v1446_v41 = vpop.permute.xlu1 %1445  ;;  %v1460_v42 = vpop.permute.xlu0 %1459  ;;  %v1578_v43 = vld [vmem:[#allocation3 + $0x1d8] sm:$0xff]  ;;  %1673 = vmatprep.subr.bf16.mxu1 %v1410_v40  ;;  %v1581_v46 = vld [vmem:[#allocation3 + $0x1f0] sm:$0xff]  ;;  %vm2848_vm3 = vmmov %vm2847_vm15 }
 0x2db   :  { %1762 = vmatpush1.bf16.msra.mxu0 %v1578_v43 }
 0x2dc   :  { %1763 = vmatprep.subr.bf16.mxu0 %v2055_v19 }
 0x2dd   :  { %1674 = vmatpush1.bf16.msra.mxu1 %v1409_v39 }
 0x2de   :  { %v1420_v44 = vpop.permute.xlu1 %1419  ;;  %v1434_v45 = vpop.permute.xlu0 %1433 }
 0x2df   :  { %v1423_v47 = vsel %vm2843_vm14, %v1418_v24, %v1420_v44  ;;  %v1424_v48 = vsel %vm2844_vm12, %v1420_v44, %v1422_v62  ;;  %v1437_v49 = vsel %vm2845_vm1, %v1432_v26, %v1434_v45  ;;  %v1438_v50 = vsel %vm2846_vm2, %v1434_v45, %v1436_v33  ;;  %1764 = vmatpush1.bf16.msra.mxu0 %v1581_v46 }
 0x2e0   :  { %1675 = vmatprep.subr.bf16.mxu1 %v1424_v48  ;;  %1765 = vmatprep.subr.bf16.mxu0 %v2055_v19 }
 0x2e1   :  { %1676 = vmatpush1.bf16.msra.mxu1 %v1423_v47 }
 0x2e2   :  { %v1464_v51 = vpop.permute.xlu1 %1463  ;;  %v1478_v52 = vpop.permute.xlu0 %1477  ;;  %1677 = vmatprep.subr.bf16.mxu1 %v1438_v50 }
 0x2e3   :  { %1472 = vst.msk [vmem:[#allocation3 + $0x208] sm:$0xff] %vm1174_vm13, %v1464_v51  ;;  %1486 = vst.msk [vmem:[#allocation3 + $0x220] sm:$0xff] %vm1174_vm13, %v1478_v52 }
 0x2e5   :  { %1678 = vmatpush1.bf16.msra.mxu1 %v1437_v49 }
 0x2e6   :  { %v1448_v53 = vpop.permute.xlu1 %1447  ;;  %v1462_v54 = vpop.permute.xlu0 %1461 }
 0x2e7   :  { %v1451_v55 = vsel %vm2847_vm15, %v1446_v41, %v1448_v53  ;;  %v1452_v56 = vsel %vm2848_vm3, %v1448_v53, %v1450_v34  ;;  %v1465_v57 = vsel %vm2849_vm4, %v1460_v42, %v1462_v54  ;;  %v1466_v59 = vsel %vm2850_vm5, %v1462_v54, %v1464_v51 }
 0x2e8   :  { %1679 = vmatprep.subr.bf16.mxu1 %v1452_v56 }
 0x2e9   :  { %1680 = vmatpush1.bf16.msra.mxu1 %v1451_v55 }
 0x2ea   :  { %v1474_v58 = vpop.permute.xlu1 %1473  ;;  %v1488_v2 = vpop.permute.xlu0 %1487  ;;  %v1584_v61 = vld [vmem:[#allocation3 + $0x208] sm:$0xff]  ;;  %1681 = vmatprep.subr.bf16.mxu1 %v1466_v59  ;;  %v1587_v5 = vld [vmem:[#allocation3 + $0x220] sm:$0xff] }
 0x2eb   :  { %1766 = vmatpush1.bf16.msra.mxu0 %v1584_v61 }
 0x2ec   :  { %1767 = vmatprep.subr.bf16.mxu0 %v2055_v19 }
 0x2ed   :  { %1682 = vmatpush1.bf16.msra.mxu1 %v1465_v57 }
 0x2ee   :  { %v1476_v3 = vpop.permute.xlu1 %1475  ;;  %v1490_v4 = vpop.permute.xlu0 %1489 }
 0x2ef   :  { %v1479_v6 = vsel %vm2851_vm6, %v1474_v58, %v1476_v3  ;;  %v1480_v7 = vsel %vm2852_vm7, %v1476_v3, %v1478_v52  ;;  %v1493_v8 = vsel %vm2853_vm8, %v1488_v2, %v1490_v4  ;;  %1768 = vmatpush1.bf16.msra.mxu0 %v1587_v5 }
 0x2f0   :  { %1683 = vmatprep.subr.bf16.mxu1 %v1480_v7  ;;  %1769 = vmatprep.subr.bf16.mxu0 %v2055_v19 }
 0x2f1   :  { %1684 = vmatpush1.bf16.msra.mxu1 %v1479_v6 }
 0x2f2   :  { %v1492_v9 = vpop.permute.xlu1 %1491 }
 0x2f3   :  { %v1494_v10 = vsel %vm2854_vm9, %v1490_v4, %v1492_v9  ;;  %1500 = vst.msk [vmem:[#allocation3 + $0x238] sm:$0xff] %vm1174_vm13, %v1492_v9  ;;  %v1506_v60 = vpop.permute.xlu0 %1505 }
 0x2f4   :  { %1514 = vst.msk [vmem:[#allocation3 + $0x250] sm:$0xff] %vm1174_vm13, %v1506_v60  ;;  %1685 = vmatprep.subr.bf16.mxu1 %v1494_v10 }
 0x2f5   :  { %1686 = vmatpush1.bf16.msra.mxu1 %v1493_v8 }
 0x2f6   :  { %v1504_v63 = vpop.permute.xlu1 %1503 }
 0x2f7   :  { %v1508_v11 = vsel %vm2855_vm10, %v1504_v63, %v1506_v60 }
 0x2f8   :  { %1687 = vmatprep.subr.bf16.mxu1 %v1508_v11 }
 0x2fa   :  { %v1502_v12 = vpop.permute.xlu1 %1501  ;;  %v1590_v13 = vld [vmem:[#allocation3 + $0x238] sm:$0xff] }
 0x2fb   :  { %v1507_v14 = vsel %vm2856_vm11, %v1502_v12, %v1504_v63  ;;  %1770 = vmatpush1.bf16.msra.mxu0 %v1590_v13  ;;  %v1593_v16 = vld [vmem:[#allocation3 + $0x250] sm:$0xff] }
 0x2fc   :  { %1771 = vmatprep.subr.bf16.mxu0 %v2055_v19  ;;  %1688 = vmatpush1.bf16.msra.mxu1 %v1507_v14 }
 0x2ff   :  { %1772 = vmatpush1.bf16.msra.mxu0 %v1593_v16  ;;  %1704 = vmatmul.mubr.bf16.vlgmr.msra.gmra.mrb[8].mxu1 %v2039_v15 }
 0x302   :  { %1788 = vmatmul.mubr.bf16.vlgmr.msra.gmra.mrb[8].mxu0 %v2039_v15 }
 0x304   :  { %v1599_v22 = vpop.permute.xlu0 %1598 }
 0x30b   :  { %v1604_v27 = vpop.permute.xlu1 %1603 }
 0x392   :  { %v1954_v17 = vpop.f32.mrb[4].mxu0 }
 0x393   :  { %v1955_v62 = vpop.f32.mrb[5].mxu0 }
 0x394   :  { %v1956_v1 = vadd.f32 %v1955_v62, %v1954_v17  ;;  %v1957_v18 = vpop.f32.mrb[6].mxu0 }
 0x395   :  { %v1958_v20 = vpop.f32.mrb[7].mxu0 }
 0x396   :  { %v1959_v21 = vadd.f32 %v1958_v20, %v1957_v18  ;;  %v1749_v25 = vadd.f32 %v1956_v1, %v1599_v22 }
 0x398   :  { %v1752_v0 = vadd.f32 %v1959_v21, %v1604_v27 }
 0x3d2   :  { %v1705_v23 = vpop.f32.mrb[8].mxu1 }
 0x3d3   :  { %v1964_v24 = vadd.f32 %v1705_v23, %v1599_v22  ;;  %v1707_v26 = vpop.f32.mrb[9].mxu1 }
 0x3d4   :  { %v1965_v29 = vadd.f32 %v1707_v26, %v1599_v22  ;;  %v1709_v30 = vpop.f32.mrb[10].mxu1 }
 0x3d5   :  { %v1789_v19 = vpop.f32.mrb[8].mxu0  ;;  %vm1796_vm0 = vcmp.ge.f32.partialorder %v1964_v24, 0.0  ;;  %v1802_v28 = vmul.f32 0.1, %v1964_v24  ;;  %v1966_v31 = vadd.f32 %v1709_v30, %v1604_v27  ;;  %v1711_v32 = vpop.f32.mrb[11].mxu1 }
 0x3d6   :  { %v1790_v33 = vadd.f32 %v1789_v19, %v1749_v25  ;;  %v1791_v34 = vpop.f32.mrb[9].mxu0  ;;  %vm1797_vm14 = vcmp.ge.f32.partialorder %v1965_v29, 0.0  ;;  %v1803_v35 = vmul.f32 0.1, %v1965_v29  ;;  %v1967_v36 = vadd.f32 %v1711_v32, %v1604_v27 }
 0x3d7   :  { %v1792_v37 = vpop.f32.mrb[10].mxu0  ;;  %v1808_v38 = vsel %vm1796_vm0, %v1964_v24, %v1802_v28  ;;  %vm1799_vm12 = vcmp.ge.f32.partialorder %v1966_v31, 0.0  ;;  %v1805_v39 = vmul.f32 0.1, %v1966_v31 }
 0x3d8   :  { %vm1798_vm1 = vcmp.ge.f32.partialorder %v1790_v33, 0.0  ;;  %v1804_v40 = vmul.f32 0.1, %v1790_v33  ;;  %v1793_v41 = vadd.f32 %v1792_v37, %v1752_v0  ;;  %1814 = vst [vmem:[%s2808_s6] sm:$0xff] %v1808_v38  ;;  %v1809_v42 = vsel %vm1797_vm14, %v1965_v29, %v1803_v35  ;;  %v1794_v43 = vpop.f32.mrb[11].mxu0 }
 0x3d9   :  { %1815 = vst [vmem:[%s2808_s6 + $0x8] sm:$0xff] %v1809_v42  ;;  %v1811_v44 = vsel %vm1799_vm12, %v1966_v31, %v1805_v39  ;;  %vm1800_vm2 = vcmp.ge.f32.partialorder %v1967_v36, 0.0  ;;  %v1806_v45 = vmul.f32 0.1, %v1967_v36 }
 0x3da   :  { %v1810_v46 = vsel %vm1798_vm1, %v1790_v33, %v1804_v40  ;;  %vm1801_vm15 = vcmp.ge.f32.partialorder %v1793_v41, 0.0  ;;  %v1807_v47 = vmul.f32 0.1, %v1793_v41  ;;  %1817 = vst [vmem:[%s2808_s6 + $0x18] sm:$0xff] %v1811_v44 }
 0x3db   :  { %1816 = vst.msk [vmem:[%s2808_s6 + $0x10] sm:$0xff] %vm1174_vm13, %v1810_v46  ;;  %v1812_v48 = vsel %vm1800_vm2, %v1967_v36, %v1806_v45 }
 0x3dc   :  { %v1813_v49 = vsel %vm1801_vm15, %v1793_v41, %v1807_v47  ;;  %1818 = vst [vmem:[%s2808_s6 + $0x20] sm:$0xff] %v1812_v48 }
 0x3dd   :  { %1819 = vst.msk [vmem:[%s2808_s6 + $0x28] sm:$0xff] %vm1174_vm13, %v1813_v49 }

// kernel: net_forward.8
= control target key start
LH: loop header
LB: loop body
LE: loop exit
PB: predicated region body
PF: predicated region fallthrough
CT: control target
= control target key end

     0   :  { %s1413_s16 = smov 127   ;;  %s1414_s21 = smov 126   ;;  %vm37_vm0 = vcmask 261120   ;;  %v1428_v19 = vmov 0   ;;  %vm62_vm1 = vcmask 1039360   ;;  %vm94_vm2 = vcmask 1031168   ;;  %s1714_s0 = inlined_call_operand.vmem [shape: bf16[16,340], index: 0, kind: input, shape index: {}]   ;;  %s1715_s1 = inlined_call_operand.vmem [shape: bf16[32,400], index: 1, kind: input, shape index: {}]   ;;  %s1716_s2 = inlined_call_operand.vmem [shape: f32[32,1], index: 2, kind: input, shape index: {}]   ;;  %s1717_s3 = inlined_call_operand.vmem [shape: f32[32,288], index: 3, kind: output, shape index: {}]  }
   0x1   :  { %v1461_v0 = vld [vmem:[%s1714_s0 + $0x4] ss:$12 sps:$4 sm:$0xff]   ;;  %v1466_v1 = vld [vmem:[%s1714_s0] ss:$12 sps:$4 sm:$0xff]   ;;  %v1376_v2 = vld [vmem:[%s1714_s0 + $0x8] ss:$12 sps:$4 sm:$0xff]   ;;  %1372 = vset.pattern.permute.xlu1 %v1428_v19  ;;  %1371 = vset.pattern.permute.xlu0 %v1428_v19 }
   0x2   :  { %58 = vrot.lane.b32.xlu0 %v1461_v0, %s1413_s16  ;;  %959 = vmatprep.subr.bf16.mxu0 %v1461_v0  ;;  %v1377_v3 = vld [vmem:[%s1714_s0 + $0x8] ss:$12 sps:$4 sm:$0xff]   ;;  %s1415_s24 = smov 125   ;;  %s1416_s27 = smov 124   ;;  %vm126_vm3 = vcmask 1022976   ;;  %vm158_vm4 = vcmask 1014784  }
   0x3   :  { %56 = vrot.lane.b32.xlu1 %v1466_v1, %s1413_s16  ;;  %960 = vmatpush1.bf16.msra.mxu0 %v1466_v1  ;;  %v1378_v4 = vld [vmem:[%s1714_s0 + $0x8] ss:$12 sps:$4 sm:$0xff]   ;;  %s1417_s30 = smov 116   ;;  %s1418_s6 = smov 115   ;;  %vm190_vm5 = vcmask 949248   ;;  %vm222_vm6 = vcmask 941056  }
   0x4   :  { %v1379_v5 = vld [vmem:[%s1714_s0 + $0x8] ss:$12 sps:$4 sm:$0xff]   ;;  %s1419_s11 = smov 114   ;;  %s1420_s14 = smov 113   ;;  %v890_v58 = vld [vmem:[%s1716_s2] sm:$0xff]  ;;  %vm254_vm7 = vcmask 932864  }
   0x5   :  { %v1380_v6 = vld [vmem:[%s1714_s0 + $0x8] ss:$12 sps:$4 sm:$0xff]   ;;  %s1421_s17 = smov 112   ;;  %s1422_s20 = smov 104   ;;  %v893_v61 = vld [vmem:[%s1716_s2 + $0x18] sm:$0xff]  ;;  %vm286_vm8 = vcmask 924672  }
   0x6   :  { %60 = vrot.lane.b32.xlu0 %v1376_v2, %s1413_s16  ;;  %v1381_v7 = vld [vmem:[%s1714_s0 + $0x8] ss:$12 sps:$4 sm:$0xff]   ;;  %s1423_s23 = smov 103   ;;  %s1424_s26 = smov 102   ;;  %vm318_vm9 = vcmask 916480   ;;  %vm350_vm10 = vcmask 850944  }
   0x7   :  { %90 = vrot.lane.b32.xlu1 %v1461_v0, %s1414_s21  ;;  %v1400_v8 = vld [vmem:[%s1714_s0 + $0x8] ss:$12 sps:$4 sm:$0xff]   ;;  %s1425_s29 = smov 101   ;;  %s1426_s5 = smov 100   ;;  %vm382_vm11 = vcmask 842752   ;;  %vm414_vm12 = vcmask 834560  }
   0x8   :  { %v1382_v9 = vld [vmem:[%s1714_s0 + $0x8] ss:$12 sps:$4 sm:$0xff]   ;;  %38 = vst.msk [vmem:[#allocation2 + $0x10] sm:$0xff] %vm37_vm0, %v1400_v8  ;;  %s1427_s10 = smov 92   ;;  %s1429_s13 = smov 91   ;;  %vm446_vm13 = vcmask 826368  }
   0x9   :  { %v1383_v10 = vld [vmem:[%s1714_s0 + $0x8] ss:$12 sps:$4 sm:$0xff]   ;;  %s1430_s16 = smov 90   ;;  %s1431_s19 = smov 89   ;;  %vm478_vm14 = vcmask 818176   ;;  %vm510_vm15 = vcmask 752640  }
   0xa   :  { %92 = vrot.lane.b32.xlu0 %v1377_v3, %s1414_s21  ;;  %v1384_v11 = vld [vmem:[%s1714_s0 + $0x8] ss:$12 sps:$4 sm:$0xff]   ;;  %s1432_s22 = smov 88   ;;  %s1433_s25 = smov 80  }
   0xb   :  { %88 = vrot.lane.b32.xlu1 %v1466_v1, %s1414_s21  ;;  %v1385_v12 = vld [vmem:[%s1714_s0 + $0x8] ss:$12 sps:$4 sm:$0xff]   ;;  %s1434_s28 = smov 79   ;;  %s1435_s4 = smov 78  }
   0xc   :  { %v1386_v13 = vld [vmem:[%s1714_s0 + $0x8] ss:$12 sps:$4 sm:$0xff]   ;;  %s1436_s7 = smov 77  }
   0xd   :  { %v1387_v14 = vld [vmem:[%s1714_s0 + $0x8] ss:$12 sps:$4 sm:$0xff]  }
   0xe   :  { %122 = vrot.lane.b32.xlu0 %v1461_v0, %s1415_s24  ;;  %v1388_v15 = vld [vmem:[%s1714_s0 + $0x8] ss:$12 sps:$4 sm:$0xff]  }
   0xf   :  { %124 = vrot.lane.b32.xlu1 %v1378_v4, %s1415_s24  ;;  %v1389_v16 = vld [vmem:[%s1714_s0 + $0x8] ss:$12 sps:$4 sm:$0xff]  }
  0x10   :  { %v1403_v17 = vld [vmem:[%s1715_s1 + $0x4] ss:$16 sps:$4 sm:$0xff]   ;;  %v891_v59 = vld [vmem:[%s1716_s2 + $0x8] sm:$0xff] }
  0x11   :  { %v1390_v18 = vld [vmem:[%s1714_s0 + $0x8] ss:$12 sps:$4 sm:$0xff]   ;;  %1097 = vmatprep.mubr.bf16.mxu1 %v1403_v17  ;;  %991 = vmatprep.mubr.bf16.mxu0 %v1403_v17 }
  0x12   :  { %120 = vrot.lane.b32.xlu0 %v1466_v1, %s1415_s24  ;;  %v1391_v20 = vld [vmem:[%s1714_s0 + $0x8] ss:$12 sps:$4 sm:$0xff]  }
  0x13   :  { %154 = vrot.lane.b32.xlu1 %v1461_v0, %s1416_s27  ;;  %v1392_v21 = vld [vmem:[%s1714_s0 + $0x8] ss:$12 sps:$4 sm:$0xff]  }
  0x14   :  { %v1393_v22 = vld [vmem:[%s1714_s0 + $0x8] ss:$12 sps:$4 sm:$0xff]  }
  0x15   :  { %v1394_v23 = vld [vmem:[%s1714_s0 + $0x8] ss:$12 sps:$4 sm:$0xff]  }
  0x16   :  { %156 = vrot.lane.b32.xlu0 %v1379_v5, %s1416_s27  ;;  %v1395_v24 = vld [vmem:[%s1714_s0 + $0x8] ss:$12 sps:$4 sm:$0xff]  }
  0x17   :  { %152 = vrot.lane.b32.xlu1 %v1466_v1, %s1416_s27  ;;  %v1396_v28 = vld [vmem:[%s1714_s0 + $0x8] ss:$12 sps:$4 sm:$0xff]  }
  0x18   :  { %v1397_v36 = vld [vmem:[%s1714_s0 + $0x8] ss:$12 sps:$4 sm:$0xff]  }
  0x19   :  { %v1398_v40 = vld [vmem:[%s1714_s0 + $0x8] ss:$12 sps:$4 sm:$0xff]  }
  0x1a   :  { %186 = vrot.lane.b32.xlu0 %v1461_v0, %s1417_s30  ;;  %v1399_v48 = vld [vmem:[%s1714_s0 + $0x8] ss:$12 sps:$4 sm:$0xff]  }
  0x1b   :  { %188 = vrot.lane.b32.xlu1 %v1380_v6, %s1417_s30  ;;  %v892_v63 = vld [vmem:[%s1716_s2 + $0x10] sm:$0xff] }
  0x1e   :  { %184 = vrot.lane.b32.xlu0 %v1466_v1, %s1417_s30 }
  0x1f   :  { %218 = vrot.lane.b32.xlu1 %v1461_v0, %s1418_s6 }
  0x22   :  { %220 = vrot.lane.b32.xlu0 %v1381_v7, %s1418_s6 }
  0x23   :  { %216 = vrot.lane.b32.xlu1 %v1466_v1, %s1418_s6 }
  0x26   :  { %250 = vrot.lane.b32.xlu0 %v1461_v0, %s1419_s11 }
  0x27   :  { %252 = vrot.lane.b32.xlu1 %v1382_v9, %s1419_s11 }
  0x2a   :  { %248 = vrot.lane.b32.xlu0 %v1466_v1, %s1419_s11 }
  0x2b   :  { %282 = vrot.lane.b32.xlu1 %v1461_v0, %s1420_s14 }
  0x2e   :  { %284 = vrot.lane.b32.xlu0 %v1383_v10, %s1420_s14 }
  0x2f   :  { %280 = vrot.lane.b32.xlu1 %v1466_v1, %s1420_s14 }
  0x32   :  { %314 = vrot.lane.b32.xlu0 %v1461_v0, %s1421_s17 }
  0x33   :  { %316 = vrot.lane.b32.xlu1 %v1384_v11, %s1421_s17 }
  0x36   :  { %312 = vrot.lane.b32.xlu0 %v1466_v1, %s1421_s17 }
  0x37   :  { %346 = vrot.lane.b32.xlu1 %v1461_v0, %s1422_s20 }
  0x3a   :  { %348 = vrot.lane.b32.xlu0 %v1385_v12, %s1422_s20  ;;  %v817_v12 = vld [vmem:[#allocation2 + $0x10] sm:$0xff] }
  0x3b   :  { %344 = vrot.lane.b32.xlu1 %v1466_v1, %s1422_s20 }
  0x3e   :  { %378 = vrot.lane.b32.xlu0 %v1461_v0, %s1423_s23 }
  0x3f   :  { %380 = vrot.lane.b32.xlu1 %v1386_v13, %s1423_s23 }
  0x42   :  { %376 = vrot.lane.b32.xlu0 %v1466_v1, %s1423_s23 }
  0x43   :  { %410 = vrot.lane.b32.xlu1 %v1461_v0, %s1424_s26 }
  0x46   :  { %412 = vrot.lane.b32.xlu0 %v1387_v14, %s1424_s26 }
  0x47   :  { %408 = vrot.lane.b32.xlu1 %v1466_v1, %s1424_s26 }
  0x4a   :  { %442 = vrot.lane.b32.xlu0 %v1461_v0, %s1425_s29 }
  0x4b   :  { %444 = vrot.lane.b32.xlu1 %v1388_v15, %s1425_s29 }
  0x4e   :  { %440 = vrot.lane.b32.xlu0 %v1466_v1, %s1425_s29 }
  0x4f   :  { %474 = vrot.lane.b32.xlu1 %v1461_v0, %s1426_s5 }
  0x52   :  { %476 = vrot.lane.b32.xlu0 %v1389_v16, %s1426_s5 }
  0x53   :  { %472 = vrot.lane.b32.xlu1 %v1466_v1, %s1426_s5 }
  0x56   :  { %506 = vrot.lane.b32.xlu0 %v1461_v0, %s1427_s10 }
  0x57   :  { %508 = vrot.lane.b32.xlu1 %v1390_v18, %s1427_s10 }
  0x5a   :  { %504 = vrot.lane.b32.xlu0 %v1466_v1, %s1427_s10  ;;  %s1437_s10 = smov 76  }
  0x5b   :  { %538 = vrot.lane.b32.xlu1 %v1461_v0, %s1429_s13 }
  0x5e   :  { %540 = vrot.lane.b32.xlu0 %v1391_v20, %s1429_s13 }
  0x5f   :  { %536 = vrot.lane.b32.xlu1 %v1466_v1, %s1429_s13 }
  0x62   :  { %570 = vrot.lane.b32.xlu0 %v1461_v0, %s1430_s16 }
  0x63   :  { %572 = vrot.lane.b32.xlu1 %v1392_v21, %s1430_s16 }
  0x66   :  { %568 = vrot.lane.b32.xlu0 %v1466_v1, %s1430_s16 }
  0x67   :  { %602 = vrot.lane.b32.xlu1 %v1461_v0, %s1431_s19 }
  0x6a   :  { %604 = vrot.lane.b32.xlu0 %v1393_v22, %s1431_s19 }
  0x6b   :  { %600 = vrot.lane.b32.xlu1 %v1466_v1, %s1431_s19 }
  0x6e   :  { %634 = vrot.lane.b32.xlu0 %v1461_v0, %s1432_s22 }
  0x6f   :  { %636 = vrot.lane.b32.xlu1 %v1394_v23, %s1432_s22 }
  0x72   :  { %632 = vrot.lane.b32.xlu0 %v1466_v1, %s1432_s22 }
  0x73   :  { %666 = vrot.lane.b32.xlu1 %v1461_v0, %s1433_s25 }
  0x74   :  { %v59_v25 = vpop.permute.xlu0 %58 }
  0x75   :  { %v57_v26 = vpop.permute.xlu1 %56 }
  0x76   :  { %v63_v27 = vsel %vm62_vm1, %v57_v26, %v59_v25  ;;  %668 = vrot.lane.b32.xlu0 %v1395_v24, %s1433_s25 }
  0x77   :  { %664 = vrot.lane.b32.xlu1 %v1466_v1, %s1433_s25 }
  0x78   :  { %v61_v29 = vpop.permute.xlu0 %60 }
  0x79   :  { %v64_v30 = vsel %vm62_vm1, %v59_v25, %v61_v29  ;;  %70 = vst.msk [vmem:[#allocation2 + $0x28] sm:$0xff] %vm37_vm0, %v61_v29  ;;  %v91_v31 = vpop.permute.xlu1 %90  ;;  %vm542_vm1 = vcmask 744448  }
  0x7a   :  { %698 = vrot.lane.b32.xlu0 %v1461_v0, %s1434_s28  ;;  %961 = vmatprep.subr.bf16.mxu0 %v64_v30 }
  0x7b   :  { %700 = vrot.lane.b32.xlu1 %v1396_v28, %s1434_s28  ;;  %962 = vmatpush1.bf16.msra.mxu0 %v63_v27 }
  0x7c   :  { %v93_v32 = vpop.permute.xlu0 %92 }
  0x7d   :  { %v96_v33 = vsel %vm94_vm2, %v91_v31, %v93_v32  ;;  %102 = vst.msk [vmem:[#allocation2 + $0x40] sm:$0xff] %vm37_vm0, %v93_v32  ;;  %v89_v34 = vpop.permute.xlu1 %88 }
  0x7e   :  { %v95_v35 = vsel %vm94_vm2, %v89_v34, %v91_v31  ;;  %696 = vrot.lane.b32.xlu0 %v1466_v1, %s1434_s28  ;;  %963 = vmatprep.subr.bf16.mxu0 %v96_v33  ;;  %vm574_vm2 = vcmask 736256  }
  0x7f   :  { %730 = vrot.lane.b32.xlu1 %v1461_v0, %s1435_s4  ;;  %964 = vmatpush1.bf16.msra.mxu0 %v95_v35 }
  0x80   :  { %v123_v37 = vpop.permute.xlu0 %122  ;;  %v820_v23 = vld [vmem:[#allocation2 + $0x28] sm:$0xff] }
  0x81   :  { %v125_v38 = vpop.permute.xlu1 %124 }
  0x82   :  { %v128_v39 = vsel %vm126_vm3, %v123_v37, %v125_v38  ;;  %134 = vst.msk [vmem:[#allocation2 + $0x58] sm:$0xff] %vm37_vm0, %v125_v38  ;;  %732 = vrot.lane.b32.xlu0 %v1397_v36, %s1435_s4 }
  0x83   :  { %728 = vrot.lane.b32.xlu1 %v1466_v1, %s1435_s4  ;;  %965 = vmatprep.subr.bf16.mxu0 %v128_v39 }
  0x84   :  { %v121_v41 = vpop.permute.xlu0 %120  ;;  %v823_v31 = vld [vmem:[#allocation2 + $0x40] sm:$0xff] }
  0x85   :  { %v127_v42 = vsel %vm126_vm3, %v121_v41, %v123_v37  ;;  %v155_v43 = vpop.permute.xlu1 %154  ;;  %vm952_vm3 = vcmask 130048  }
  0x86   :  { %762 = vrot.lane.b32.xlu0 %v1461_v0, %s1436_s7  ;;  %966 = vmatpush1.bf16.msra.mxu0 %v127_v42 }
  0x87   :  { %764 = vrot.lane.b32.xlu1 %v1398_v40, %s1436_s7 }
  0x88   :  { %v157_v44 = vpop.permute.xlu0 %156 }
  0x89   :  { %v160_v45 = vsel %vm158_vm4, %v155_v43, %v157_v44  ;;  %166 = vst.msk [vmem:[#allocation2 + $0x70] sm:$0xff] %vm37_vm0, %v157_v44  ;;  %v153_v46 = vpop.permute.xlu1 %152  ;;  %v826_v37 = vld [vmem:[#allocation2 + $0x58] sm:$0xff] }
  0x8a   :  { %v159_v47 = vsel %vm158_vm4, %v153_v46, %v155_v43  ;;  %760 = vrot.lane.b32.xlu0 %v1466_v1, %s1436_s7  ;;  %967 = vmatprep.subr.bf16.mxu0 %v160_v45  ;;  %vm606_vm4 = vcmask 728064  }
  0x8b   :  { %794 = vrot.lane.b32.xlu1 %v1461_v0, %s1437_s10  ;;  %968 = vmatpush1.bf16.msra.mxu0 %v159_v47 }
  0x8c   :  { %v187_v49 = vpop.permute.xlu0 %186 }
  0x8d   :  { %v189_v50 = vpop.permute.xlu1 %188 }
  0x8e   :  { %v192_v51 = vsel %vm190_vm5, %v187_v49, %v189_v50  ;;  %198 = vst.msk [vmem:[#allocation2 + $0x88] sm:$0xff] %vm37_vm0, %v189_v50  ;;  %796 = vrot.lane.b32.xlu0 %v1399_v48, %s1437_s10 }
  0x8f   :  { %792 = vrot.lane.b32.xlu1 %v1466_v1, %s1437_s10  ;;  %969 = vmatprep.subr.bf16.mxu0 %v192_v51 }
  0x90   :  { %v185_v52 = vpop.permute.xlu0 %184  ;;  %v829_v45 = vld [vmem:[#allocation2 + $0x70] sm:$0xff] }
  0x91   :  { %v191_v53 = vsel %vm190_vm5, %v185_v52, %v187_v49  ;;  %v219_v54 = vpop.permute.xlu1 %218  ;;  %vm638_vm5 = vcmask 719872  }
  0x92   :  { %970 = vmatpush1.bf16.msra.mxu0 %v191_v53  ;;  %896 = vperm.xlu0 %1371, %v890_v58  }
  0x93   :  { %901 = vperm.xlu1 %1372, %v891_v59  }
  0x94   :  { %v221_v55 = vpop.permute.xlu0 %220 }
  0x95   :  { %v224_v56 = vsel %vm222_vm6, %v219_v54, %v221_v55  ;;  %230 = vst.msk [vmem:[#allocation2 + $0xa0] sm:$0xff] %vm37_vm0, %v221_v55  ;;  %v217_v57 = vpop.permute.xlu1 %216  ;;  %v832_v51 = vld [vmem:[#allocation2 + $0x88] sm:$0xff] }
  0x96   :  { %v223_v60 = vsel %vm222_vm6, %v217_v57, %v219_v54  ;;  %971 = vmatprep.subr.bf16.mxu0 %v224_v56  ;;  %911 = vperm.xlu0 %1371, %v893_v61   ;;  %vm670_vm6 = vcmask 654336  }
  0x97   :  { %972 = vmatpush1.bf16.msra.mxu0 %v223_v60  ;;  %906 = vperm.xlu1 %1372, %v892_v63   ;;  %v1401_v60 = vld [vmem:[%s1715_s1] ss:$16 sps:$4 sm:$0xff]  }
  0x98   :  { %v251_v62 = vpop.permute.xlu0 %250 }
  0x99   :  { %v253_v0 = vpop.permute.xlu1 %252 }
  0x9a   :  { %v256_v1 = vsel %vm254_vm7, %v251_v62, %v253_v0  ;;  %262 = vst.msk [vmem:[#allocation2 + $0xb8] sm:$0xff] %vm37_vm0, %v253_v0 }
  0x9b   :  { %973 = vmatprep.subr.bf16.mxu0 %v256_v1 }
  0x9c   :  { %v249_v2 = vpop.permute.xlu0 %248  ;;  %v835_v59 = vld [vmem:[#allocation2 + $0xa0] sm:$0xff] }
  0x9d   :  { %v255_v3 = vsel %vm254_vm7, %v249_v2, %v251_v62  ;;  %v283_v4 = vpop.permute.xlu1 %282  ;;  %v1404_v62 = vld [vmem:[%s1715_s1 + $0x24] ss:$16 sps:$4 sm:$0xff]   ;;  %vm702_vm7 = vcmask 646144  }
  0x9e   :  { %974 = vmatpush1.bf16.msra.mxu0 %v255_v3 }
  0xa0   :  { %v285_v5 = vpop.permute.xlu0 %284 }
  0xa1   :  { %v288_v6 = vsel %vm286_vm8, %v283_v4, %v285_v5  ;;  %294 = vst.msk [vmem:[#allocation2 + $0xd0] sm:$0xff] %vm37_vm0, %v285_v5  ;;  %v281_v7 = vpop.permute.xlu1 %280  ;;  %v838_v3 = vld [vmem:[#allocation2 + $0xb8] sm:$0xff] }
  0xa2   :  { %v287_v8 = vsel %vm286_vm8, %v281_v7, %v283_v4  ;;  %975 = vmatprep.subr.bf16.mxu0 %v288_v6  ;;  %v1406_v6 = vld [vmem:[%s1715_s1 + $0x20] ss:$16 sps:$4 sm:$0xff]   ;;  %vm734_vm8 = vcmask 637952  }
  0xa3   :  { %976 = vmatpush1.bf16.msra.mxu0 %v287_v8  ;;  %v1409_v8 = vld [vmem:[%s1715_s1 + $0xc] ss:$16 sps:$4 sm:$0xff]  }
  0xa4   :  { %v315_v9 = vpop.permute.xlu0 %314 }
  0xa5   :  { %v317_v10 = vpop.permute.xlu1 %316 }
  0xa6   :  { %v320_v11 = vsel %vm318_vm9, %v315_v9, %v317_v10  ;;  %326 = vst.msk [vmem:[#allocation2 + $0xe8] sm:$0xff] %vm37_vm0, %v317_v10 }
  0xa7   :  { %977 = vmatprep.subr.bf16.mxu0 %v320_v11 }
  0xa8   :  { %v313_v13 = vpop.permute.xlu0 %312  ;;  %v841_v14 = vld [vmem:[#allocation2 + $0xd0] sm:$0xff] }
  0xa9   :  { %v319_v15 = vsel %vm318_vm9, %v313_v13, %v315_v9  ;;  %v347_v16 = vpop.permute.xlu1 %346  ;;  %1302 = vmatprep.subr.bf16.mxu1 %v841_v14  ;;  %vm766_vm9 = vcmask 629760  }
  0xaa   :  { %1303 = vmatpush3.bf16.msra.mxu1 %v817_v12  ;;  %978 = vmatpush1.bf16.msra.mxu0 %v319_v15 }
  0xac   :  { %v349_v17 = vpop.permute.xlu0 %348 }
  0xad   :  { %v352_v18 = vsel %vm350_vm10, %v347_v16, %v349_v17  ;;  %358 = vst.msk [vmem:[#allocation2 + $0x100] sm:$0xff] %vm37_vm0, %v349_v17  ;;  %v345_v20 = vpop.permute.xlu1 %344  ;;  %v844_v21 = vld [vmem:[#allocation2 + $0xe8] sm:$0xff] }
  0xae   :  { %v351_v22 = vsel %vm350_vm10, %v345_v20, %v347_v16  ;;  %1304 = vmatprep.subr.bf16.mxu1 %v844_v21  ;;  %979 = vmatprep.subr.bf16.mxu0 %v352_v18  ;;  %vm798_vm10 = vcmask 621568  }
  0xaf   :  { %1305 = vmatpush3.bf16.msra.mxu1 %v820_v23  ;;  %980 = vmatpush1.bf16.msra.mxu0 %v351_v22 }
  0xb0   :  { %v379_v24 = vpop.permute.xlu0 %378 }
  0xb1   :  { %v381_v25 = vpop.permute.xlu1 %380 }
  0xb2   :  { %v384_v26 = vsel %vm382_vm11, %v379_v24, %v381_v25  ;;  %390 = vst.msk [vmem:[#allocation2 + $0x118] sm:$0xff] %vm37_vm0, %v381_v25 }
  0xb3   :  { %981 = vmatprep.subr.bf16.mxu0 %v384_v26 }
  0xb4   :  { %v377_v27 = vpop.permute.xlu0 %376  ;;  %v847_v28 = vld [vmem:[#allocation2 + $0x100] sm:$0xff] }
  0xb5   :  { %v383_v29 = vsel %vm382_vm11, %v377_v27, %v379_v24  ;;  %v411_v30 = vpop.permute.xlu1 %410  ;;  %1306 = vmatprep.subr.bf16.mxu1 %v847_v28 }
  0xb6   :  { %1307 = vmatpush3.bf16.msra.mxu1 %v823_v31  ;;  %982 = vmatpush1.bf16.msra.mxu0 %v383_v29 }
  0xb8   :  { %v413_v32 = vpop.permute.xlu0 %412 }
  0xb9   :  { %v416_v33 = vsel %vm414_vm12, %v411_v30, %v413_v32  ;;  %422 = vst.msk [vmem:[#allocation2 + $0x130] sm:$0xff] %vm37_vm0, %v413_v32  ;;  %v409_v34 = vpop.permute.xlu1 %408  ;;  %v850_v35 = vld [vmem:[#allocation2 + $0x118] sm:$0xff] }
  0xba   :  { %v415_v36 = vsel %vm414_vm12, %v409_v34, %v411_v30  ;;  %1308 = vmatprep.subr.bf16.mxu1 %v850_v35  ;;  %983 = vmatprep.subr.bf16.mxu0 %v416_v33 }
  0xbb   :  { %1309 = vmatpush3.bf16.msra.mxu1 %v826_v37  ;;  %984 = vmatpush1.bf16.msra.mxu0 %v415_v36 }
  0xbc   :  { %v443_v38 = vpop.permute.xlu0 %442 }
  0xbd   :  { %v445_v39 = vpop.permute.xlu1 %444 }
  0xbe   :  { %v448_v40 = vsel %vm446_vm13, %v443_v38, %v445_v39  ;;  %454 = vst.msk [vmem:[#allocation2 + $0x148] sm:$0xff] %vm37_vm0, %v445_v39 }
  0xbf   :  { %985 = vmatprep.subr.bf16.mxu0 %v448_v40 }
  0xc0   :  { %v441_v41 = vpop.permute.xlu0 %440  ;;  %v853_v42 = vld [vmem:[#allocation2 + $0x130] sm:$0xff] }
  0xc1   :  { %v447_v43 = vsel %vm446_vm13, %v441_v41, %v443_v38  ;;  %v475_v44 = vpop.permute.xlu1 %474  ;;  %1310 = vmatprep.subr.bf16.mxu1 %v853_v42 }
  0xc2   :  { %1311 = vmatpush3.bf16.msra.mxu1 %v829_v45  ;;  %986 = vmatpush1.bf16.msra.mxu0 %v447_v43 }
  0xc4   :  { %v477_v46 = vpop.permute.xlu0 %476 }
  0xc5   :  { %v480_v47 = vsel %vm478_vm14, %v475_v44, %v477_v46  ;;  %486 = vst.msk [vmem:[#allocation2 + $0x160] sm:$0xff] %vm37_vm0, %v477_v46  ;;  %v473_v48 = vpop.permute.xlu1 %472  ;;  %v856_v49 = vld [vmem:[#allocation2 + $0x148] sm:$0xff] }
  0xc6   :  { %v479_v50 = vsel %vm478_vm14, %v473_v48, %v475_v44  ;;  %1312 = vmatprep.subr.bf16.mxu1 %v856_v49  ;;  %987 = vmatprep.subr.bf16.mxu0 %v480_v47 }
  0xc7   :  { %1313 = vmatpush3.bf16.msra.mxu1 %v832_v51  ;;  %988 = vmatpush1.bf16.msra.mxu0 %v479_v50 }
  0xc8   :  { %v507_v52 = vpop.permute.xlu0 %506 }
  0xc9   :  { %v509_v53 = vpop.permute.xlu1 %508 }
  0xca   :  { %v512_v54 = vsel %vm510_vm15, %v507_v52, %v509_v53  ;;  %518 = vst.msk [vmem:[#allocation2 + $0x178] sm:$0xff] %vm37_vm0, %v509_v53 }
  0xcb   :  { %989 = vmatprep.subr.bf16.mxu0 %v512_v54 }
  0xcc   :  { %v505_v55 = vpop.permute.xlu0 %504  ;;  %v859_v56 = vld [vmem:[#allocation2 + $0x160] sm:$0xff] }
  0xcd   :  { %v511_v57 = vsel %vm510_vm15, %v505_v55, %v507_v52  ;;  %v539_v58 = vpop.permute.xlu1 %538  ;;  %1314 = vmatprep.subr.bf16.mxu1 %v859_v56  ;;  %v1407_v55 = vld [vmem:[%s1715_s1 + $0x8] ss:$16 sps:$4 sm:$0xff]   ;;  %v1410_v56 = vld [vmem:[%s1715_s1 + $0x2c] ss:$16 sps:$4 sm:$0xff]  }
  0xce   :  { %1315 = vmatpush3.bf16.msra.mxu1 %v835_v59  ;;  %990 = vmatpush1.bf16.msra.mxu0 %v511_v57 }
  0xd0   :  { %v541_v61 = vpop.permute.xlu0 %540 }
  0xd1   :  { %v544_v63 = vsel %vm542_vm1, %v539_v58, %v541_v61  ;;  %550 = vst.msk [vmem:[#allocation2 + $0x190] sm:$0xff] %vm37_vm0, %v541_v61  ;;  %v537_v0 = vpop.permute.xlu1 %536  ;;  %v862_v1 = vld [vmem:[#allocation2 + $0x178] sm:$0xff]  ;;  %992 = vmatmul.mubr.bf16.vlgmr.msra.gmra.mrb[0].mxu0 %v1401_v60 }
  0xd2   :  { %v543_v2 = vsel %vm542_vm1, %v537_v0, %v539_v58  ;;  %1316 = vmatprep.subr.bf16.mxu1 %v862_v1  ;;  %1012 = vmatprep.subr.bf16.mxu0 %v544_v63  ;;  %v1412_v58 = vld [vmem:[%s1715_s1 + $0x28] ss:$16 sps:$4 sm:$0xff]  }
  0xd3   :  { %1317 = vmatpush3.bf16.msra.mxu1 %v838_v3  ;;  %1013 = vmatpush1.bf16.msra.mxu0 %v543_v2 }
  0xd4   :  { %v571_v4 = vpop.permute.xlu0 %570  ;;  %1114 = vmatprep.subr.bf16.mxu1 %v1428_v19  ;;  %1001 = vmatprep.mubr.bf16.mxu0 %v1404_v62 }
  0xd5   :  { %v573_v5 = vpop.permute.xlu1 %572 }
  0xd6   :  { %v576_v7 = vsel %vm574_vm2, %v571_v4, %v573_v5  ;;  %582 = vst.msk [vmem:[#allocation2 + $0x1a8] sm:$0xff] %vm37_vm0, %v573_v5  ;;  %1098 = vmatmul.mubr.bf16.vlgmr.msra.gmra.mrb[0].mxu1 %v1401_v60 }
  0xd7   :  { %1014 = vmatprep.subr.bf16.mxu0 %v576_v7  ;;  %1105 = vmatprep.mubr.bf16.mxu1 %v1404_v62 }
  0xd8   :  { %v569_v9 = vpop.permute.xlu0 %568  ;;  %v865_v10 = vld [vmem:[#allocation2 + $0x190] sm:$0xff] }
  0xd9   :  { %v575_v11 = vsel %vm574_vm2, %v569_v9, %v571_v4  ;;  %v603_v12 = vpop.permute.xlu1 %602  ;;  %1115 = vmatpush1.bf16.msra.mxu1 %v865_v10  ;;  %1002 = vmatmul.mubr.bf16.gmra.mrb[4].mxu0 %v1406_v6 }
  0xda   :  { %1116 = vmatprep.subr.bf16.mxu1 %v1428_v19  ;;  %1015 = vmatpush1.bf16.msra.mxu0 %v575_v11 }
  0xdb   :  { %1298 = vmatprep.mubr.msk.bf16.mxu0 %vm952_vm3, %v1409_v8 }
  0xdc   :  { %v605_v13 = vpop.permute.xlu0 %604 }
  0xdd   :  { %v608_v14 = vsel %vm606_vm4, %v603_v12, %v605_v13  ;;  %614 = vst.msk [vmem:[#allocation2 + $0x1c0] sm:$0xff] %vm37_vm0, %v605_v13  ;;  %v601_v15 = vpop.permute.xlu1 %600  ;;  %v868_v16 = vld [vmem:[#allocation2 + $0x1a8] sm:$0xff] }
  0xde   :  { %v607_v17 = vsel %vm606_vm4, %v601_v15, %v603_v12  ;;  %1117 = vmatpush1.bf16.msra.mxu1 %v868_v16  ;;  %1016 = vmatprep.subr.bf16.mxu0 %v608_v14 }
  0xdf   :  { %1118 = vmatprep.subr.bf16.mxu1 %v1428_v19  ;;  %1017 = vmatpush1.bf16.msra.mxu0 %v607_v17 }
  0xe0   :  { %v635_v18 = vpop.permute.xlu0 %634  ;;  %1106 = vmatmul.mubr.bf16.gmra.mrb[4].mxu1 %v1406_v6 }
  0xe1   :  { %v637_v20 = vpop.permute.xlu1 %636  ;;  %1300 = vmatprep.mubr.msk.bf16.mxu1 %vm952_vm3, %v1409_v8 }
  0xe2   :  { %v640_v21 = vsel %vm638_vm5, %v635_v18, %v637_v20  ;;  %646 = vst.msk [vmem:[#allocation2 + $0x1d8] sm:$0xff] %vm37_vm0, %v637_v20 }
  0xe3   :  { %1018 = vmatprep.subr.bf16.mxu0 %v640_v21 }
  0xe4   :  { %v633_v22 = vpop.permute.xlu0 %632  ;;  %v871_v23 = vld [vmem:[#allocation2 + $0x1c0] sm:$0xff] }
  0xe5   :  { %v639_v24 = vsel %vm638_vm5, %v633_v22, %v635_v18  ;;  %v667_v25 = vpop.permute.xlu1 %666  ;;  %1119 = vmatpush1.bf16.msra.mxu1 %v871_v23 }
  0xe6   :  { %1120 = vmatprep.subr.bf16.mxu1 %v1428_v19  ;;  %1019 = vmatpush1.bf16.msra.mxu0 %v639_v24 }
  0xe8   :  { %v669_v26 = vpop.permute.xlu0 %668 }
  0xe9   :  { %v672_v27 = vsel %vm670_vm6, %v667_v25, %v669_v26  ;;  %678 = vst.msk [vmem:[#allocation2 + $0x1f0] sm:$0xff] %vm37_vm0, %v669_v26  ;;  %v665_v28 = vpop.permute.xlu1 %664  ;;  %v874_v29 = vld [vmem:[#allocation2 + $0x1d8] sm:$0xff] }
  0xea   :  { %v671_v30 = vsel %vm670_vm6, %v665_v28, %v667_v25  ;;  %1121 = vmatpush1.bf16.msra.mxu1 %v874_v29  ;;  %1020 = vmatprep.subr.bf16.mxu0 %v672_v27 }
  0xeb   :  { %1122 = vmatprep.subr.bf16.mxu1 %v1428_v19  ;;  %1021 = vmatpush1.bf16.msra.mxu0 %v671_v30 }
  0xec   :  { %v699_v31 = vpop.permute.xlu0 %698 }
  0xed   :  { %v701_v32 = vpop.permute.xlu1 %700 }
  0xee   :  { %v704_v33 = vsel %vm702_vm7, %v699_v31, %v701_v32  ;;  %710 = vst.msk [vmem:[#allocation2 + $0x208] sm:$0xff] %vm37_vm0, %v701_v32 }
  0xef   :  { %1022 = vmatprep.subr.bf16.mxu0 %v704_v33 }
  0xf0   :  { %v697_v34 = vpop.permute.xlu0 %696  ;;  %v877_v35 = vld [vmem:[#allocation2 + $0x1f0] sm:$0xff] }
  0xf1   :  { %v703_v36 = vsel %vm702_vm7, %v697_v34, %v699_v31  ;;  %v731_v37 = vpop.permute.xlu1 %730  ;;  %1123 = vmatpush1.bf16.msra.mxu1 %v877_v35 }
  0xf2   :  { %1124 = vmatprep.subr.bf16.mxu1 %v1428_v19  ;;  %1023 = vmatpush1.bf16.msra.mxu0 %v703_v36 }
  0xf4   :  { %v733_v38 = vpop.permute.xlu0 %732 }
  0xf5   :  { %v736_v39 = vsel %vm734_vm8, %v731_v37, %v733_v38  ;;  %742 = vst.msk [vmem:[#allocation2 + $0x220] sm:$0xff] %vm37_vm0, %v733_v38  ;;  %v729_v40 = vpop.permute.xlu1 %728  ;;  %v880_v41 = vld [vmem:[#allocation2 + $0x208] sm:$0xff] }
  0xf6   :  { %v735_v42 = vsel %vm734_vm8, %v729_v40, %v731_v37  ;;  %1125 = vmatpush1.bf16.msra.mxu1 %v880_v41  ;;  %1024 = vmatprep.subr.bf16.mxu0 %v736_v39 }
  0xf7   :  { %1126 = vmatprep.subr.bf16.mxu1 %v1428_v19  ;;  %1025 = vmatpush1.bf16.msra.mxu0 %v735_v42 }
  0xf8   :  { %v763_v43 = vpop.permute.xlu0 %762 }
  0xf9   :  { %v765_v44 = vpop.permute.xlu1 %764 }
  0xfa   :  { %v768_v45 = vsel %vm766_vm9, %v763_v43, %v765_v44  ;;  %774 = vst.msk [vmem:[#allocation2 + $0x238] sm:$0xff] %vm37_vm0, %v765_v44 }
  0xfb   :  { %1026 = vmatprep.subr.bf16.mxu0 %v768_v45 }
  0xfc   :  { %v761_v46 = vpop.permute.xlu0 %760  ;;  %v883_v47 = vld [vmem:[#allocation2 + $0x220] sm:$0xff] }
  0xfd   :  { %v767_v48 = vsel %vm766_vm9, %v761_v46, %v763_v43  ;;  %v795_v49 = vpop.permute.xlu1 %794  ;;  %1127 = vmatpush1.bf16.msra.mxu1 %v883_v47 }
  0xfe   :  { %1128 = vmatprep.subr.bf16.mxu1 %v1428_v19  ;;  %1027 = vmatpush1.bf16.msra.mxu0 %v767_v48 }
 0x100   :  { %v797_v50 = vpop.permute.xlu0 %796 }
 0x101   :  { %v800_v51 = vsel %vm798_vm10, %v795_v49, %v797_v50  ;;  %806 = vst.msk [vmem:[#allocation2 + $0x250] sm:$0xff] %vm37_vm0, %v797_v50  ;;  %v793_v52 = vpop.permute.xlu1 %792  ;;  %v886_v53 = vld [vmem:[#allocation2 + $0x238] sm:$0xff] }
 0x102   :  { %v799_v54 = vsel %vm798_vm10, %v793_v52, %v795_v49  ;;  %1129 = vmatpush1.bf16.msra.mxu1 %v886_v53  ;;  %1028 = vmatprep.subr.bf16.mxu0 %v800_v51 }
 0x103   :  { %1130 = vmatprep.subr.bf16.mxu1 %v1428_v19  ;;  %1029 = vmatpush1.bf16.msra.mxu0 %v799_v54 }
 0x106   :  { %1045 = vmatmul.mubr.bf16.vlgmr.msra.gmra.mrb[0].mxu0 %v1407_v55 }
 0x107   :  { %1299 = vmatprep.mubr.msk.bf16.mxu0 %vm952_vm3, %v1410_v56 }
 0x108   :  { %v889_v57 = vld [vmem:[#allocation2 + $0x250] sm:$0xff] }
 0x109   :  { %1131 = vmatpush1.bf16.msra.mxu1 %v889_v57 }
 0x10c   :  { %1147 = vmatmul.mubr.bf16.vlgmr.msra.gmra.mrb[8].mxu1 %v1407_v55 }
 0x10d   :  { %1301 = vmatprep.mubr.msk.bf16.mxu1 %vm952_vm3, %v1410_v56 }
 0x10e   :  { %1055 = vmatmul.mubr.bf16.gmra.mrb[4].mxu0 %v1412_v58 }
 0x111   :  { %v897_v6 = vpop.permute.xlu0 %896 }
 0x112   :  { %v902_v10 = vpop.permute.xlu1 %901 }
 0x114   :  { %1155 = vmatmul.mubr.bf16.gmra.mrb[12].mxu1 %v1412_v58 }
 0x115   :  { %v912_v40 = vpop.permute.xlu0 %911 }
 0x116   :  { %v907_v25 = vpop.permute.xlu1 %906 }
 0x1a9   :  { %v1318_v19 = vpop.f32.mrb[0].mxu1 }
 0x1aa   :  { %v1319_v59 = vpop.f32.mrb[1].mxu1 }
 0x1ab   :  { %v1320_v60 = vadd.f32 %v1319_v59, %v1318_v19  ;;  %v1321_v61 = vpop.f32.mrb[2].mxu1 }
 0x1ac   :  { %v1322_v62 = vpop.f32.mrb[3].mxu1 }
 0x1ad   :  { %v1323_v63 = vadd.f32 %v1322_v62, %v1321_v61  ;;  %v1100_v18 = vadd.f32 %v1320_v60, %v897_v6 }
 0x1af   :  { %v1103_v28 = vadd.f32 %v1323_v63, %v902_v10 }
 0x1b3   :  { %v1324_v0 = vpop.f32.mrb[4].mxu1 }
 0x1b4   :  { %v1325_v1 = vpop.f32.mrb[5].mxu1 }
 0x1b5   :  { %v1326_v2 = vadd.f32 %v1325_v1, %v1324_v0  ;;  %v1327_v3 = vpop.f32.mrb[6].mxu1 }
 0x1b6   :  { %v1328_v4 = vpop.f32.mrb[7].mxu1 }
 0x1b7   :  { %v1671_v5 = vadd.f32 %v1328_v4, %v1327_v3  ;;  %v1108_v47 = vadd.f32 %v1326_v2, %v907_v25 }
 0x1b9   :  { %v1111_v54 = vadd.f32 %v1671_v5, %v912_v40 }
 0x1d9   :  { %v1046_v7 = vpop.f32.mrb[0].mxu0 }
 0x1da   :  { %v1330_v8 = vadd.f32 %v1046_v7, %v897_v6  ;;  %v1048_v9 = vpop.f32.mrb[1].mxu0 }
 0x1db   :  { %v1331_v11 = vadd.f32 %v1048_v9, %v897_v6  ;;  %v1050_v12 = vpop.f32.mrb[2].mxu0 }
 0x1dc   :  { %vm1163_vm11 = vcmp.ge.f32.partialorder %v1330_v8, 0.0  ;;  %v1175_v13 = vmul.f32 0.1, %v1330_v8  ;;  %v1332_v14 = vadd.f32 %v1050_v12, %v902_v10  ;;  %v1052_v15 = vpop.f32.mrb[3].mxu0 }
 0x1dd   :  { %vm1164_vm12 = vcmp.ge.f32.partialorder %v1331_v11, 0.0  ;;  %v1176_v16 = vmul.f32 0.1, %v1331_v11  ;;  %v1333_v17 = vadd.f32 %v1052_v15, %v902_v10 }
 0x1de   :  { %v1187_v20 = vsel %vm1163_vm11, %v1330_v8, %v1175_v13  ;;  %vm1166_vm13 = vcmp.ge.f32.partialorder %v1332_v14, 0.0  ;;  %v1178_v21 = vmul.f32 0.1, %v1332_v14 }
 0x1df   :  { %v1148_v22 = vpop.f32.mrb[8].mxu1  ;;  %1199 = vst [vmem:[%s1717_s3] sm:$0xff] %v1187_v20  ;;  %v1188_v23 = vsel %vm1164_vm12, %v1331_v11, %v1176_v16  ;;  %vm1167_vm14 = vcmp.ge.f32.partialorder %v1333_v17, 0.0  ;;  %v1179_v24 = vmul.f32 0.1, %v1333_v17 }
 0x1e0   :  { %v1149_v26 = vadd.f32 %v1148_v22, %v1100_v18  ;;  %v1150_v27 = vpop.f32.mrb[9].mxu1  ;;  %1200 = vst [vmem:[%s1717_s3 + $0x8] sm:$0xff] %v1188_v23  ;;  %v1190_v29 = vsel %vm1166_vm13, %v1332_v14, %v1178_v21 }
 0x1e1   :  { %v1151_v30 = vpop.f32.mrb[10].mxu1  ;;  %1202 = vst [vmem:[%s1717_s3 + $0x18] sm:$0xff] %v1190_v29  ;;  %v1191_v31 = vsel %vm1167_vm14, %v1333_v17, %v1179_v24  ;;  %v1056_v32 = vpop.f32.mrb[4].mxu0 }
 0x1e2   :  { %vm1165_vm15 = vcmp.ge.f32.partialorder %v1149_v26, 0.0  ;;  %v1177_v33 = vmul.f32 0.1, %v1149_v26  ;;  %v1152_v34 = vadd.f32 %v1151_v30, %v1103_v28  ;;  %v1153_v35 = vpop.f32.mrb[11].mxu1  ;;  %1203 = vst [vmem:[%s1717_s3 + $0x20] sm:$0xff] %v1191_v31  ;;  %v1334_v36 = vadd.f32 %v1056_v32, %v907_v25  ;;  %v1058_v37 = vpop.f32.mrb[5].mxu0 }
 0x1e3   :  { %v1335_v38 = vadd.f32 %v1058_v37, %v907_v25  ;;  %v1060_v39 = vpop.f32.mrb[6].mxu0 }
 0x1e4   :  { %v1189_v41 = vsel %vm1165_vm15, %v1149_v26, %v1177_v33  ;;  %vm1168_vm1 = vcmp.ge.f32.partialorder %v1152_v34, 0.0  ;;  %v1180_v42 = vmul.f32 0.1, %v1152_v34  ;;  %vm1169_vm2 = vcmp.ge.f32.partialorder %v1334_v36, 0.0  ;;  %v1062_v43 = vpop.f32.mrb[7].mxu0 }
 0x1e5   :  { %1201 = vst.msk [vmem:[%s1717_s3 + $0x10] sm:$0xff] %vm37_vm0, %v1189_v41  ;;  %v1181_v44 = vmul.f32 0.1, %v1334_v36  ;;  %vm1170_vm3 = vcmp.ge.f32.partialorder %v1335_v38, 0.0  ;;  %v1182_v45 = vmul.f32 0.1, %v1335_v38  ;;  %v1336_v46 = vadd.f32 %v1060_v39, %v912_v40 }
 0x1e6   :  { %v1192_v48 = vsel %vm1168_vm1, %v1152_v34, %v1180_v42  ;;  %v1337_v49 = vadd.f32 %v1062_v43, %v912_v40 }
 0x1e7   :  { %1204 = vst.msk [vmem:[%s1717_s3 + $0x28] sm:$0xff] %vm37_vm0, %v1192_v48  ;;  %v1156_v50 = vpop.f32.mrb[12].mxu1  ;;  %v1193_v51 = vsel %vm1169_vm2, %v1334_v36, %v1181_v44  ;;  %v1194_v52 = vsel %vm1170_vm3, %v1335_v38, %v1182_v45  ;;  %vm1172_vm4 = vcmp.ge.f32.partialorder %v1336_v46, 0.0  ;;  %v1184_v53 = vmul.f32 0.1, %v1336_v46 }
 0x1e8   :  { %v1157_v55 = vadd.f32 %v1156_v50, %v1108_v47  ;;  %v1158_v56 = vpop.f32.mrb[13].mxu1  ;;  %1205 = vst [vmem:[%s1717_s3 + $0x30] sm:$0xff] %v1193_v51  ;;  %1206 = vst [vmem:[%s1717_s3 + $0x38] sm:$0xff] %v1194_v52  ;;  %vm1173_vm5 = vcmp.ge.f32.partialorder %v1337_v49, 0.0  ;;  %v1185_v57 = vmul.f32 0.1, %v1337_v49 }
 0x1e9   :  { %v1159_v58 = vpop.f32.mrb[14].mxu1  ;;  %v1196_v19 = vsel %vm1172_vm4, %v1336_v46, %v1184_v53 }
 0x1ea   :  { %vm1171_vm6 = vcmp.ge.f32.partialorder %v1157_v55, 0.0  ;;  %v1183_v59 = vmul.f32 0.1, %v1157_v55  ;;  %v1160_v60 = vadd.f32 %v1159_v58, %v1111_v54  ;;  %v1161_v61 = vpop.f32.mrb[15].mxu1  ;;  %1208 = vst [vmem:[%s1717_s3 + $0x48] sm:$0xff] %v1196_v19  ;;  %v1197_v62 = vsel %vm1173_vm5, %v1337_v49, %v1185_v57 }
 0x1eb   :  { %1209 = vst [vmem:[%s1717_s3 + $0x50] sm:$0xff] %v1197_v62 }
 0x1ec   :  { %v1195_v63 = vsel %vm1171_vm6, %v1157_v55, %v1183_v59  ;;  %vm1174_vm7 = vcmp.ge.f32.partialorder %v1160_v60, 0.0  ;;  %v1186_v0 = vmul.f32 0.1, %v1160_v60 }
 0x1ed   :  { %1207 = vst.msk [vmem:[%s1717_s3 + $0x40] sm:$0xff] %vm37_vm0, %v1195_v63 }
 0x1ee   :  { %v1198_v1 = vsel %vm1174_vm7, %v1160_v60, %v1186_v0 }
 0x1ef   :  { %1210 = vst.msk [vmem:[%s1717_s3 + $0x58] sm:$0xff] %vm37_vm0, %v1198_v1 }

// kernel: net_forward.10
= control target key start
LH: loop header
LB: loop body
LE: loop exit
PB: predicated region body
PF: predicated region fallthrough
CT: control target
= control target key end

     0   :  { %vm49_vm0 = vcmask 769024   ;;  %s1054_s25 = smov 127   ;;  %s1055_s30 = smov 126   ;;  %vm541_vm1 = vcmask 588800   ;;  %vm81_vm2 = vcmask 1039360   ;;  %vm120_vm3 = vcmask 1031168   ;;  %s1288_s0 = inlined_call_operand.vmem [shape: bf16[32,244], index: 0, kind: input, shape index: {}]   ;;  %s1289_s1 = inlined_call_operand.vmem [shape: bf16[16,288], index: 1, kind: input, shape index: {}]   ;;  %s1290_s4 = inlined_call_operand.vmem [shape: bf16[16,222], index: 4, kind: input, shape index: {}]   ;;  %s1291_s5 = inlined_call_operand.vmem [shape: bf16[16,144], index: 5, kind: input, shape index: {}]   ;;  %s1292_s2 = inlined_call_operand.vmem [shape: f32[1,222], index: 2, kind: input, shape index: {}]   ;;  %s1293_s3 = inlined_call_operand.vmem [shape: bf16[16,144], index: 3, kind: input, shape index: {}]   ;;  %s1294_s6 = inlined_call_operand.vmem [shape: f32[16,200], index: 6, kind: output, shape index: {}]  }
   0x1   :  { %v1035_v0 = vld [vmem:[%s1288_s0 + $0x10] ss:$8 sps:$4 sm:$0xff]   ;;  %v1037_v1 = vld [vmem:[%s1288_s0 + $0x14] ss:$8 sps:$4 sm:$0xff]   ;;  %v1038_v2 = vld [vmem:[%s1288_s0] ss:$8 sps:$4 sm:$0xff]  }
   0x2   :  { %77 = vrot.lane.b32.xlu1 %v1035_v0, %s1054_s25  ;;  %v1040_v3 = vld [vmem:[%s1288_s0 + $0x4] ss:$8 sps:$4 sm:$0xff]   ;;  %52 = vst.msk [vmem:[#allocation2 + $0x18] sm:$0xff] %vm49_vm0, %v1037_v1  ;;  %73 = vrot.lane.b32.xlu0 %v1038_v2, %s1054_s25  ;;  %s1056_s0 = smov 118   ;;  %s1057_s7 = smov 117   ;;  %vm159_vm4 = vcmask 965632  }
   0x3   :  { %50 = vst.msk [vmem:[#allocation2 + $0x8] sm:$0xff] %vm49_vm0, %v1040_v3  ;;  %s1058_s8 = smov 116   ;;  %s1059_s9 = smov 108   ;;  %v1043_v6 = vld [vmem:[%s1289_s1 + $0x4] ss:$12 sps:$4 sm:$0xff]   ;;  %vm198_vm5 = vcmask 957440  }
   0x4   :  { %s1060_s10 = smov 107   ;;  %s1061_s13 = smov 106   ;;  %456 = vmatprep.mubr.bf16.mxu0 %v1043_v6  ;;  %v1045_v7 = vld [vmem:[%s1290_s4 + $0x4] ss:$8 sps:$4 sm:$0xff]   ;;  %v1047_v8 = vld [vmem:[%s1290_s4] ss:$8 sps:$4 sm:$0xff]  }
   0x5   :  { %650 = vst.msk [vmem:[#allocation4 + $0x8] sm:$0xff] %vm541_vm1, %v1045_v7  ;;  %vm237_vm6 = vcmask 949248   ;;  %vm276_vm7 = vcmask 883712   ;;  %vm315_vm8 = vcmask 875520   ;;  %vm354_vm9 = vcmask 867328  }
   0x6   :  { %79 = vrot.lane.b32.xlu1 %v1037_v1, %s1054_s25  ;;  %75 = vrot.lane.b32.xlu0 %v1040_v3, %s1054_s25  ;;  %vm420_vm10 = vcmask 261120   ;;  %vm832_vm11 = vcmask 130048  }
   0x9   :  { %v372_v5 = vld [vmem:[#allocation2 + $0x18] sm:$0xff] }
   0xa   :  { %114 = vrot.lane.b32.xlu1 %v1040_v3, %s1055_s30  ;;  %v370_v4 = vld [vmem:[#allocation2 + $0x8] sm:$0xff]  ;;  %112 = vrot.lane.b32.xlu0 %v1038_v2, %s1055_s30 }
   0xb   :  { %424 = vmatprep.subr.bf16.mxu0 %v370_v4 }
   0xc   :  { %425 = vmatpush1.bf16.msra.mxu0 %v1038_v2  ;;  %v806_v9 = vld [vmem:[#allocation4 + $0x8] sm:$0xff] }
   0xd   :  { %426 = vmatprep.subr.bf16.mxu0 %v372_v5  ;;  %836 = vmatprep.subr.bf16.mxu1 %v806_v9  ;;  %v1041_v9 = vld [vmem:[%s1289_s1] ss:$12 sps:$4 sm:$0xff]  }
   0xe   :  { %118 = vrot.lane.b32.xlu1 %v1037_v1, %s1055_s30  ;;  %116 = vrot.lane.b32.xlu0 %v1035_v0, %s1055_s30 }
   0xf   :  { %837 = vmatpush1.bf16.msra.mxu1 %v1047_v8 }
  0x10   :  { %427 = vmatpush1.bf16.msra.mxu0 %v1035_v0 }
  0x12   :  { %153 = vrot.lane.b32.xlu1 %v1040_v3, %s1056_s0  ;;  %151 = vrot.lane.b32.xlu0 %v1038_v2, %s1056_s0 }
  0x16   :  { %157 = vrot.lane.b32.xlu1 %v1037_v1, %s1056_s0  ;;  %155 = vrot.lane.b32.xlu0 %v1035_v0, %s1056_s0 }
  0x1a   :  { %192 = vrot.lane.b32.xlu1 %v1040_v3, %s1057_s7  ;;  %190 = vrot.lane.b32.xlu0 %v1038_v2, %s1057_s7 }
  0x1e   :  { %196 = vrot.lane.b32.xlu1 %v1037_v1, %s1057_s7  ;;  %194 = vrot.lane.b32.xlu0 %v1035_v0, %s1057_s7 }
  0x22   :  { %231 = vrot.lane.b32.xlu1 %v1040_v3, %s1058_s8  ;;  %229 = vrot.lane.b32.xlu0 %v1038_v2, %s1058_s8 }
  0x26   :  { %235 = vrot.lane.b32.xlu1 %v1037_v1, %s1058_s8  ;;  %233 = vrot.lane.b32.xlu0 %v1035_v0, %s1058_s8 }
  0x2a   :  { %270 = vrot.lane.b32.xlu1 %v1040_v3, %s1059_s9  ;;  %268 = vrot.lane.b32.xlu0 %v1038_v2, %s1059_s9 }
  0x2e   :  { %274 = vrot.lane.b32.xlu1 %v1037_v1, %s1059_s9  ;;  %272 = vrot.lane.b32.xlu0 %v1035_v0, %s1059_s9 }
  0x32   :  { %309 = vrot.lane.b32.xlu1 %v1040_v3, %s1060_s10  ;;  %307 = vrot.lane.b32.xlu0 %v1038_v2, %s1060_s10 }
  0x36   :  { %313 = vrot.lane.b32.xlu1 %v1037_v1, %s1060_s10  ;;  %311 = vrot.lane.b32.xlu0 %v1035_v0, %s1060_s10 }
  0x3a   :  { %348 = vrot.lane.b32.xlu1 %v1040_v3, %s1061_s13  ;;  %346 = vrot.lane.b32.xlu0 %v1038_v2, %s1061_s13 }
  0x3e   :  { %352 = vrot.lane.b32.xlu1 %v1037_v1, %s1061_s13  ;;  %350 = vrot.lane.b32.xlu0 %v1035_v0, %s1061_s13 }
  0x42   :  { %663 = vrot.lane.b32.xlu1 %v1045_v7, %s1054_s25  ;;  %661 = vrot.lane.b32.xlu0 %v1047_v8, %s1054_s25 }
  0x46   :  { %682 = vrot.lane.b32.xlu1 %v1045_v7, %s1055_s30  ;;  %680 = vrot.lane.b32.xlu0 %v1047_v8, %s1055_s30 }
  0x4a   :  { %701 = vrot.lane.b32.xlu1 %v1045_v7, %s1056_s0  ;;  %699 = vrot.lane.b32.xlu0 %v1047_v8, %s1056_s0 }
  0x4e   :  { %720 = vrot.lane.b32.xlu1 %v1045_v7, %s1057_s7  ;;  %718 = vrot.lane.b32.xlu0 %v1047_v8, %s1057_s7 }
  0x52   :  { %739 = vrot.lane.b32.xlu1 %v1045_v7, %s1058_s8  ;;  %737 = vrot.lane.b32.xlu0 %v1047_v8, %s1058_s8 }
  0x56   :  { %758 = vrot.lane.b32.xlu1 %v1045_v7, %s1059_s9  ;;  %756 = vrot.lane.b32.xlu0 %v1047_v8, %s1059_s9 }
  0x5a   :  { %777 = vrot.lane.b32.xlu1 %v1045_v7, %s1060_s10  ;;  %775 = vrot.lane.b32.xlu0 %v1047_v8, %s1060_s10 }
  0x5e   :  { %796 = vrot.lane.b32.xlu1 %v1045_v7, %s1061_s13  ;;  %794 = vrot.lane.b32.xlu0 %v1047_v8, %s1061_s13 }
  0x74   :  { %v78_v10 = vpop.permute.xlu1 %77  ;;  %v74_v11 = vpop.permute.xlu0 %73 }
  0x78   :  { %v80_v12 = vpop.permute.xlu1 %79  ;;  %v76_v14 = vpop.permute.xlu0 %75 }
  0x79   :  { %v83_v13 = vsel %vm81_vm2, %v78_v10, %v80_v12  ;;  %91 = vst.msk [vmem:[#allocation2 + $0x38] sm:$0xff] %vm49_vm0, %v80_v12  ;;  %v82_v15 = vsel %vm81_vm2, %v74_v11, %v76_v14  ;;  %89 = vst.msk [vmem:[#allocation2 + $0x28] sm:$0xff] %vm49_vm0, %v76_v14  ;;  %v1062_v11 = vmov 0  }
  0x7c   :  { %v115_v16 = vpop.permute.xlu1 %114  ;;  %v113_v17 = vpop.permute.xlu0 %112 }
  0x7d   :  { %128 = vst.msk [vmem:[#allocation2 + $0x48] sm:$0xff] %vm49_vm0, %v115_v16  ;;  %v121_v18 = vsel %vm120_vm3, %v113_v17, %v115_v16 }
  0x80   :  { %v119_v19 = vpop.permute.xlu1 %118  ;;  %v374_v20 = vld [vmem:[#allocation2 + $0x28] sm:$0xff]  ;;  %v117_v21 = vpop.permute.xlu0 %116  ;;  %v376_v22 = vld [vmem:[#allocation2 + $0x38] sm:$0xff] }
  0x81   :  { %130 = vst.msk [vmem:[#allocation2 + $0x58] sm:$0xff] %vm49_vm0, %v119_v19  ;;  %428 = vmatprep.subr.bf16.mxu0 %v374_v20  ;;  %v122_v23 = vsel %vm120_vm3, %v117_v21, %v119_v19 }
  0x82   :  { %429 = vmatpush1.bf16.msra.mxu0 %v82_v15 }
  0x83   :  { %430 = vmatprep.subr.bf16.mxu0 %v376_v22 }
  0x84   :  { %v154_v24 = vpop.permute.xlu1 %153  ;;  %v152_v25 = vpop.permute.xlu0 %151  ;;  %v378_v26 = vld [vmem:[#allocation2 + $0x48] sm:$0xff] }
  0x85   :  { %167 = vst.msk [vmem:[#allocation2 + $0x68] sm:$0xff] %vm49_vm0, %v154_v24  ;;  %v160_v27 = vsel %vm159_vm4, %v152_v25, %v154_v24 }
  0x86   :  { %431 = vmatpush1.bf16.msra.mxu0 %v83_v13 }
  0x87   :  { %432 = vmatprep.subr.bf16.mxu0 %v378_v26 }
  0x88   :  { %v158_v28 = vpop.permute.xlu1 %157  ;;  %v156_v29 = vpop.permute.xlu0 %155  ;;  %v380_v30 = vld [vmem:[#allocation2 + $0x58] sm:$0xff] }
  0x89   :  { %169 = vst.msk [vmem:[#allocation2 + $0x78] sm:$0xff] %vm49_vm0, %v158_v28  ;;  %v161_v31 = vsel %vm159_vm4, %v156_v29, %v158_v28 }
  0x8a   :  { %433 = vmatpush1.bf16.msra.mxu0 %v121_v18  ;;  %v1044_v18 = vld [vmem:[%s1289_s1 + $0x8] ss:$12 sps:$4 sm:$0xff]  }
  0x8b   :  { %434 = vmatprep.subr.bf16.mxu0 %v380_v30 }
  0x8c   :  { %v193_v32 = vpop.permute.xlu1 %192  ;;  %v191_v33 = vpop.permute.xlu0 %190  ;;  %v382_v34 = vld [vmem:[#allocation2 + $0x68] sm:$0xff] }
  0x8d   :  { %206 = vst.msk [vmem:[#allocation2 + $0x88] sm:$0xff] %vm49_vm0, %v193_v32  ;;  %v199_v35 = vsel %vm198_vm5, %v191_v33, %v193_v32 }
  0x8e   :  { %435 = vmatpush1.bf16.msra.mxu0 %v122_v23 }
  0x8f   :  { %436 = vmatprep.subr.bf16.mxu0 %v382_v34 }
  0x90   :  { %v197_v36 = vpop.permute.xlu1 %196  ;;  %v195_v37 = vpop.permute.xlu0 %194  ;;  %v384_v38 = vld [vmem:[#allocation2 + $0x78] sm:$0xff] }
  0x91   :  { %208 = vst.msk [vmem:[#allocation2 + $0x98] sm:$0xff] %vm49_vm0, %v197_v36  ;;  %v200_v39 = vsel %vm198_vm5, %v195_v37, %v197_v36 }
  0x92   :  { %437 = vmatpush1.bf16.msra.mxu0 %v160_v27 }
  0x93   :  { %438 = vmatprep.subr.bf16.mxu0 %v384_v38 }
  0x94   :  { %v232_v40 = vpop.permute.xlu1 %231  ;;  %v230_v41 = vpop.permute.xlu0 %229  ;;  %v386_v42 = vld [vmem:[#allocation2 + $0x88] sm:$0xff] }
  0x95   :  { %245 = vst.msk [vmem:[#allocation2 + $0xa8] sm:$0xff] %vm49_vm0, %v232_v40  ;;  %v238_v43 = vsel %vm237_vm6, %v230_v41, %v232_v40 }
  0x96   :  { %439 = vmatpush1.bf16.msra.mxu0 %v161_v31 }
  0x97   :  { %440 = vmatprep.subr.bf16.mxu0 %v386_v42 }
  0x98   :  { %v236_v44 = vpop.permute.xlu1 %235  ;;  %v234_v45 = vpop.permute.xlu0 %233  ;;  %v388_v46 = vld [vmem:[#allocation2 + $0x98] sm:$0xff] }
  0x99   :  { %247 = vst.msk [vmem:[#allocation2 + $0xb8] sm:$0xff] %vm49_vm0, %v236_v44  ;;  %v239_v47 = vsel %vm237_vm6, %v234_v45, %v236_v44  ;;  %v1050_v45 = vld [vmem:[%s1291_s5 + $0x4] ss:$8 sps:$4 sm:$0xff]  }
  0x9a   :  { %441 = vmatpush1.bf16.msra.mxu0 %v199_v35  ;;  %1014 = vmatprep.mubr.msk.bf16.mxu1 %vm832_vm11, %v1050_v45 }
  0x9b   :  { %442 = vmatprep.subr.bf16.mxu0 %v388_v46  ;;  %v1048_v46 = vld [vmem:[%s1291_s5] ss:$8 sps:$4 sm:$0xff]  }
  0x9c   :  { %v271_v48 = vpop.permute.xlu1 %270  ;;  %v269_v49 = vpop.permute.xlu0 %268  ;;  %v390_v50 = vld [vmem:[#allocation2 + $0xa8] sm:$0xff] }
  0x9d   :  { %284 = vst.msk [vmem:[#allocation2 + $0xc8] sm:$0xff] %vm49_vm0, %v271_v48  ;;  %v277_v51 = vsel %vm276_vm7, %v269_v49, %v271_v48 }
  0x9e   :  { %443 = vmatpush1.bf16.msra.mxu0 %v200_v39 }
  0x9f   :  { %444 = vmatprep.subr.bf16.mxu0 %v390_v50  ;;  %v522_v50 = vld [vmem:[%s1292_s2] sm:$0x3] }
  0xa0   :  { %v275_v52 = vpop.permute.xlu1 %274  ;;  %v273_v53 = vpop.permute.xlu0 %272  ;;  %v392_v54 = vld [vmem:[#allocation2 + $0xb8] sm:$0xff] }
  0xa1   :  { %286 = vst.msk [vmem:[#allocation2 + $0xd8] sm:$0xff] %vm49_vm0, %v275_v52  ;;  %v278_v55 = vsel %vm276_vm7, %v273_v53, %v275_v52 }
  0xa2   :  { %445 = vmatpush1.bf16.msra.mxu0 %v238_v43 }
  0xa3   :  { %446 = vmatprep.subr.bf16.mxu0 %v392_v54 }
  0xa4   :  { %v310_v56 = vpop.permute.xlu1 %309  ;;  %v308_v57 = vpop.permute.xlu0 %307  ;;  %v394_v58 = vld [vmem:[#allocation2 + $0xc8] sm:$0xff] }
  0xa5   :  { %323 = vst.msk [vmem:[#allocation2 + $0xe8] sm:$0xff] %vm49_vm0, %v310_v56  ;;  %v316_v59 = vsel %vm315_vm8, %v308_v57, %v310_v56 }
  0xa6   :  { %447 = vmatpush1.bf16.msra.mxu0 %v239_v47  ;;  %v524_v47 = vlaneseq }
  0xa7   :  { %448 = vmatprep.subr.bf16.mxu0 %v394_v58 }
  0xa8   :  { %v314_v60 = vpop.permute.xlu1 %313  ;;  %v312_v61 = vpop.permute.xlu0 %311  ;;  %v396_v62 = vld [vmem:[#allocation2 + $0xd8] sm:$0xff]  ;;  %v525_v48 = vshrl.u32 %v524_v47, 7 }
  0xa9   :  { %325 = vst.msk [vmem:[#allocation2 + $0xf8] sm:$0xff] %vm49_vm0, %v314_v60  ;;  %v317_v63 = vsel %vm315_vm8, %v312_v61, %v314_v60 }
  0xaa   :  { %449 = vmatpush1.bf16.msra.mxu0 %v277_v51  ;;  %v526_v49 = vsub.s32 0, %v525_v48  ;;  %v530_v51 = vsub.s32 1, %v525_v48 }
  0xab   :  { %450 = vmatprep.subr.bf16.mxu0 %v396_v62 }
  0xac   :  { %v349_v0 = vpop.permute.xlu1 %348  ;;  %v347_v1 = vpop.permute.xlu0 %346  ;;  %v398_v2 = vld [vmem:[#allocation2 + $0xe8] sm:$0xff] }
  0xad   :  { %362 = vst.msk [vmem:[#allocation2 + $0x108] sm:$0xff] %vm49_vm0, %v349_v0  ;;  %v355_v3 = vsel %vm354_vm9, %v347_v1, %v349_v0 }
  0xae   :  { %451 = vmatpush1.bf16.msra.mxu0 %v278_v55  ;;  %v527_v55 = vrot.slane %v522_v50, %v526_v49 }
  0xaf   :  { %452 = vmatprep.subr.bf16.mxu0 %v398_v2 }
  0xb0   :  { %v353_v4 = vpop.permute.xlu1 %352  ;;  %v400_v5 = vld [vmem:[#allocation2 + $0xf8] sm:$0xff]  ;;  %v351_v6 = vpop.permute.xlu0 %350 }
  0xb1   :  { %364 = vst.msk [vmem:[#allocation2 + $0x118] sm:$0xff] %vm49_vm0, %v353_v4  ;;  %v356_v7 = vsel %vm354_vm9, %v351_v6, %v353_v4 }
  0xb2   :  { %453 = vmatpush1.bf16.msra.mxu0 %v316_v59  ;;  %v531_v59 = vrot.slane %v522_v50, %v530_v51 }
  0xb3   :  { %454 = vmatprep.subr.bf16.mxu0 %v400_v5 }
  0xb4   :  { %v402_v8 = vld [vmem:[#allocation2 + $0x108] sm:$0xff]  ;;  %v664_v12 = vpop.permute.xlu1 %663  ;;  %v662_v13 = vpop.permute.xlu0 %661 }
  0xb5   :  { %669 = vst.msk [vmem:[#allocation4 + $0x18] sm:$0xff] %vm541_vm1, %v664_v12  ;;  %v665_v14 = vsel %vm81_vm2, %v662_v13, %v664_v12 }
  0xb6   :  { %455 = vmatpush1.bf16.msra.mxu0 %v317_v63 }
  0xb7   :  { %467 = vmatprep.subr.bf16.mxu0 %v402_v8 }
  0xb8   :  { %v404_v10 = vld [vmem:[#allocation2 + $0x118] sm:$0xff]  ;;  %v683_v15 = vpop.permute.xlu1 %682  ;;  %v681_v16 = vpop.permute.xlu0 %680 }
  0xb9   :  { %457 = vmatmul.mubr.bf16.vlgmr.msra.gmra.mrb[0].mxu0 %v1041_v9  ;;  %688 = vst.msk [vmem:[#allocation4 + $0x28] sm:$0xff] %vm541_vm1, %v683_v15  ;;  %v684_v17 = vsel %vm120_vm3, %v681_v16, %v683_v15  ;;  %v1051_v9 = vld [vmem:[%s1293_s3 + $0x4] ss:$8 sps:$4 sm:$0xff]  }
  0xba   :  { %468 = vmatpush1.bf16.msra.mxu0 %v355_v3  ;;  %499 = vmatprep.mubr.bf16.mxu0 %v1062_v11 }
  0xbb   :  { %469 = vmatprep.subr.bf16.mxu0 %v404_v10 }
  0xbc   :  { %v702_v19 = vpop.permute.xlu1 %701  ;;  %v808_v20 = vld [vmem:[#allocation4 + $0x18] sm:$0xff]  ;;  %v700_v21 = vpop.permute.xlu0 %699 }
  0xbd   :  { %707 = vst.msk [vmem:[#allocation4 + $0x38] sm:$0xff] %vm541_vm1, %v702_v19  ;;  %838 = vmatprep.subr.bf16.mxu1 %v808_v20  ;;  %v703_v22 = vsel %vm159_vm4, %v700_v21, %v702_v19 }
  0xbe   :  { %470 = vmatpush1.bf16.msra.mxu0 %v356_v7  ;;  %839 = vmatpush1.bf16.msra.mxu1 %v665_v14 }
  0xc0   :  { %v721_v23 = vpop.permute.xlu1 %720  ;;  %v810_v24 = vld [vmem:[#allocation4 + $0x28] sm:$0xff]  ;;  %v719_v25 = vpop.permute.xlu0 %718 }
  0xc1   :  { %726 = vst.msk [vmem:[#allocation4 + $0x48] sm:$0xff] %vm541_vm1, %v721_v23  ;;  %840 = vmatprep.subr.bf16.mxu1 %v810_v24  ;;  %v722_v26 = vsel %vm198_vm5, %v719_v25, %v721_v23 }
  0xc2   :  { %841 = vmatpush1.bf16.msra.mxu1 %v684_v17 }
  0xc4   :  { %v740_v27 = vpop.permute.xlu1 %739  ;;  %v812_v28 = vld [vmem:[#allocation4 + $0x38] sm:$0xff]  ;;  %v738_v29 = vpop.permute.xlu0 %737 }
  0xc5   :  { %993 = vmatmul.mubr.msk.bf16.vlgmr.msra.gmra.mrb[0].mxu0 %vm420_vm10, %v1044_v18  ;;  %745 = vst.msk [vmem:[#allocation4 + $0x58] sm:$0xff] %vm541_vm1, %v740_v27  ;;  %842 = vmatprep.subr.bf16.mxu1 %v812_v28  ;;  %v741_v30 = vsel %vm237_vm6, %v738_v29, %v740_v27 }
  0xc6   :  { %843 = vmatpush1.bf16.msra.mxu1 %v703_v22 }
  0xc8   :  { %v759_v31 = vpop.permute.xlu1 %758  ;;  %v814_v32 = vld [vmem:[#allocation4 + $0x48] sm:$0xff]  ;;  %v757_v33 = vpop.permute.xlu0 %756 }
  0xc9   :  { %764 = vst.msk [vmem:[#allocation4 + $0x68] sm:$0xff] %vm541_vm1, %v759_v31  ;;  %844 = vmatprep.subr.bf16.mxu1 %v814_v32  ;;  %v760_v34 = vsel %vm276_vm7, %v757_v33, %v759_v31 }
  0xca   :  { %845 = vmatpush1.bf16.msra.mxu1 %v722_v26 }
  0xcc   :  { %v778_v35 = vpop.permute.xlu1 %777  ;;  %v816_v36 = vld [vmem:[#allocation4 + $0x58] sm:$0xff]  ;;  %v776_v37 = vpop.permute.xlu0 %775 }
  0xcd   :  { %783 = vst.msk [vmem:[#allocation4 + $0x78] sm:$0xff] %vm541_vm1, %v778_v35  ;;  %846 = vmatprep.subr.bf16.mxu1 %v816_v36  ;;  %v779_v38 = vsel %vm315_vm8, %v776_v37, %v778_v35 }
  0xce   :  { %847 = vmatpush1.bf16.msra.mxu1 %v741_v30 }
  0xd0   :  { %v797_v39 = vpop.permute.xlu1 %796  ;;  %v818_v40 = vld [vmem:[#allocation4 + $0x68] sm:$0xff]  ;;  %v795_v42 = vpop.permute.xlu0 %794 }
  0xd1   :  { %802 = vst.msk [vmem:[#allocation4 + $0x88] sm:$0xff] %vm541_vm1, %v797_v39  ;;  %848 = vmatprep.subr.bf16.mxu1 %v818_v40  ;;  %v798_v43 = vsel %vm354_vm9, %v795_v42, %v797_v39  ;;  %v1053_v42 = vld [vmem:[%s1293_s3] ss:$8 sps:$4 sm:$0xff]  }
  0xd2   :  { %849 = vmatpush1.bf16.msra.mxu1 %v760_v34 }
  0xd4   :  { %v820_v41 = vld [vmem:[#allocation4 + $0x78] sm:$0xff] }
  0xd5   :  { %850 = vmatprep.subr.bf16.mxu1 %v820_v41 }
  0xd6   :  { %851 = vmatpush1.bf16.msra.mxu1 %v779_v38 }
  0xd8   :  { %v822_v44 = vld [vmem:[#allocation4 + $0x88] sm:$0xff] }
  0xd9   :  { %852 = vmatprep.subr.bf16.mxu1 %v822_v44 }
  0xda   :  { %853 = vmatpush1.bf16.msra.mxu1 %v798_v43 }
  0xdd   :  { %869 = vmatmul.mubr.bf16.vlgmr.msra.gmra.mrb[0].mxu1 %v1048_v46 }
  0xde   :  { %1017 = vmatprep.mubr.msk.bf16.mxu1 %vm832_vm11, %v1051_v9 }
 0x198   :  { %v501_v52 = vpop.f32.mrb[0].mxu0 }
 0x199   :  { %vm510_vm12 = vcmp.ge.f32.partialorder %v501_v52, 0.0  ;;  %v514_v53 = vmul.f32 0.1, %v501_v52  ;;  %v503_v54 = vpop.f32.mrb[1].mxu0 }
 0x19a   :  { %vm511_vm13 = vcmp.ge.f32.partialorder %v503_v54, 0.0  ;;  %v515_v56 = vmul.f32 0.1, %v503_v54  ;;  %v505_v57 = vpop.f32.mrb[2].mxu0 }
 0x19b   :  { %v518_v58 = vsel %vm510_vm12, %v501_v52, %v514_v53  ;;  %vm512_vm14 = vcmp.ge.f32.partialorder %v505_v57, 0.0  ;;  %v516_v60 = vmul.f32 0.1, %v505_v57  ;;  %v507_v61 = vpop.f32.mrb[3].mxu0 }
 0x19c   :  { %v519_v62 = vsel %vm511_vm13, %v503_v54, %v515_v56  ;;  %vm513_vm15 = vcmp.ge.f32.partialorder %v507_v61, 0.0  ;;  %v517_v63 = vmul.f32 0.1, %v507_v61  ;;  %v534_v1 = vmul.f32 %v527_v55, %v518_v58 }
 0x19d   :  { %v520_v0 = vsel %vm512_vm14, %v505_v57, %v516_v60  ;;  %v535_v4 = vmul.f32 %v531_v59, %v519_v62 }
 0x19e   :  { %v536_v2 = vmul.f32 %v527_v55, %v520_v0  ;;  %v521_v3 = vsel %vm513_vm15, %v507_v61, %v517_v63 }
 0x19f   :  { %v537_v5 = vmul.f32 %v531_v59, %v521_v3 }
 0x1a0   :  { %v538_v6 = vpack.c.bf16 %v536_v2, %v534_v1 }
 0x1a1   :  { %v539_v7 = vpack.c.bf16 %v537_v5, %v535_v4 }
 0x1a2   :  { %545 = vrot.lane.b32.xlu0 %v538_v6, %s1054_s25 }
 0x1a3   :  { %542 = vst.msk [vmem:[#allocation3 + $0x8] sm:$0xff] %vm541_vm1, %v539_v7  ;;  %547 = vrot.lane.b32.xlu1 %v539_v7, %s1054_s25 }
 0x1a6   :  { %554 = vrot.lane.b32.xlu0 %v538_v6, %s1055_s30 }
 0x1a7   :  { %556 = vrot.lane.b32.xlu1 %v539_v7, %s1055_s30 }
 0x1aa   :  { %563 = vrot.lane.b32.xlu0 %v538_v6, %s1056_s0  ;;  %v620_v8 = vld [vmem:[#allocation3 + $0x8] sm:$0xff] }
 0x1ab   :  { %565 = vrot.lane.b32.xlu1 %v539_v7, %s1056_s0  ;;  %891 = vmatprep.subr.bf16.mxu1 %v620_v8 }
 0x1ac   :  { %892 = vmatpush1.bf16.msra.mxu1 %v538_v6 }
 0x1ae   :  { %572 = vrot.lane.b32.xlu0 %v538_v6, %s1057_s7 }
 0x1af   :  { %574 = vrot.lane.b32.xlu1 %v539_v7, %s1057_s7 }
 0x1b2   :  { %581 = vrot.lane.b32.xlu0 %v538_v6, %s1058_s8 }
 0x1b3   :  { %583 = vrot.lane.b32.xlu1 %v539_v7, %s1058_s8 }
 0x1b6   :  { %590 = vrot.lane.b32.xlu0 %v538_v6, %s1059_s9 }
 0x1b7   :  { %592 = vrot.lane.b32.xlu1 %v539_v7, %s1059_s9 }
 0x1ba   :  { %599 = vrot.lane.b32.xlu0 %v538_v6, %s1060_s10 }
 0x1bb   :  { %601 = vrot.lane.b32.xlu1 %v539_v7, %s1060_s10 }
 0x1be   :  { %608 = vrot.lane.b32.xlu0 %v538_v6, %s1061_s13 }
 0x1bf   :  { %610 = vrot.lane.b32.xlu1 %v539_v7, %s1061_s13 }
 0x214   :  { %v546_v10 = vpop.permute.xlu0 %545 }
 0x215   :  { %v548_v11 = vpop.permute.xlu1 %547 }
 0x216   :  { %v549_v12 = vsel %vm81_vm2, %v546_v10, %v548_v11  ;;  %553 = vst.msk [vmem:[#allocation3 + $0x18] sm:$0xff] %vm541_vm1, %v548_v11 }
 0x218   :  { %v555_v13 = vpop.permute.xlu0 %554 }
 0x219   :  { %v557_v14 = vpop.permute.xlu1 %556 }
 0x21a   :  { %v558_v15 = vsel %vm120_vm3, %v555_v13, %v557_v14  ;;  %562 = vst.msk [vmem:[#allocation3 + $0x28] sm:$0xff] %vm541_vm1, %v557_v14 }
 0x21c   :  { %v564_v16 = vpop.permute.xlu0 %563 }
 0x21d   :  { %v566_v17 = vpop.permute.xlu1 %565  ;;  %v622_v18 = vld [vmem:[#allocation3 + $0x18] sm:$0xff] }
 0x21e   :  { %v567_v19 = vsel %vm159_vm4, %v564_v16, %v566_v17  ;;  %571 = vst.msk [vmem:[#allocation3 + $0x38] sm:$0xff] %vm541_vm1, %v566_v17  ;;  %893 = vmatprep.subr.bf16.mxu1 %v622_v18 }
 0x21f   :  { %894 = vmatpush1.bf16.msra.mxu1 %v549_v12 }
 0x220   :  { %v573_v20 = vpop.permute.xlu0 %572 }
 0x221   :  { %v575_v21 = vpop.permute.xlu1 %574  ;;  %v624_v22 = vld [vmem:[#allocation3 + $0x28] sm:$0xff] }
 0x222   :  { %v576_v23 = vsel %vm198_vm5, %v573_v20, %v575_v21  ;;  %580 = vst.msk [vmem:[#allocation3 + $0x48] sm:$0xff] %vm541_vm1, %v575_v21  ;;  %895 = vmatprep.subr.bf16.mxu1 %v624_v22 }
 0x223   :  { %896 = vmatpush1.bf16.msra.mxu1 %v558_v15 }
 0x224   :  { %v582_v24 = vpop.permute.xlu0 %581 }
 0x225   :  { %v584_v25 = vpop.permute.xlu1 %583  ;;  %v626_v26 = vld [vmem:[#allocation3 + $0x38] sm:$0xff] }
 0x226   :  { %v585_v27 = vsel %vm237_vm6, %v582_v24, %v584_v25  ;;  %589 = vst.msk [vmem:[#allocation3 + $0x58] sm:$0xff] %vm541_vm1, %v584_v25  ;;  %897 = vmatprep.subr.bf16.mxu1 %v626_v26 }
 0x227   :  { %898 = vmatpush1.bf16.msra.mxu1 %v567_v19 }
 0x228   :  { %v591_v28 = vpop.permute.xlu0 %590 }
 0x229   :  { %v593_v29 = vpop.permute.xlu1 %592  ;;  %v628_v30 = vld [vmem:[#allocation3 + $0x48] sm:$0xff] }
 0x22a   :  { %v594_v31 = vsel %vm276_vm7, %v591_v28, %v593_v29  ;;  %598 = vst.msk [vmem:[#allocation3 + $0x68] sm:$0xff] %vm541_vm1, %v593_v29  ;;  %899 = vmatprep.subr.bf16.mxu1 %v628_v30 }
 0x22b   :  { %900 = vmatpush1.bf16.msra.mxu1 %v576_v23 }
 0x22c   :  { %v600_v32 = vpop.permute.xlu0 %599 }
 0x22d   :  { %v602_v33 = vpop.permute.xlu1 %601  ;;  %v630_v34 = vld [vmem:[#allocation3 + $0x58] sm:$0xff] }
 0x22e   :  { %v603_v35 = vsel %vm315_vm8, %v600_v32, %v602_v33  ;;  %607 = vst.msk [vmem:[#allocation3 + $0x78] sm:$0xff] %vm541_vm1, %v602_v33  ;;  %901 = vmatprep.subr.bf16.mxu1 %v630_v34 }
 0x22f   :  { %902 = vmatpush1.bf16.msra.mxu1 %v585_v27 }
 0x230   :  { %v609_v36 = vpop.permute.xlu0 %608 }
 0x231   :  { %v611_v37 = vpop.permute.xlu1 %610  ;;  %v632_v38 = vld [vmem:[#allocation3 + $0x68] sm:$0xff] }
 0x232   :  { %v612_v39 = vsel %vm354_vm9, %v609_v36, %v611_v37  ;;  %616 = vst.msk [vmem:[#allocation3 + $0x88] sm:$0xff] %vm541_vm1, %v611_v37  ;;  %903 = vmatprep.subr.bf16.mxu1 %v632_v38 }
 0x233   :  { %904 = vmatpush1.bf16.msra.mxu1 %v594_v31 }
 0x235   :  { %v634_v40 = vld [vmem:[#allocation3 + $0x78] sm:$0xff] }
 0x236   :  { %905 = vmatprep.subr.bf16.mxu1 %v634_v40 }
 0x237   :  { %906 = vmatpush1.bf16.msra.mxu1 %v603_v35 }
 0x239   :  { %v636_v41 = vld [vmem:[#allocation3 + $0x88] sm:$0xff] }
 0x23a   :  { %907 = vmatprep.subr.bf16.mxu1 %v636_v41 }
 0x23b   :  { %908 = vmatpush1.bf16.msra.mxu1 %v612_v39 }
 0x23e   :  { %924 = vmatmul.mubr.bf16.vlgmr.msra.gmra.mrb[0].mxu1 %v1053_v42 }
 0x311   :  { %v925_v43 = vpop.f32.mrb[0].mxu1 }
 0x312   :  { %vm934_vm0 = vcmp.ge.f32.partialorder %v925_v43, 0.0  ;;  %v938_v44 = vmul.f32 0.1, %v925_v43  ;;  %v927_v45 = vpop.f32.mrb[1].mxu1 }
 0x313   :  { %vm935_vm2 = vcmp.ge.f32.partialorder %v927_v45, 0.0  ;;  %v939_v46 = vmul.f32 0.1, %v927_v45  ;;  %v929_v47 = vpop.f32.mrb[2].mxu1 }
 0x314   :  { %v942_v48 = vsel %vm934_vm0, %v925_v43, %v938_v44  ;;  %vm936_vm3 = vcmp.ge.f32.partialorder %v929_v47, 0.0  ;;  %v940_v49 = vmul.f32 0.1, %v929_v47  ;;  %v931_v50 = vpop.f32.mrb[3].mxu1 }
 0x315   :  { %946 = vst [vmem:[%s1294_s6] sm:$0xff] %v942_v48  ;;  %v943_v51 = vsel %vm935_vm2, %v927_v45, %v939_v46  ;;  %vm937_vm4 = vcmp.ge.f32.partialorder %v931_v50, 0.0  ;;  %v941_v52 = vmul.f32 0.1, %v931_v50 }
 0x316   :  { %947 = vst.msk [vmem:[%s1294_s6 + $0x8] sm:$0xff] %vm541_vm1, %v943_v51  ;;  %v944_v53 = vsel %vm936_vm3, %v929_v47, %v940_v49 }
 0x317   :  { %948 = vst [vmem:[%s1294_s6 + $0x10] sm:$0xff] %v944_v53  ;;  %v945_v54 = vsel %vm937_vm4, %v931_v50, %v941_v52 }
 0x318   :  { %949 = vst.msk [vmem:[%s1294_s6 + $0x18] sm:$0xff] %vm541_vm1, %v945_v54 }

// kernel: net_forward.9
= control target key start
LH: loop header
LB: loop body
LE: loop exit
PB: predicated region body
PF: predicated region fallthrough
CT: control target
= control target key end

     0   :  { %vm58_vm0 = vcmask 588800   ;;  %s3517_s13 = smov 127   ;;  %s3518_s18 = smov 126   ;;  %vm90_vm1 = vcmask 1039360   ;;  %vm129_vm2 = vcmask 1031168   ;;  %vm168_vm3 = vcmask 1022976   ;;  %s4722_s0 = inlined_call_operand.vmem [shape: bf16[32,236], index: 0, kind: input, shape index: {}]   ;;  %s4723_s1 = inlined_call_operand.vmem [shape: bf16[32,800], index: 1, kind: input, shape index: {}]   ;;  %s4724_s2 = inlined_call_operand.vmem [shape: f32[32,1], index: 2, kind: input, shape index: {}]   ;;  %s4725_s3 = inlined_call_operand.vmem [shape: f32[1,200], index: 3, kind: input, shape index: {}]   ;;  %s4726_s4 = inlined_call_operand.vmem [shape: bf16[32,800], index: 4, kind: input, shape index: {}]   ;;  %s4727_s5 = inlined_call_operand.vmem [shape: f32[32,1], index: 5, kind: input, shape index: {}]   ;;  %s4728_s6 = inlined_call_operand.vmem [shape: f32[1,164], index: 6, kind: input, shape index: {}]   ;;  %s4729_s7 = inlined_call_operand.vmem [shape: bf16[32,800], index: 7, kind: input, shape index: {}]   ;;  %s4730_s8 = inlined_call_operand.vmem [shape: f32[32,1], index: 8, kind: input, shape index: {}]   ;;  %s4731_s9 = inlined_call_operand.vmem [shape: f32[32,128], index: 9, kind: output, shape index: {}]  }
   0x1   :  { %v3595_v0 = vld [vmem:[%s4722_s0 + $0x10] ss:$8 sps:$4 sm:$0xff]   ;;  %v3600_v1 = vld [vmem:[%s4722_s0 + $0x14] ss:$8 sps:$4 sm:$0xff]   ;;  %v3607_v2 = vld [vmem:[%s4722_s0] ss:$8 sps:$4 sm:$0xff]  }
   0x2   :  { %86 = vrot.lane.b32.xlu1 %v3595_v0, %s3517_s13  ;;  %v3612_v3 = vld [vmem:[%s4722_s0 + $0x4] ss:$8 sps:$4 sm:$0xff]   ;;  %61 = vst.msk [vmem:[#allocation2 + $0x18] sm:$0xff] %vm58_vm0, %v3600_v1  ;;  %82 = vrot.lane.b32.xlu0 %v3607_v2, %s3517_s13  ;;  %s3519_s0 = smov 125   ;;  %s3520_s19 = smov 124   ;;  %vm207_vm4 = vcmask 1014784  }
   0x3   :  { %59 = vst.msk [vmem:[#allocation2 + $0x8] sm:$0xff] %vm58_vm0, %v3612_v3  ;;  %s3521_s20 = smov 120   ;;  %s3522_s21 = smov 119   ;;  %v3459_v6 = vld [vmem:[%s4723_s1 + $0x4] ss:$28 sps:$4 sm:$0xff]   ;;  %vm246_vm5 = vcmask 982016  }
   0x4   :  { %s3523_s22 = smov 118   ;;  %s3524_s25 = smov 117   ;;  %1247 = vmatprep.mubr.bf16.mxu0 %v3459_v6  ;;  %vm285_vm6 = vcmask 973824   ;;  %vm324_vm7 = vcmask 965632   ;;  %vm363_vm8 = vcmask 957440   ;;  %vm402_vm9 = vcmask 949248  }
   0x5   :  { %s4772_s26 = smov 116   ;;  %s4768_s27 = smov 112   ;;  %vm441_vm10 = vcmask 916480   ;;  %vm480_vm11 = vcmask 908288   ;;  %vm4765_vm12 = vcmask 900096   ;;  %vm4760_vm13 = vcmask 891904  }
   0x6   :  { %88 = vrot.lane.b32.xlu1 %v3600_v1, %s3517_s13  ;;  %84 = vrot.lane.b32.xlu0 %v3612_v3, %s3517_s13  ;;  %s4766_s28 = smov 111   ;;  %s3528_s29 = smov 110   ;;  %vm4752_vm14 = vcmask 883712   ;;  %vm4753_vm15 = vcmask 850944  }
   0x7   :  { %s4774_s30 = smov 109   ;;  %s4770_s10 = smov 108  }
   0x8   :  { %s4750_s11 = smov 104   ;;  %s4748_s12 = smov 103  }
   0x9   :  { %v1017_v5 = vld [vmem:[#allocation2 + $0x18] sm:$0xff]  ;;  %s4742_s14 = smov 102   ;;  %s4740_s15 = smov 101  }
   0xa   :  { %123 = vrot.lane.b32.xlu1 %v3612_v3, %s3518_s18  ;;  %v1015_v4 = vld [vmem:[#allocation2 + $0x8] sm:$0xff]  ;;  %121 = vrot.lane.b32.xlu0 %v3607_v2, %s3518_s18  ;;  %s4738_s16 = smov 100   ;;  %s4736_s17 = smov 96  }
   0xb   :  { %1215 = vmatprep.subr.bf16.mxu0 %v1015_v4  ;;  %s4732_s23 = smov 95   ;;  %s4734_s24 = smov 94  }
   0xc   :  { %1216 = vmatpush1.bf16.msra.mxu0 %v3607_v2 }
   0xd   :  { %1217 = vmatprep.subr.bf16.mxu0 %v1017_v5 }
   0xe   :  { %127 = vrot.lane.b32.xlu1 %v3600_v1, %s3518_s18  ;;  %125 = vrot.lane.b32.xlu0 %v3595_v0, %s3518_s18 }
  0x10   :  { %1218 = vmatpush1.bf16.msra.mxu0 %v3595_v0 }
  0x12   :  { %162 = vrot.lane.b32.xlu1 %v3612_v3, %s3519_s0  ;;  %160 = vrot.lane.b32.xlu0 %v3607_v2, %s3519_s0 }
  0x16   :  { %166 = vrot.lane.b32.xlu1 %v3600_v1, %s3519_s0  ;;  %164 = vrot.lane.b32.xlu0 %v3595_v0, %s3519_s0 }
  0x1a   :  { %201 = vrot.lane.b32.xlu1 %v3612_v3, %s3520_s19  ;;  %199 = vrot.lane.b32.xlu0 %v3607_v2, %s3520_s19 }
  0x1e   :  { %205 = vrot.lane.b32.xlu1 %v3600_v1, %s3520_s19  ;;  %203 = vrot.lane.b32.xlu0 %v3595_v0, %s3520_s19 }
  0x22   :  { %240 = vrot.lane.b32.xlu1 %v3612_v3, %s3521_s20  ;;  %238 = vrot.lane.b32.xlu0 %v3607_v2, %s3521_s20 }
  0x26   :  { %244 = vrot.lane.b32.xlu1 %v3600_v1, %s3521_s20  ;;  %242 = vrot.lane.b32.xlu0 %v3595_v0, %s3521_s20 }
  0x2a   :  { %279 = vrot.lane.b32.xlu1 %v3612_v3, %s3522_s21  ;;  %277 = vrot.lane.b32.xlu0 %v3607_v2, %s3522_s21 }
  0x2e   :  { %283 = vrot.lane.b32.xlu1 %v3600_v1, %s3522_s21  ;;  %281 = vrot.lane.b32.xlu0 %v3595_v0, %s3522_s21 }
  0x32   :  { %318 = vrot.lane.b32.xlu1 %v3612_v3, %s3523_s22  ;;  %316 = vrot.lane.b32.xlu0 %v3607_v2, %s3523_s22 }
  0x36   :  { %322 = vrot.lane.b32.xlu1 %v3600_v1, %s3523_s22  ;;  %320 = vrot.lane.b32.xlu0 %v3595_v0, %s3523_s22 }
  0x3a   :  { %357 = vrot.lane.b32.xlu1 %v3612_v3, %s3524_s25  ;;  %355 = vrot.lane.b32.xlu0 %v3607_v2, %s3524_s25 }
  0x3e   :  { %361 = vrot.lane.b32.xlu1 %v3600_v1, %s3524_s25  ;;  %359 = vrot.lane.b32.xlu0 %v3595_v0, %s3524_s25 }
  0x42   :  { %396 = vrot.lane.b32.xlu1 %v3612_v3, %s4772_s26  ;;  %394 = vrot.lane.b32.xlu0 %v3607_v2, %s4772_s26 }
  0x46   :  { %400 = vrot.lane.b32.xlu1 %v3600_v1, %s4772_s26  ;;  %398 = vrot.lane.b32.xlu0 %v3595_v0, %s4772_s26 }
  0x4a   :  { %435 = vrot.lane.b32.xlu1 %v3612_v3, %s4768_s27  ;;  %433 = vrot.lane.b32.xlu0 %v3607_v2, %s4768_s27 }
  0x4e   :  { %439 = vrot.lane.b32.xlu1 %v3600_v1, %s4768_s27  ;;  %437 = vrot.lane.b32.xlu0 %v3595_v0, %s4768_s27 }
  0x52   :  { %474 = vrot.lane.b32.xlu1 %v3612_v3, %s4766_s28  ;;  %472 = vrot.lane.b32.xlu0 %v3607_v2, %s4766_s28 }
  0x56   :  { %478 = vrot.lane.b32.xlu1 %v3600_v1, %s4766_s28  ;;  %476 = vrot.lane.b32.xlu0 %v3595_v0, %s4766_s28 }
  0x5a   :  { %513 = vrot.lane.b32.xlu1 %v3612_v3, %s3528_s29  ;;  %511 = vrot.lane.b32.xlu0 %v3607_v2, %s3528_s29 }
  0x5e   :  { %517 = vrot.lane.b32.xlu1 %v3600_v1, %s3528_s29  ;;  %515 = vrot.lane.b32.xlu0 %v3595_v0, %s3528_s29 }
  0x62   :  { %552 = vrot.lane.b32.xlu1 %v3612_v3, %s4774_s30  ;;  %550 = vrot.lane.b32.xlu0 %v3607_v2, %s4774_s30 }
  0x66   :  { %556 = vrot.lane.b32.xlu1 %v3600_v1, %s4774_s30  ;;  %554 = vrot.lane.b32.xlu0 %v3595_v0, %s4774_s30 }
  0x6a   :  { %591 = vrot.lane.b32.xlu1 %v3612_v3, %s4770_s10  ;;  %589 = vrot.lane.b32.xlu0 %v3607_v2, %s4770_s10 }
  0x6e   :  { %595 = vrot.lane.b32.xlu1 %v3600_v1, %s4770_s10  ;;  %593 = vrot.lane.b32.xlu0 %v3595_v0, %s4770_s10 }
  0x72   :  { %630 = vrot.lane.b32.xlu1 %v3612_v3, %s4750_s11  ;;  %628 = vrot.lane.b32.xlu0 %v3607_v2, %s4750_s11 }
  0x74   :  { %v87_v7 = vpop.permute.xlu1 %86  ;;  %v83_v8 = vpop.permute.xlu0 %82 }
  0x76   :  { %634 = vrot.lane.b32.xlu1 %v3600_v1, %s4750_s11  ;;  %632 = vrot.lane.b32.xlu0 %v3595_v0, %s4750_s11 }
  0x78   :  { %v89_v9 = vpop.permute.xlu1 %88  ;;  %v85_v11 = vpop.permute.xlu0 %84 }
  0x79   :  { %v92_v10 = vsel %vm90_vm1, %v87_v7, %v89_v9  ;;  %100 = vst.msk [vmem:[#allocation2 + $0x38] sm:$0xff] %vm58_vm0, %v89_v9  ;;  %v91_v12 = vsel %vm90_vm1, %v83_v8, %v85_v11  ;;  %98 = vst.msk [vmem:[#allocation2 + $0x28] sm:$0xff] %vm58_vm0, %v85_v11 }
  0x7a   :  { %669 = vrot.lane.b32.xlu1 %v3612_v3, %s4748_s12  ;;  %667 = vrot.lane.b32.xlu0 %v3607_v2, %s4748_s12 }
  0x7c   :  { %v124_v13 = vpop.permute.xlu1 %123  ;;  %v122_v14 = vpop.permute.xlu0 %121 }
  0x7d   :  { %137 = vst.msk [vmem:[#allocation2 + $0x48] sm:$0xff] %vm58_vm0, %v124_v13  ;;  %v130_v15 = vsel %vm129_vm2, %v122_v14, %v124_v13 }
  0x7e   :  { %673 = vrot.lane.b32.xlu1 %v3600_v1, %s4748_s12  ;;  %671 = vrot.lane.b32.xlu0 %v3595_v0, %s4748_s12  ;;  %s4776_s12 = smov 104  }
  0x80   :  { %v128_v16 = vpop.permute.xlu1 %127  ;;  %v126_v17 = vpop.permute.xlu0 %125  ;;  %v1019_v18 = vld [vmem:[#allocation2 + $0x28] sm:$0xff]  ;;  %v1021_v20 = vld [vmem:[#allocation2 + $0x38] sm:$0xff] }
  0x81   :  { %139 = vst.msk [vmem:[#allocation2 + $0x58] sm:$0xff] %vm58_vm0, %v128_v16  ;;  %v131_v19 = vsel %vm129_vm2, %v126_v17, %v128_v16  ;;  %1219 = vmatprep.subr.bf16.mxu0 %v1019_v18 }
  0x82   :  { %708 = vrot.lane.b32.xlu1 %v3612_v3, %s4742_s14  ;;  %706 = vrot.lane.b32.xlu0 %v3607_v2, %s4742_s14 }
  0x83   :  { %1220 = vmatpush1.bf16.msra.mxu0 %v91_v12  ;;  %v3457_v12 = vld [vmem:[%s4723_s1] ss:$28 sps:$4 sm:$0xff]  }
  0x84   :  { %v163_v21 = vpop.permute.xlu1 %162  ;;  %1221 = vmatprep.subr.bf16.mxu0 %v1021_v20  ;;  %v161_v22 = vpop.permute.xlu0 %160  ;;  %v1023_v24 = vld [vmem:[#allocation2 + $0x48] sm:$0xff] }
  0x85   :  { %176 = vst.msk [vmem:[#allocation2 + $0x68] sm:$0xff] %vm58_vm0, %v163_v21  ;;  %v169_v23 = vsel %vm168_vm3, %v161_v22, %v163_v21  ;;  %v3462_v21 = vld [vmem:[%s4723_s1 + $0x38] ss:$28 sps:$4 sm:$0xff]  }
  0x86   :  { %712 = vrot.lane.b32.xlu1 %v3600_v1, %s4742_s14  ;;  %710 = vrot.lane.b32.xlu0 %v3595_v0, %s4742_s14  ;;  %s4779_s14 = smov 101  }
  0x87   :  { %1222 = vmatpush1.bf16.msra.mxu0 %v92_v10 }
  0x88   :  { %v167_v25 = vpop.permute.xlu1 %166  ;;  %1223 = vmatprep.subr.bf16.mxu0 %v1023_v24  ;;  %v165_v26 = vpop.permute.xlu0 %164  ;;  %v1025_v28 = vld [vmem:[#allocation2 + $0x58] sm:$0xff] }
  0x89   :  { %178 = vst.msk [vmem:[#allocation2 + $0x78] sm:$0xff] %vm58_vm0, %v167_v25  ;;  %v170_v27 = vsel %vm168_vm3, %v165_v26, %v167_v25 }
  0x8a   :  { %747 = vrot.lane.b32.xlu1 %v3612_v3, %s4740_s15  ;;  %745 = vrot.lane.b32.xlu0 %v3607_v2, %s4740_s15 }
  0x8b   :  { %1224 = vmatpush1.bf16.msra.mxu0 %v130_v15  ;;  %v3460_v15 = vld [vmem:[%s4723_s1 + $0x3c] ss:$28 sps:$4 sm:$0xff]  }
  0x8c   :  { %v202_v29 = vpop.permute.xlu1 %201  ;;  %1225 = vmatprep.subr.bf16.mxu0 %v1025_v28  ;;  %v200_v30 = vpop.permute.xlu0 %199  ;;  %v1027_v32 = vld [vmem:[#allocation2 + $0x68] sm:$0xff]  ;;  %v1114_v28 = vld [vmem:[%s4724_s2] sm:$0xff] }
  0x8d   :  { %215 = vst.msk [vmem:[#allocation2 + $0x88] sm:$0xff] %vm58_vm0, %v202_v29  ;;  %v208_v31 = vsel %vm207_vm4, %v200_v30, %v202_v29  ;;  %v1115_v29 = vld [vmem:[%s4724_s2 + $0x8] sm:$0xff] }
  0x8e   :  { %751 = vrot.lane.b32.xlu1 %v3600_v1, %s4740_s15  ;;  %749 = vrot.lane.b32.xlu0 %v3595_v0, %s4740_s15  ;;  %s4780_s15 = smov 100  }
  0x8f   :  { %1226 = vmatpush1.bf16.msra.mxu0 %v131_v19  ;;  %v3541_v19 = vmov 0  }
  0x90   :  { %v206_v33 = vpop.permute.xlu1 %205  ;;  %1227 = vmatprep.subr.bf16.mxu0 %v1027_v32  ;;  %v204_v34 = vpop.permute.xlu0 %203  ;;  %v1029_v36 = vld [vmem:[#allocation2 + $0x78] sm:$0xff]  ;;  %1406 = vmatprep.mubr.bf16.mxu1 %v3541_v19 }
  0x91   :  { %217 = vst.msk [vmem:[#allocation2 + $0x98] sm:$0xff] %vm58_vm0, %v206_v33  ;;  %v209_v35 = vsel %vm207_vm4, %v204_v34, %v206_v33  ;;  %3449 = vset.pattern.permute.xlu0 %v3541_v19  ;;  %3450 = vset.pattern.permute.xlu1 %v3541_v19  ;;  %v1116_v33 = vld [vmem:[%s4724_s2 + $0x10] sm:$0xff]  ;;  %v1117_v34 = vld [vmem:[%s4724_s2 + $0x18] sm:$0xff]  ;;  %s4784_s2 = smov 93  }
  0x92   :  { %786 = vrot.lane.b32.xlu1 %v3612_v3, %s4738_s16  ;;  %784 = vrot.lane.b32.xlu0 %v3607_v2, %s4738_s16 }
  0x93   :  { %1228 = vmatpush1.bf16.msra.mxu0 %v169_v23 }
  0x94   :  { %v241_v37 = vpop.permute.xlu1 %240  ;;  %1229 = vmatprep.subr.bf16.mxu0 %v1029_v36  ;;  %v239_v38 = vpop.permute.xlu0 %238  ;;  %v1031_v40 = vld [vmem:[#allocation2 + $0x88] sm:$0xff] }
  0x95   :  { %254 = vst.msk [vmem:[#allocation2 + $0xa8] sm:$0xff] %vm58_vm0, %v241_v37  ;;  %v247_v39 = vsel %vm246_vm5, %v239_v38, %v241_v37 }
  0x96   :  { %790 = vrot.lane.b32.xlu1 %v3600_v1, %s4738_s16  ;;  %788 = vrot.lane.b32.xlu0 %v3595_v0, %s4738_s16  ;;  %s4781_s16 = smov 96  }
  0x97   :  { %1230 = vmatpush1.bf16.msra.mxu0 %v170_v27 }
  0x98   :  { %v245_v41 = vpop.permute.xlu1 %244  ;;  %1231 = vmatprep.subr.bf16.mxu0 %v1031_v40  ;;  %v243_v42 = vpop.permute.xlu0 %242  ;;  %v1033_v44 = vld [vmem:[#allocation2 + $0x98] sm:$0xff] }
  0x99   :  { %256 = vst.msk [vmem:[#allocation2 + $0xb8] sm:$0xff] %vm58_vm0, %v245_v41  ;;  %v248_v43 = vsel %vm246_vm5, %v243_v42, %v245_v41 }
  0x9a   :  { %825 = vrot.lane.b32.xlu1 %v3612_v3, %s4736_s17  ;;  %823 = vrot.lane.b32.xlu0 %v3607_v2, %s4736_s17 }
  0x9b   :  { %1232 = vmatpush1.bf16.msra.mxu0 %v208_v31 }
  0x9c   :  { %v280_v45 = vpop.permute.xlu1 %279  ;;  %1233 = vmatprep.subr.bf16.mxu0 %v1033_v44  ;;  %v278_v46 = vpop.permute.xlu0 %277  ;;  %v1035_v48 = vld [vmem:[#allocation2 + $0xa8] sm:$0xff] }
  0x9d   :  { %293 = vst.msk [vmem:[#allocation2 + $0xc8] sm:$0xff] %vm58_vm0, %v280_v45  ;;  %v286_v47 = vsel %vm285_vm6, %v278_v46, %v280_v45 }
  0x9e   :  { %829 = vrot.lane.b32.xlu1 %v3600_v1, %s4736_s17  ;;  %827 = vrot.lane.b32.xlu0 %v3595_v0, %s4736_s17  ;;  %s4782_s17 = smov 95  }
  0x9f   :  { %1234 = vmatpush1.bf16.msra.mxu0 %v209_v35 }
  0xa0   :  { %v284_v49 = vpop.permute.xlu1 %283  ;;  %1235 = vmatprep.subr.bf16.mxu0 %v1035_v48  ;;  %v282_v50 = vpop.permute.xlu0 %281  ;;  %v1037_v52 = vld [vmem:[#allocation2 + $0xb8] sm:$0xff] }
  0xa1   :  { %295 = vst.msk [vmem:[#allocation2 + $0xd8] sm:$0xff] %vm58_vm0, %v284_v49  ;;  %v287_v51 = vsel %vm285_vm6, %v282_v50, %v284_v49 }
  0xa2   :  { %864 = vrot.lane.b32.xlu1 %v3612_v3, %s4732_s23  ;;  %862 = vrot.lane.b32.xlu0 %v3607_v2, %s4732_s23 }
  0xa3   :  { %1236 = vmatpush1.bf16.msra.mxu0 %v247_v39 }
  0xa4   :  { %v319_v53 = vpop.permute.xlu1 %318  ;;  %1237 = vmatprep.subr.bf16.mxu0 %v1037_v52  ;;  %v317_v54 = vpop.permute.xlu0 %316  ;;  %v1039_v56 = vld [vmem:[#allocation2 + $0xc8] sm:$0xff] }
  0xa5   :  { %332 = vst.msk [vmem:[#allocation2 + $0xe8] sm:$0xff] %vm58_vm0, %v319_v53  ;;  %v325_v55 = vsel %vm324_vm7, %v317_v54, %v319_v53 }
  0xa6   :  { %868 = vrot.lane.b32.xlu1 %v3600_v1, %s4732_s23  ;;  %866 = vrot.lane.b32.xlu0 %v3595_v0, %s4732_s23  ;;  %s4746_s23 = smov 93  }
  0xa7   :  { %1238 = vmatpush1.bf16.msra.mxu0 %v248_v43 }
  0xa8   :  { %v323_v57 = vpop.permute.xlu1 %322  ;;  %1239 = vmatprep.subr.bf16.mxu0 %v1039_v56  ;;  %v321_v58 = vpop.permute.xlu0 %320  ;;  %v1041_v60 = vld [vmem:[#allocation2 + $0xd8] sm:$0xff] }
  0xa9   :  { %334 = vst.msk [vmem:[#allocation2 + $0xf8] sm:$0xff] %vm58_vm0, %v323_v57  ;;  %v326_v59 = vsel %vm324_vm7, %v321_v58, %v323_v57 }
  0xaa   :  { %903 = vrot.lane.b32.xlu1 %v3612_v3, %s4734_s24  ;;  %901 = vrot.lane.b32.xlu0 %v3607_v2, %s4734_s24 }
  0xab   :  { %1240 = vmatpush1.bf16.msra.mxu0 %v286_v47 }
  0xac   :  { %v358_v61 = vpop.permute.xlu1 %357  ;;  %1241 = vmatprep.subr.bf16.mxu0 %v1041_v60  ;;  %v356_v62 = vpop.permute.xlu0 %355  ;;  %v1043_v4 = vld [vmem:[#allocation2 + $0xe8] sm:$0xff] }
  0xad   :  { %371 = vst.msk [vmem:[#allocation2 + $0x108] sm:$0xff] %vm58_vm0, %v358_v61  ;;  %v364_v63 = vsel %vm363_vm8, %v356_v62, %v358_v61 }
  0xae   :  { %907 = vrot.lane.b32.xlu1 %v3600_v1, %s4734_s24  ;;  %905 = vrot.lane.b32.xlu0 %v3595_v0, %s4734_s24  ;;  %s4744_s24 = smov 92  }
  0xaf   :  { %1242 = vmatpush1.bf16.msra.mxu0 %v287_v51 }
  0xb0   :  { %v362_v5 = vpop.permute.xlu1 %361  ;;  %1243 = vmatprep.subr.bf16.mxu0 %v1043_v4  ;;  %v360_v6 = vpop.permute.xlu0 %359  ;;  %v1045_v8 = vld [vmem:[#allocation2 + $0xf8] sm:$0xff] }
  0xb1   :  { %373 = vst.msk [vmem:[#allocation2 + $0x118] sm:$0xff] %vm58_vm0, %v362_v5  ;;  %v365_v7 = vsel %vm363_vm8, %v360_v6, %v362_v5 }
  0xb2   :  { %942 = vrot.lane.b32.xlu1 %v3612_v3, %s4746_s23  ;;  %940 = vrot.lane.b32.xlu0 %v3607_v2, %s4746_s23 }
  0xb3   :  { %1244 = vmatpush1.bf16.msra.mxu0 %v325_v55 }
  0xb4   :  { %v397_v9 = vpop.permute.xlu1 %396  ;;  %1245 = vmatprep.subr.bf16.mxu0 %v1045_v8  ;;  %v395_v10 = vpop.permute.xlu0 %394  ;;  %v1047_v13 = vld [vmem:[#allocation2 + $0x108] sm:$0xff] }
  0xb5   :  { %410 = vst.msk [vmem:[#allocation2 + $0x128] sm:$0xff] %vm58_vm0, %v397_v9  ;;  %v403_v11 = vsel %vm402_vm9, %v395_v10, %v397_v9 }
  0xb6   :  { %981 = vrot.lane.b32.xlu1 %v3612_v3, %s4744_s24  ;;  %979 = vrot.lane.b32.xlu0 %v3607_v2, %s4744_s24 }
  0xb7   :  { %1246 = vmatpush1.bf16.msra.mxu0 %v326_v59 }
  0xb8   :  { %v401_v14 = vpop.permute.xlu1 %400  ;;  %1268 = vmatprep.subr.bf16.mxu0 %v1047_v13  ;;  %v399_v3 = vpop.permute.xlu0 %398  ;;  %v1049_v2 = vld [vmem:[#allocation2 + $0x118] sm:$0xff] }
  0xb9   :  { %412 = vst.msk [vmem:[#allocation2 + $0x138] sm:$0xff] %vm58_vm0, %v401_v14  ;;  %v404_v16 = vsel %vm402_vm9, %v399_v3, %v401_v14 }
  0xba   :  { %946 = vrot.lane.b32.xlu1 %v3600_v1, %s4746_s23  ;;  %1248 = vmatmul.mubr.bf16.vlgmr.msra.gmra.mrb[0].mxu0 %v3457_v12 }
  0xbb   :  { %944 = vrot.lane.b32.xlu0 %v3595_v0, %s4746_s23  ;;  %1269 = vmatpush1.bf16.msra.mxu0 %v364_v63  ;;  %s4777_s23 = smov 103  }
  0xbc   :  { %v436_v17 = vpop.permute.xlu1 %435  ;;  %1270 = vmatprep.subr.bf16.mxu0 %v1049_v2  ;;  %1257 = vmatprep.mubr.bf16.mxu0 %v3460_v15  ;;  %v434_v18 = vpop.permute.xlu0 %433  ;;  %v1051_v22 = vld [vmem:[#allocation2 + $0x128] sm:$0xff] }
  0xbd   :  { %449 = vst.msk [vmem:[#allocation2 + $0x148] sm:$0xff] %vm58_vm0, %v436_v17  ;;  %v442_v20 = vsel %vm441_vm10, %v434_v18, %v436_v17 }
  0xbe   :  { %985 = vrot.lane.b32.xlu1 %v3600_v1, %s4744_s24  ;;  %v3465_v1 = vld [vmem:[%s4723_s1 + $0xc] ss:$28 sps:$4 sm:$0xff]  }
  0xbf   :  { %983 = vrot.lane.b32.xlu0 %v3595_v0, %s4744_s24  ;;  %1271 = vmatpush1.bf16.msra.mxu0 %v365_v7  ;;  %s4778_s24 = smov 102  }
  0xc0   :  { %v440_v23 = vpop.permute.xlu1 %439  ;;  %1272 = vmatprep.subr.bf16.mxu0 %v1051_v22  ;;  %v438_v24 = vpop.permute.xlu0 %437  ;;  %v1053_v26 = vld [vmem:[#allocation2 + $0x138] sm:$0xff] }
  0xc1   :  { %451 = vst.msk [vmem:[#allocation2 + $0x158] sm:$0xff] %vm58_vm0, %v440_v23  ;;  %v443_v25 = vsel %vm441_vm10, %v438_v24, %v440_v23  ;;  %v3466_v23 = vld [vmem:[%s4723_s1 + $0x44] ss:$28 sps:$4 sm:$0xff]  }
  0xc2   :  { %1258 = vmatmul.mubr.bf16.gmra.mrb[4].mxu0 %v3462_v21  ;;  %1125 = vperm.xlu1 %3450, %v1115_v29  }
  0xc3   :  { %1273 = vmatpush1.bf16.msra.mxu0 %v403_v11  ;;  %1300 = vmatprep.mubr.bf16.mxu0 %v3465_v1 }
  0xc4   :  { %v475_v27 = vpop.permute.xlu1 %474  ;;  %1274 = vmatprep.subr.bf16.mxu0 %v1053_v26  ;;  %v473_v0 = vpop.permute.xlu0 %472  ;;  %1120 = vperm.xlu0 %3449, %v1114_v28   ;;  %v1055_v31 = vld [vmem:[#allocation2 + $0x148] sm:$0xff]  ;;  %v3468_v28 = vld [vmem:[%s4723_s1 + $0x40] ss:$28 sps:$4 sm:$0xff]  }
  0xc5   :  { %488 = vst.msk [vmem:[#allocation2 + $0x168] sm:$0xff] %vm58_vm0, %v475_v27  ;;  %v481_v30 = vsel %vm480_vm11, %v473_v0, %v475_v27 }
  0xc6   :  { %1130 = vperm.xlu1 %3450, %v1116_v33  }
  0xc7   :  { %1275 = vmatpush1.bf16.msra.mxu0 %v404_v16 }
  0xc8   :  { %v479_v32 = vpop.permute.xlu1 %478  ;;  %1276 = vmatprep.subr.bf16.mxu0 %v1055_v31  ;;  %v477_v35 = vpop.permute.xlu0 %476  ;;  %1135 = vperm.xlu0 %3449, %v1117_v34   ;;  %v1057_v37 = vld [vmem:[#allocation2 + $0x158] sm:$0xff]  ;;  %v3471_v31 = vld [vmem:[%s4723_s1 + $0x14] ss:$28 sps:$4 sm:$0xff]  }
  0xc9   :  { %490 = vst.msk [vmem:[#allocation2 + $0x178] sm:$0xff] %vm58_vm0, %v479_v32  ;;  %v482_v36 = vsel %vm480_vm11, %v477_v35, %v479_v32 }
  0xcb   :  { %1277 = vmatpush1.bf16.msra.mxu0 %v442_v20  ;;  %v3463_v20 = vld [vmem:[%s4723_s1 + $0x8] ss:$28 sps:$4 sm:$0xff]  }
  0xcc   :  { %v514_v38 = vpop.permute.xlu1 %513  ;;  %1278 = vmatprep.subr.bf16.mxu0 %v1057_v37  ;;  %v512_v39 = vpop.permute.xlu0 %511  ;;  %v1059_v41 = vld [vmem:[#allocation2 + $0x168] sm:$0xff] }
  0xcd   :  { %527 = vst.msk [vmem:[#allocation2 + $0x188] sm:$0xff] %vm58_vm0, %v514_v38  ;;  %v520_v40 = vsel %vm4765_vm12, %v512_v39, %v514_v38 }
  0xcf   :  { %1279 = vmatpush1.bf16.msra.mxu0 %v443_v25 }
  0xd0   :  { %v518_v42 = vpop.permute.xlu1 %517  ;;  %1280 = vmatprep.subr.bf16.mxu0 %v1059_v41  ;;  %v516_v43 = vpop.permute.xlu0 %515  ;;  %v1061_v45 = vld [vmem:[#allocation2 + $0x178] sm:$0xff] }
  0xd1   :  { %529 = vst.msk [vmem:[#allocation2 + $0x198] sm:$0xff] %vm58_vm0, %v518_v42  ;;  %v521_v44 = vsel %vm4765_vm12, %v516_v43, %v518_v42 }
  0xd3   :  { %1281 = vmatpush1.bf16.msra.mxu0 %v481_v30 }
  0xd4   :  { %v553_v46 = vpop.permute.xlu1 %552  ;;  %1282 = vmatprep.subr.bf16.mxu0 %v1061_v45  ;;  %v551_v47 = vpop.permute.xlu0 %550  ;;  %v1063_v49 = vld [vmem:[#allocation2 + $0x188] sm:$0xff] }
  0xd5   :  { %566 = vst.msk [vmem:[#allocation2 + $0x1a8] sm:$0xff] %vm58_vm0, %v553_v46  ;;  %v559_v48 = vsel %vm4760_vm13, %v551_v47, %v553_v46 }
  0xd7   :  { %1283 = vmatpush1.bf16.msra.mxu0 %v482_v36 }
  0xd8   :  { %v557_v50 = vpop.permute.xlu1 %556  ;;  %1284 = vmatprep.subr.bf16.mxu0 %v1063_v49  ;;  %v555_v51 = vpop.permute.xlu0 %554  ;;  %v1065_v53 = vld [vmem:[#allocation2 + $0x198] sm:$0xff] }
  0xd9   :  { %568 = vst.msk [vmem:[#allocation2 + $0x1b8] sm:$0xff] %vm58_vm0, %v557_v50  ;;  %v560_v52 = vsel %vm4760_vm13, %v555_v51, %v557_v50  ;;  %vm4762_vm13 = vcmask 752640  }
  0xdb   :  { %1285 = vmatpush1.bf16.msra.mxu0 %v520_v40 }
  0xdc   :  { %v592_v54 = vpop.permute.xlu1 %591  ;;  %1286 = vmatprep.subr.bf16.mxu0 %v1065_v53  ;;  %v590_v55 = vpop.permute.xlu0 %589  ;;  %v1067_v57 = vld [vmem:[#allocation2 + $0x1a8] sm:$0xff] }
  0xdd   :  { %605 = vst.msk [vmem:[#allocation2 + $0x1c8] sm:$0xff] %vm58_vm0, %v592_v54  ;;  %v598_v56 = vsel %vm4752_vm14, %v590_v55, %v592_v54 }
  0xdf   :  { %1287 = vmatpush1.bf16.msra.mxu0 %v521_v44 }
  0xe0   :  { %v596_v58 = vpop.permute.xlu1 %595  ;;  %1288 = vmatprep.subr.bf16.mxu0 %v1067_v57  ;;  %v594_v59 = vpop.permute.xlu0 %593  ;;  %v1069_v61 = vld [vmem:[#allocation2 + $0x1b8] sm:$0xff] }
  0xe1   :  { %607 = vst.msk [vmem:[#allocation2 + $0x1d8] sm:$0xff] %vm58_vm0, %v596_v58  ;;  %v599_v60 = vsel %vm4752_vm14, %v594_v59, %v596_v58  ;;  %vm4754_vm14 = vcmask 842752  }
  0xe3   :  { %1289 = vmatpush1.bf16.msra.mxu0 %v559_v48 }
  0xe4   :  { %v631_v62 = vpop.permute.xlu1 %630  ;;  %1290 = vmatprep.subr.bf16.mxu0 %v1069_v61  ;;  %v629_v63 = vpop.permute.xlu0 %628  ;;  %v1071_v5 = vld [vmem:[#allocation2 + $0x1c8] sm:$0xff] }
  0xe5   :  { %644 = vst.msk [vmem:[#allocation2 + $0x1e8] sm:$0xff] %vm58_vm0, %v631_v62  ;;  %v637_v4 = vsel %vm4753_vm15, %v629_v63, %v631_v62 }
  0xe7   :  { %1291 = vmatpush1.bf16.msra.mxu0 %v560_v52 }
  0xe8   :  { %v635_v6 = vpop.permute.xlu1 %634  ;;  %1292 = vmatprep.subr.bf16.mxu0 %v1071_v5  ;;  %v633_v7 = vpop.permute.xlu0 %632  ;;  %v1073_v9 = vld [vmem:[#allocation2 + $0x1d8] sm:$0xff] }
  0xe9   :  { %646 = vst.msk [vmem:[#allocation2 + $0x1f8] sm:$0xff] %vm58_vm0, %v635_v6  ;;  %v638_v8 = vsel %vm4753_vm15, %v633_v7, %v635_v6  ;;  %vm4755_vm15 = vcmask 834560  }
  0xeb   :  { %1293 = vmatpush1.bf16.msra.mxu0 %v598_v56 }
  0xec   :  { %v670_v10 = vpop.permute.xlu1 %669  ;;  %1294 = vmatprep.subr.bf16.mxu0 %v1073_v9  ;;  %v668_v11 = vpop.permute.xlu0 %667  ;;  %v1075_v13 = vld [vmem:[#allocation2 + $0x1e8] sm:$0xff] }
  0xed   :  { %683 = vst.msk [vmem:[#allocation2 + $0x208] sm:$0xff] %vm58_vm0, %v670_v10  ;;  %v676_v12 = vsel %vm4754_vm14, %v668_v11, %v670_v10 }
  0xef   :  { %1295 = vmatpush1.bf16.msra.mxu0 %v599_v60 }
  0xf0   :  { %v674_v14 = vpop.permute.xlu1 %673  ;;  %1296 = vmatprep.subr.bf16.mxu0 %v1075_v13  ;;  %v672_v15 = vpop.permute.xlu0 %671  ;;  %v1077_v16 = vld [vmem:[#allocation2 + $0x1f8] sm:$0xff] }
  0xf1   :  { %685 = vst.msk [vmem:[#allocation2 + $0x218] sm:$0xff] %vm58_vm0, %v674_v14  ;;  %v677_v3 = vsel %vm4754_vm14, %v672_v15, %v674_v14  ;;  %vm4756_vm14 = vcmask 826368  }
  0xf3   :  { %1297 = vmatpush1.bf16.msra.mxu0 %v637_v4 }
  0xf4   :  { %v709_v2 = vpop.permute.xlu1 %708  ;;  %1298 = vmatprep.subr.bf16.mxu0 %v1077_v16  ;;  %v707_v17 = vpop.permute.xlu0 %706  ;;  %v1079_v21 = vld [vmem:[#allocation2 + $0x208] sm:$0xff] }
  0xf5   :  { %722 = vst.msk [vmem:[#allocation2 + $0x228] sm:$0xff] %vm58_vm0, %v709_v2  ;;  %v715_v18 = vsel %vm4755_vm15, %v707_v17, %v709_v2 }
  0xf7   :  { %1299 = vmatpush1.bf16.msra.mxu0 %v638_v8 }
  0xf8   :  { %v713_v22 = vpop.permute.xlu1 %712  ;;  %1321 = vmatprep.subr.bf16.mxu0 %v1079_v21  ;;  %v711_v1 = vpop.permute.xlu0 %710  ;;  %v1081_v25 = vld [vmem:[#allocation2 + $0x218] sm:$0xff] }
  0xf9   :  { %724 = vst.msk [vmem:[#allocation2 + $0x238] sm:$0xff] %vm58_vm0, %v713_v22  ;;  %v716_v24 = vsel %vm4755_vm15, %v711_v1, %v713_v22  ;;  %vm4757_vm15 = vcmask 818176  }
  0xfa   :  { %1301 = vmatmul.mubr.bf16.vlgmr.msra.gmra.mrb[0].mxu0 %v3463_v20 }
  0xfb   :  { %1322 = vmatpush1.bf16.msra.mxu0 %v676_v12  ;;  %1310 = vmatprep.mubr.bf16.mxu0 %v3466_v23  ;;  %v3469_v23 = vld [vmem:[%s4723_s1 + $0x10] ss:$28 sps:$4 sm:$0xff]  }
  0xfc   :  { %v748_v26 = vpop.permute.xlu1 %747  ;;  %1323 = vmatprep.subr.bf16.mxu0 %v1081_v25  ;;  %v746_v27 = vpop.permute.xlu0 %745  ;;  %v1083_v29 = vld [vmem:[#allocation2 + $0x228] sm:$0xff]  ;;  %v3472_v25 = vld [vmem:[%s4723_s1 + $0x18] ss:$28 sps:$4 sm:$0xff]  }
  0xfd   :  { %761 = vst.msk [vmem:[#allocation2 + $0x248] sm:$0xff] %vm58_vm0, %v748_v26  ;;  %v754_v0 = vsel %vm4756_vm14, %v746_v27, %v748_v26  ;;  %v3475_v26 = vld [vmem:[%s4723_s1 + $0x48] ss:$28 sps:$4 sm:$0xff]   ;;  %v3476_v27 = vld [vmem:[%s4723_s1 + $0x50] ss:$28 sps:$4 sm:$0xff]  }
  0xff   :  { %1324 = vmatpush1.bf16.msra.mxu0 %v677_v3 }
 0x100   :  { %v752_v30 = vpop.permute.xlu1 %751  ;;  %1325 = vmatprep.subr.bf16.mxu0 %v1083_v29  ;;  %v750_v32 = vpop.permute.xlu0 %749  ;;  %v1085_v34 = vld [vmem:[#allocation2 + $0x238] sm:$0xff] }
 0x101   :  { %763 = vst.msk [vmem:[#allocation2 + $0x258] sm:$0xff] %vm58_vm0, %v752_v30  ;;  %v755_v33 = vsel %vm4756_vm14, %v750_v32, %v752_v30  ;;  %vm4758_vm14 = vcmask 785408  }
 0x102   :  { %1311 = vmatmul.mubr.bf16.gmra.mrb[4].mxu0 %v3468_v28 }
 0x103   :  { %1326 = vmatpush1.bf16.msra.mxu0 %v715_v18  ;;  %1353 = vmatprep.mubr.bf16.mxu0 %v3471_v31 }
 0x104   :  { %v787_v35 = vpop.permute.xlu1 %786  ;;  %1327 = vmatprep.subr.bf16.mxu0 %v1085_v34  ;;  %v785_v36 = vpop.permute.xlu0 %784  ;;  %v1087_v38 = vld [vmem:[#allocation2 + $0x248] sm:$0xff] }
 0x105   :  { %800 = vst.msk [vmem:[#allocation2 + $0x268] sm:$0xff] %vm58_vm0, %v787_v35  ;;  %v793_v37 = vsel %vm4757_vm15, %v785_v36, %v787_v35 }
 0x107   :  { %1328 = vmatpush1.bf16.msra.mxu0 %v716_v24  ;;  %v3473_v24 = vld [vmem:[%s4723_s1 + $0x4c] ss:$28 sps:$4 sm:$0xff]   ;;  %s4783_s1 = smov 94  }
 0x108   :  { %v791_v39 = vpop.permute.xlu1 %790  ;;  %1329 = vmatprep.subr.bf16.mxu0 %v1087_v38  ;;  %v789_v40 = vpop.permute.xlu0 %788  ;;  %v1089_v42 = vld [vmem:[#allocation2 + $0x258] sm:$0xff] }
 0x109   :  { %802 = vst.msk [vmem:[#allocation2 + $0x278] sm:$0xff] %vm58_vm0, %v791_v39  ;;  %v794_v41 = vsel %vm4757_vm15, %v789_v40, %v791_v39  ;;  %vm4759_vm15 = vcmask 777216  }
 0x10b   :  { %1330 = vmatpush1.bf16.msra.mxu0 %v754_v0  ;;  %v1453_v0 = vlaneseq }
 0x10c   :  { %v826_v43 = vpop.permute.xlu1 %825  ;;  %1331 = vmatprep.subr.bf16.mxu0 %v1089_v42  ;;  %v824_v44 = vpop.permute.xlu0 %823  ;;  %v1091_v46 = vld [vmem:[#allocation2 + $0x268] sm:$0xff] }
 0x10d   :  { %839 = vst.msk [vmem:[#allocation2 + $0x288] sm:$0xff] %vm58_vm0, %v826_v43  ;;  %v832_v45 = vsel %vm4758_vm14, %v824_v44, %v826_v43  ;;  %v3966_v29 = vshrl.u32 %v1453_v0, 7 }
 0x10f   :  { %1332 = vmatpush1.bf16.msra.mxu0 %v755_v33  ;;  %v1459_v43 = vsub.s32 1, %v3966_v29 }
 0x110   :  { %v830_v47 = vpop.permute.xlu1 %829  ;;  %1333 = vmatprep.subr.bf16.mxu0 %v1091_v46  ;;  %v828_v48 = vpop.permute.xlu0 %827  ;;  %v1093_v50 = vld [vmem:[#allocation2 + $0x278] sm:$0xff] }
 0x111   :  { %841 = vst.msk [vmem:[#allocation2 + $0x298] sm:$0xff] %vm58_vm0, %v830_v47  ;;  %v833_v49 = vsel %vm4758_vm14, %v828_v48, %v830_v47  ;;  %vm4764_vm14 = vcmask 769024  }
 0x113   :  { %1334 = vmatpush1.bf16.msra.mxu0 %v793_v37  ;;  %v1455_v37 = vsub.s32 0, %v3966_v29 }
 0x114   :  { %v865_v51 = vpop.permute.xlu1 %864  ;;  %1335 = vmatprep.subr.bf16.mxu0 %v1093_v50  ;;  %v863_v52 = vpop.permute.xlu0 %862  ;;  %v1095_v54 = vld [vmem:[#allocation2 + $0x288] sm:$0xff] }
 0x115   :  { %878 = vst.msk [vmem:[#allocation2 + $0x2a8] sm:$0xff] %vm58_vm0, %v865_v51  ;;  %v871_v53 = vsel %vm4759_vm15, %v863_v52, %v865_v51 }
 0x117   :  { %1336 = vmatpush1.bf16.msra.mxu0 %v794_v41  ;;  %v1451_v41 = vld [vmem:[%s4725_s3] sm:$0x3]  ;;  %s4816_s3 = smov 108  }
 0x118   :  { %v869_v55 = vpop.permute.xlu1 %868  ;;  %1337 = vmatprep.subr.bf16.mxu0 %v1095_v54  ;;  %v867_v56 = vpop.permute.xlu0 %866  ;;  %v1097_v58 = vld [vmem:[#allocation2 + $0x298] sm:$0xff]  ;;  %v1456_v50 = vrot.slane %v1451_v41, %v1455_v37 }
 0x119   :  { %880 = vst.msk [vmem:[#allocation2 + $0x2b8] sm:$0xff] %vm58_vm0, %v869_v55  ;;  %v872_v57 = vsel %vm4759_vm15, %v867_v56, %v869_v55  ;;  %vm4763_vm15 = vcmask 760832   ;;  %v1460_v55 = vrot.slane %v1451_v41, %v1459_v43 }
 0x11b   :  { %1338 = vmatpush1.bf16.msra.mxu0 %v832_v45 }
 0x11c   :  { %v904_v59 = vpop.permute.xlu1 %903  ;;  %1339 = vmatprep.subr.bf16.mxu0 %v1097_v58  ;;  %v902_v60 = vpop.permute.xlu0 %901  ;;  %v1099_v62 = vld [vmem:[#allocation2 + $0x2a8] sm:$0xff] }
 0x11d   :  { %917 = vst.msk [vmem:[#allocation2 + $0x2c8] sm:$0xff] %vm58_vm0, %v904_v59  ;;  %v910_v61 = vsel %vm4764_vm14, %v902_v60, %v904_v59 }
 0x11f   :  { %1340 = vmatpush1.bf16.msra.mxu0 %v833_v49 }
 0x120   :  { %v908_v63 = vpop.permute.xlu1 %907  ;;  %1341 = vmatprep.subr.bf16.mxu0 %v1099_v62  ;;  %v906_v4 = vpop.permute.xlu0 %905  ;;  %v1101_v6 = vld [vmem:[#allocation2 + $0x2b8] sm:$0xff] }
 0x121   :  { %919 = vst.msk [vmem:[#allocation2 + $0x2d8] sm:$0xff] %vm58_vm0, %v908_v63  ;;  %v911_v5 = vsel %vm4764_vm14, %v906_v4, %v908_v63 }
 0x123   :  { %1342 = vmatpush1.bf16.msra.mxu0 %v871_v53 }
 0x124   :  { %v943_v7 = vpop.permute.xlu1 %942  ;;  %1343 = vmatprep.subr.bf16.mxu0 %v1101_v6  ;;  %v941_v8 = vpop.permute.xlu0 %940  ;;  %v1103_v10 = vld [vmem:[#allocation2 + $0x2c8] sm:$0xff] }
 0x125   :  { %956 = vst.msk [vmem:[#allocation2 + $0x2e8] sm:$0xff] %vm58_vm0, %v943_v7  ;;  %v949_v9 = vsel %vm4763_vm15, %v941_v8, %v943_v7 }
 0x127   :  { %1344 = vmatpush1.bf16.msra.mxu0 %v872_v57 }
 0x128   :  { %v982_v11 = vpop.permute.xlu1 %981  ;;  %1345 = vmatprep.subr.bf16.mxu0 %v1103_v10  ;;  %v980_v12 = vpop.permute.xlu0 %979  ;;  %v1105_v14 = vld [vmem:[#allocation2 + $0x2d8] sm:$0xff] }
 0x129   :  { %995 = vst.msk [vmem:[#allocation2 + $0x308] sm:$0xff] %vm58_vm0, %v982_v11  ;;  %v988_v13 = vsel %vm4762_vm13, %v980_v12, %v982_v11 }
 0x12b   :  { %1346 = vmatpush1.bf16.msra.mxu0 %v910_v61 }
 0x12c   :  { %v947_v15 = vpop.permute.xlu1 %946  ;;  %1347 = vmatprep.subr.bf16.mxu0 %v1105_v14  ;;  %v1107_v2 = vld [vmem:[#allocation2 + $0x2e8] sm:$0xff] }
 0x12d   :  { %958 = vst.msk [vmem:[#allocation2 + $0x2f8] sm:$0xff] %vm58_vm0, %v947_v15  ;;  %v945_v3 = vpop.permute.xlu0 %944 }
 0x12e   :  { %v950_v16 = vsel %vm4763_vm15, %v945_v3, %v947_v15 }
 0x12f   :  { %1348 = vmatpush1.bf16.msra.mxu0 %v911_v5 }
 0x130   :  { %v986_v17 = vpop.permute.xlu1 %985  ;;  %v1111_v18 = vld [vmem:[#allocation2 + $0x308] sm:$0xff]  ;;  %1349 = vmatprep.subr.bf16.mxu0 %v1107_v2 }
 0x131   :  { %997 = vst.msk [vmem:[#allocation2 + $0x318] sm:$0xff] %vm58_vm0, %v986_v17  ;;  %1374 = vmatprep.subr.bf16.mxu1 %v1111_v18  ;;  %v984_v20 = vpop.permute.xlu0 %983  ;;  %vm4761_vm0 = vcmask 261120  }
 0x132   :  { %1375 = vmatpush1.bf16.msra.mxu1 %v988_v13  ;;  %v989_v21 = vsel %vm4762_vm13, %v984_v20, %v986_v17 }
 0x133   :  { %1350 = vmatpush1.bf16.msra.mxu0 %v949_v9 }
 0x134   :  { %v1109_v22 = vld [vmem:[#allocation2 + $0x2f8] sm:$0xff] }
 0x135   :  { %1351 = vmatprep.subr.bf16.mxu0 %v1109_v22 }
 0x137   :  { %1352 = vmatpush1.bf16.msra.mxu0 %v950_v16 }
 0x138   :  { %v1113_v1 = vld [vmem:[#allocation2 + $0x318] sm:$0xff] }
 0x139   :  { %1376 = vmatprep.subr.bf16.mxu1 %v1113_v1 }
 0x13a   :  { %1377 = vmatpush1.bf16.msra.mxu1 %v989_v21  ;;  %1354 = vmatmul.mubr.bf16.vlgmr.msra.gmra.mrb[0].mxu0 %v3469_v23 }
 0x13b   :  { %1363 = vmatprep.mubr.bf16.mxu0 %v3473_v24 }
 0x13d   :  { %3230 = vmatmul.mubr.msk.bf16.vlgmr.msra.gmra.mrb[0].mxu1 %vm4761_vm0, %v3472_v25 }
 0x13e   :  { %1416 = vmatprep.mubr.bf16.mxu1 %v3541_v19 }
 0x141   :  { %v1126_v31 = vpop.permute.xlu1 %1125 }
 0x142   :  { %1364 = vmatmul.mubr.bf16.gmra.mrb[4].mxu0 %v3475_v26 }
 0x143   :  { %v1121_v28 = vpop.permute.xlu0 %1120 }
 0x145   :  { %3231 = vmatmul.mubr.msk.bf16.gmra.mrb[4].mxu1 %vm4761_vm0, %v3476_v27  ;;  %v1131_v53 = vpop.permute.xlu1 %1130 }
 0x147   :  { %v1136_v60 = vpop.permute.xlu0 %1135 }
 0x20d   :  { %v1355_v30 = vpop.f32.mrb[0].mxu0 }
 0x20e   :  { %v3360_v32 = vadd.f32 %v1355_v30, %v1121_v28  ;;  %v1357_v33 = vpop.f32.mrb[1].mxu0 }
 0x20f   :  { %v3362_v34 = vadd.f32 %v1357_v33, %v1121_v28  ;;  %v1359_v35 = vpop.f32.mrb[2].mxu0 }
 0x210   :  { %v1408_v36 = vpop.f32.mrb[0].mxu1  ;;  %v3364_v38 = vadd.f32 %v1359_v35, %v1126_v31  ;;  %v1361_v39 = vpop.f32.mrb[3].mxu0 }
 0x211   :  { %v3361_v40 = vadd.f32 %v3360_v32, %v1408_v36  ;;  %v1410_v42 = vpop.f32.mrb[1].mxu1  ;;  %v3366_v44 = vadd.f32 %v1361_v39, %v1126_v31  ;;  %v3479_v39 = vld [vmem:[%s4726_s4 + $0x4] ss:$28 sps:$4 sm:$0xff]  }
 0x212   :  { %v3363_v45 = vadd.f32 %v3362_v34, %v1410_v42  ;;  %v1412_v46 = vpop.f32.mrb[2].mxu1  ;;  %2164 = vmatprep.mubr.bf16.mxu1 %v3479_v39 }
 0x213   :  { %vm1427_vm0 = vcmp.ge.f32.partialorder %v3361_v40, 0.0  ;;  %v1435_v47 = vmul.f32 0.1, %v3361_v40  ;;  %v3365_v48 = vadd.f32 %v3364_v38, %v1412_v46  ;;  %v1414_v49 = vpop.f32.mrb[3].mxu1 }
 0x214   :  { %vm1428_vm13 = vcmp.ge.f32.partialorder %v3363_v45, 0.0  ;;  %v1436_v51 = vmul.f32 0.1, %v3363_v45  ;;  %v3367_v52 = vadd.f32 %v3366_v44, %v1414_v49 }
 0x215   :  { %v1443_v54 = vsel %vm1427_vm0, %v3361_v40, %v1435_v47  ;;  %vm1429_vm15 = vcmp.ge.f32.partialorder %v3365_v48, 0.0  ;;  %v1437_v56 = vmul.f32 0.1, %v3365_v48  ;;  %v1365_v59 = vpop.f32.mrb[4].mxu0 }
 0x216   :  { %v1444_v57 = vsel %vm1428_vm13, %v3363_v45, %v1436_v51  ;;  %vm1430_vm14 = vcmp.ge.f32.partialorder %v3367_v52, 0.0  ;;  %v1438_v58 = vmul.f32 0.1, %v3367_v52  ;;  %v3368_v62 = vadd.f32 %v1365_v59, %v1131_v53  ;;  %v1367_v63 = vpop.f32.mrb[5].mxu0 }
 0x217   :  { %v1445_v61 = vsel %vm1429_vm15, %v3365_v48, %v1437_v56  ;;  %v1463_v4 = vmul.f32 %v1456_v50, %v1443_v54  ;;  %v3370_v7 = vadd.f32 %v1367_v63, %v1131_v53  ;;  %v1369_v8 = vpop.f32.mrb[6].mxu0  ;;  %v1464_v10 = vmul.f32 %v1460_v55, %v1444_v57 }
 0x218   :  { %v1465_v5 = vmul.f32 %v1456_v50, %v1445_v61  ;;  %v1446_v6 = vsel %vm1430_vm14, %v3367_v52, %v1438_v58  ;;  %v1418_v9 = vpop.f32.mrb[4].mxu1  ;;  %v3372_v12 = vadd.f32 %v1369_v8, %v1136_v60  ;;  %v1371_v13 = vpop.f32.mrb[7].mxu0  ;;  %vm1476_vm13 = vcmask 293888  }
 0x219   :  { %v1466_v11 = vmul.f32 %v1460_v55, %v1446_v6  ;;  %v3369_v14 = vadd.f32 %v3368_v62, %v1418_v9  ;;  %v1420_v15 = vpop.f32.mrb[5].mxu1  ;;  %v3374_v16 = vadd.f32 %v1371_v13, %v1136_v60 }
 0x21a   :  { %v3977_v3 = vpack.c.bf16 %v1465_v5, %v1463_v4  ;;  %v3371_v2 = vadd.f32 %v3370_v7, %v1420_v15  ;;  %v1422_v17 = vpop.f32.mrb[6].mxu1 }
 0x21b   :  { %v3979_v18 = vpack.c.bf16 %v1466_v11, %v1464_v10  ;;  %vm1431_vm15 = vcmp.ge.f32.partialorder %v3369_v14, 0.0  ;;  %v1439_v20 = vmul.f32 0.1, %v3369_v14  ;;  %v3373_v21 = vadd.f32 %v3372_v12, %v1422_v17  ;;  %v1424_v22 = vpop.f32.mrb[7].mxu1 }
 0x21c   :  { %vm1432_vm14 = vcmp.ge.f32.partialorder %v3371_v2, 0.0  ;;  %v1440_v23 = vmul.f32 0.1, %v3371_v2  ;;  %v3375_v1 = vadd.f32 %v3374_v16, %v1424_v22  ;;  %1484 = vrot.lane.b32.xlu1 %v3977_v3, %s3517_s13 }
 0x21d   :  { %v1447_v24 = vsel %vm1431_vm15, %v3369_v14, %v1439_v20  ;;  %vm1433_vm0 = vcmp.ge.f32.partialorder %v3373_v21, 0.0  ;;  %v1441_v25 = vmul.f32 0.1, %v3373_v21  ;;  %1486 = vrot.lane.b32.xlu0 %v3979_v18, %s3517_s13  ;;  %1477 = vst.msk [vmem:[#allocation3 + $0x8] sm:$0xff] %vm1476_vm13, %v3979_v18 }
 0x21e   :  { %v1448_v26 = vsel %vm1432_vm14, %v3371_v2, %v1440_v23  ;;  %vm1434_vm12 = vcmp.ge.f32.partialorder %v3375_v1, 0.0  ;;  %v1442_v27 = vmul.f32 0.1, %v3375_v1  ;;  %v1467_v28 = vmul.f32 %v1456_v50, %v1447_v24 }
 0x21f   :  { %v1449_v0 = vsel %vm1433_vm0, %v3373_v21, %v1441_v25  ;;  %v1468_v32 = vmul.f32 %v1460_v55, %v1448_v26  ;;  %vm4788_vm14 = vcmask 891904  }
 0x220   :  { %v1469_v30 = vmul.f32 %v1456_v50, %v1449_v0  ;;  %v1450_v31 = vsel %vm1434_vm12, %v3375_v1, %v1442_v27  ;;  %vm4786_vm12 = vcmask 900096   ;;  %vm4789_vm0 = vmmov %vm4788_vm14 }
 0x221   :  { %v1470_v33 = vmul.f32 %v1460_v55, %v1450_v31  ;;  %vm4787_vm15 = vmmov %vm4786_vm12 }
 0x222   :  { %v3987_v34 = vpack.c.bf16 %v1469_v30, %v1467_v28 }
 0x223   :  { %v3989_v35 = vpack.c.bf16 %v1470_v33, %v1468_v32 }
 0x224   :  { %1488 = vrot.lane.b32.xlu1 %v3987_v34, %s3517_s13  ;;  %v1933_v36 = vld [vmem:[#allocation3 + $0x8] sm:$0xff] }
 0x225   :  { %2132 = vmatprep.subr.bf16.mxu1 %v1933_v36  ;;  %1479 = vst.msk [vmem:[#allocation3 + $0x18] sm:$0xff] %vm1476_vm13, %v3989_v35  ;;  %1490 = vrot.lane.b32.xlu0 %v3989_v35, %s3517_s13 }
 0x226   :  { %2133 = vmatpush1.bf16.msra.mxu1 %v3977_v3 }
 0x228   :  { %1502 = vrot.lane.b32.xlu1 %v3977_v3, %s3518_s18 }
 0x229   :  { %1504 = vrot.lane.b32.xlu0 %v3979_v18, %s3518_s18 }
 0x22c   :  { %1506 = vrot.lane.b32.xlu1 %v3987_v34, %s3518_s18  ;;  %v1935_v38 = vld [vmem:[#allocation3 + $0x18] sm:$0xff] }
 0x22d   :  { %1508 = vrot.lane.b32.xlu0 %v3989_v35, %s3518_s18  ;;  %2134 = vmatprep.subr.bf16.mxu1 %v1935_v38 }
 0x22e   :  { %2135 = vmatpush1.bf16.msra.mxu1 %v3987_v34 }
 0x230   :  { %1520 = vrot.lane.b32.xlu1 %v3977_v3, %s3519_s0 }
 0x231   :  { %1522 = vrot.lane.b32.xlu0 %v3979_v18, %s3519_s0 }
 0x234   :  { %1524 = vrot.lane.b32.xlu1 %v3987_v34, %s3519_s0 }
 0x235   :  { %1526 = vrot.lane.b32.xlu0 %v3989_v35, %s3519_s0 }
 0x238   :  { %1538 = vrot.lane.b32.xlu1 %v3977_v3, %s3520_s19 }
 0x239   :  { %1540 = vrot.lane.b32.xlu0 %v3979_v18, %s3520_s19 }
 0x23c   :  { %1542 = vrot.lane.b32.xlu1 %v3987_v34, %s3520_s19 }
 0x23d   :  { %1544 = vrot.lane.b32.xlu0 %v3989_v35, %s3520_s19 }
 0x240   :  { %1556 = vrot.lane.b32.xlu1 %v3977_v3, %s3521_s20 }
 0x241   :  { %1558 = vrot.lane.b32.xlu0 %v3979_v18, %s3521_s20 }
 0x244   :  { %1560 = vrot.lane.b32.xlu1 %v3987_v34, %s3521_s20 }
 0x245   :  { %1562 = vrot.lane.b32.xlu0 %v3989_v35, %s3521_s20 }
 0x248   :  { %1574 = vrot.lane.b32.xlu1 %v3977_v3, %s3522_s21 }
 0x249   :  { %1576 = vrot.lane.b32.xlu0 %v3979_v18, %s3522_s21 }
 0x24c   :  { %1578 = vrot.lane.b32.xlu1 %v3987_v34, %s3522_s21 }
 0x24d   :  { %1580 = vrot.lane.b32.xlu0 %v3989_v35, %s3522_s21 }
 0x250   :  { %1592 = vrot.lane.b32.xlu1 %v3977_v3, %s3523_s22 }
 0x251   :  { %1594 = vrot.lane.b32.xlu0 %v3979_v18, %s3523_s22 }
 0x254   :  { %1596 = vrot.lane.b32.xlu1 %v3987_v34, %s3523_s22 }
 0x255   :  { %1598 = vrot.lane.b32.xlu0 %v3989_v35, %s3523_s22 }
 0x258   :  { %1610 = vrot.lane.b32.xlu1 %v3977_v3, %s3524_s25 }
 0x259   :  { %1612 = vrot.lane.b32.xlu0 %v3979_v18, %s3524_s25 }
 0x25c   :  { %1614 = vrot.lane.b32.xlu1 %v3987_v34, %s3524_s25 }
 0x25d   :  { %1616 = vrot.lane.b32.xlu0 %v3989_v35, %s3524_s25 }
 0x260   :  { %1628 = vrot.lane.b32.xlu1 %v3977_v3, %s4772_s26 }
 0x261   :  { %1630 = vrot.lane.b32.xlu0 %v3979_v18, %s4772_s26 }
 0x264   :  { %1632 = vrot.lane.b32.xlu1 %v3987_v34, %s4772_s26 }
 0x265   :  { %1634 = vrot.lane.b32.xlu0 %v3989_v35, %s4772_s26  ;;  %s4818_s26 = smov 111  }
 0x268   :  { %1646 = vrot.lane.b32.xlu1 %v3977_v3, %s4768_s27 }
 0x269   :  { %1648 = vrot.lane.b32.xlu0 %v3979_v18, %s4768_s27 }
 0x26c   :  { %1650 = vrot.lane.b32.xlu1 %v3987_v34, %s4768_s27 }
 0x26d   :  { %1652 = vrot.lane.b32.xlu0 %v3989_v35, %s4768_s27  ;;  %s4785_s27 = smov 92  }
 0x270   :  { %1664 = vrot.lane.b32.xlu1 %v3977_v3, %s4766_s28 }
 0x271   :  { %1666 = vrot.lane.b32.xlu0 %v3979_v18, %s4766_s28 }
 0x274   :  { %1668 = vrot.lane.b32.xlu1 %v3987_v34, %s4766_s28 }
 0x275   :  { %1670 = vrot.lane.b32.xlu0 %v3989_v35, %s4766_s28 }
 0x278   :  { %1682 = vrot.lane.b32.xlu1 %v3977_v3, %s3528_s29 }
 0x279   :  { %1684 = vrot.lane.b32.xlu0 %v3979_v18, %s3528_s29 }
 0x27c   :  { %1686 = vrot.lane.b32.xlu1 %v3987_v34, %s3528_s29 }
 0x27d   :  { %1688 = vrot.lane.b32.xlu0 %v3989_v35, %s3528_s29 }
 0x280   :  { %1700 = vrot.lane.b32.xlu1 %v3977_v3, %s4774_s30 }
 0x281   :  { %1702 = vrot.lane.b32.xlu0 %v3979_v18, %s4774_s30 }
 0x284   :  { %1704 = vrot.lane.b32.xlu1 %v3987_v34, %s4774_s30 }
 0x285   :  { %1706 = vrot.lane.b32.xlu0 %v3989_v35, %s4774_s30 }
 0x288   :  { %1718 = vrot.lane.b32.xlu1 %v3977_v3, %s4770_s10 }
 0x289   :  { %1720 = vrot.lane.b32.xlu0 %v3979_v18, %s4770_s10 }
 0x28c   :  { %1722 = vrot.lane.b32.xlu1 %v3987_v34, %s4770_s10 }
 0x28d   :  { %1724 = vrot.lane.b32.xlu0 %v3989_v35, %s4770_s10 }
 0x28e   :  { %v1485_v40 = vpop.permute.xlu1 %1484 }
 0x28f   :  { %v1487_v41 = vpop.permute.xlu0 %1486 }
 0x290   :  { %v1492_v42 = vsel %vm90_vm1, %v1485_v40, %v1487_v41  ;;  %1499 = vst.msk [vmem:[#allocation3 + $0x28] sm:$0xff] %vm1476_vm13, %v1487_v41  ;;  %1736 = vrot.lane.b32.xlu1 %v3977_v3, %s4776_s12 }
 0x291   :  { %1738 = vrot.lane.b32.xlu0 %v3979_v18, %s4776_s12 }
 0x294   :  { %1740 = vrot.lane.b32.xlu1 %v3987_v34, %s4776_s12 }
 0x295   :  { %1742 = vrot.lane.b32.xlu0 %v3989_v35, %s4776_s12 }
 0x296   :  { %v1489_v44 = vpop.permute.xlu1 %1488 }
 0x297   :  { %v1491_v45 = vpop.permute.xlu0 %1490  ;;  %v1937_v46 = vld [vmem:[#allocation3 + $0x28] sm:$0xff] }
 0x298   :  { %v1493_v47 = vsel %vm90_vm1, %v1489_v44, %v1491_v45  ;;  %1501 = vst.msk [vmem:[#allocation3 + $0x38] sm:$0xff] %vm1476_vm13, %v1491_v45  ;;  %1754 = vrot.lane.b32.xlu1 %v3977_v3, %s4777_s23  ;;  %2136 = vmatprep.subr.bf16.mxu1 %v1937_v46 }
 0x299   :  { %1756 = vrot.lane.b32.xlu0 %v3979_v18, %s4777_s23  ;;  %2137 = vmatpush1.bf16.msra.mxu1 %v1492_v42 }
 0x29a   :  { %v1503_v48 = vpop.permute.xlu1 %1502 }
 0x29b   :  { %v1505_v49 = vpop.permute.xlu0 %1504 }
 0x29c   :  { %v1510_v50 = vsel %vm129_vm2, %v1503_v48, %v1505_v49  ;;  %1517 = vst.msk [vmem:[#allocation3 + $0x48] sm:$0xff] %vm1476_vm13, %v1505_v49  ;;  %1758 = vrot.lane.b32.xlu1 %v3987_v34, %s4777_s23  ;;  %v3480_v49 = vld [vmem:[%s4726_s4 + $0x3c] ss:$28 sps:$4 sm:$0xff]  }
 0x29d   :  { %1760 = vrot.lane.b32.xlu0 %v3989_v35, %s4777_s23 }
 0x29e   :  { %v1507_v51 = vpop.permute.xlu1 %1506 }
 0x29f   :  { %v1509_v52 = vpop.permute.xlu0 %1508  ;;  %v1939_v53 = vld [vmem:[#allocation3 + $0x38] sm:$0xff] }
 0x2a0   :  { %v1511_v54 = vsel %vm129_vm2, %v1507_v51, %v1509_v52  ;;  %1519 = vst.msk [vmem:[#allocation3 + $0x58] sm:$0xff] %vm1476_vm13, %v1509_v52  ;;  %1772 = vrot.lane.b32.xlu1 %v3977_v3, %s4778_s24  ;;  %2138 = vmatprep.subr.bf16.mxu1 %v1939_v53 }
 0x2a1   :  { %1774 = vrot.lane.b32.xlu0 %v3979_v18, %s4778_s24  ;;  %2139 = vmatpush1.bf16.msra.mxu1 %v1493_v47  ;;  %v3477_v47 = vld [vmem:[%s4726_s4] ss:$28 sps:$4 sm:$0xff]  }
 0x2a2   :  { %v1521_v55 = vpop.permute.xlu1 %1520 }
 0x2a3   :  { %v1523_v56 = vpop.permute.xlu0 %1522  ;;  %v1941_v57 = vld [vmem:[#allocation3 + $0x48] sm:$0xff] }
 0x2a4   :  { %v1528_v58 = vsel %vm168_vm3, %v1521_v55, %v1523_v56  ;;  %1535 = vst.msk [vmem:[#allocation3 + $0x68] sm:$0xff] %vm1476_vm13, %v1523_v56  ;;  %1776 = vrot.lane.b32.xlu1 %v3987_v34, %s4778_s24  ;;  %2140 = vmatprep.subr.bf16.mxu1 %v1941_v57  ;;  %v3482_v57 = vld [vmem:[%s4726_s4 + $0x38] ss:$28 sps:$4 sm:$0xff]  }
 0x2a5   :  { %1778 = vrot.lane.b32.xlu0 %v3989_v35, %s4778_s24  ;;  %2141 = vmatpush1.bf16.msra.mxu1 %v1510_v50 }
 0x2a6   :  { %v1525_v59 = vpop.permute.xlu1 %1524 }
 0x2a7   :  { %v1527_v60 = vpop.permute.xlu0 %1526  ;;  %v1943_v61 = vld [vmem:[#allocation3 + $0x58] sm:$0xff] }
 0x2a8   :  { %v1529_v62 = vsel %vm168_vm3, %v1525_v59, %v1527_v60  ;;  %1537 = vst.msk [vmem:[#allocation3 + $0x78] sm:$0xff] %vm1476_vm13, %v1527_v60  ;;  %1790 = vrot.lane.b32.xlu1 %v3977_v3, %s4779_s14  ;;  %2142 = vmatprep.subr.bf16.mxu1 %v1943_v61  ;;  %v3485_v59 = vld [vmem:[%s4726_s4 + $0xc] ss:$28 sps:$4 sm:$0xff]  }
 0x2a9   :  { %1792 = vrot.lane.b32.xlu0 %v3979_v18, %s4779_s14  ;;  %2143 = vmatpush1.bf16.msra.mxu1 %v1511_v54 }
 0x2aa   :  { %v1539_v63 = vpop.permute.xlu1 %1538 }
 0x2ab   :  { %v1541_v4 = vpop.permute.xlu0 %1540  ;;  %v1945_v5 = vld [vmem:[#allocation3 + $0x68] sm:$0xff] }
 0x2ac   :  { %v1546_v6 = vsel %vm207_vm4, %v1539_v63, %v1541_v4  ;;  %1553 = vst.msk [vmem:[#allocation3 + $0x88] sm:$0xff] %vm1476_vm13, %v1541_v4  ;;  %1794 = vrot.lane.b32.xlu1 %v3987_v34, %s4779_s14  ;;  %2144 = vmatprep.subr.bf16.mxu1 %v1945_v5  ;;  %v2033_v63 = vld [vmem:[%s4727_s5 + $0x8] sm:$0xff] }
 0x2ad   :  { %1796 = vrot.lane.b32.xlu0 %v3989_v35, %s4779_s14  ;;  %2145 = vmatpush1.bf16.msra.mxu1 %v1528_v58 }
 0x2ae   :  { %v1543_v7 = vpop.permute.xlu1 %1542 }
 0x2af   :  { %v1545_v8 = vpop.permute.xlu0 %1544  ;;  %v1947_v9 = vld [vmem:[#allocation3 + $0x78] sm:$0xff] }
 0x2b0   :  { %v1547_v10 = vsel %vm207_vm4, %v1543_v7, %v1545_v8  ;;  %1555 = vst.msk [vmem:[#allocation3 + $0x98] sm:$0xff] %vm1476_vm13, %v1545_v8  ;;  %1808 = vrot.lane.b32.xlu1 %v3977_v3, %s4780_s15  ;;  %2146 = vmatprep.subr.bf16.mxu1 %v1947_v9  ;;  %v2035_v7 = vld [vmem:[%s4727_s5 + $0x18] sm:$0xff] }
 0x2b1   :  { %1810 = vrot.lane.b32.xlu0 %v3979_v18, %s4780_s15  ;;  %2147 = vmatpush1.bf16.msra.mxu1 %v1529_v62 }
 0x2b2   :  { %v1557_v11 = vpop.permute.xlu1 %1556 }
 0x2b3   :  { %v1559_v12 = vpop.permute.xlu0 %1558  ;;  %v1949_v13 = vld [vmem:[#allocation3 + $0x88] sm:$0xff] }
 0x2b4   :  { %v1564_v14 = vsel %vm246_vm5, %v1557_v11, %v1559_v12  ;;  %1571 = vst.msk [vmem:[#allocation3 + $0xa8] sm:$0xff] %vm1476_vm13, %v1559_v12  ;;  %1812 = vrot.lane.b32.xlu1 %v3987_v34, %s4780_s15  ;;  %2148 = vmatprep.subr.bf16.mxu1 %v1949_v13 }
 0x2b5   :  { %1814 = vrot.lane.b32.xlu0 %v3989_v35, %s4780_s15  ;;  %2149 = vmatpush1.bf16.msra.mxu1 %v1546_v6 }
 0x2b6   :  { %v1561_v15 = vpop.permute.xlu1 %1560 }
 0x2b7   :  { %v1563_v16 = vpop.permute.xlu0 %1562  ;;  %v1951_v2 = vld [vmem:[#allocation3 + $0x98] sm:$0xff] }
 0x2b8   :  { %v1565_v17 = vsel %vm246_vm5, %v1561_v15, %v1563_v16  ;;  %1573 = vst.msk [vmem:[#allocation3 + $0xb8] sm:$0xff] %vm1476_vm13, %v1563_v16  ;;  %1826 = vrot.lane.b32.xlu1 %v3977_v3, %s4781_s16  ;;  %2150 = vmatprep.subr.bf16.mxu1 %v1951_v2 }
 0x2b9   :  { %1828 = vrot.lane.b32.xlu0 %v3979_v18, %s4781_s16  ;;  %2151 = vmatpush1.bf16.msra.mxu1 %v1547_v10 }
 0x2ba   :  { %v1575_v20 = vpop.permute.xlu1 %1574 }
 0x2bb   :  { %v1577_v21 = vpop.permute.xlu0 %1576  ;;  %v1953_v22 = vld [vmem:[#allocation3 + $0xa8] sm:$0xff] }
 0x2bc   :  { %v1582_v23 = vsel %vm285_vm6, %v1575_v20, %v1577_v21  ;;  %1589 = vst.msk [vmem:[#allocation3 + $0xc8] sm:$0xff] %vm1476_vm13, %v1577_v21  ;;  %1830 = vrot.lane.b32.xlu1 %v3987_v34, %s4781_s16  ;;  %2152 = vmatprep.subr.bf16.mxu1 %v1953_v22 }
 0x2bd   :  { %1832 = vrot.lane.b32.xlu0 %v3989_v35, %s4781_s16  ;;  %2153 = vmatpush1.bf16.msra.mxu1 %v1564_v14 }
 0x2be   :  { %v1579_v1 = vpop.permute.xlu1 %1578 }
 0x2bf   :  { %v1581_v24 = vpop.permute.xlu0 %1580  ;;  %v1955_v25 = vld [vmem:[#allocation3 + $0xb8] sm:$0xff] }
 0x2c0   :  { %v1583_v26 = vsel %vm285_vm6, %v1579_v1, %v1581_v24  ;;  %1591 = vst.msk [vmem:[#allocation3 + $0xd8] sm:$0xff] %vm1476_vm13, %v1581_v24  ;;  %1844 = vrot.lane.b32.xlu1 %v3977_v3, %s4782_s17  ;;  %2154 = vmatprep.subr.bf16.mxu1 %v1955_v25 }
 0x2c1   :  { %1846 = vrot.lane.b32.xlu0 %v3979_v18, %s4782_s17  ;;  %2155 = vmatpush1.bf16.msra.mxu1 %v1565_v17 }
 0x2c2   :  { %v1593_v27 = vpop.permute.xlu1 %1592 }
 0x2c3   :  { %v1595_v0 = vpop.permute.xlu0 %1594  ;;  %v1957_v28 = vld [vmem:[#allocation3 + $0xc8] sm:$0xff] }
 0x2c4   :  { %v1600_v30 = vsel %vm324_vm7, %v1593_v27, %v1595_v0  ;;  %1607 = vst.msk [vmem:[#allocation3 + $0xe8] sm:$0xff] %vm1476_vm13, %v1595_v0  ;;  %1848 = vrot.lane.b32.xlu1 %v3987_v34, %s4782_s17  ;;  %2156 = vmatprep.subr.bf16.mxu1 %v1957_v28 }
 0x2c5   :  { %1850 = vrot.lane.b32.xlu0 %v3989_v35, %s4782_s17  ;;  %2157 = vmatpush1.bf16.msra.mxu1 %v1582_v23 }
 0x2c6   :  { %v1597_v31 = vpop.permute.xlu1 %1596 }
 0x2c7   :  { %v1599_v32 = vpop.permute.xlu0 %1598  ;;  %v1959_v33 = vld [vmem:[#allocation3 + $0xd8] sm:$0xff] }
 0x2c8   :  { %v1601_v36 = vsel %vm324_vm7, %v1597_v31, %v1599_v32  ;;  %1609 = vst.msk [vmem:[#allocation3 + $0xf8] sm:$0xff] %vm1476_vm13, %v1599_v32  ;;  %1862 = vrot.lane.b32.xlu1 %v3977_v3, %s4783_s1  ;;  %2158 = vmatprep.subr.bf16.mxu1 %v1959_v33 }
 0x2c9   :  { %1864 = vrot.lane.b32.xlu0 %v3979_v18, %s4783_s1  ;;  %2159 = vmatpush1.bf16.msra.mxu1 %v1583_v26 }
 0x2ca   :  { %v1611_v38 = vpop.permute.xlu1 %1610 }
 0x2cb   :  { %v1613_v39 = vpop.permute.xlu0 %1612  ;;  %v1961_v40 = vld [vmem:[#allocation3 + $0xe8] sm:$0xff] }
 0x2cc   :  { %v1618_v41 = vsel %vm363_vm8, %v1611_v38, %v1613_v39  ;;  %1625 = vst.msk [vmem:[#allocation3 + $0x108] sm:$0xff] %vm1476_vm13, %v1613_v39  ;;  %1866 = vrot.lane.b32.xlu1 %v3987_v34, %s4783_s1  ;;  %2160 = vmatprep.subr.bf16.mxu1 %v1961_v40 }
 0x2cd   :  { %1868 = vrot.lane.b32.xlu0 %v3989_v35, %s4783_s1  ;;  %2161 = vmatpush1.bf16.msra.mxu1 %v1600_v30 }
 0x2ce   :  { %v1615_v42 = vpop.permute.xlu1 %1614 }
 0x2cf   :  { %v1617_v44 = vpop.permute.xlu0 %1616  ;;  %v1963_v45 = vld [vmem:[#allocation3 + $0xf8] sm:$0xff] }
 0x2d0   :  { %v1619_v46 = vsel %vm363_vm8, %v1615_v42, %v1617_v44  ;;  %1627 = vst.msk [vmem:[#allocation3 + $0x118] sm:$0xff] %vm1476_vm13, %v1617_v44  ;;  %1880 = vrot.lane.b32.xlu1 %v3977_v3, %s4784_s2  ;;  %2162 = vmatprep.subr.bf16.mxu1 %v1963_v45 }
 0x2d1   :  { %1882 = vrot.lane.b32.xlu0 %v3979_v18, %s4784_s2  ;;  %2163 = vmatpush1.bf16.msra.mxu1 %v1601_v36 }
 0x2d2   :  { %v1629_v48 = vpop.permute.xlu1 %1628 }
 0x2d3   :  { %v1631_v50 = vpop.permute.xlu0 %1630  ;;  %v1965_v51 = vld [vmem:[#allocation3 + $0x108] sm:$0xff] }
 0x2d4   :  { %v1636_v52 = vsel %vm402_vm9, %v1629_v48, %v1631_v50  ;;  %1643 = vst.msk [vmem:[#allocation3 + $0x128] sm:$0xff] %vm1476_vm13, %v1631_v50  ;;  %1884 = vrot.lane.b32.xlu1 %v3987_v34, %s4784_s2  ;;  %2185 = vmatprep.subr.bf16.mxu1 %v1965_v51 }
 0x2d5   :  { %1886 = vrot.lane.b32.xlu0 %v3989_v35, %s4784_s2  ;;  %2165 = vmatmul.mubr.bf16.vlgmr.msra.gmra.mrb[8].mxu1 %v3477_v47 }
 0x2d6   :  { %2186 = vmatpush1.bf16.msra.mxu1 %v1618_v41  ;;  %v1633_v53 = vpop.permute.xlu1 %1632  ;;  %2174 = vmatprep.mubr.bf16.mxu1 %v3480_v49 }
 0x2d7   :  { %v1635_v54 = vpop.permute.xlu0 %1634  ;;  %v1967_v55 = vld [vmem:[#allocation3 + $0x118] sm:$0xff] }
 0x2d8   :  { %v1637_v56 = vsel %vm402_vm9, %v1633_v53, %v1635_v54  ;;  %1645 = vst.msk [vmem:[#allocation3 + $0x138] sm:$0xff] %vm1476_vm13, %v1635_v54  ;;  %1898 = vrot.lane.b32.xlu1 %v3977_v3, %s4785_s27  ;;  %2187 = vmatprep.subr.bf16.mxu1 %v1967_v55  ;;  %v2032_v3 = vld [vmem:[%s4727_s5] sm:$0xff] }
 0x2d9   :  { %1900 = vrot.lane.b32.xlu0 %v3979_v18, %s4785_s27 }
 0x2da   :  { %2188 = vmatpush1.bf16.msra.mxu1 %v1619_v46  ;;  %v1647_v58 = vpop.permute.xlu1 %1646 }
 0x2db   :  { %v1649_v60 = vpop.permute.xlu0 %1648  ;;  %v1969_v61 = vld [vmem:[#allocation3 + $0x128] sm:$0xff] }
 0x2dc   :  { %v1654_v62 = vsel %vm441_vm10, %v1647_v58, %v1649_v60  ;;  %1661 = vst.msk [vmem:[#allocation3 + $0x148] sm:$0xff] %vm1476_vm13, %v1649_v60  ;;  %1902 = vrot.lane.b32.xlu1 %v3987_v34, %s4785_s27  ;;  %2189 = vmatprep.subr.bf16.mxu1 %v1969_v61  ;;  %v3486_v61 = vld [vmem:[%s4726_s4 + $0x44] ss:$28 sps:$4 sm:$0xff]  }
 0x2dd   :  { %1904 = vrot.lane.b32.xlu0 %v3989_v35, %s4785_s27  ;;  %2175 = vmatmul.mubr.bf16.gmra.mrb[12].mxu1 %v3482_v57  ;;  %v2034_v35 = vld [vmem:[%s4727_s5 + $0x10] sm:$0xff]  ;;  %s4817_s5 = smov 112  }
 0x2de   :  { %2190 = vmatpush1.bf16.msra.mxu1 %v1636_v52  ;;  %v1651_v18 = vpop.permute.xlu1 %1650  ;;  %2217 = vmatprep.mubr.bf16.mxu1 %v3485_v59  ;;  %v3483_v59 = vld [vmem:[%s4726_s4 + $0x8] ss:$28 sps:$4 sm:$0xff]  }
 0x2df   :  { %v1653_v4 = vpop.permute.xlu0 %1652  ;;  %v1971_v5 = vld [vmem:[#allocation3 + $0x138] sm:$0xff] }
 0x2e0   :  { %v1655_v34 = vsel %vm441_vm10, %v1651_v18, %v1653_v4  ;;  %1663 = vst.msk [vmem:[#allocation3 + $0x158] sm:$0xff] %vm1476_vm13, %v1653_v4  ;;  %2038 = vperm.xlu1 %3450, %v2032_v3   ;;  %2191 = vmatprep.subr.bf16.mxu1 %v1971_v5 }
 0x2e1   :  { %2043 = vperm.xlu0 %3449, %v2033_v63  }
 0x2e2   :  { %2192 = vmatpush1.bf16.msra.mxu1 %v1637_v56  ;;  %v1665_v6 = vpop.permute.xlu1 %1664 }
 0x2e3   :  { %v1667_v8 = vpop.permute.xlu0 %1666  ;;  %v1973_v9 = vld [vmem:[#allocation3 + $0x148] sm:$0xff] }
 0x2e4   :  { %v1672_v10 = vsel %vm480_vm11, %v1665_v6, %v1667_v8  ;;  %1679 = vst.msk [vmem:[#allocation3 + $0x168] sm:$0xff] %vm1476_vm13, %v1667_v8  ;;  %2048 = vperm.xlu1 %3450, %v2034_v35   ;;  %2193 = vmatprep.subr.bf16.mxu1 %v1973_v9  ;;  %v3488_v35 = vld [vmem:[%s4726_s4 + $0x40] ss:$28 sps:$4 sm:$0xff]  }
 0x2e5   :  { %2053 = vperm.xlu0 %3449, %v2035_v7   ;;  %v3491_v7 = vld [vmem:[%s4726_s4 + $0x14] ss:$28 sps:$4 sm:$0xff]  }
 0x2e6   :  { %2194 = vmatpush1.bf16.msra.mxu1 %v1654_v62  ;;  %v1669_v11 = vpop.permute.xlu1 %1668 }
 0x2e7   :  { %v1671_v12 = vpop.permute.xlu0 %1670  ;;  %v1975_v13 = vld [vmem:[#allocation3 + $0x158] sm:$0xff] }
 0x2e8   :  { %v1673_v14 = vsel %vm480_vm11, %v1669_v11, %v1671_v12  ;;  %1681 = vst.msk [vmem:[#allocation3 + $0x178] sm:$0xff] %vm1476_vm13, %v1671_v12  ;;  %2195 = vmatprep.subr.bf16.mxu1 %v1975_v13 }
 0x2ea   :  { %2196 = vmatpush1.bf16.msra.mxu1 %v1655_v34  ;;  %v1683_v15 = vpop.permute.xlu1 %1682 }
 0x2eb   :  { %v1685_v16 = vpop.permute.xlu0 %1684  ;;  %v1977_v2 = vld [vmem:[#allocation3 + $0x168] sm:$0xff] }
 0x2ec   :  { %v1690_v17 = vsel %vm4786_vm12, %v1683_v15, %v1685_v16  ;;  %1697 = vst.msk [vmem:[#allocation3 + $0x188] sm:$0xff] %vm1476_vm13, %v1685_v16  ;;  %2197 = vmatprep.subr.bf16.mxu1 %v1977_v2  ;;  %vm4790_vm12 = vcmask 883712  }
 0x2ee   :  { %2198 = vmatpush1.bf16.msra.mxu1 %v1672_v10  ;;  %v1687_v20 = vpop.permute.xlu1 %1686 }
 0x2ef   :  { %v1689_v21 = vpop.permute.xlu0 %1688  ;;  %v1979_v22 = vld [vmem:[#allocation3 + $0x178] sm:$0xff] }
 0x2f0   :  { %v1691_v23 = vsel %vm4787_vm15, %v1687_v20, %v1689_v21  ;;  %1699 = vst.msk [vmem:[#allocation3 + $0x198] sm:$0xff] %vm1476_vm13, %v1689_v21  ;;  %2199 = vmatprep.subr.bf16.mxu1 %v1979_v22  ;;  %vm4791_vm15 = vmmov %vm4790_vm12 }
 0x2f2   :  { %2200 = vmatpush1.bf16.msra.mxu1 %v1673_v14  ;;  %v1701_v1 = vpop.permute.xlu1 %1700 }
 0x2f3   :  { %v1703_v24 = vpop.permute.xlu0 %1702  ;;  %v1981_v25 = vld [vmem:[#allocation3 + $0x188] sm:$0xff] }
 0x2f4   :  { %v1708_v26 = vsel %vm4788_vm14, %v1701_v1, %v1703_v24  ;;  %1715 = vst.msk [vmem:[#allocation3 + $0x1a8] sm:$0xff] %vm1476_vm13, %v1703_v24  ;;  %2201 = vmatprep.subr.bf16.mxu1 %v1981_v25  ;;  %vm4792_vm14 = vcmask 850944  }
 0x2f6   :  { %2202 = vmatpush1.bf16.msra.mxu1 %v1690_v17  ;;  %v1705_v27 = vpop.permute.xlu1 %1704 }
 0x2f7   :  { %v1707_v0 = vpop.permute.xlu0 %1706  ;;  %v1983_v28 = vld [vmem:[#allocation3 + $0x198] sm:$0xff] }
 0x2f8   :  { %v1709_v30 = vsel %vm4789_vm0, %v1705_v27, %v1707_v0  ;;  %1717 = vst.msk [vmem:[#allocation3 + $0x1b8] sm:$0xff] %vm1476_vm13, %v1707_v0  ;;  %2203 = vmatprep.subr.bf16.mxu1 %v1983_v28  ;;  %vm4793_vm0 = vmmov %vm4792_vm14 }
 0x2fa   :  { %2204 = vmatpush1.bf16.msra.mxu1 %v1691_v23  ;;  %v1719_v31 = vpop.permute.xlu1 %1718 }
 0x2fb   :  { %v1721_v32 = vpop.permute.xlu0 %1720  ;;  %v1985_v33 = vld [vmem:[#allocation3 + $0x1a8] sm:$0xff] }
 0x2fc   :  { %v1726_v36 = vsel %vm4790_vm12, %v1719_v31, %v1721_v32  ;;  %1733 = vst.msk [vmem:[#allocation3 + $0x1c8] sm:$0xff] %vm1476_vm13, %v1721_v32  ;;  %2205 = vmatprep.subr.bf16.mxu1 %v1985_v33  ;;  %vm4794_vm12 = vcmask 842752  }
 0x2fe   :  { %2206 = vmatpush1.bf16.msra.mxu1 %v1708_v26  ;;  %v1723_v38 = vpop.permute.xlu1 %1722 }
 0x2ff   :  { %v1725_v39 = vpop.permute.xlu0 %1724  ;;  %v1987_v40 = vld [vmem:[#allocation3 + $0x1b8] sm:$0xff] }
 0x300   :  { %v1727_v41 = vsel %vm4791_vm15, %v1723_v38, %v1725_v39  ;;  %1735 = vst.msk [vmem:[#allocation3 + $0x1d8] sm:$0xff] %vm1476_vm13, %v1725_v39  ;;  %2207 = vmatprep.subr.bf16.mxu1 %v1987_v40  ;;  %vm4795_vm15 = vmmov %vm4794_vm12 }
 0x302   :  { %2208 = vmatpush1.bf16.msra.mxu1 %v1709_v30  ;;  %v1737_v42 = vpop.permute.xlu1 %1736 }
 0x303   :  { %v1739_v44 = vpop.permute.xlu0 %1738  ;;  %v1989_v45 = vld [vmem:[#allocation3 + $0x1c8] sm:$0xff] }
 0x304   :  { %v1744_v46 = vsel %vm4792_vm14, %v1737_v42, %v1739_v44  ;;  %1751 = vst.msk [vmem:[#allocation3 + $0x1e8] sm:$0xff] %vm1476_vm13, %v1739_v44  ;;  %2209 = vmatprep.subr.bf16.mxu1 %v1989_v45  ;;  %vm4796_vm14 = vcmask 834560  }
 0x306   :  { %2210 = vmatpush1.bf16.msra.mxu1 %v1726_v36  ;;  %v1741_v47 = vpop.permute.xlu1 %1740 }
 0x307   :  { %v1743_v48 = vpop.permute.xlu0 %1742  ;;  %v1991_v49 = vld [vmem:[#allocation3 + $0x1d8] sm:$0xff] }
 0x308   :  { %v1745_v50 = vsel %vm4793_vm0, %v1741_v47, %v1743_v48  ;;  %1753 = vst.msk [vmem:[#allocation3 + $0x1f8] sm:$0xff] %vm1476_vm13, %v1743_v48  ;;  %2211 = vmatprep.subr.bf16.mxu1 %v1991_v49  ;;  %vm4797_vm0 = vmmov %vm4796_vm14 }
 0x30a   :  { %2212 = vmatpush1.bf16.msra.mxu1 %v1727_v41  ;;  %v1755_v51 = vpop.permute.xlu1 %1754 }
 0x30b   :  { %v1757_v52 = vpop.permute.xlu0 %1756  ;;  %v1993_v53 = vld [vmem:[#allocation3 + $0x1e8] sm:$0xff] }
 0x30c   :  { %v1762_v54 = vsel %vm4794_vm12, %v1755_v51, %v1757_v52  ;;  %1769 = vst.msk [vmem:[#allocation3 + $0x208] sm:$0xff] %vm1476_vm13, %v1757_v52  ;;  %2213 = vmatprep.subr.bf16.mxu1 %v1993_v53  ;;  %vm4798_vm12 = vcmask 826368  }
 0x30e   :  { %2214 = vmatpush1.bf16.msra.mxu1 %v1744_v46  ;;  %v1759_v55 = vpop.permute.xlu1 %1758 }
 0x30f   :  { %v1761_v56 = vpop.permute.xlu0 %1760  ;;  %v1995_v57 = vld [vmem:[#allocation3 + $0x1f8] sm:$0xff] }
 0x310   :  { %v1763_v58 = vsel %vm4795_vm15, %v1759_v55, %v1761_v56  ;;  %1771 = vst.msk [vmem:[#allocation3 + $0x218] sm:$0xff] %vm1476_vm13, %v1761_v56  ;;  %2215 = vmatprep.subr.bf16.mxu1 %v1995_v57  ;;  %vm4799_vm15 = vmmov %vm4798_vm12 }
 0x312   :  { %2216 = vmatpush1.bf16.msra.mxu1 %v1745_v50  ;;  %v1773_v60 = vpop.permute.xlu1 %1772 }
 0x313   :  { %v1775_v62 = vpop.permute.xlu0 %1774  ;;  %v1997_v3 = vld [vmem:[#allocation3 + $0x208] sm:$0xff] }
 0x314   :  { %v1780_v18 = vsel %vm4796_vm14, %v1773_v60, %v1775_v62  ;;  %1787 = vst.msk [vmem:[#allocation3 + $0x228] sm:$0xff] %vm1476_vm13, %v1775_v62  ;;  %2238 = vmatprep.subr.bf16.mxu1 %v1997_v3  ;;  %vm4800_vm14 = vcmask 818176  }
 0x315   :  { %2218 = vmatmul.mubr.bf16.vlgmr.msra.gmra.mrb[8].mxu1 %v3483_v59 }
 0x316   :  { %2239 = vmatpush1.bf16.msra.mxu1 %v1762_v54  ;;  %v1777_v63 = vpop.permute.xlu1 %1776  ;;  %2227 = vmatprep.mubr.bf16.mxu1 %v3486_v61 }
 0x317   :  { %v1779_v4 = vpop.permute.xlu0 %1778  ;;  %v1999_v5 = vld [vmem:[#allocation3 + $0x218] sm:$0xff] }
 0x318   :  { %v1781_v34 = vsel %vm4797_vm0, %v1777_v63, %v1779_v4  ;;  %1789 = vst.msk [vmem:[#allocation3 + $0x238] sm:$0xff] %vm1476_vm13, %v1779_v4  ;;  %2240 = vmatprep.subr.bf16.mxu1 %v1999_v5  ;;  %vm4801_vm0 = vmmov %vm4800_vm14  ;;  %v3489_v5 = vld [vmem:[%s4726_s4 + $0x10] ss:$28 sps:$4 sm:$0xff]  }
 0x31a   :  { %2241 = vmatpush1.bf16.msra.mxu1 %v1763_v58  ;;  %v1791_v6 = vpop.permute.xlu1 %1790 }
 0x31b   :  { %v1793_v8 = vpop.permute.xlu0 %1792  ;;  %v2001_v9 = vld [vmem:[#allocation3 + $0x228] sm:$0xff] }
 0x31c   :  { %v1798_v10 = vsel %vm4798_vm12, %v1791_v6, %v1793_v8  ;;  %1805 = vst.msk [vmem:[#allocation3 + $0x248] sm:$0xff] %vm1476_vm13, %v1793_v8  ;;  %2242 = vmatprep.subr.bf16.mxu1 %v2001_v9  ;;  %vm4802_vm12 = vcmask 785408   ;;  %v3495_v8 = vld [vmem:[%s4726_s4 + $0x18] ss:$28 sps:$4 sm:$0xff]   ;;  %v3496_v9 = vld [vmem:[%s4726_s4 + $0x50] ss:$28 sps:$4 sm:$0xff]  }
 0x31d   :  { %2228 = vmatmul.mubr.bf16.gmra.mrb[12].mxu1 %v3488_v35 }
 0x31e   :  { %2243 = vmatpush1.bf16.msra.mxu1 %v1780_v18  ;;  %v1795_v11 = vpop.permute.xlu1 %1794  ;;  %2270 = vmatprep.mubr.bf16.mxu1 %v3491_v7  ;;  %v3494_v7 = vld [vmem:[%s4726_s4 + $0x48] ss:$28 sps:$4 sm:$0xff]  }
 0x31f   :  { %v1797_v12 = vpop.permute.xlu0 %1796  ;;  %v2003_v13 = vld [vmem:[#allocation3 + $0x238] sm:$0xff] }
 0x320   :  { %v1799_v14 = vsel %vm4799_vm15, %v1795_v11, %v1797_v12  ;;  %1807 = vst.msk [vmem:[#allocation3 + $0x258] sm:$0xff] %vm1476_vm13, %v1797_v12  ;;  %2244 = vmatprep.subr.bf16.mxu1 %v2003_v13  ;;  %vm4803_vm15 = vmmov %vm4802_vm12  ;;  %v2368_v13 = vld [vmem:[%s4728_s6] sm:$0x3]  ;;  %s4815_s6 = smov 116  }
 0x322   :  { %2245 = vmatpush1.bf16.msra.mxu1 %v1781_v34  ;;  %v1809_v15 = vpop.permute.xlu1 %1808  ;;  %v3492_v34 = vld [vmem:[%s4726_s4 + $0x4c] ss:$28 sps:$4 sm:$0xff]   ;;  %s4814_s4 = smov 109  }
 0x323   :  { %v1811_v16 = vpop.permute.xlu0 %1810  ;;  %v2005_v2 = vld [vmem:[#allocation3 + $0x248] sm:$0xff] }
 0x324   :  { %v1816_v17 = vsel %vm4800_vm14, %v1809_v15, %v1811_v16  ;;  %1823 = vst.msk [vmem:[#allocation3 + $0x268] sm:$0xff] %vm1476_vm13, %v1811_v16  ;;  %2246 = vmatprep.subr.bf16.mxu1 %v2005_v2  ;;  %vm4804_vm14 = vcmask 777216  }
 0x326   :  { %2247 = vmatpush1.bf16.msra.mxu1 %v1798_v10  ;;  %v1813_v20 = vpop.permute.xlu1 %1812 }
 0x327   :  { %v1815_v21 = vpop.permute.xlu0 %1814  ;;  %v2007_v22 = vld [vmem:[#allocation3 + $0x258] sm:$0xff] }
 0x328   :  { %v1817_v23 = vsel %vm4801_vm0, %v1813_v20, %v1815_v21  ;;  %1825 = vst.msk [vmem:[#allocation3 + $0x278] sm:$0xff] %vm1476_vm13, %v1815_v21  ;;  %2248 = vmatprep.subr.bf16.mxu1 %v2007_v22  ;;  %vm4805_vm0 = vmmov %vm4804_vm14  ;;  %v2373_v21 = vrot.slane %v2368_v13, %v1455_v37 }
 0x32a   :  { %2249 = vmatpush1.bf16.msra.mxu1 %v1799_v14  ;;  %v1827_v1 = vpop.permute.xlu1 %1826 }
 0x32b   :  { %v1829_v24 = vpop.permute.xlu0 %1828  ;;  %v2009_v25 = vld [vmem:[#allocation3 + $0x268] sm:$0xff] }
 0x32c   :  { %v1834_v26 = vsel %vm4802_vm12, %v1827_v1, %v1829_v24  ;;  %1841 = vst.msk [vmem:[#allocation3 + $0x288] sm:$0xff] %vm1476_vm13, %v1829_v24  ;;  %2250 = vmatprep.subr.bf16.mxu1 %v2009_v25  ;;  %vm4806_vm12 = vcmask 769024   ;;  %v2377_v24 = vrot.slane %v2368_v13, %v1459_v43 }
 0x32e   :  { %2251 = vmatpush1.bf16.msra.mxu1 %v1816_v17  ;;  %v1831_v27 = vpop.permute.xlu1 %1830 }
 0x32f   :  { %v1833_v0 = vpop.permute.xlu0 %1832  ;;  %v2011_v28 = vld [vmem:[#allocation3 + $0x278] sm:$0xff] }
 0x330   :  { %v1835_v30 = vsel %vm4803_vm15, %v1831_v27, %v1833_v0  ;;  %1843 = vst.msk [vmem:[#allocation3 + $0x298] sm:$0xff] %vm1476_vm13, %v1833_v0  ;;  %2252 = vmatprep.subr.bf16.mxu1 %v2011_v28  ;;  %vm4807_vm15 = vmmov %vm4806_vm12 }
 0x332   :  { %2253 = vmatpush1.bf16.msra.mxu1 %v1817_v23  ;;  %v1845_v31 = vpop.permute.xlu1 %1844 }
 0x333   :  { %v1847_v32 = vpop.permute.xlu0 %1846  ;;  %v2013_v33 = vld [vmem:[#allocation3 + $0x288] sm:$0xff] }
 0x334   :  { %v1852_v36 = vsel %vm4804_vm14, %v1845_v31, %v1847_v32  ;;  %1859 = vst.msk [vmem:[#allocation3 + $0x2a8] sm:$0xff] %vm1476_vm13, %v1847_v32  ;;  %2254 = vmatprep.subr.bf16.mxu1 %v2013_v33  ;;  %vm4808_vm14 = vcmask 760832  }
 0x336   :  { %2255 = vmatpush1.bf16.msra.mxu1 %v1834_v26  ;;  %v1849_v38 = vpop.permute.xlu1 %1848 }
 0x337   :  { %v1851_v39 = vpop.permute.xlu0 %1850  ;;  %v2015_v40 = vld [vmem:[#allocation3 + $0x298] sm:$0xff] }
 0x338   :  { %v1853_v41 = vsel %vm4805_vm0, %v1849_v38, %v1851_v39  ;;  %1861 = vst.msk [vmem:[#allocation3 + $0x2b8] sm:$0xff] %vm1476_vm13, %v1851_v39  ;;  %2256 = vmatprep.subr.bf16.mxu1 %v2015_v40  ;;  %vm4809_vm0 = vmmov %vm4808_vm14 }
 0x33a   :  { %2257 = vmatpush1.bf16.msra.mxu1 %v1835_v30  ;;  %v1863_v42 = vpop.permute.xlu1 %1862 }
 0x33b   :  { %v1865_v44 = vpop.permute.xlu0 %1864  ;;  %v2017_v45 = vld [vmem:[#allocation3 + $0x2a8] sm:$0xff] }
 0x33c   :  { %v1870_v46 = vsel %vm4806_vm12, %v1863_v42, %v1865_v44  ;;  %1877 = vst.msk [vmem:[#allocation3 + $0x2c8] sm:$0xff] %vm1476_vm13, %v1865_v44  ;;  %2258 = vmatprep.subr.bf16.mxu1 %v2017_v45  ;;  %vm4810_vm12 = vcmask 752640  }
 0x33e   :  { %2259 = vmatpush1.bf16.msra.mxu1 %v1852_v36  ;;  %v1867_v47 = vpop.permute.xlu1 %1866 }
 0x33f   :  { %v1869_v48 = vpop.permute.xlu0 %1868  ;;  %v2019_v49 = vld [vmem:[#allocation3 + $0x2b8] sm:$0xff] }
 0x340   :  { %v1871_v50 = vsel %vm4807_vm15, %v1867_v47, %v1869_v48  ;;  %1879 = vst.msk [vmem:[#allocation3 + $0x2d8] sm:$0xff] %vm1476_vm13, %v1869_v48  ;;  %2260 = vmatprep.subr.bf16.mxu1 %v2019_v49  ;;  %vm4811_vm15 = vmmov %vm4810_vm12 }
 0x342   :  { %2261 = vmatpush1.bf16.msra.mxu1 %v1853_v41  ;;  %v1881_v51 = vpop.permute.xlu1 %1880 }
 0x343   :  { %v1883_v52 = vpop.permute.xlu0 %1882  ;;  %v2021_v53 = vld [vmem:[#allocation3 + $0x2c8] sm:$0xff] }
 0x344   :  { %v1888_v54 = vsel %vm4808_vm14, %v1881_v51, %v1883_v52  ;;  %1895 = vst.msk [vmem:[#allocation3 + $0x2e8] sm:$0xff] %vm1476_vm13, %v1883_v52  ;;  %2262 = vmatprep.subr.bf16.mxu1 %v2021_v53 }
 0x346   :  { %2263 = vmatpush1.bf16.msra.mxu1 %v1870_v46  ;;  %v1885_v55 = vpop.permute.xlu1 %1884 }
 0x347   :  { %v1887_v56 = vpop.permute.xlu0 %1886  ;;  %v2023_v57 = vld [vmem:[#allocation3 + $0x2d8] sm:$0xff] }
 0x348   :  { %v1889_v58 = vsel %vm4809_vm0, %v1885_v55, %v1887_v56  ;;  %1897 = vst.msk [vmem:[#allocation3 + $0x2f8] sm:$0xff] %vm1476_vm13, %v1887_v56  ;;  %2264 = vmatprep.subr.bf16.mxu1 %v2023_v57 }
 0x34a   :  { %2265 = vmatpush1.bf16.msra.mxu1 %v1871_v50  ;;  %v1899_v59 = vpop.permute.xlu1 %1898 }
 0x34b   :  { %v1901_v60 = vpop.permute.xlu0 %1900  ;;  %v2025_v61 = vld [vmem:[#allocation3 + $0x2e8] sm:$0xff] }
 0x34c   :  { %v1906_v62 = vsel %vm4810_vm12, %v1899_v59, %v1901_v60  ;;  %1913 = vst.msk [vmem:[#allocation3 + $0x308] sm:$0xff] %vm1476_vm13, %v1901_v60  ;;  %2266 = vmatprep.subr.bf16.mxu1 %v2025_v61  ;;  %v3499_v61 = vld [vmem:[%s4729_s7 + $0x4] ss:$28 sps:$4 sm:$0xff]  }
 0x34d   :  { %2932 = vmatprep.mubr.bf16.mxu0 %v3499_v61 }
 0x34e   :  { %2267 = vmatpush1.bf16.msra.mxu1 %v1888_v54  ;;  %v1903_v3 = vpop.permute.xlu1 %1902 }
 0x34f   :  { %v1905_v18 = vpop.permute.xlu0 %1904  ;;  %v2027_v63 = vld [vmem:[#allocation3 + $0x2f8] sm:$0xff] }
 0x350   :  { %v1907_v4 = vsel %vm4811_vm15, %v1903_v3, %v1905_v18  ;;  %1915 = vst.msk [vmem:[#allocation3 + $0x318] sm:$0xff] %vm1476_vm13, %v1905_v18  ;;  %2268 = vmatprep.subr.bf16.mxu1 %v2027_v63  ;;  %vm4812_vm13 = vcmask 261120  }
 0x351   :  { %vm4813_vm14 = vmmov %vm4812_vm13 }
 0x352   :  { %2269 = vmatpush1.bf16.msra.mxu1 %v1889_v58 }
 0x353   :  { %v2029_v35 = vld [vmem:[#allocation3 + $0x308] sm:$0xff] }
 0x354   :  { %2291 = vmatprep.subr.bf16.mxu1 %v2029_v35 }
 0x355   :  { %2271 = vmatmul.mubr.bf16.vlgmr.msra.gmra.mrb[8].mxu1 %v3489_v5 }
 0x356   :  { %2292 = vmatpush1.bf16.msra.mxu1 %v1906_v62  ;;  %2280 = vmatprep.mubr.bf16.mxu1 %v3492_v34 }
 0x357   :  { %v2031_v6 = vld [vmem:[#allocation3 + $0x318] sm:$0xff] }
 0x358   :  { %2293 = vmatprep.subr.bf16.mxu1 %v2031_v6 }
 0x35a   :  { %2294 = vmatpush1.bf16.msra.mxu1 %v1907_v4 }
 0x35d   :  { %2281 = vmatmul.mubr.bf16.gmra.mrb[12].mxu1 %v3494_v7 }
 0x35e   :  { %2323 = vmatprep.mubr.bf16.mxu1 %v3541_v19 }
 0x35f   :  { %v2039_v10 = vpop.permute.xlu1 %2038 }
 0x360   :  { %v2044_v15 = vpop.permute.xlu0 %2043 }
 0x363   :  { %v2049_v28 = vpop.permute.xlu1 %2048 }
 0x364   :  { %v2054_v40 = vpop.permute.xlu0 %2053 }
 0x365   :  { %3246 = vmatmul.mubr.msk.bf16.vlgmr.msra.gmra.mrb[8].mxu1 %vm4812_vm13, %v3495_v8 }
 0x366   :  { %2333 = vmatprep.mubr.bf16.mxu1 %v3541_v19 }
 0x36d   :  { %3247 = vmatmul.mubr.msk.bf16.gmra.mrb[12].mxu1 %vm4813_vm14, %v3496_v9 }
 0x438   :  { %v2325_v11 = vpop.f32.mrb[8].mxu1 }
 0x439   :  { %v3376_v12 = vadd.f32 %v2325_v11, %v2039_v10  ;;  %v2327_v14 = vpop.f32.mrb[9].mxu1 }
 0x43a   :  { %v3377_v16 = vadd.f32 %v2327_v14, %v2039_v10  ;;  %v2329_v2 = vpop.f32.mrb[10].mxu1 }
 0x43b   :  { %vm2344_vm0 = vcmp.ge.f32.partialorder %v3376_v12, 0.0  ;;  %v2352_v17 = vmul.f32 0.1, %v3376_v12  ;;  %v3378_v19 = vadd.f32 %v2329_v2, %v2044_v15  ;;  %v2331_v20 = vpop.f32.mrb[11].mxu1 }
 0x43c   :  { %vm2345_vm12 = vcmp.ge.f32.partialorder %v3377_v16, 0.0  ;;  %v2353_v22 = vmul.f32 0.1, %v3377_v16  ;;  %v3379_v23 = vadd.f32 %v2331_v20, %v2044_v15 }
 0x43d   :  { %v2360_v1 = vsel %vm2344_vm0, %v3376_v12, %v2352_v17  ;;  %vm2346_vm15 = vcmp.ge.f32.partialorder %v3378_v19, 0.0  ;;  %v2354_v25 = vmul.f32 0.1, %v3378_v19 }
 0x43e   :  { %v2361_v26 = vsel %vm2345_vm12, %v3377_v16, %v2353_v22  ;;  %vm2347_vm13 = vcmp.ge.f32.partialorder %v3379_v23, 0.0  ;;  %v2355_v27 = vmul.f32 0.1, %v3379_v23  ;;  %v2380_v30 = vmul.f32 %v2373_v21, %v2360_v1 }
 0x43f   :  { %v2362_v0 = vsel %vm2346_vm15, %v3378_v19, %v2354_v25  ;;  %v2381_v36 = vmul.f32 %v2377_v24, %v2361_v26 }
 0x440   :  { %v2382_v31 = vmul.f32 %v2373_v21, %v2362_v0  ;;  %v2363_v32 = vsel %vm2347_vm13, %v3379_v23, %v2355_v27  ;;  %v2335_v33 = vpop.f32.mrb[12].mxu1  ;;  %vm4819_vm13 = vcmask 900096  }
 0x441   :  { %v2383_v37 = vmul.f32 %v2377_v24, %v2363_v32  ;;  %v3380_v38 = vadd.f32 %v2335_v33, %v2049_v28  ;;  %v2337_v39 = vpop.f32.mrb[13].mxu1 }
 0x442   :  { %v4344_v41 = vpack.c.bf16 %v2382_v31, %v2380_v30  ;;  %v3381_v29 = vadd.f32 %v2337_v39, %v2049_v28  ;;  %v2339_v43 = vpop.f32.mrb[14].mxu1 }
 0x443   :  { %v4346_v42 = vpack.c.bf16 %v2383_v37, %v2381_v36  ;;  %vm2348_vm14 = vcmp.ge.f32.partialorder %v3380_v38, 0.0  ;;  %v2356_v44 = vmul.f32 0.1, %v3380_v38  ;;  %v3382_v45 = vadd.f32 %v2339_v43, %v2054_v40  ;;  %v2341_v46 = vpop.f32.mrb[15].mxu1  ;;  %v3505_v36 = vld [vmem:[%s4729_s7 + $0xc] ss:$28 sps:$4 sm:$0xff]  }
 0x444   :  { %vm2349_vm0 = vcmp.ge.f32.partialorder %v3381_v29, 0.0  ;;  %v2357_v47 = vmul.f32 0.1, %v3381_v29  ;;  %v3383_v48 = vadd.f32 %v2341_v46, %v2054_v40  ;;  %2440 = vrot.lane.b32.xlu1 %v4344_v41, %s3520_s19  ;;  %2981 = vmatprep.mubr.bf16.mxu1 %v3505_v36 }
 0x445   :  { %v2364_v49 = vsel %vm2348_vm14, %v3380_v38, %v2356_v44  ;;  %vm2350_vm12 = vcmp.ge.f32.partialorder %v3382_v45, 0.0  ;;  %v2358_v50 = vmul.f32 0.1, %v3382_v45  ;;  %2442 = vrot.lane.b32.xlu0 %v4346_v42, %s3520_s19  ;;  %vm4820_vm14 = vcmask 785408  }
 0x446   :  { %v2384_v51 = vmul.f32 %v2373_v21, %v2364_v49  ;;  %v2365_v52 = vsel %vm2349_vm0, %v3381_v29, %v2357_v47  ;;  %vm2351_vm15 = vcmp.ge.f32.partialorder %v3383_v48, 0.0  ;;  %v2359_v53 = vmul.f32 0.1, %v3383_v48 }
 0x447   :  { %v2385_v54 = vmul.f32 %v2377_v24, %v2365_v52  ;;  %v2366_v55 = vsel %vm2350_vm12, %v3382_v45, %v2358_v50  ;;  %vm4821_vm0 = vcmask 842752   ;;  %vm4822_vm12 = vcmask 891904  }
 0x448   :  { %v2386_v56 = vmul.f32 %v2373_v21, %v2366_v55  ;;  %v2367_v57 = vsel %vm2351_vm15, %v3383_v48, %v2359_v53  ;;  %2454 = vrot.lane.b32.xlu1 %v4344_v41, %s3521_s20  ;;  %vm4823_vm15 = vcmask 777216  }
 0x449   :  { %v2387_v58 = vmul.f32 %v2377_v24, %v2367_v57  ;;  %2456 = vrot.lane.b32.xlu0 %v4346_v42, %s3521_s20 }
 0x44a   :  { %v4356_v59 = vpack.c.bf16 %v2386_v56, %v2384_v51 }
 0x44b   :  { %v4358_v60 = vpack.c.bf16 %v2387_v58, %v2385_v54 }
 0x44c   :  { %2398 = vrot.lane.b32.xlu1 %v4344_v41, %s3517_s13 }
 0x44d   :  { %2400 = vrot.lane.b32.xlu0 %v4346_v42, %s3517_s13 }
 0x450   :  { %2468 = vrot.lane.b32.xlu1 %v4344_v41, %s3522_s21 }
 0x451   :  { %2470 = vrot.lane.b32.xlu0 %v4346_v42, %s3522_s21 }
 0x454   :  { %2412 = vrot.lane.b32.xlu1 %v4344_v41, %s3518_s18 }
 0x455   :  { %2414 = vrot.lane.b32.xlu0 %v4346_v42, %s3518_s18 }
 0x458   :  { %2482 = vrot.lane.b32.xlu1 %v4344_v41, %s3523_s22 }
 0x459   :  { %2484 = vrot.lane.b32.xlu0 %v4346_v42, %s3523_s22 }
 0x45c   :  { %2426 = vrot.lane.b32.xlu1 %v4344_v41, %s3519_s0 }
 0x45d   :  { %2428 = vrot.lane.b32.xlu0 %v4346_v42, %s3519_s0 }
 0x460   :  { %2552 = vrot.lane.b32.xlu1 %v4344_v41, %s3528_s29 }
 0x461   :  { %2554 = vrot.lane.b32.xlu0 %v4346_v42, %s3528_s29 }
 0x464   :  { %2496 = vrot.lane.b32.xlu1 %v4344_v41, %s3524_s25 }
 0x465   :  { %2498 = vrot.lane.b32.xlu0 %v4346_v42, %s3524_s25 }
 0x468   :  { %2664 = vrot.lane.b32.xlu1 %v4344_v41, %s4781_s16 }
 0x469   :  { %2666 = vrot.lane.b32.xlu0 %v4346_v42, %s4781_s16 }
 0x46c   :  { %2608 = vrot.lane.b32.xlu1 %v4344_v41, %s4777_s23 }
 0x46d   :  { %2610 = vrot.lane.b32.xlu0 %v4346_v42, %s4777_s23 }
 0x470   :  { %2566 = vrot.lane.b32.xlu1 %v4344_v41, %s4814_s4 }
 0x471   :  { %2568 = vrot.lane.b32.xlu0 %v4346_v42, %s4814_s4 }
 0x474   :  { %2510 = vrot.lane.b32.xlu1 %v4344_v41, %s4815_s6 }
 0x475   :  { %2512 = vrot.lane.b32.xlu0 %v4346_v42, %s4815_s6 }
 0x478   :  { %2678 = vrot.lane.b32.xlu1 %v4344_v41, %s4782_s17 }
 0x479   :  { %2680 = vrot.lane.b32.xlu0 %v4346_v42, %s4782_s17 }
 0x47c   :  { %2622 = vrot.lane.b32.xlu1 %v4344_v41, %s4778_s24 }
 0x47d   :  { %2624 = vrot.lane.b32.xlu0 %v4346_v42, %s4778_s24 }
 0x480   :  { %2580 = vrot.lane.b32.xlu1 %v4344_v41, %s4816_s3 }
 0x481   :  { %2582 = vrot.lane.b32.xlu0 %v4346_v42, %s4816_s3 }
 0x484   :  { %2524 = vrot.lane.b32.xlu1 %v4344_v41, %s4817_s5 }
 0x485   :  { %2526 = vrot.lane.b32.xlu0 %v4346_v42, %s4817_s5 }
 0x488   :  { %2692 = vrot.lane.b32.xlu1 %v4344_v41, %s4783_s1 }
 0x489   :  { %2694 = vrot.lane.b32.xlu0 %v4346_v42, %s4783_s1 }
 0x48c   :  { %2636 = vrot.lane.b32.xlu1 %v4344_v41, %s4779_s14 }
 0x48d   :  { %2638 = vrot.lane.b32.xlu0 %v4346_v42, %s4779_s14 }
 0x490   :  { %2594 = vrot.lane.b32.xlu1 %v4344_v41, %s4776_s12 }
 0x491   :  { %2596 = vrot.lane.b32.xlu0 %v4346_v42, %s4776_s12 }
 0x494   :  { %2538 = vrot.lane.b32.xlu1 %v4344_v41, %s4818_s26 }
 0x495   :  { %2540 = vrot.lane.b32.xlu0 %v4346_v42, %s4818_s26 }
 0x498   :  { %2706 = vrot.lane.b32.xlu1 %v4344_v41, %s4784_s2 }
 0x499   :  { %2708 = vrot.lane.b32.xlu0 %v4346_v42, %s4784_s2 }
 0x49c   :  { %2650 = vrot.lane.b32.xlu1 %v4344_v41, %s4780_s15 }
 0x49d   :  { %2652 = vrot.lane.b32.xlu0 %v4346_v42, %s4780_s15 }
 0x4a0   :  { %2444 = vrot.lane.b32.xlu1 %v4356_v59, %s3520_s19 }
 0x4a1   :  { %2446 = vrot.lane.b32.xlu0 %v4358_v60, %s3520_s19 }
 0x4a4   :  { %2458 = vrot.lane.b32.xlu1 %v4356_v59, %s3521_s20 }
 0x4a5   :  { %2460 = vrot.lane.b32.xlu0 %v4358_v60, %s3521_s20 }
 0x4a8   :  { %2402 = vrot.lane.b32.xlu1 %v4356_v59, %s3517_s13 }
 0x4a9   :  { %2404 = vrot.lane.b32.xlu0 %v4358_v60, %s3517_s13 }
 0x4ac   :  { %2472 = vrot.lane.b32.xlu1 %v4356_v59, %s3522_s21 }
 0x4ad   :  { %2474 = vrot.lane.b32.xlu0 %v4358_v60, %s3522_s21 }
 0x4b0   :  { %2416 = vrot.lane.b32.xlu1 %v4356_v59, %s3518_s18 }
 0x4b1   :  { %2418 = vrot.lane.b32.xlu0 %v4358_v60, %s3518_s18 }
 0x4b4   :  { %2486 = vrot.lane.b32.xlu1 %v4356_v59, %s3523_s22 }
 0x4b5   :  { %2488 = vrot.lane.b32.xlu0 %v4358_v60, %s3523_s22 }
 0x4b6   :  { %v2441_v62 = vpop.permute.xlu1 %2440 }
 0x4b7   :  { %v2443_v3 = vpop.permute.xlu0 %2442 }
 0x4b8   :  { %2430 = vrot.lane.b32.xlu1 %v4356_v59, %s3519_s0  ;;  %v2448_v18 = vsel %vm207_vm4, %v2441_v62, %v2443_v3  ;;  %v2802_v3 = vld [vmem:[%s4730_s8 + $0x10] sm:$0xff] }
 0x4b9   :  { %2432 = vrot.lane.b32.xlu0 %v4358_v60, %s3519_s0  ;;  %3264 = vmatprep.subr.bf16.mxu0 %v2448_v18  ;;  %v2803_v18 = vld [vmem:[%s4730_s8 + $0x18] sm:$0xff] }
 0x4ba   :  { %3265 = vmatpush3.bf16.msra.mxu0 %v4344_v41  ;;  %v2455_v63 = vpop.permute.xlu1 %2454 }
 0x4bb   :  { %v2457_v4 = vpop.permute.xlu0 %2456 }
 0x4bc   :  { %2556 = vrot.lane.b32.xlu1 %v4356_v59, %s3528_s29  ;;  %v4480_v5 = vsel %vm246_vm5, %v2455_v63, %v2457_v4 }
 0x4bd   :  { %2558 = vrot.lane.b32.xlu0 %v4358_v60, %s3528_s29 }
 0x4be   :  { %v2399_v34 = vpop.permute.xlu1 %2398 }
 0x4bf   :  { %v2401_v35 = vpop.permute.xlu0 %2400 }
 0x4c0   :  { %v4485_v6 = vsel %vm90_vm1, %v2399_v34, %v2401_v35  ;;  %2500 = vrot.lane.b32.xlu1 %v4356_v59, %s3524_s25 }
 0x4c1   :  { %2502 = vrot.lane.b32.xlu0 %v4358_v60, %s3524_s25 }
 0x4c2   :  { %v2469_v7 = vpop.permute.xlu1 %2468 }
 0x4c3   :  { %v2471_v8 = vpop.permute.xlu0 %2470 }
 0x4c4   :  { %2668 = vrot.lane.b32.xlu1 %v4356_v59, %s4781_s16  ;;  %v4494_v9 = vsel %vm285_vm6, %v2469_v7, %v2471_v8 }
 0x4c5   :  { %2670 = vrot.lane.b32.xlu0 %v4358_v60, %s4781_s16 }
 0x4c6   :  { %v2413_v10 = vpop.permute.xlu1 %2412 }
 0x4c7   :  { %v2415_v11 = vpop.permute.xlu0 %2414 }
 0x4c8   :  { %v4499_v12 = vsel %vm129_vm2, %v2413_v10, %v2415_v11  ;;  %2612 = vrot.lane.b32.xlu1 %v4356_v59, %s4777_s23 }
 0x4c9   :  { %2614 = vrot.lane.b32.xlu0 %v4358_v60, %s4777_s23 }
 0x4ca   :  { %v2483_v13 = vpop.permute.xlu1 %2482 }
 0x4cb   :  { %v2485_v14 = vpop.permute.xlu0 %2484 }
 0x4cc   :  { %2570 = vrot.lane.b32.xlu1 %v4356_v59, %s4814_s4  ;;  %v4508_v15 = vsel %vm324_vm7, %v2483_v13, %v2485_v14 }
 0x4cd   :  { %2572 = vrot.lane.b32.xlu0 %v4358_v60, %s4814_s4 }
 0x4ce   :  { %v2427_v16 = vpop.permute.xlu1 %2426 }
 0x4cf   :  { %v2429_v2 = vpop.permute.xlu0 %2428 }
 0x4d0   :  { %v4513_v17 = vsel %vm168_vm3, %v2427_v16, %v2429_v2  ;;  %2514 = vrot.lane.b32.xlu1 %v4356_v59, %s4815_s6 }
 0x4d1   :  { %2516 = vrot.lane.b32.xlu0 %v4358_v60, %s4815_s6 }
 0x4d2   :  { %v2553_v19 = vpop.permute.xlu1 %2552 }
 0x4d3   :  { %v2555_v20 = vpop.permute.xlu0 %2554 }
 0x4d4   :  { %2682 = vrot.lane.b32.xlu1 %v4356_v59, %s4782_s17  ;;  %v2560_v21 = vsel %vm4819_vm13, %v2553_v19, %v2555_v20  ;;  %vm4824_vm13 = vcmask 834560  }
 0x4d5   :  { %2684 = vrot.lane.b32.xlu0 %v4358_v60, %s4782_s17  ;;  %3292 = vmatprep.subr.bf16.mxu1 %v2560_v21 }
 0x4d6   :  { %v2497_v22 = vpop.permute.xlu1 %2496 }
 0x4d7   :  { %v2499_v23 = vpop.permute.xlu0 %2498 }
 0x4d8   :  { %v2504_v1 = vsel %vm363_vm8, %v2497_v22, %v2499_v23  ;;  %2626 = vrot.lane.b32.xlu1 %v4356_v59, %s4778_s24 }
 0x4d9   :  { %2628 = vrot.lane.b32.xlu0 %v4358_v60, %s4778_s24  ;;  %3293 = vmatpush3.bf16.msra.mxu1 %v2504_v1 }
 0x4da   :  { %v2665_v24 = vpop.permute.xlu1 %2664 }
 0x4db   :  { %v2667_v25 = vpop.permute.xlu0 %2666 }
 0x4dc   :  { %2584 = vrot.lane.b32.xlu1 %v4356_v59, %s4816_s3  ;;  %v4532_v26 = vsel %vm4820_vm14, %v2665_v24, %v2667_v25  ;;  %vm4825_vm14 = vcmask 883712  }
 0x4dd   :  { %2586 = vrot.lane.b32.xlu0 %v4358_v60, %s4816_s3 }
 0x4de   :  { %v2609_v27 = vpop.permute.xlu1 %2608 }
 0x4df   :  { %v2611_v0 = vpop.permute.xlu0 %2610 }
 0x4e0   :  { %v4537_v28 = vsel %vm4821_vm0, %v2609_v27, %v2611_v0  ;;  %2528 = vrot.lane.b32.xlu1 %v4356_v59, %s4817_s5  ;;  %vm4826_vm0 = vcmask 769024  }
 0x4e1   :  { %2530 = vrot.lane.b32.xlu0 %v4358_v60, %s4817_s5 }
 0x4e2   :  { %v2567_v30 = vpop.permute.xlu1 %2566 }
 0x4e3   :  { %v2569_v31 = vpop.permute.xlu0 %2568 }
 0x4e4   :  { %2696 = vrot.lane.b32.xlu1 %v4356_v59, %s4783_s1  ;;  %v4546_v32 = vsel %vm4822_vm12, %v2567_v30, %v2569_v31  ;;  %vm4827_vm12 = vcmask 826368  }
 0x4e5   :  { %2698 = vrot.lane.b32.xlu0 %v4358_v60, %s4783_s1 }
 0x4e6   :  { %v2511_v33 = vpop.permute.xlu1 %2510 }
 0x4e7   :  { %v2513_v37 = vpop.permute.xlu0 %2512 }
 0x4e8   :  { %v4554_v38 = vsel %vm402_vm9, %v2511_v33, %v2513_v37  ;;  %2640 = vrot.lane.b32.xlu1 %v4356_v59, %s4779_s14  ;;  %v3497_v33 = vld [vmem:[%s4729_s7] ss:$28 sps:$4 sm:$0xff]  }
 0x4e9   :  { %2642 = vrot.lane.b32.xlu0 %v4358_v60, %s4779_s14  ;;  %v3500_v37 = vld [vmem:[%s4729_s7 + $0x3c] ss:$28 sps:$4 sm:$0xff]  }
 0x4ea   :  { %v2679_v39 = vpop.permute.xlu1 %2678 }
 0x4eb   :  { %v2681_v40 = vpop.permute.xlu0 %2680 }
 0x4ec   :  { %2598 = vrot.lane.b32.xlu1 %v4356_v59, %s4776_s12  ;;  %v4563_v29 = vsel %vm4823_vm15, %v2679_v39, %v2681_v40  ;;  %vm4828_vm15 = vcmask 850944  }
 0x4ed   :  { %2600 = vrot.lane.b32.xlu0 %v4358_v60, %s4776_s12 }
 0x4ee   :  { %v2623_v43 = vpop.permute.xlu1 %2622 }
 0x4ef   :  { %v2625_v44 = vpop.permute.xlu0 %2624 }
 0x4f0   :  { %v4568_v45 = vsel %vm4824_vm13, %v2623_v43, %v2625_v44  ;;  %2542 = vrot.lane.b32.xlu1 %v4356_v59, %s4818_s26  ;;  %vm4829_vm13 = vcmask 760832   ;;  %v3502_v44 = vld [vmem:[%s4729_s7 + $0x38] ss:$28 sps:$4 sm:$0xff]  }
 0x4f1   :  { %2544 = vrot.lane.b32.xlu0 %v4358_v60, %s4818_s26 }
 0x4f2   :  { %v2581_v46 = vpop.permute.xlu1 %2580 }
 0x4f3   :  { %v2583_v47 = vpop.permute.xlu0 %2582 }
 0x4f4   :  { %2710 = vrot.lane.b32.xlu1 %v4356_v59, %s4784_s2  ;;  %v4577_v48 = vsel %vm4825_vm14, %v2581_v46, %v2583_v47  ;;  %vm4830_vm14 = vcmask 818176  }
 0x4f5   :  { %2712 = vrot.lane.b32.xlu0 %v4358_v60, %s4784_s2 }
 0x4f6   :  { %v2525_v49 = vpop.permute.xlu1 %2524 }
 0x4f7   :  { %v2527_v50 = vpop.permute.xlu0 %2526 }
 0x4f8   :  { %v4582_v51 = vsel %vm441_vm10, %v2525_v49, %v2527_v50  ;;  %2654 = vrot.lane.b32.xlu1 %v4356_v59, %s4780_s15 }
 0x4f9   :  { %2656 = vrot.lane.b32.xlu0 %v4358_v60, %s4780_s15 }
 0x4fa   :  { %v2693_v52 = vpop.permute.xlu1 %2692 }
 0x4fb   :  { %v2695_v53 = vpop.permute.xlu0 %2694 }
 0x4fc   :  { %2720 = vrot.lane.b32.xlu1 %v4344_v41, %s4785_s27  ;;  %v4591_v54 = vsel %vm4826_vm0, %v2693_v52, %v2695_v53  ;;  %v2800_v41 = vld [vmem:[%s4730_s8] sm:$0xff] }
 0x4fd   :  { %2722 = vrot.lane.b32.xlu0 %v4346_v42, %s4785_s27  ;;  %v2801_v42 = vld [vmem:[%s4730_s8 + $0x8] sm:$0xff] }
 0x4fe   :  { %v2637_v55 = vpop.permute.xlu1 %2636 }
 0x4ff   :  { %v2639_v56 = vpop.permute.xlu0 %2638 }
 0x500   :  { %v4596_v57 = vsel %vm4827_vm12, %v2637_v55, %v2639_v56  ;;  %2724 = vrot.lane.b32.xlu1 %v4356_v59, %s4785_s27 }
 0x501   :  { %2726 = vrot.lane.b32.xlu0 %v4358_v60, %s4785_s27 }
 0x502   :  { %v2595_v58 = vpop.permute.xlu1 %2594 }
 0x503   :  { %v2597_v61 = vpop.permute.xlu0 %2596 }
 0x504   :  { %2806 = vperm.xlu1 %3450, %v2800_v41   ;;  %v4609_v62 = vsel %vm4828_vm15, %v2595_v58, %v2597_v61 }
 0x505   :  { %2811 = vperm.xlu0 %3449, %v2801_v42  }
 0x506   :  { %v2539_v60 = vpop.permute.xlu1 %2538 }
 0x507   :  { %v2541_v63 = vpop.permute.xlu0 %2540 }
 0x508   :  { %v4618_v4 = vsel %vm480_vm11, %v2539_v60, %v2541_v63  ;;  %2816 = vperm.xlu1 %3450, %v2802_v3  }
 0x509   :  { %2821 = vperm.xlu0 %3449, %v2803_v18  }
 0x50a   :  { %v2707_v34 = vpop.permute.xlu1 %2706 }
 0x50b   :  { %v2709_v35 = vpop.permute.xlu0 %2708 }
 0x50c   :  { %v4621_v7 = vsel %vm4829_vm13, %v2707_v34, %v2709_v35 }
 0x50e   :  { %v2651_v8 = vpop.permute.xlu1 %2650 }
 0x50f   :  { %v2653_v10 = vpop.permute.xlu0 %2652 }
 0x510   :  { %v4624_v11 = vsel %vm4830_vm14, %v2651_v8, %v2653_v10 }
 0x512   :  { %v2445_v13 = vpop.permute.xlu1 %2444 }
 0x513   :  { %v2447_v14 = vpop.permute.xlu0 %2446 }
 0x514   :  { %v2449_v16 = vsel %vm207_vm4, %v2445_v13, %v2447_v14  ;;  %vm4834_vm4 = vcmask 891904  }
 0x515   :  { %3266 = vmatprep.subr.bf16.mxu0 %v2449_v16 }
 0x516   :  { %3267 = vmatpush3.bf16.msra.mxu0 %v4356_v59  ;;  %v2459_v2 = vpop.permute.xlu1 %2458 }
 0x517   :  { %v2461_v19 = vpop.permute.xlu0 %2460  ;;  %3268 = vmatprep.subr.bf16.mxu0 %v4480_v5 }
 0x518   :  { %v2463_v21 = vsel %vm246_vm5, %v2459_v2, %v2461_v19  ;;  %vm4835_vm5 = vcmask 777216  }
 0x51a   :  { %3269 = vmatpush3.bf16.msra.mxu0 %v4485_v6  ;;  %v2403_v20 = vpop.permute.xlu1 %2402 }
 0x51b   :  { %v2405_v22 = vpop.permute.xlu0 %2404  ;;  %3270 = vmatprep.subr.bf16.mxu0 %v2463_v21 }
 0x51c   :  { %v2407_v23 = vsel %vm90_vm1, %v2403_v20, %v2405_v22  ;;  %vm4831_vm1 = vcmask 900096  }
 0x51e   :  { %3271 = vmatpush3.bf16.msra.mxu0 %v2407_v23  ;;  %v2473_v1 = vpop.permute.xlu1 %2472 }
 0x51f   :  { %v2475_v24 = vpop.permute.xlu0 %2474  ;;  %3272 = vmatprep.subr.bf16.mxu0 %v4494_v9 }
 0x520   :  { %v2477_v25 = vsel %vm285_vm6, %v2473_v1, %v2475_v24  ;;  %vm4836_vm6 = vcmask 834560  }
 0x522   :  { %3273 = vmatpush3.bf16.msra.mxu0 %v4499_v12  ;;  %v2417_v59 = vpop.permute.xlu1 %2416 }
 0x523   :  { %v2419_v5 = vpop.permute.xlu0 %2418  ;;  %3274 = vmatprep.subr.bf16.mxu0 %v2477_v25  ;;  %v3511_v25 = vld [vmem:[%s4729_s7 + $0x40] ss:$28 sps:$4 sm:$0xff]  }
 0x524   :  { %v2421_v6 = vsel %vm129_vm2, %v2417_v59, %v2419_v5  ;;  %vm4832_vm2 = vcmask 785408   ;;  %v3508_v59 = vld [vmem:[%s4729_s7 + $0x10] ss:$28 sps:$4 sm:$0xff]  }
 0x525   :  { %v3512_v5 = vld [vmem:[%s4729_s7 + $0x4c] ss:$28 sps:$4 sm:$0xff]  }
 0x526   :  { %3275 = vmatpush3.bf16.msra.mxu0 %v2421_v6  ;;  %v2487_v27 = vpop.permute.xlu1 %2486 }
 0x527   :  { %v2489_v0 = vpop.permute.xlu0 %2488  ;;  %3276 = vmatprep.subr.bf16.mxu0 %v4508_v15 }
 0x528   :  { %v2491_v31 = vsel %vm324_vm7, %v2487_v27, %v2489_v0  ;;  %vm4837_vm7 = vcmask 883712   ;;  %v3515_v27 = vld [vmem:[%s4729_s7 + $0x18] ss:$28 sps:$4 sm:$0xff]  }
 0x52a   :  { %3277 = vmatpush3.bf16.msra.mxu0 %v4513_v17  ;;  %v2431_v30 = vpop.permute.xlu1 %2430 }
 0x52b   :  { %v2433_v9 = vpop.permute.xlu0 %2432  ;;  %3278 = vmatprep.subr.bf16.mxu0 %v2491_v31 }
 0x52c   :  { %v2435_v12 = vsel %vm168_vm3, %v2431_v30, %v2433_v9  ;;  %vm4833_vm3 = vcmask 842752  }
 0x52e   :  { %3279 = vmatpush3.bf16.msra.mxu0 %v2435_v12  ;;  %v2557_v36 = vpop.permute.xlu1 %2556 }
 0x52f   :  { %v2559_v15 = vpop.permute.xlu0 %2558  ;;  %3320 = vmatprep.subr.bf16.mxu0 %v4532_v26  ;;  %v3510_v26 = vld [vmem:[%s4729_s7 + $0x14] ss:$28 sps:$4 sm:$0xff]  }
 0x530   :  { %v2561_v17 = vsel %vm4831_vm1, %v2557_v36, %v2559_v15  ;;  %v3516_v36 = vld [vmem:[%s4729_s7 + $0x50] ss:$28 sps:$4 sm:$0xff]  }
 0x531   :  { %2933 = vmatmul.mubr.bf16.vlgmr.msra.gmra.mrb[8].mxu0 %v3497_v33  ;;  %3294 = vmatprep.subr.bf16.mxu1 %v2561_v17  ;;  %v3514_v33 = vld [vmem:[%s4729_s7 + $0x48] ss:$28 sps:$4 sm:$0xff]  }
 0x532   :  { %3321 = vmatpush3.bf16.msra.mxu0 %v4537_v28  ;;  %v2501_v39 = vpop.permute.xlu1 %2500  ;;  %2940 = vmatprep.mubr.bf16.mxu0 %v3500_v37 }
 0x533   :  { %v2503_v40 = vpop.permute.xlu0 %2502 }
 0x534   :  { %v2505_v43 = vsel %vm363_vm8, %v2501_v39, %v2503_v40  ;;  %vm4838_vm8 = vmmov %vm4826_vm0 }
 0x535   :  { %3295 = vmatpush3.bf16.msra.mxu1 %v2505_v43  ;;  %vm4841_vm0 = vmmov %vm4829_vm13 }
 0x536   :  { %3296 = vmatprep.subr.bf16.mxu1 %v4546_v32  ;;  %v2669_v46 = vpop.permute.xlu1 %2668 }
 0x537   :  { %v2671_v47 = vpop.permute.xlu0 %2670 }
 0x538   :  { %v2673_v28 = vsel %vm4832_vm2, %v2669_v46, %v2671_v47 }
 0x539   :  { %2941 = vmatmul.mubr.bf16.gmra.mrb[12].mxu0 %v3502_v44  ;;  %3297 = vmatpush3.bf16.msra.mxu1 %v4554_v38 }
 0x53a   :  { %3322 = vmatprep.subr.bf16.mxu0 %v2673_v28  ;;  %v2613_v49 = vpop.permute.xlu1 %2612  ;;  %3030 = vmatprep.mubr.bf16.mxu0 %v3510_v26 }
 0x53b   :  { %v2615_v50 = vpop.permute.xlu0 %2614 }
 0x53c   :  { %v2617_v52 = vsel %vm4833_vm3, %v2613_v49, %v2615_v50 }
 0x53d   :  { %3323 = vmatpush3.bf16.msra.mxu0 %v2617_v52 }
 0x53e   :  { %3324 = vmatprep.subr.bf16.mxu0 %v4563_v29  ;;  %v2571_v32 = vpop.permute.xlu1 %2570 }
 0x53f   :  { %v2573_v53 = vpop.permute.xlu0 %2572 }
 0x540   :  { %v2575_v55 = vsel %vm4834_vm4, %v2571_v32, %v2573_v53 }
 0x541   :  { %3298 = vmatprep.subr.bf16.mxu1 %v2575_v55  ;;  %3325 = vmatpush3.bf16.msra.mxu0 %v4568_v45 }
 0x542   :  { %v2515_v56 = vpop.permute.xlu1 %2514 }
 0x543   :  { %v2517_v41 = vpop.permute.xlu0 %2516 }
 0x544   :  { %v2519_v38 = vsel %vm402_vm9, %v2515_v56, %v2517_v41  ;;  %vm4839_vm9 = vmmov %vm4827_vm12 }
 0x545   :  { %3299 = vmatpush3.bf16.msra.mxu1 %v2519_v38  ;;  %vm4842_vm12 = vmmov %vm4830_vm14 }
 0x546   :  { %3300 = vmatprep.subr.bf16.mxu1 %v4577_v48  ;;  %v2683_v58 = vpop.permute.xlu1 %2682 }
 0x547   :  { %v2685_v42 = vpop.permute.xlu0 %2684 }
 0x548   :  { %v2687_v61 = vsel %vm4835_vm5, %v2683_v58, %v2685_v42 }
 0x549   :  { %3301 = vmatpush3.bf16.msra.mxu1 %v4582_v51  ;;  %3326 = vmatprep.subr.bf16.mxu0 %v2687_v61 }
 0x54a   :  { %v2627_v29 = vpop.permute.xlu1 %2626 }
 0x54b   :  { %v2629_v3 = vpop.permute.xlu0 %2628 }
 0x54c   :  { %v2631_v60 = vsel %vm4836_vm6, %v2627_v29, %v2629_v3 }
 0x54d   :  { %3327 = vmatpush3.bf16.msra.mxu0 %v2631_v60 }
 0x54e   :  { %3328 = vmatprep.subr.bf16.mxu0 %v4591_v54  ;;  %v2585_v45 = vpop.permute.xlu1 %2584 }
 0x54f   :  { %v2587_v18 = vpop.permute.xlu0 %2586 }
 0x550   :  { %v2589_v63 = vsel %vm4837_vm7, %v2585_v45, %v2587_v18 }
 0x551   :  { %3302 = vmatprep.subr.bf16.mxu1 %v2589_v63  ;;  %3329 = vmatpush3.bf16.msra.mxu0 %v4596_v57 }
 0x552   :  { %v2529_v48 = vpop.permute.xlu1 %2528 }
 0x553   :  { %v2531_v34 = vpop.permute.xlu0 %2530 }
 0x554   :  { %v2533_v35 = vsel %vm441_vm10, %v2529_v48, %v2531_v34  ;;  %vm4840_vm10 = vmmov %vm4828_vm15  ;;  %vm4844_vm15 = vcmask 261120  }
 0x555   :  { %3303 = vmatpush3.bf16.msra.mxu1 %v2533_v35  ;;  %vm4846_vm14 = vmmov %vm4844_vm15 }
 0x556   :  { %3304 = vmatprep.subr.bf16.mxu1 %v4609_v62  ;;  %v2697_v51 = vpop.permute.xlu1 %2696 }
 0x557   :  { %v2699_v8 = vpop.permute.xlu0 %2698 }
 0x558   :  { %v2701_v10 = vsel %vm4838_vm8, %v2697_v51, %v2699_v8 }
 0x559   :  { %3305 = vmatpush3.bf16.msra.mxu1 %v4618_v4  ;;  %3330 = vmatprep.subr.bf16.mxu0 %v2701_v10  ;;  %v3503_v4 = vld [vmem:[%s4729_s7 + $0x8] ss:$28 sps:$4 sm:$0xff]  }
 0x55a   :  { %v2641_v54 = vpop.permute.xlu1 %2640 }
 0x55b   :  { %v2643_v13 = vpop.permute.xlu0 %2642 }
 0x55c   :  { %v2645_v14 = vsel %vm4839_vm9, %v2641_v54, %v2643_v13 }
 0x55d   :  { %3331 = vmatpush3.bf16.msra.mxu0 %v2645_v14 }
 0x55e   :  { %3332 = vmatprep.subr.bf16.mxu0 %v4621_v7  ;;  %v2599_v57 = vpop.permute.xlu1 %2598  ;;  %v3506_v7 = vld [vmem:[%s4729_s7 + $0x44] ss:$28 sps:$4 sm:$0xff]  }
 0x55f   :  { %v2601_v16 = vpop.permute.xlu0 %2600 }
 0x560   :  { %v2603_v2 = vsel %vm4840_vm10, %v2599_v57, %v2601_v16 }
 0x561   :  { %3306 = vmatprep.subr.bf16.mxu1 %v2603_v2  ;;  %3333 = vmatpush3.bf16.msra.mxu0 %v4624_v11 }
 0x562   :  { %v2543_v62 = vpop.permute.xlu1 %2542 }
 0x563   :  { %v2545_v19 = vpop.permute.xlu0 %2544 }
 0x564   :  { %v2547_v20 = vsel %vm480_vm11, %v2543_v62, %v2545_v19  ;;  %vm4843_vm11 = vcmask 752640  }
 0x565   :  { %3307 = vmatpush3.bf16.msra.mxu1 %v2547_v20  ;;  %vm4845_vm13 = vmmov %vm4843_vm11 }
 0x566   :  { %v2711_v21 = vpop.permute.xlu1 %2710 }
 0x567   :  { %v2713_v22 = vpop.permute.xlu0 %2712 }
 0x568   :  { %2982 = vmatmul.mubr.bf16.vlgmr.msra.gmra.mrb[16].mxu1 %v3503_v4  ;;  %v2715_v23 = vsel %vm4841_vm0, %v2711_v21, %v2713_v22 }
 0x569   :  { %3334 = vmatprep.subr.bf16.mxu0 %v2715_v23  ;;  %2989 = vmatprep.mubr.bf16.mxu1 %v3506_v7 }
 0x56a   :  { %v2655_v11 = vpop.permute.xlu1 %2654 }
 0x56b   :  { %v2657_v1 = vpop.permute.xlu0 %2656 }
 0x56c   :  { %v2659_v24 = vsel %vm4842_vm12, %v2655_v11, %v2657_v1 }
 0x56d   :  { %3335 = vmatpush3.bf16.msra.mxu0 %v2659_v24 }
 0x56e   :  { %v2721_v6 = vpop.permute.xlu1 %2720 }
 0x56f   :  { %v2723_v0 = vpop.permute.xlu0 %2722 }
 0x570   :  { %2990 = vmatmul.mubr.bf16.gmra.mrb[20].mxu1 %v3511_v25  ;;  %3031 = vmatmul.mubr.bf16.vlgmr.msra.gmra.mrb[16].mxu0 %v3508_v59  ;;  %v2728_v30 = vsel %vm4843_vm11, %v2721_v6, %v2723_v0 }
 0x571   :  { %3352 = vmatprep.subr.bf16.mxu1 %v2728_v30  ;;  %3038 = vmatprep.mubr.bf16.mxu0 %v3512_v5 }
 0x572   :  { %3353 = vmatpush3.bf16.msra.mxu1 %v2728_v30  ;;  %v2725_v31 = vpop.permute.xlu1 %2724  ;;  %3356 = vmatprep.mubr.msk.bf16.mxu1 %vm4844_vm15, %v3515_v27 }
 0x573   :  { %v2727_v9 = vpop.permute.xlu0 %2726 }
 0x574   :  { %v2729_v12 = vsel %vm4845_vm13, %v2725_v31, %v2727_v9 }
 0x575   :  { %3354 = vmatprep.subr.bf16.mxu1 %v2729_v12 }
 0x576   :  { %3355 = vmatpush3.bf16.msra.mxu1 %v2729_v12 }
 0x578   :  { %3039 = vmatmul.mubr.bf16.gmra.mrb[20].mxu0 %v3514_v33 }
 0x579   :  { %3357 = vmatmul.mubr.msk.bf16.vlgmr.msra.gmra.mrb[24].mxu1 %vm4846_vm14, %v3516_v36 }
 0x583   :  { %v2807_v50 = vpop.permute.xlu1 %2806 }
 0x584   :  { %v2812_v32 = vpop.permute.xlu0 %2811 }
 0x587   :  { %v2817_v3 = vpop.permute.xlu1 %2816 }
 0x588   :  { %v2822_v60 = vpop.permute.xlu0 %2821 }
 0x604   :  { %v3280_v37 = vpop.f32.mrb[8].mxu0 }
 0x605   :  { %v3281_v15 = vpop.f32.mrb[9].mxu0 }
 0x606   :  { %v3282_v17 = vadd.f32 %v3281_v15, %v3280_v37  ;;  %v3283_v39 = vpop.f32.mrb[10].mxu0 }
 0x607   :  { %v3284_v40 = vpop.f32.mrb[11].mxu0 }
 0x608   :  { %v3285_v43 = vadd.f32 %v3284_v40, %v3283_v39  ;;  %v2935_v55 = vadd.f32 %v3282_v17, %v2807_v50 }
 0x60a   :  { %v2938_v58 = vadd.f32 %v3285_v43, %v2812_v32 }
 0x60c   :  { %v3286_v44 = vpop.f32.mrb[12].mxu0 }
 0x60d   :  { %v3287_v46 = vpop.f32.mrb[13].mxu0 }
 0x60e   :  { %v3288_v26 = vadd.f32 %v3287_v46, %v3286_v44  ;;  %v3289_v47 = vpop.f32.mrb[14].mxu0 }
 0x60f   :  { %v3290_v28 = vpop.f32.mrb[15].mxu0 }
 0x610   :  { %v3291_v49 = vadd.f32 %v3290_v28, %v3289_v47  ;;  %v2943_v34 = vadd.f32 %v3288_v26, %v2817_v3 }
 0x612   :  { %v2946_v54 = vadd.f32 %v3291_v49, %v2822_v60 }
 0x63b   :  { %v3308_v52 = vpop.f32.mrb[16].mxu1 }
 0x63c   :  { %v3309_v53 = vpop.f32.mrb[17].mxu1 }
 0x63d   :  { %v3310_v56 = vadd.f32 %v3309_v53, %v3308_v52  ;;  %v3311_v41 = vpop.f32.mrb[18].mxu1 }
 0x63e   :  { %v3312_v38 = vpop.f32.mrb[19].mxu1 }
 0x63f   :  { %v2984_v42 = vadd.f32 %v3310_v56, %v2935_v55  ;;  %v3313_v61 = vadd.f32 %v3312_v38, %v3311_v41 }
 0x641   :  { %v2987_v29 = vadd.f32 %v3313_v61, %v2938_v58 }
 0x643   :  { %v3314_v45 = vpop.f32.mrb[20].mxu1  ;;  %v3336_v18 = vpop.f32.mrb[16].mxu0 }
 0x644   :  { %v3315_v63 = vpop.f32.mrb[21].mxu1  ;;  %v3337_v48 = vpop.f32.mrb[17].mxu0 }
 0x645   :  { %v3316_v35 = vadd.f32 %v3315_v63, %v3314_v45  ;;  %v3338_v51 = vadd.f32 %v3337_v48, %v3336_v18  ;;  %v3317_v8 = vpop.f32.mrb[22].mxu1  ;;  %v3339_v10 = vpop.f32.mrb[18].mxu0 }
 0x646   :  { %v3318_v13 = vpop.f32.mrb[23].mxu1  ;;  %v3340_v14 = vpop.f32.mrb[19].mxu0 }
 0x647   :  { %v2992_v57 = vadd.f32 %v3316_v35, %v2943_v34  ;;  %v3319_v16 = vadd.f32 %v3318_v13, %v3317_v8  ;;  %v3341_v2 = vadd.f32 %v3340_v14, %v3339_v10  ;;  %v3033_v62 = vadd.f32 %v3338_v51, %v2984_v42 }
 0x649   :  { %v2995_v19 = vadd.f32 %v3319_v16, %v2946_v54  ;;  %v3036_v20 = vadd.f32 %v3341_v2, %v2987_v29 }
 0x64b   :  { %v3342_v4 = vpop.f32.mrb[20].mxu0 }
 0x64c   :  { %v3343_v7 = vpop.f32.mrb[21].mxu0  ;;  %v3358_v21 = vpop.f32.mrb[24].mxu1 }
 0x64d   :  { %v3344_v22 = vadd.f32 %v3343_v7, %v3342_v4  ;;  %v3345_v23 = vpop.f32.mrb[22].mxu0  ;;  %v3081_v11 = vpop.f32.mrb[25].mxu1 }
 0x64e   :  { %v3082_v1 = vadd.f32 %v3081_v11, %v3033_v62  ;;  %v3346_v24 = vpop.f32.mrb[23].mxu0  ;;  %v3359_v59 = vpop.f32.mrb[26].mxu1 }
 0x64f   :  { %v3041_v25 = vadd.f32 %v3344_v22, %v2992_v57  ;;  %v3347_v5 = vadd.f32 %v3346_v24, %v3345_v23  ;;  %v3084_v6 = vpop.f32.mrb[27].mxu1 }
 0x650   :  { %vm3096_vm1 = vcmp.ge.f32.partialorder %v3082_v1, 0.0  ;;  %v3100_v27 = vmul.f32 0.1, %v3082_v1  ;;  %v3085_v0 = vadd.f32 %v3084_v6, %v3036_v20 }
 0x651   :  { %v3090_v30 = vadd.f32 %v3358_v21, %v3041_v25  ;;  %v3044_v31 = vadd.f32 %v3347_v5, %v2995_v19 }
 0x652   :  { %v3104_v9 = vsel %vm3096_vm1, %v3082_v1, %v3100_v27  ;;  %vm3097_vm2 = vcmp.ge.f32.partialorder %v3085_v0, 0.0  ;;  %v3101_v12 = vmul.f32 0.1, %v3085_v0 }
 0x653   :  { %vm3098_vm3 = vcmp.ge.f32.partialorder %v3090_v30, 0.0  ;;  %v3102_v33 = vmul.f32 0.1, %v3090_v30  ;;  %3108 = vst [vmem:[%s4731_s9] sm:$0xff] %v3104_v9  ;;  %v3093_v36 = vadd.f32 %v3359_v59, %v3044_v31 }
 0x654   :  { %v3105_v37 = vsel %vm3097_vm2, %v3085_v0, %v3101_v12 }
 0x655   :  { %v3106_v15 = vsel %vm3098_vm3, %v3090_v30, %v3102_v33  ;;  %vm3099_vm4 = vcmp.ge.f32.partialorder %v3093_v36, 0.0  ;;  %v3103_v17 = vmul.f32 0.1, %v3093_v36  ;;  %3109 = vst [vmem:[%s4731_s9 + $0x8] sm:$0xff] %v3105_v37 }
 0x656   :  { %3110 = vst [vmem:[%s4731_s9 + $0x10] sm:$0xff] %v3106_v15 }
 0x657   :  { %v3107_v39 = vsel %vm3099_vm4, %v3093_v36, %v3103_v17 }
 0x658   :  { %3111 = vst [vmem:[%s4731_s9 + $0x18] sm:$0xff] %v3107_v39 }

// kernel: net_forward.11
= control target key start
LH: loop header
LB: loop body
LE: loop exit
PB: predicated region body
PF: predicated region fallthrough
CT: control target
= control target key end

     0   :  { %s860_s13 = smov 127   ;;  %s861_s20 = smov 126   ;;  %vm53_vm0 = vcmask 64512   ;;  %v867_v6 = vmov 1966171168   ;;  %v602_v8 = vlaneseq  ;;  %vm614_vm1 = vcmask 130048   ;;  %s1080_s0 = inlined_call_operand.vmem [shape: bf16[16,686], index: 0, kind: input, shape index: {}]   ;;  %s1081_s1 = inlined_call_operand.vmem [shape: bf16[2,144], index: 1, kind: input, shape index: {}]   ;;  %s1082_s2 = inlined_call_operand.vmem [shape: f32[2,648], index: 2, kind: output, shape index: {}]  }
   0x1   :  { %v851_v0 = vld [vmem:[%s1080_s0 + $0x4] ss:$24 sps:$4 sm:$0xff]   ;;  %v853_v1 = vld [vmem:[%s1080_s0] ss:$24 sps:$4 sm:$0xff]   ;;  %v904_v4 = vld [vmem:[%s1080_s0 + $0x10] ss:$24 sps:$4 sm:$0xff]   ;;  %v600_v7 = vunpack.c.l.s4 %v867_v6 }
   0x2   :  { %87 = vrot.lane.b32.xlu0 %v851_v0, %s860_s13  ;;  %v854_v2 = vld [vmem:[%s1080_s0 + $0x8] ss:$24 sps:$4 sm:$0xff]   ;;  %v898_v3 = vld [vmem:[%s1080_s0 + $0xc] ss:$24 sps:$4 sm:$0xff]   ;;  %618 = vmatprep.subr.bf16.mxu0 %v851_v0  ;;  %s862_s21 = smov 110   ;;  %s863_s22 = smov 109  }
   0x3   :  { %85 = vrot.lane.b32.xlu1 %v853_v1, %s860_s13  ;;  %619 = vmatpush1.bf16.msra.mxu0 %v853_v1  ;;  %s864_s23 = smov 108   ;;  %s865_s24 = smov 92   ;;  %v859_v5 = vld [vmem:[%s1080_s0 + $0x14] ss:$24 sps:$4 sm:$0xff]   ;;  %v601_v9 = vunpack.c.0.s8 %v600_v7  ;;  %v929_v10 = vshrl.u32 %v602_v8, 7  ;;  %vm97_vm2 = vcmask 1039360  }
   0x4   :  { %659 = vmatprep.subr.bf16.mxu1 %v898_v3  ;;  %s866_s27 = smov 91   ;;  %54 = vst.msk [vmem:[#allocation2 + $0x28] sm:$0xff] %vm53_vm0, %v859_v5  ;;  %v837_v11 = vld.sshfl [vmem:[%s1081_s1] sm:$0x11 pattern:$0x75316420] }
   0x5   :  { %660 = vmatpush1.bf16.msra.mxu1 %v854_v2  ;;  %v598_v12 = vcombine.high %v837_v11, %v837_v11  ;;  %v604_v13 = vsub.s32 %v601_v9, %v929_v10  ;;  %s868_s0 = smov 90   ;;  %vm157_vm3 = vcmask 1031168   ;;  %vm217_vm4 = vcmask 900096  }
   0x6   :  { %89 = vrot.lane.b32.xlu0 %v854_v2, %s860_s13  ;;  %vm277_vm5 = vcmask 891904   ;;  %vm337_vm6 = vcmask 883712   ;;  %vm397_vm7 = vcmask 752640   ;;  %vm457_vm8 = vcmask 744448  }
   0x7   :  { %147 = vrot.lane.b32.xlu1 %v851_v0, %s861_s20  ;;  %v937_v14 = vrot.slane %v598_v12, %v604_v13  ;;  %v939_v15 = vrot.slane %v837_v11, %v604_v13  ;;  %vm517_vm9 = vcmask 736256   ;;  %vm775_vm10 = vcmask 1041408  }
   0x8   :  { %vm776_vm11 = vcmask 60418  }
   0x9   :  { %838 = vmatprep.mubr.msk.bf16.mxu0 %vm614_vm1, %v937_v14  ;;  %839 = vmatprep.mubr.msk.bf16.mxu1 %vm614_vm1, %v937_v14  ;;  %vm777_vm12 = vmor %vm776_vm11, %vm775_vm10 }
   0xa   :  { %149 = vrot.lane.b32.xlu0 %v854_v2, %s861_s20 }
   0xb   :  { %145 = vrot.lane.b32.xlu1 %v853_v1, %s861_s20  ;;  %v541_v55 = vld [vmem:[#allocation2 + $0x28] sm:$0xff] }
   0xe   :  { %207 = vrot.lane.b32.xlu0 %v851_v0, %s862_s21 }
   0xf   :  { %209 = vrot.lane.b32.xlu1 %v854_v2, %s862_s21 }
  0x12   :  { %205 = vrot.lane.b32.xlu0 %v853_v1, %s862_s21 }
  0x13   :  { %267 = vrot.lane.b32.xlu1 %v851_v0, %s863_s22 }
  0x16   :  { %269 = vrot.lane.b32.xlu0 %v854_v2, %s863_s22 }
  0x17   :  { %265 = vrot.lane.b32.xlu1 %v853_v1, %s863_s22 }
  0x1a   :  { %327 = vrot.lane.b32.xlu0 %v851_v0, %s864_s23 }
  0x1b   :  { %329 = vrot.lane.b32.xlu1 %v854_v2, %s864_s23 }
  0x1e   :  { %325 = vrot.lane.b32.xlu0 %v853_v1, %s864_s23 }
  0x1f   :  { %387 = vrot.lane.b32.xlu1 %v851_v0, %s865_s24 }
  0x22   :  { %389 = vrot.lane.b32.xlu0 %v854_v2, %s865_s24 }
  0x23   :  { %385 = vrot.lane.b32.xlu1 %v853_v1, %s865_s24 }
  0x26   :  { %447 = vrot.lane.b32.xlu0 %v851_v0, %s866_s27 }
  0x27   :  { %449 = vrot.lane.b32.xlu1 %v854_v2, %s866_s27 }
  0x2a   :  { %445 = vrot.lane.b32.xlu0 %v853_v1, %s866_s27 }
  0x2b   :  { %507 = vrot.lane.b32.xlu1 %v851_v0, %s868_s0 }
  0x2e   :  { %509 = vrot.lane.b32.xlu0 %v854_v2, %s868_s0 }
  0x2f   :  { %505 = vrot.lane.b32.xlu1 %v853_v1, %s868_s0 }
  0x32   :  { %91 = vrot.lane.b32.xlu0 %v898_v3, %s860_s13 }
  0x33   :  { %93 = vrot.lane.b32.xlu1 %v904_v4, %s860_s13 }
  0x36   :  { %95 = vrot.lane.b32.xlu0 %v859_v5, %s860_s13 }
  0x37   :  { %151 = vrot.lane.b32.xlu1 %v898_v3, %s861_s20 }
  0x3a   :  { %153 = vrot.lane.b32.xlu0 %v904_v4, %s861_s20 }
  0x3b   :  { %155 = vrot.lane.b32.xlu1 %v859_v5, %s861_s20 }
  0x3e   :  { %211 = vrot.lane.b32.xlu0 %v898_v3, %s862_s21 }
  0x3f   :  { %213 = vrot.lane.b32.xlu1 %v904_v4, %s862_s21 }
  0x42   :  { %215 = vrot.lane.b32.xlu0 %v859_v5, %s862_s21 }
  0x43   :  { %271 = vrot.lane.b32.xlu1 %v898_v3, %s863_s22 }
  0x46   :  { %273 = vrot.lane.b32.xlu0 %v904_v4, %s863_s22 }
  0x47   :  { %275 = vrot.lane.b32.xlu1 %v859_v5, %s863_s22 }
  0x4a   :  { %331 = vrot.lane.b32.xlu0 %v898_v3, %s864_s23 }
  0x4b   :  { %333 = vrot.lane.b32.xlu1 %v904_v4, %s864_s23 }
  0x4e   :  { %335 = vrot.lane.b32.xlu0 %v859_v5, %s864_s23 }
  0x4f   :  { %391 = vrot.lane.b32.xlu1 %v898_v3, %s865_s24 }
  0x52   :  { %393 = vrot.lane.b32.xlu0 %v904_v4, %s865_s24 }
  0x53   :  { %395 = vrot.lane.b32.xlu1 %v859_v5, %s865_s24 }
  0x56   :  { %451 = vrot.lane.b32.xlu0 %v898_v3, %s866_s27 }
  0x57   :  { %453 = vrot.lane.b32.xlu1 %v904_v4, %s866_s27 }
  0x5a   :  { %455 = vrot.lane.b32.xlu0 %v859_v5, %s866_s27 }
  0x5b   :  { %511 = vrot.lane.b32.xlu1 %v898_v3, %s868_s0 }
  0x5e   :  { %513 = vrot.lane.b32.xlu0 %v904_v4, %s868_s0 }
  0x5f   :  { %515 = vrot.lane.b32.xlu1 %v859_v5, %s868_s0 }
  0x74   :  { %v88_v16 = vpop.permute.xlu0 %87 }
  0x75   :  { %v86_v17 = vpop.permute.xlu1 %85 }
  0x76   :  { %v98_v18 = vsel %vm97_vm2, %v86_v17, %v88_v16 }
  0x78   :  { %v988_v19 = vpop.permute.xlu0 %89 }
  0x79   :  { %v99_v20 = vsel %vm97_vm2, %v88_v16, %v988_v19  ;;  %v148_v21 = vpop.permute.xlu1 %147 }
  0x7a   :  { %620 = vmatprep.subr.bf16.mxu0 %v99_v20 }
  0x7b   :  { %621 = vmatpush1.bf16.msra.mxu0 %v98_v18 }
  0x7c   :  { %v992_v22 = vpop.permute.xlu0 %149 }
  0x7d   :  { %v159_v23 = vsel %vm157_vm3, %v148_v21, %v992_v22  ;;  %v146_v24 = vpop.permute.xlu1 %145 }
  0x7e   :  { %v158_v25 = vsel %vm157_vm3, %v146_v24, %v148_v21  ;;  %622 = vmatprep.subr.bf16.mxu0 %v159_v23 }
  0x7f   :  { %623 = vmatpush1.bf16.msra.mxu0 %v158_v25 }
  0x80   :  { %v208_v26 = vpop.permute.xlu0 %207 }
  0x81   :  { %v997_v27 = vpop.permute.xlu1 %209 }
  0x82   :  { %v219_v28 = vsel %vm217_vm4, %v208_v26, %v997_v27 }
  0x83   :  { %624 = vmatprep.subr.bf16.mxu0 %v219_v28 }
  0x84   :  { %v206_v29 = vpop.permute.xlu0 %205 }
  0x85   :  { %v218_v30 = vsel %vm217_vm4, %v206_v29, %v208_v26  ;;  %v268_v31 = vpop.permute.xlu1 %267 }
  0x86   :  { %625 = vmatpush1.bf16.msra.mxu0 %v218_v30 }
  0x88   :  { %v1002_v32 = vpop.permute.xlu0 %269 }
  0x89   :  { %v279_v33 = vsel %vm277_vm5, %v268_v31, %v1002_v32  ;;  %v266_v34 = vpop.permute.xlu1 %265 }
  0x8a   :  { %v278_v35 = vsel %vm277_vm5, %v266_v34, %v268_v31  ;;  %626 = vmatprep.subr.bf16.mxu0 %v279_v33 }
  0x8b   :  { %627 = vmatpush1.bf16.msra.mxu0 %v278_v35 }
  0x8c   :  { %v328_v36 = vpop.permute.xlu0 %327 }
  0x8d   :  { %v1007_v37 = vpop.permute.xlu1 %329 }
  0x8e   :  { %v339_v38 = vsel %vm337_vm6, %v328_v36, %v1007_v37 }
  0x8f   :  { %628 = vmatprep.subr.bf16.mxu0 %v339_v38 }
  0x90   :  { %v326_v39 = vpop.permute.xlu0 %325 }
  0x91   :  { %v338_v40 = vsel %vm337_vm6, %v326_v39, %v328_v36  ;;  %v388_v41 = vpop.permute.xlu1 %387 }
  0x92   :  { %629 = vmatpush1.bf16.msra.mxu0 %v338_v40 }
  0x94   :  { %v1012_v42 = vpop.permute.xlu0 %389 }
  0x95   :  { %v399_v43 = vsel %vm397_vm7, %v388_v41, %v1012_v42  ;;  %v386_v44 = vpop.permute.xlu1 %385 }
  0x96   :  { %v398_v45 = vsel %vm397_vm7, %v386_v44, %v388_v41  ;;  %630 = vmatprep.subr.bf16.mxu0 %v399_v43 }
  0x97   :  { %631 = vmatpush1.bf16.msra.mxu0 %v398_v45 }
  0x98   :  { %v448_v46 = vpop.permute.xlu0 %447 }
  0x99   :  { %v1017_v47 = vpop.permute.xlu1 %449 }
  0x9a   :  { %v459_v48 = vsel %vm457_vm8, %v448_v46, %v1017_v47 }
  0x9b   :  { %632 = vmatprep.subr.bf16.mxu0 %v459_v48 }
  0x9c   :  { %v446_v49 = vpop.permute.xlu0 %445 }
  0x9d   :  { %v458_v50 = vsel %vm457_vm8, %v446_v49, %v448_v46  ;;  %v508_v51 = vpop.permute.xlu1 %507 }
  0x9e   :  { %633 = vmatpush1.bf16.msra.mxu0 %v458_v50 }
  0xa0   :  { %v1022_v52 = vpop.permute.xlu0 %509 }
  0xa1   :  { %v519_v53 = vsel %vm517_vm9, %v508_v51, %v1022_v52  ;;  %v506_v54 = vpop.permute.xlu1 %505 }
  0xa2   :  { %v518_v56 = vsel %vm517_vm9, %v506_v54, %v508_v51  ;;  %634 = vmatprep.subr.bf16.mxu0 %v519_v53 }
  0xa3   :  { %635 = vmatpush1.bf16.msra.mxu0 %v518_v56  ;;  %v869_v56 = vmov 1983009808  }
  0xa4   :  { %v92_v57 = vpop.permute.xlu0 %91  ;;  %700 = vmatprep.subr.bf16.mxu0 %v541_v55 }
  0xa5   :  { %v100_v58 = vsel %vm97_vm2, %v988_v19, %v92_v57  ;;  %v94_v59 = vpop.permute.xlu1 %93 }
  0xa6   :  { %v101_v60 = vsel %vm97_vm2, %v92_v57, %v94_v59  ;;  %651 = vmatmul.mubr.bf16.vlgmr.msra.gmra.mrb[0].mxu0 %v939_v15  ;;  %v750_v57 = vunpack.c.l.s4 %v869_v56 }
  0xa7   :  { %661 = vmatprep.subr.bf16.mxu1 %v101_v60  ;;  %701 = vmatpush1.bf16.msra.mxu0 %v904_v4 }
  0xa8   :  { %v96_v61 = vpop.permute.xlu0 %95  ;;  %662 = vmatpush1.bf16.msra.mxu1 %v100_v58  ;;  %840 = vmatprep.mubr.msk.bf16.mxu0 %vm614_vm1, %v937_v14  ;;  %v751_v58 = vunpack.c.0.s8 %v750_v57 }
  0xa9   :  { %v102_v62 = vsel %vm97_vm2, %v94_v59, %v96_v61  ;;  %114 = vst.msk [vmem:[#allocation2 + $0x58] sm:$0xff] %vm53_vm0, %v96_v61  ;;  %v152_v63 = vpop.permute.xlu1 %151 }
  0xaa   :  { %v160_v0 = vsel %vm157_vm3, %v992_v22, %v152_v63  ;;  %v754_v59 = vsub.s32 %v751_v58, %v929_v10 }
  0xac   :  { %v154_v1 = vpop.permute.xlu0 %153 }
  0xad   :  { %v161_v2 = vsel %vm157_vm3, %v152_v63, %v154_v1  ;;  %v156_v3 = vpop.permute.xlu1 %155 }
  0xae   :  { %v162_v5 = vsel %vm157_vm3, %v154_v1, %v156_v3  ;;  %174 = vst.msk [vmem:[#allocation2 + $0x88] sm:$0xff] %vm53_vm0, %v156_v3  ;;  %663 = vmatprep.subr.bf16.mxu1 %v161_v2 }
  0xaf   :  { %664 = vmatpush1.bf16.msra.mxu1 %v160_v0 }
  0xb0   :  { %v212_v4 = vpop.permute.xlu0 %211  ;;  %v547_v6 = vld [vmem:[#allocation2 + $0x58] sm:$0xff] }
  0xb1   :  { %v220_v7 = vsel %vm217_vm4, %v997_v27, %v212_v4  ;;  %v214_v8 = vpop.permute.xlu1 %213  ;;  %702 = vmatprep.subr.bf16.mxu0 %v547_v6 }
  0xb2   :  { %v221_v9 = vsel %vm217_vm4, %v212_v4, %v214_v8  ;;  %703 = vmatpush1.bf16.msra.mxu0 %v102_v62 }
  0xb3   :  { %665 = vmatprep.subr.bf16.mxu1 %v221_v9 }
  0xb4   :  { %v216_v11 = vpop.permute.xlu0 %215  ;;  %666 = vmatpush1.bf16.msra.mxu1 %v220_v7 }
  0xb5   :  { %v222_v12 = vsel %vm217_vm4, %v214_v8, %v216_v11  ;;  %234 = vst.msk [vmem:[#allocation2 + $0xb8] sm:$0xff] %vm53_vm0, %v216_v11  ;;  %v272_v13 = vpop.permute.xlu1 %271  ;;  %v553_v14 = vld [vmem:[#allocation2 + $0x88] sm:$0xff] }
  0xb6   :  { %v280_v16 = vsel %vm277_vm5, %v1002_v32, %v272_v13  ;;  %704 = vmatprep.subr.bf16.mxu0 %v553_v14 }
  0xb7   :  { %705 = vmatpush1.bf16.msra.mxu0 %v162_v5 }
  0xb8   :  { %v274_v17 = vpop.permute.xlu0 %273 }
  0xb9   :  { %v281_v18 = vsel %vm277_vm5, %v272_v13, %v274_v17  ;;  %v276_v19 = vpop.permute.xlu1 %275 }
  0xba   :  { %v282_v20 = vsel %vm277_vm5, %v274_v17, %v276_v19  ;;  %294 = vst.msk [vmem:[#allocation2 + $0xe8] sm:$0xff] %vm53_vm0, %v276_v19  ;;  %667 = vmatprep.subr.bf16.mxu1 %v281_v18 }
  0xbb   :  { %668 = vmatpush1.bf16.msra.mxu1 %v280_v16 }
  0xbc   :  { %v332_v21 = vpop.permute.xlu0 %331  ;;  %v559_v22 = vld [vmem:[#allocation2 + $0xb8] sm:$0xff] }
  0xbd   :  { %v340_v23 = vsel %vm337_vm6, %v1007_v37, %v332_v21  ;;  %v334_v24 = vpop.permute.xlu1 %333  ;;  %706 = vmatprep.subr.bf16.mxu0 %v559_v22 }
  0xbe   :  { %v341_v25 = vsel %vm337_vm6, %v332_v21, %v334_v24  ;;  %707 = vmatpush1.bf16.msra.mxu0 %v222_v12 }
  0xbf   :  { %669 = vmatprep.subr.bf16.mxu1 %v341_v25 }
  0xc0   :  { %v336_v26 = vpop.permute.xlu0 %335  ;;  %670 = vmatpush1.bf16.msra.mxu1 %v340_v23 }
  0xc1   :  { %v342_v27 = vsel %vm337_vm6, %v334_v24, %v336_v26  ;;  %354 = vst.msk [vmem:[#allocation2 + $0x118] sm:$0xff] %vm53_vm0, %v336_v26  ;;  %v392_v28 = vpop.permute.xlu1 %391  ;;  %v565_v29 = vld [vmem:[#allocation2 + $0xe8] sm:$0xff] }
  0xc2   :  { %v400_v30 = vsel %vm397_vm7, %v1012_v42, %v392_v28  ;;  %708 = vmatprep.subr.bf16.mxu0 %v565_v29 }
  0xc3   :  { %709 = vmatpush1.bf16.msra.mxu0 %v282_v20 }
  0xc4   :  { %v394_v31 = vpop.permute.xlu0 %393 }
  0xc5   :  { %v401_v32 = vsel %vm397_vm7, %v392_v28, %v394_v31  ;;  %v396_v33 = vpop.permute.xlu1 %395 }
  0xc6   :  { %v402_v34 = vsel %vm397_vm7, %v394_v31, %v396_v33  ;;  %414 = vst.msk [vmem:[#allocation2 + $0x148] sm:$0xff] %vm53_vm0, %v396_v33  ;;  %671 = vmatprep.subr.bf16.mxu1 %v401_v32 }
  0xc7   :  { %672 = vmatpush1.bf16.msra.mxu1 %v400_v30 }
  0xc8   :  { %v452_v35 = vpop.permute.xlu0 %451  ;;  %v571_v36 = vld [vmem:[#allocation2 + $0x118] sm:$0xff] }
  0xc9   :  { %v460_v37 = vsel %vm457_vm8, %v1017_v47, %v452_v35  ;;  %v454_v38 = vpop.permute.xlu1 %453  ;;  %710 = vmatprep.subr.bf16.mxu0 %v571_v36 }
  0xca   :  { %v461_v39 = vsel %vm457_vm8, %v452_v35, %v454_v38  ;;  %711 = vmatpush1.bf16.msra.mxu0 %v342_v27 }
  0xcb   :  { %673 = vmatprep.subr.bf16.mxu1 %v461_v39 }
  0xcc   :  { %v456_v40 = vpop.permute.xlu0 %455  ;;  %674 = vmatpush1.bf16.msra.mxu1 %v460_v37 }
  0xcd   :  { %v462_v41 = vsel %vm457_vm8, %v454_v38, %v456_v40  ;;  %474 = vst.msk [vmem:[#allocation2 + $0x178] sm:$0xff] %vm53_vm0, %v456_v40  ;;  %v512_v42 = vpop.permute.xlu1 %511  ;;  %v577_v43 = vld [vmem:[#allocation2 + $0x148] sm:$0xff] }
  0xce   :  { %v520_v44 = vsel %vm517_vm9, %v1022_v52, %v512_v42  ;;  %712 = vmatprep.subr.bf16.mxu0 %v577_v43 }
  0xcf   :  { %713 = vmatpush1.bf16.msra.mxu0 %v402_v34 }
  0xd0   :  { %v514_v45 = vpop.permute.xlu0 %513 }
  0xd1   :  { %v521_v46 = vsel %vm517_vm9, %v512_v42, %v514_v45  ;;  %v516_v47 = vpop.permute.xlu1 %515 }
  0xd2   :  { %v522_v48 = vsel %vm517_vm9, %v514_v45, %v516_v47  ;;  %534 = vst.msk [vmem:[#allocation2 + $0x1a8] sm:$0xff] %vm53_vm0, %v516_v47  ;;  %675 = vmatprep.subr.bf16.mxu1 %v521_v46 }
  0xd3   :  { %676 = vmatpush1.bf16.msra.mxu1 %v520_v44 }
  0xd4   :  { %v583_v49 = vld [vmem:[#allocation2 + $0x178] sm:$0xff] }
  0xd5   :  { %714 = vmatprep.subr.bf16.mxu0 %v583_v49 }
  0xd6   :  { %715 = vmatpush1.bf16.msra.mxu0 %v462_v41  ;;  %692 = vmatmul.mubr.bf16.vlgmr.msra.gmra.mrb[0].mxu1 %v939_v15 }
  0xd9   :  { %v589_v50 = vld [vmem:[#allocation2 + $0x1a8] sm:$0xff] }
  0xda   :  { %716 = vmatprep.subr.bf16.mxu0 %v589_v50 }
  0xdb   :  { %717 = vmatpush1.bf16.msra.mxu0 %v522_v48 }
  0xde   :  { %733 = vmatmul.mubr.bf16.vlgmr.msra.gmra.mrb[4].mxu0 %v939_v15 }
 0x179   :  { %v652_v51 = vpop.f32.mrb[0].mxu0 }
 0x17a   :  { %v654_v52 = vpop.f32.mrb[1].mxu0 }
 0x17b   :  { %v747_v53 = vcombine.low %v652_v51, %v654_v52  ;;  %v656_v54 = vpop.f32.mrb[2].mxu0 }
 0x17c   :  { %v657_v55 = vpop.f32.mrb[3].mxu0 }
 0x17d   :  { %v755_v1 = vrot.slane %v747_v53, %v754_v59 }
 0x1a9   :  { %v693_v60 = vpop.f32.mrb[0].mxu1 }
 0x1aa   :  { %v695_v61 = vpop.f32.mrb[1].mxu1 }
 0x1ab   :  { %v748_v62 = vcombine.low %v693_v60, %v695_v61  ;;  %v697_v63 = vpop.f32.mrb[2].mxu1 }
 0x1ac   :  { %v698_v0 = vpop.f32.mrb[3].mxu1 }
 0x1ad   :  { %v762_v2 = vrot.slane %v748_v62, %v754_v59 }
 0x1af   :  { %v763_v3 = vcombine.low %v755_v1, %v762_v2 }
 0x1b1   :  { %v734_v5 = vpop.f32.mrb[4].mxu0  ;;  %774 = vst [vmem:[%s1082_s2] sm:$0xff] %v763_v3 }
 0x1b2   :  { %v736_v15 = vpop.f32.mrb[5].mxu0 }
 0x1b3   :  { %v764_v4 = vcombine.low %v734_v5, %v736_v15  ;;  %v738_v6 = vpop.f32.mrb[6].mxu0 }
 0x1b4   :  { %v739_v10 = vpop.f32.mrb[7].mxu0 }
 0x1b5   :  { %v771_v7 = vrot.slane %v764_v4, %v754_v59 }
 0x1b7   :  { %778 = vst.msk [vmem:[%s1082_s2 + $0x8] sm:$0xf] %vm777_vm12, %v771_v7 }

</bundles_post_ra>
